<compile_context>
chip_gen: v7x
topology: tpu7x:2x2x1
jax: 0.10.0
libtpu: 0.0.40
codegen_flags: <defaults>
</compile_context>

<pallas_src>
import math
from functools import partial

import jax
import jax.numpy as jnp
from jax.experimental import pallas as pl
from jax.experimental.pallas import tpu as pltpu


# ------------------------------ tiling helper ------------------------------

def _pick_lane_tile(M):
    """Largest lane tile that is a multiple of 128, divides M and keeps the
    grid >= 2 steps (both v7x TensorCores busy); otherwise one full block."""
    for t in (512, 256, 128):
        if M % t == 0 and M // t >= 2:
            return t
    return M


# ------------------------------ Pallas kernels ------------------------------

def _matmul_bias_kernel(w_ref, a_ref, bias_ref, o_ref):
    acc = jnp.dot(w_ref[...], a_ref[...], preferred_element_type=jnp.float32)
    o_ref[...] = acc + bias_ref[...]


def _matmul_bias_add_kernel(w_ref, a_ref, bias_ref, add_ref, o_ref):
    acc = jnp.dot(w_ref[...], a_ref[...], preferred_element_type=jnp.float32)
    o_ref[...] = acc + bias_ref[...] + add_ref[...]


def pallas_matmul_bias(wm, a, bias, add=None):
    """out(Cout, M) = wm(Cout, K) @ a(K, M) + bias[:, None]  (+ add).

    bf16 MXU operands, f32 accumulation / bias / fused residual add.
    The lane (last) dim is the big batch*spatial dim M -> dense stores."""
    cout, K = wm.shape
    _, M = a.shape
    wm = wm.astype(jnp.bfloat16)
    a = a.astype(jnp.bfloat16)
    bias2 = bias.reshape(cout, 1).astype(jnp.float32)

    TM = _pick_lane_tile(M)
    in_specs = [pl.BlockSpec((cout, K), lambda i: (0, 0)),
                pl.BlockSpec((K, TM), lambda i: (0, i)),
                pl.BlockSpec((cout, 1), lambda i: (0, 0))]
    args = [wm, a, bias2]
    kernel = _matmul_bias_kernel
    if add is not None:
        in_specs.append(pl.BlockSpec((cout, TM), lambda i: (0, i)))
        args.append(add.astype(jnp.float32))
        kernel = _matmul_bias_add_kernel

    return pl.pallas_call(
        kernel,
        out_shape=jax.ShapeDtypeStruct((cout, M), jnp.float32),
        grid=(M // TM,),
        in_specs=in_specs,
        out_specs=pl.BlockSpec((cout, TM), lambda i: (0, i)),
        compiler_params=pltpu.CompilerParams(dimension_semantics=("parallel",)),
    )(*args)


def _bn_relu6_kernel(x_ref, scale_ref, shift_ref, o_ref):
    y = x_ref[...] * scale_ref[...] + shift_ref[...]
    o_ref[...] = jnp.clip(y, 0.0, 6.0).astype(jnp.bfloat16)


def pallas_bn_relu6(x2d, scale, shift):
    """x2d: (C, M) channels-first; eval-BatchNorm affine + ReLU6.
    Math in f32, output bf16 (feeds the bf16 MXU path). Lane dim = M (dense)."""
    C, M = x2d.shape
    TM = _pick_lane_tile(M)
    return pl.pallas_call(
        _bn_relu6_kernel,
        out_shape=jax.ShapeDtypeStruct((C, M), jnp.bfloat16),
        grid=(M // TM,),
        in_specs=[pl.BlockSpec((C, TM), lambda i: (0, i)),
                  pl.BlockSpec((C, 1), lambda i: (0, 0)),
                  pl.BlockSpec((C, 1), lambda i: (0, 0))],
        out_specs=pl.BlockSpec((C, TM), lambda i: (0, i)),
        compiler_params=pltpu.CompilerParams(dimension_semantics=("parallel",)),
    )(x2d.astype(jnp.float32), scale.reshape(C, 1).astype(jnp.float32),
      shift.reshape(C, 1).astype(jnp.float32))


def _attn_kernel(q_ref, k_ref, v_ref, o_ref):
    q = q_ref[0]                                           # (Sq, dk) bf16
    k = k_ref[0]                                           # (dk, Sk) bf16
    v = v_ref[0]                                           # (dv, Sk) bf16
    s = jnp.dot(q, k, preferred_element_type=jnp.float32)  # (Sq, Sk) f32
    m = jnp.max(s, axis=-1, keepdims=True)
    p = jnp.exp(s - m)
    denom = jnp.sum(p, axis=-1, keepdims=True)
    p = p * pl.reciprocal(denom, approx=True)              # EUP, no VPU divide
    o = jax.lax.dot_general(v, p.astype(jnp.bfloat16),
                            (((1,), (1,)), ((), ())),
                            preferred_element_type=jnp.float32)  # (dv, Sq)
    o_ref[0] = o


def pallas_attention(qh, kh, vh):
    """qh: (BH, Sq, dk), kh: (BH, dk, Sk), vh: (BH, dv, Sk) -> (BH, dv, Sq)."""
    BH, Sq, dk = qh.shape
    _, dv, Sk = vh.shape
    return pl.pallas_call(
        _attn_kernel,
        out_shape=jax.ShapeDtypeStruct((BH, dv, Sq), jnp.float32),
        grid=(BH,),
        in_specs=[pl.BlockSpec((1, Sq, dk), lambda b: (b, 0, 0)),
                  pl.BlockSpec((1, dk, Sk), lambda b: (b, 0, 0)),
                  pl.BlockSpec((1, dv, Sk), lambda b: (b, 0, 0))],
        out_specs=pl.BlockSpec((1, dv, Sq), lambda b: (b, 0, 0)),
        compiler_params=pltpu.CompilerParams(dimension_semantics=("parallel",)),
    )(qh.astype(jnp.bfloat16), kh.astype(jnp.bfloat16), vh.astype(jnp.bfloat16))


# ------------------------------- JAX glue ops -------------------------------

def _im2col_cm(x, k, stride, pad):
    """x: (C, N, D, H, W) -> bf16 patches (k^3*C, N*Do*Ho*Wo), tap-major rows."""
    C, N, D, H, W = x.shape
    xb = x.astype(jnp.bfloat16)
    if pad:
        xb = jnp.pad(xb, ((0, 0), (0, 0), (pad, pad), (pad, pad), (pad, pad)))
    Dp, Hp, Wp = D + 2 * pad, H + 2 * pad, W + 2 * pad
    Do = (Dp - k) // stride + 1
    Ho = (Hp - k) // stride + 1
    Wo = (Wp - k) // stride + 1
    cols = []
    for kd in range(k):
        for kh in range(k):
            for kw in range(k):
                cols.append(xb[:, :, kd:kd + Do * stride:stride,
                                     kh:kh + Ho * stride:stride,
                                     kw:kw + Wo * stride:stride])
    a = jnp.concatenate(cols, axis=0).reshape(k * k * k * C, N * Do * Ho * Wo)
    return a, (Do, Ho, Wo)


def conv3d(x, p, stride=1, add=None):
    """PyTorch-equivalent Conv3d (padding=(k-1)//2) in channels-first layout.
    x: (Cin, N, D, H, W) -> (Cout, N, Do, Ho, Wo)."""
    w, b = p['w'], p['b']                      # w: (Cout, Cin, k, k, k)
    cout, cin, k = w.shape[0], w.shape[1], w.shape[2]
    N = x.shape[1]
    if k == 1:
        if stride != 1:
            x = x[:, :, ::stride, ::stride, ::stride]
        Do, Ho, Wo = x.shape[2:]
        a = x.reshape(cin, -1)
        wm = w.reshape(cout, cin)
    else:
        pad = (k - 1) // 2
        a, (Do, Ho, Wo) = _im2col_cm(x, k, stride, pad)
        wm = jnp.transpose(w, (0, 2, 3, 4, 1)).reshape(cout, k * k * k * cin)
    add2 = None if add is None else add.reshape(cout, -1)
    out = pallas_matmul_bias(wm, a, b, add=add2)
    return out.reshape(cout, N, Do, Ho, Wo)


def _shift_up(t, axis):
    """u[..., i, ...] = t[..., i+1, ...] with zero past the end."""
    sl = [slice(None)] * t.ndim
    sl[axis] = slice(1, None)
    padcfg = [(0, 0)] * t.ndim
    padcfg[axis] = (0, 1)
    return jnp.pad(t[tuple(sl)], padcfg)


# parity -> ((kernel_index, input_shift), ...) for ConvTranspose3d(3, 2, 1, op=1)
_PHASE_TAPS = {0: ((1, 0),), 1: ((2, 0), (0, 1))}


def conv_transpose3d(x, p):
    """PyTorch ConvTranspose3d(k=3, stride=2, padding=1, output_padding=1),
    phase-decomposed: 8 output parities, dense taps, no zero-stuffing.
    x: (Cin, N, D, H, W) -> (Cout, N, 2D, 2H, 2W)."""
    w, b = p['w'], p['b']                      # w: (Cin, Cout, 3, 3, 3)
    cin, cout = w.shape[0], w.shape[1]
    _, N, D, H, W = x.shape
    xb = x.astype(jnp.bfloat16)
    M = N * D * H * W
    slabs = []
    for pd in (0, 1):
        for ph in (0, 1):
            for pw in (0, 1):
                cols, wcols = [], []
                for kd, sd in _PHASE_TAPS[pd]:
                    for kh, sh in _PHASE_TAPS[ph]:
                        for kw, sw in _PHASE_TAPS[pw]:
                            t = xb
                            if sd:
                                t = _shift_up(t, 2)
                            if sh:
                                t = _shift_up(t, 3)
                            if sw:
                                t = _shift_up(t, 4)
                            cols.append(t)
                            wcols.append(w[:, :, kd, kh, kw])      # (Cin, Cout)
                a = jnp.concatenate(cols, axis=0).reshape(-1, M)    # (T*Cin, M)
                wm = jnp.concatenate(wcols, axis=0).T               # (Cout, T*Cin)
                o = pallas_matmul_bias(wm, a, b)                    # (Cout, M)
                slabs.append(o.reshape(cout, N, D, H, W))
    s = jnp.stack(slabs, axis=0).reshape(2, 2, 2, cout, N, D, H, W)
    return jnp.transpose(s, (3, 4, 5, 0, 6, 1, 7, 2)).reshape(
        cout, N, 2 * D, 2 * H, 2 * W)


def bn_relu6(x, bn):
    scale = bn['gamma'] / jnp.sqrt(bn['var'] + 1e-5)
    shift = bn['beta'] - bn['mean'] * scale
    C = x.shape[0]
    y = pallas_bn_relu6(x.reshape(C, -1), scale, shift)
    return y.reshape(x.shape)


# ------------------------------ Network blocks ------------------------------

def multihead_attention_3d(x, p, num_heads, layer_type, add=None):
    _, N, D, H, W = x.shape
    if layer_type == 'UP':
        q = conv_transpose3d(x, p['q'])
    else:
        q = conv3d(x, p['q'])
    k = conv3d(x, p['k'])
    v = conv3d(x, p['v'])
    Kf, Vf = q.shape[0], v.shape[0]
    dk, dv = Kf // num_heads, Vf // num_heads
    Dq, Hq, Wq = q.shape[2:]
    Sq, Sk = Dq * Hq * Wq, D * H * W

    # split channels into heads; q rows (Sq, dk) for QK^T, k/v stay channels-first
    # so the PV product writes lane-dense (dv, Sq).
    qh = (q.reshape(num_heads, dk, N, Sq).transpose(2, 0, 3, 1)
            .reshape(N * num_heads, Sq, dk)) * (dk ** -0.5)
    kh = (k.reshape(num_heads, dk, N, Sk).transpose(2, 0, 1, 3)
            .reshape(N * num_heads, dk, Sk))
    vh = (v.reshape(num_heads, dv, N, Sk).transpose(2, 0, 1, 3)
            .reshape(N * num_heads, dv, Sk))
    oh = pallas_attention(qh, kh, vh)                       # (BH, dv, Sq)
    o = (oh.reshape(N, num_heads, dv, Sq).transpose(1, 2, 0, 3)
           .reshape(Vf, N, Dq, Hq, Wq))
    # output 1x1 conv with the block shortcut fused as matmul epilogue.
    return conv3d(o, p['out'], add=add)


def residual_block(x, p, stride):
    shortcut = x
    if p.get('proj') is not None:
        shortcut = conv3d(x, p['proj'], stride=stride)
    h = bn_relu6(x, p['bn1'])
    h = conv3d(h, p['conv1'], stride=stride)
    h = bn_relu6(h, p['bn2'])
    return conv3d(h, p['conv2'], stride=1, add=shortcut)    # fused residual add


def encoding_block_layer(x, p, stride):
    x = residual_block(x, p['rb1'], stride)
    x = residual_block(x, p['rb2'], 1)
    return x


def attention_block(x, p, strides):
    shortcut = x
    h = bn_relu6(x, p['bn'])
    if p.get('proj') is not None:
        shortcut = conv_transpose3d(shortcut, p['proj'])
    layer_type = 'UP' if strides != 1 else 'SAME'
    return multihead_attention_3d(h, p['mha'], num_heads=1,
                                  layer_type=layer_type, add=shortcut)


def att_decoding_block_layer(x, skip, p, strides):
    skip = conv_transpose3d(skip, p['proj'])
    x = attention_block(x, p['attn'], strides)
    x = x + skip
    return residual_block(x, p['res1'], 1)


def network_forward(x_ncdhw, params):
    # NCDHW -> channels-first flat (C, N, D, H, W): lane dim = N*D*H*W everywhere.
    x = jnp.transpose(x_ncdhw, (1, 0, 2, 3, 4)).astype(jnp.float32)
    x = conv3d(x, params['input_block'])
    x = encoding_block_layer(x, params['down1'], 2)
    skip1 = x
    x = encoding_block_layer(x, params['down2'], 2)
    skip2 = x
    x = bn_relu6(x, params['bn_mid'])
    x = multihead_attention_3d(x, params['bottom'], num_heads=2,
                               layer_type='SAME', add=skip2)   # fused "+= skip"
    x = att_decoding_block_layer(x, skip2, params['up1'], 2)
    x = att_decoding_block_layer(x, skip1, params['up2'], 2)
    x = bn_relu6(x, params['out_bn'])
    # Dropout(0.5): identity in eval mode.
    x = conv3d(x, params['out_conv'])
    return jnp.transpose(x, (1, 0, 2, 3, 4))   # back to NCDHW


# --------------------------- deterministic params ---------------------------

class _KeyGen:
    def __init__(self, seed):
        self._key = jax.random.PRNGKey(seed)

    def __call__(self):
        self._key, sub = jax.random.split(self._key)
        return sub


def _conv_params(kg, cin, cout, k):
    fan_in = cin * k ** 3
    return {'w': jax.random.normal(kg(), (cout, cin, k, k, k), jnp.float32) / math.sqrt(fan_in),
            'b': 0.01 * jax.random.normal(kg(), (cout,), jnp.float32)}


def _convT_params(kg, cin, cout, k=3):
    fan_in = cin * k ** 3
    return {'w': jax.random.normal(kg(), (cin, cout, k, k, k), jnp.float32) / math.sqrt(fan_in),
            'b': 0.01 * jax.random.normal(kg(), (cout,), jnp.float32)}


def _bn_params(kg, c):
    return {'gamma': 1.0 + 0.1 * jax.random.normal(kg(), (c,), jnp.float32),
            'beta': 0.1 * jax.random.normal(kg(), (c,), jnp.float32),
            'mean': jnp.zeros((c,), jnp.float32),
            'var': jnp.ones((c,), jnp.float32)}


def _residual_params(kg, cin, cout, with_proj):
    return {'bn1': _bn_params(kg, cin),
            'conv1': _conv_params(kg, cin, cout, 3),
            'bn2': _bn_params(kg, cout),
            'conv2': _conv_params(kg, cout, cout, 3),
            'proj': _conv_params(kg, cin, cout, 1) if with_proj else None}


def _mha_params(kg, cin, keyf, valf, outf, layer_type):
    q = _convT_params(kg, cin, keyf) if layer_type == 'UP' else _conv_params(kg, cin, keyf, 1)
    return {'q': q,
            'k': _conv_params(kg, cin, keyf, 1),
            'v': _conv_params(kg, cin, valf, 1),
            'out': _conv_params(kg, valf, outf, 1)}


def _encoding_params(kg, cin, cout):
    return {'rb1': _residual_params(kg, cin, cout, True),
            'rb2': _residual_params(kg, cout, cout, False)}


def _att_decoding_params(kg, cin, filters):
    return {'proj': _convT_params(kg, cin, filters),
            'attn': {'bn': _bn_params(kg, filters),
                     'proj': _convT_params(kg, filters, filters),
                     'mha': _mha_params(kg, filters, filters, filters, filters, 'UP')},
            'res1': _residual_params(kg, filters, filters, False)}


def init_network_params(seed, in_channels, num_classes, num_filters):
    kg = _KeyGen(seed)
    F = num_filters
    return {
        'input_block': _conv_params(kg, in_channels, F, 3),
        'down1': _encoding_params(kg, F, 2 * F),
        'down2': _encoding_params(kg, 2 * F, 4 * F),
        'bn_mid': _bn_params(kg, 4 * F),
        'bottom': _mha_params(kg, 4 * F, 4 * F, 4 * F, 4 * F, 'SAME'),
        'up1': _att_decoding_params(kg, 4 * F, 4 * F),
        'up2': _att_decoding_params(kg, 2 * F, 4 * F),
        'out_bn': _bn_params(kg, 4 * F),
        'out_conv': _conv_params(kg, 4 * F, num_classes, 1),
    }


# ---------------------------------- main ------------------------------------

if __name__ == "__main__":
    in_channels, num_classes, num_filters = 1, 2, 4
    params = init_network_params(42, in_channels, num_classes, num_filters)

    x = jax.random.normal(jax.random.PRNGKey(0), (2, in_channels, 8, 8, 8), jnp.float32)

    fwd = jax.jit(partial(network_forward, params=params))
    out = jax.block_until_ready(fwd(x))

    assert out.shape == (2, num_classes, 8, 8, 8), out.shape
    assert bool(jnp.all(jnp.isfinite(out)))
    print("KERNEL_OK")
</pallas_src>

<mosaic_0001>
module attributes {stable_mosaic.version = 11 : i64} {
  func.func @_matmul_bias_kernel(%arg0: i32, %arg1: memref<4x27xbf16, #tpu.memory_space<vmem>>, %arg2: memref<27x512xbf16, #tpu.memory_space<vmem>>, %arg3: memref<4x1xf32, #tpu.memory_space<vmem>>, %arg4: memref<4x512xf32, #tpu.memory_space<vmem>>) attributes {dimension_semantics = [#tpu.dimension_semantics<parallel>], iteration_bounds = array<i64: 2>, scalar_prefetch = 0 : i64, scratch_operands = 0 : i64, tpu.core_type = #tpu.core_type<tc>, window_params = [{pipeline_mode = #tpu.pipeline_mode<synchronous>, transform_indices = @transform_0, window_bounds = array<i64: 4, 27>}, {transform_indices = @transform_1, window_bounds = array<i64: 27, 512>}, {pipeline_mode = #tpu.pipeline_mode<synchronous>, transform_indices = @transform_2, window_bounds = array<i64: 4, 1>}, {transform_indices = @transform_3, window_bounds = array<i64: 4, 512>}]} {
    %c0 = arith.constant 0 : index
    %c0_0 = arith.constant 0 : index
    %0 = vector.load %arg1[%c0, %c0_0] : memref<4x27xbf16, #tpu.memory_space<vmem>>, vector<4x27xbf16>
    %c0_1 = arith.constant 0 : index
    %c0_2 = arith.constant 0 : index
    %1 = vector.load %arg2[%c0_1, %c0_2] : memref<27x512xbf16, #tpu.memory_space<vmem>>, vector<27x512xbf16>
    %cst = arith.constant dense<0.000000e+00> : vector<4x512xf32>
    %2 = tpu.matmul %0, %1, %cst {dimension_numbers = #tpu.dot_dimension_numbers<[1], [0], [0], [1], [0, 0, 1, 1], [], []>} : vector<4x27xbf16>, vector<27x512xbf16>, vector<4x512xf32> -> vector<4x512xf32>
    %c0_3 = arith.constant 0 : index
    %c0_4 = arith.constant 0 : index
    %3 = vector.load %arg3[%c0_3, %c0_4] : memref<4x1xf32, #tpu.memory_space<vmem>>, vector<4x1xf32>
    %4 = vector.broadcast %3 : vector<4x1xf32> to vector<4x512xf32>
    %5 = arith.addf %2, %4 : vector<4x512xf32>
    %c0_5 = arith.constant 0 : index
    %c0_6 = arith.constant 0 : index
    %6 = vector.load %arg4[%c0_5, %c0_6] : memref<4x512xf32, #tpu.memory_space<vmem>>, vector<4x512xf32>
    tpu.vector_store %arg4[%c0_5, %c0_6], %5 {strides = array<i32>} : memref<4x512xf32, #tpu.memory_space<vmem>>, vector<4x512xf32>,
    return
  }
  func.func @transform_0(%arg0: i32) -> (i32, i32) {
    %c0_i32 = arith.constant 0 : i32
    %c0_i32_0 = arith.constant 0 : i32
    %c0_i32_1 = arith.constant 0 : i32
    return %c0_i32, %c0_i32_0 : i32, i32
  }
  func.func @transform_1(%arg0: i32) -> (i32, i32) {
    %c0_i32 = arith.constant 0 : i32
    %c0_i32_0 = arith.constant 0 : i32
    return %c0_i32, %arg0 : i32, i32
  }
  func.func @transform_2(%arg0: i32) -> (i32, i32) {
    %c0_i32 = arith.constant 0 : i32
    %c0_i32_0 = arith.constant 0 : i32
    %c0_i32_1 = arith.constant 0 : i32
    return %c0_i32, %c0_i32_0 : i32, i32
  }
  func.func @transform_3(%arg0: i32) -> (i32, i32) {
    %c0_i32 = arith.constant 0 : i32
    %c0_i32_0 = arith.constant 0 : i32
    return %c0_i32, %arg0 : i32, i32
  }
}

module attributes {stable_mosaic.version = 11 : i64} {
  func.func @_bn_relu6_kernel(%arg0: i32, %arg1: memref<4x512xf32, #tpu.memory_space<vmem>>, %arg2: memref<4x1xf32, #tpu.memory_space<vmem>>, %arg3: memref<4x1xf32, #tpu.memory_space<vmem>>, %arg4: memref<4x512xbf16, #tpu.memory_space<vmem>>) attributes {dimension_semantics = [#tpu.dimension_semantics<parallel>], iteration_bounds = array<i64: 2>, scalar_prefetch = 0 : i64, scratch_operands = 0 : i64, tpu.core_type = #tpu.core_type<tc>, window_params = [{transform_indices = @transform_0, window_bounds = array<i64: 4, 512>}, {pipeline_mode = #tpu.pipeline_mode<synchronous>, transform_indices = @transform_1, window_bounds = array<i64: 4, 1>}, {pipeline_mode = #tpu.pipeline_mode<synchronous>, transform_indices = @transform_2, window_bounds = array<i64: 4, 1>}, {transform_indices = @transform_3, window_bounds = array<i64: 4, 512>}]} {
    %c0 = arith.constant 0 : index
    %c0_0 = arith.constant 0 : index
    %0 = vector.load %arg1[%c0, %c0_0] : memref<4x512xf32, #tpu.memory_space<vmem>>, vector<4x512xf32>
    %c0_1 = arith.constant 0 : index
    %c0_2 = arith.constant 0 : index
    %1 = vector.load %arg2[%c0_1, %c0_2] : memref<4x1xf32, #tpu.memory_space<vmem>>, vector<4x1xf32>
    %2 = vector.broadcast %1 : vector<4x1xf32> to vector<4x512xf32>
    %3 = arith.mulf %0, %2 : vector<4x512xf32>
    %c0_3 = arith.constant 0 : index
    %c0_4 = arith.constant 0 : index
    %4 = vector.load %arg3[%c0_3, %c0_4] : memref<4x1xf32, #tpu.memory_space<vmem>>, vector<4x1xf32>
    %5 = vector.broadcast %4 : vector<4x1xf32> to vector<4x512xf32>
    %6 = arith.addf %3, %5 : vector<4x512xf32>
    %cst = arith.constant 0.000000e+00 : f32
    %cst_5 = arith.constant 6.000000e+00 : f32
    %7 = vector.broadcast %cst : f32 to vector<4x512xf32>
    %8 = arith.maximumf %7, %6 : vector<4x512xf32>
    %9 = vector.broadcast %cst_5 : f32 to vector<4x512xf32>
    %10 = arith.minimumf %9, %8 : vector<4x512xf32>
    %11 = arith.truncf %10 : vector<4x512xf32> to vector<4x512xbf16>
    %c0_6 = arith.constant 0 : index
    %c0_7 = arith.constant 0 : index
    %12 = vector.load %arg4[%c0_6, %c0_7] : memref<4x512xbf16, #tpu.memory_space<vmem>>, vector<4x512xbf16>
    tpu.vector_store %arg4[%c0_6, %c0_7], %11 {strides = array<i32>} : memref<4x512xbf16, #tpu.memory_space<vmem>>, vector<4x512xbf16>,
    return
  }
  func.func @transform_0(%arg0: i32) -> (i32, i32) {
    %c0_i32 = arith.constant 0 : i32
    %c0_i32_0 = arith.constant 0 : i32
    return %c0_i32, %arg0 : i32, i32
  }
  func.func @transform_1(%arg0: i32) -> (i32, i32) {
    %c0_i32 = arith.constant 0 : i32
    %c0_i32_0 = arith.constant 0 : i32
    %c0_i32_1 = arith.constant 0 : i32
    return %c0_i32, %c0_i32_0 : i32, i32
  }
  func.func @transform_2(%arg0: i32) -> (i32, i32) {
    %c0_i32 = arith.constant 0 : i32
    %c0_i32_0 = arith.constant 0 : i32
    %c0_i32_1 = arith.constant 0 : i32
    return %c0_i32, %c0_i32_0 : i32, i32
  }
  func.func @transform_3(%arg0: i32) -> (i32, i32) {
    %c0_i32 = arith.constant 0 : i32
    %c0_i32_0 = arith.constant 0 : i32
    return %c0_i32, %arg0 : i32, i32
  }
}

module attributes {stable_mosaic.version = 11 : i64} {
  func.func @_matmul_bias_kernel(%arg0: i32, %arg1: memref<8x4xbf16, #tpu.memory_space<vmem>>, %arg2: memref<4x128xbf16, #tpu.memory_space<vmem>>, %arg3: memref<8x1xf32, #tpu.memory_space<vmem>>, %arg4: memref<8x128xf32, #tpu.memory_space<vmem>>) attributes {dimension_semantics = [#tpu.dimension_semantics<parallel>], iteration_bounds = array<i64: 1>, scalar_prefetch = 0 : i64, scratch_operands = 0 : i64, tpu.core_type = #tpu.core_type<tc>, window_params = [{pipeline_mode = #tpu.pipeline_mode<synchronous>, transform_indices = @transform_0, window_bounds = array<i64: 8, 4>}, {transform_indices = @transform_1, window_bounds = array<i64: 4, 128>}, {pipeline_mode = #tpu.pipeline_mode<synchronous>, transform_indices = @transform_2, window_bounds = array<i64: 8, 1>}, {transform_indices = @transform_3, window_bounds = array<i64: 8, 128>}]} {
    %c0 = arith.constant 0 : index
    %c0_0 = arith.constant 0 : index
    %0 = vector.load %arg1[%c0, %c0_0] : memref<8x4xbf16, #tpu.memory_space<vmem>>, vector<8x4xbf16>
    %c0_1 = arith.constant 0 : index
    %c0_2 = arith.constant 0 : index
    %1 = vector.load %arg2[%c0_1, %c0_2] : memref<4x128xbf16, #tpu.memory_space<vmem>>, vector<4x128xbf16>
    %cst = arith.constant dense<0.000000e+00> : vector<8x128xf32>
    %2 = tpu.matmul %0, %1, %cst {dimension_numbers = #tpu.dot_dimension_numbers<[1], [0], [0], [1], [0, 0, 1, 1], [], []>} : vector<8x4xbf16>, vector<4x128xbf16>, vector<8x128xf32> -> vector<8x128xf32>
    %c0_3 = arith.constant 0 : index
    %c0_4 = arith.constant 0 : index
    %3 = vector.load %arg3[%c0_3, %c0_4] : memref<8x1xf32, #tpu.memory_space<vmem>>, vector<8x1xf32>
    %4 = vector.broadcast %3 : vector<8x1xf32> to vector<8x128xf32>
    %5 = arith.addf %2, %4 : vector<8x128xf32>
    %c0_5 = arith.constant 0 : index
    %c0_6 = arith.constant 0 : index
    %6 = vector.load %arg4[%c0_5, %c0_6] : memref<8x128xf32, #tpu.memory_space<vmem>>, vector<8x128xf32>
    tpu.vector_store %arg4[%c0_5, %c0_6], %5 {strides = array<i32>} : memref<8x128xf32, #tpu.memory_space<vmem>>, vector<8x128xf32>,
    return
  }
  func.func @transform_0(%arg0: i32) -> (i32, i32) {
    %c0_i32 = arith.constant 0 : i32
    %c0_i32_0 = arith.constant 0 : i32
    %c0_i32_1 = arith.constant 0 : i32
    return %c0_i32, %c0_i32_0 : i32, i32
  }
  func.func @transform_1(%arg0: i32) -> (i32, i32) {
    %c0_i32 = arith.constant 0 : i32
    %c0_i32_0 = arith.constant 0 : i32
    return %c0_i32, %arg0 : i32, i32
  }
  func.func @transform_2(%arg0: i32) -> (i32, i32) {
    %c0_i32 = arith.constant 0 : i32
    %c0_i32_0 = arith.constant 0 : i32
    %c0_i32_1 = arith.constant 0 : i32
    return %c0_i32, %c0_i32_0 : i32, i32
  }
  func.func @transform_3(%arg0: i32) -> (i32, i32) {
    %c0_i32 = arith.constant 0 : i32
    %c0_i32_0 = arith.constant 0 : i32
    return %c0_i32, %arg0 : i32, i32
  }
}

module attributes {stable_mosaic.version = 11 : i64} {
  func.func @_bn_relu6_kernel(%arg0: i32, %arg1: memref<8x128xf32, #tpu.memory_space<vmem>>, %arg2: memref<8x1xf32, #tpu.memory_space<vmem>>, %arg3: memref<8x1xf32, #tpu.memory_space<vmem>>, %arg4: memref<8x128xbf16, #tpu.memory_space<vmem>>) attributes {dimension_semantics = [#tpu.dimension_semantics<parallel>], iteration_bounds = array<i64: 1>, scalar_prefetch = 0 : i64, scratch_operands = 0 : i64, tpu.core_type = #tpu.core_type<tc>, window_params = [{transform_indices = @transform_0, window_bounds = array<i64: 8, 128>}, {pipeline_mode = #tpu.pipeline_mode<synchronous>, transform_indices = @transform_1, window_bounds = array<i64: 8, 1>}, {pipeline_mode = #tpu.pipeline_mode<synchronous>, transform_indices = @transform_2, window_bounds = array<i64: 8, 1>}, {transform_indices = @transform_3, window_bounds = array<i64: 8, 128>}]} {
    %c0 = arith.constant 0 : index
    %c0_0 = arith.constant 0 : index
    %0 = vector.load %arg1[%c0, %c0_0] : memref<8x128xf32, #tpu.memory_space<vmem>>, vector<8x128xf32>
    %c0_1 = arith.constant 0 : index
    %c0_2 = arith.constant 0 : index
    %1 = vector.load %arg2[%c0_1, %c0_2] : memref<8x1xf32, #tpu.memory_space<vmem>>, vector<8x1xf32>
    %2 = vector.broadcast %1 : vector<8x1xf32> to vector<8x128xf32>
    %3 = arith.mulf %0, %2 : vector<8x128xf32>
    %c0_3 = arith.constant 0 : index
    %c0_4 = arith.constant 0 : index
    %4 = vector.load %arg3[%c0_3, %c0_4] : memref<8x1xf32, #tpu.memory_space<vmem>>, vector<8x1xf32>
    %5 = vector.broadcast %4 : vector<8x1xf32> to vector<8x128xf32>
    %6 = arith.addf %3, %5 : vector<8x128xf32>
    %cst = arith.constant 0.000000e+00 : f32
    %cst_5 = arith.constant 6.000000e+00 : f32
    %7 = vector.broadcast %cst : f32 to vector<8x128xf32>
    %8 = arith.maximumf %7, %6 : vector<8x128xf32>
    %9 = vector.broadcast %cst_5 : f32 to vector<8x128xf32>
    %10 = arith.minimumf %9, %8 : vector<8x128xf32>
    %11 = arith.truncf %10 : vector<8x128xf32> to vector<8x128xbf16>
    %c0_6 = arith.constant 0 : index
    %c0_7 = arith.constant 0 : index
    %12 = vector.load %arg4[%c0_6, %c0_7] : memref<8x128xbf16, #tpu.memory_space<vmem>>, vector<8x128xbf16>
    tpu.vector_store %arg4[%c0_6, %c0_7], %11 {strides = array<i32>} : memref<8x128xbf16, #tpu.memory_space<vmem>>, vector<8x128xbf16>,
    return
  }
  func.func @transform_0(%arg0: i32) -> (i32, i32) {
    %c0_i32 = arith.constant 0 : i32
    %c0_i32_0 = arith.constant 0 : i32
    return %c0_i32, %arg0 : i32, i32
  }
  func.func @transform_1(%arg0: i32) -> (i32, i32) {
    %c0_i32 = arith.constant 0 : i32
    %c0_i32_0 = arith.constant 0 : i32
    %c0_i32_1 = arith.constant 0 : i32
    return %c0_i32, %c0_i32_0 : i32, i32
  }
  func.func @transform_2(%arg0: i32) -> (i32, i32) {
    %c0_i32 = arith.constant 0 : i32
    %c0_i32_0 = arith.constant 0 : i32
    %c0_i32_1 = arith.constant 0 : i32
    return %c0_i32, %c0_i32_0 : i32, i32
  }
  func.func @transform_3(%arg0: i32) -> (i32, i32) {
    %c0_i32 = arith.constant 0 : i32
    %c0_i32_0 = arith.constant 0 : i32
    return %c0_i32, %arg0 : i32, i32
  }
}

module attributes {stable_mosaic.version = 11 : i64} {
  func.func @_matmul_bias_kernel(%arg0: i32, %arg1: memref<8x108xbf16, #tpu.memory_space<vmem>>, %arg2: memref<108x128xbf16, #tpu.memory_space<vmem>>, %arg3: memref<8x1xf32, #tpu.memory_space<vmem>>, %arg4: memref<8x128xf32, #tpu.memory_space<vmem>>) attributes {dimension_semantics = [#tpu.dimension_semantics<parallel>], iteration_bounds = array<i64: 1>, scalar_prefetch = 0 : i64, scratch_operands = 0 : i64, tpu.core_type = #tpu.core_type<tc>, window_params = [{pipeline_mode = #tpu.pipeline_mode<synchronous>, transform_indices = @transform_0, window_bounds = array<i64: 8, 108>}, {transform_indices = @transform_1, window_bounds = array<i64: 108, 128>}, {pipeline_mode = #tpu.pipeline_mode<synchronous>, transform_indices = @transform_2, window_bounds = array<i64: 8, 1>}, {transform_indices = @transform_3, window_bounds = array<i64: 8, 128>}]} {
    %c0 = arith.constant 0 : index
    %c0_0 = arith.constant 0 : index
    %0 = vector.load %arg1[%c0, %c0_0] : memref<8x108xbf16, #tpu.memory_space<vmem>>, vector<8x108xbf16>
    %c0_1 = arith.constant 0 : index
    %c0_2 = arith.constant 0 : index
    %1 = vector.load %arg2[%c0_1, %c0_2] : memref<108x128xbf16, #tpu.memory_space<vmem>>, vector<108x128xbf16>
    %cst = arith.constant dense<0.000000e+00> : vector<8x128xf32>
    %2 = tpu.matmul %0, %1, %cst {dimension_numbers = #tpu.dot_dimension_numbers<[1], [0], [0], [1], [0, 0, 1, 1], [], []>} : vector<8x108xbf16>, vector<108x128xbf16>, vector<8x128xf32> -> vector<8x128xf32>
    %c0_3 = arith.constant 0 : index
    %c0_4 = arith.constant 0 : index
    %3 = vector.load %arg3[%c0_3, %c0_4] : memref<8x1xf32, #tpu.memory_space<vmem>>, vector<8x1xf32>
    %4 = vector.broadcast %3 : vector<8x1xf32> to vector<8x128xf32>
    %5 = arith.addf %2, %4 : vector<8x128xf32>
    %c0_5 = arith.constant 0 : index
    %c0_6 = arith.constant 0 : index
    %6 = vector.load %arg4[%c0_5, %c0_6] : memref<8x128xf32, #tpu.memory_space<vmem>>, vector<8x128xf32>
    tpu.vector_store %arg4[%c0_5, %c0_6], %5 {strides = array<i32>} : memref<8x128xf32, #tpu.memory_space<vmem>>, vector<8x128xf32>,
    return
  }
  func.func @transform_0(%arg0: i32) -> (i32, i32) {
    %c0_i32 = arith.constant 0 : i32
    %c0_i32_0 = arith.constant 0 : i32
    %c0_i32_1 = arith.constant 0 : i32
    return %c0_i32, %c0_i32_0 : i32, i32
  }
  func.func @transform_1(%arg0: i32) -> (i32, i32) {
    %c0_i32 = arith.constant 0 : i32
    %c0_i32_0 = arith.constant 0 : i32
    return %c0_i32, %arg0 : i32, i32
  }
  func.func @transform_2(%arg0: i32) -> (i32, i32) {
    %c0_i32 = arith.constant 0 : i32
    %c0_i32_0 = arith.constant 0 : i32
    %c0_i32_1 = arith.constant 0 : i32
    return %c0_i32, %c0_i32_0 : i32, i32
  }
  func.func @transform_3(%arg0: i32) -> (i32, i32) {
    %c0_i32 = arith.constant 0 : i32
    %c0_i32_0 = arith.constant 0 : i32
    return %c0_i32, %arg0 : i32, i32
  }
}

module attributes {stable_mosaic.version = 11 : i64} {
  func.func @_matmul_bias_kernel(%arg0: i32, %arg1: memref<8x216xbf16, #tpu.memory_space<vmem>>, %arg2: memref<216x128xbf16, #tpu.memory_space<vmem>>, %arg3: memref<8x1xf32, #tpu.memory_space<vmem>>, %arg4: memref<8x128xf32, #tpu.memory_space<vmem>>) attributes {dimension_semantics = [#tpu.dimension_semantics<parallel>], iteration_bounds = array<i64: 1>, scalar_prefetch = 0 : i64, scratch_operands = 0 : i64, tpu.core_type = #tpu.core_type<tc>, window_params = [{pipeline_mode = #tpu.pipeline_mode<synchronous>, transform_indices = @transform_0, window_bounds = array<i64: 8, 216>}, {transform_indices = @transform_1, window_bounds = array<i64: 216, 128>}, {pipeline_mode = #tpu.pipeline_mode<synchronous>, transform_indices = @transform_2, window_bounds = array<i64: 8, 1>}, {transform_indices = @transform_3, window_bounds = array<i64: 8, 128>}]} {
    %c0 = arith.constant 0 : index
    %c0_0 = arith.constant 0 : index
    %0 = vector.load %arg1[%c0, %c0_0] : memref<8x216xbf16, #tpu.memory_space<vmem>>, vector<8x216xbf16>
    %c0_1 = arith.constant 0 : index
    %c0_2 = arith.constant 0 : index
    %1 = vector.load %arg2[%c0_1, %c0_2] : memref<216x128xbf16, #tpu.memory_space<vmem>>, vector<216x128xbf16>
    %cst = arith.constant dense<0.000000e+00> : vector<8x128xf32>
    %2 = tpu.matmul %0, %1, %cst {dimension_numbers = #tpu.dot_dimension_numbers<[1], [0], [0], [1], [0, 0, 1, 1], [], []>} : vector<8x216xbf16>, vector<216x128xbf16>, vector<8x128xf32> -> vector<8x128xf32>
    %c0_3 = arith.constant 0 : index
    %c0_4 = arith.constant 0 : index
    %3 = vector.load %arg3[%c0_3, %c0_4] : memref<8x1xf32, #tpu.memory_space<vmem>>, vector<8x1xf32>
    %4 = vector.broadcast %3 : vector<8x1xf32> to vector<8x128xf32>
    %5 = arith.addf %2, %4 : vector<8x128xf32>
    %c0_5 = arith.constant 0 : index
    %c0_6 = arith.constant 0 : index
    %6 = vector.load %arg4[%c0_5, %c0_6] : memref<8x128xf32, #tpu.memory_space<vmem>>, vector<8x128xf32>
    tpu.vector_store %arg4[%c0_5, %c0_6], %5 {strides = array<i32>} : memref<8x128xf32, #tpu.memory_space<vmem>>, vector<8x128xf32>,
    return
  }
  func.func @transform_0(%arg0: i32) -> (i32, i32) {
    %c0_i32 = arith.constant 0 : i32
    %c0_i32_0 = arith.constant 0 : i32
    %c0_i32_1 = arith.constant 0 : i32
    return %c0_i32, %c0_i32_0 : i32, i32
  }
  func.func @transform_1(%arg0: i32) -> (i32, i32) {
    %c0_i32 = arith.constant 0 : i32
    %c0_i32_0 = arith.constant 0 : i32
    return %c0_i32, %arg0 : i32, i32
  }
  func.func @transform_2(%arg0: i32) -> (i32, i32) {
    %c0_i32 = arith.constant 0 : i32
    %c0_i32_0 = arith.constant 0 : i32
    %c0_i32_1 = arith.constant 0 : i32
    return %c0_i32, %c0_i32_0 : i32, i32
  }
  func.func @transform_3(%arg0: i32) -> (i32, i32) {
    %c0_i32 = arith.constant 0 : i32
    %c0_i32_0 = arith.constant 0 : i32
    return %c0_i32, %arg0 : i32, i32
  }
}

module attributes {stable_mosaic.version = 11 : i64} {
  func.func @_matmul_bias_add_kernel(%arg0: i32, %arg1: memref<8x216xbf16, #tpu.memory_space<vmem>>, %arg2: memref<216x128xbf16, #tpu.memory_space<vmem>>, %arg3: memref<8x1xf32, #tpu.memory_space<vmem>>, %arg4: memref<8x128xf32, #tpu.memory_space<vmem>>, %arg5: memref<8x128xf32, #tpu.memory_space<vmem>>) attributes {dimension_semantics = [#tpu.dimension_semantics<parallel>], iteration_bounds = array<i64: 1>, scalar_prefetch = 0 : i64, scratch_operands = 0 : i64, tpu.core_type = #tpu.core_type<tc>, window_params = [{pipeline_mode = #tpu.pipeline_mode<synchronous>, transform_indices = @transform_0, window_bounds = array<i64: 8, 216>}, {transform_indices = @transform_1, window_bounds = array<i64: 216, 128>}, {pipeline_mode = #tpu.pipeline_mode<synchronous>, transform_indices = @transform_2, window_bounds = array<i64: 8, 1>}, {transform_indices = @transform_3, window_bounds = array<i64: 8, 128>}, {transform_indices = @transform_4, window_bounds = array<i64: 8, 128>}]} {
    %c0 = arith.constant 0 : index
    %c0_0 = arith.constant 0 : index
    %0 = vector.load %arg1[%c0, %c0_0] : memref<8x216xbf16, #tpu.memory_space<vmem>>, vector<8x216xbf16>
    %c0_1 = arith.constant 0 : index
    %c0_2 = arith.constant 0 : index
    %1 = vector.load %arg2[%c0_1, %c0_2] : memref<216x128xbf16, #tpu.memory_space<vmem>>, vector<216x128xbf16>
    %cst = arith.constant dense<0.000000e+00> : vector<8x128xf32>
    %2 = tpu.matmul %0, %1, %cst {dimension_numbers = #tpu.dot_dimension_numbers<[1], [0], [0], [1], [0, 0, 1, 1], [], []>} : vector<8x216xbf16>, vector<216x128xbf16>, vector<8x128xf32> -> vector<8x128xf32>
    %c0_3 = arith.constant 0 : index
    %c0_4 = arith.constant 0 : index
    %3 = vector.load %arg3[%c0_3, %c0_4] : memref<8x1xf32, #tpu.memory_space<vmem>>, vector<8x1xf32>
    %4 = vector.broadcast %3 : vector<8x1xf32> to vector<8x128xf32>
    %5 = arith.addf %2, %4 : vector<8x128xf32>
    %c0_5 = arith.constant 0 : index
    %c0_6 = arith.constant 0 : index
    %6 = vector.load %arg4[%c0_5, %c0_6] : memref<8x128xf32, #tpu.memory_space<vmem>>, vector<8x128xf32>
    %7 = arith.addf %5, %6 : vector<8x128xf32>
    %c0_7 = arith.constant 0 : index
    %c0_8 = arith.constant 0 : index
    %8 = vector.load %arg5[%c0_7, %c0_8] : memref<8x128xf32, #tpu.memory_space<vmem>>, vector<8x128xf32>
    tpu.vector_store %arg5[%c0_7, %c0_8], %7 {strides = array<i32>} : memref<8x128xf32, #tpu.memory_space<vmem>>, vector<8x128xf32>,
    return
  }
  func.func @transform_0(%arg0: i32) -> (i32, i32) {
    %c0_i32 = arith.constant 0 : i32
    %c0_i32_0 = arith.constant 0 : i32
    %c0_i32_1 = arith.constant 0 : i32
    return %c0_i32, %c0_i32_0 : i32, i32
  }
  func.func @transform_1(%arg0: i32) -> (i32, i32) {
    %c0_i32 = arith.constant 0 : i32
    %c0_i32_0 = arith.constant 0 : i32
    return %c0_i32, %arg0 : i32, i32
  }
  func.func @transform_2(%arg0: i32) -> (i32, i32) {
    %c0_i32 = arith.constant 0 : i32
    %c0_i32_0 = arith.constant 0 : i32
    %c0_i32_1 = arith.constant 0 : i32
    return %c0_i32, %c0_i32_0 : i32, i32
  }
  func.func @transform_3(%arg0: i32) -> (i32, i32) {
    %c0_i32 = arith.constant 0 : i32
    %c0_i32_0 = arith.constant 0 : i32
    return %c0_i32, %arg0 : i32, i32
  }
  func.func @transform_4(%arg0: i32) -> (i32, i32) {
    %c0_i32 = arith.constant 0 : i32
    %c0_i32_0 = arith.constant 0 : i32
    return %c0_i32, %arg0 : i32, i32
  }
}

module attributes {stable_mosaic.version = 11 : i64} {
  func.func @_matmul_bias_kernel(%arg0: i32, %arg1: memref<16x8xbf16, #tpu.memory_space<vmem>>, %arg2: memref<8x128xbf16, #tpu.memory_space<vmem>>, %arg3: memref<16x1xf32, #tpu.memory_space<vmem>>, %arg4: memref<16x128xf32, #tpu.memory_space<vmem>>) attributes {dimension_semantics = [#tpu.dimension_semantics<parallel>], iteration_bounds = array<i64: 1>, scalar_prefetch = 0 : i64, scratch_operands = 0 : i64, tpu.core_type = #tpu.core_type<tc>, window_params = [{pipeline_mode = #tpu.pipeline_mode<synchronous>, transform_indices = @transform_0, window_bounds = array<i64: 16, 8>}, {transform_indices = @transform_1, window_bounds = array<i64: 8, 128>}, {pipeline_mode = #tpu.pipeline_mode<synchronous>, transform_indices = @transform_2, window_bounds = array<i64: 16, 1>}, {transform_indices = @transform_3, window_bounds = array<i64: 16, 128>}]} {
    %c0 = arith.constant 0 : index
    %c0_0 = arith.constant 0 : index
    %0 = vector.load %arg1[%c0, %c0_0] : memref<16x8xbf16, #tpu.memory_space<vmem>>, vector<16x8xbf16>
    %c0_1 = arith.constant 0 : index
    %c0_2 = arith.constant 0 : index
    %1 = vector.load %arg2[%c0_1, %c0_2] : memref<8x128xbf16, #tpu.memory_space<vmem>>, vector<8x128xbf16>
    %cst = arith.constant dense<0.000000e+00> : vector<16x128xf32>
    %2 = tpu.matmul %0, %1, %cst {dimension_numbers = #tpu.dot_dimension_numbers<[1], [0], [0], [1], [0, 0, 1, 1], [], []>} : vector<16x8xbf16>, vector<8x128xbf16>, vector<16x128xf32> -> vector<16x128xf32>
    %c0_3 = arith.constant 0 : index
    %c0_4 = arith.constant 0 : index
    %3 = vector.load %arg3[%c0_3, %c0_4] : memref<16x1xf32, #tpu.memory_space<vmem>>, vector<16x1xf32>
    %4 = vector.broadcast %3 : vector<16x1xf32> to vector<16x128xf32>
    %5 = arith.addf %2, %4 : vector<16x128xf32>
    %c0_5 = arith.constant 0 : index
    %c0_6 = arith.constant 0 : index
    %6 = vector.load %arg4[%c0_5, %c0_6] : memref<16x128xf32, #tpu.memory_space<vmem>>, vector<16x128xf32>
    tpu.vector_store %arg4[%c0_5, %c0_6], %5 {strides = array<i32>} : memref<16x128xf32, #tpu.memory_space<vmem>>, vector<16x128xf32>,
    return
  }
  func.func @transform_0(%arg0: i32) -> (i32, i32) {
    %c0_i32 = arith.constant 0 : i32
    %c0_i32_0 = arith.constant 0 : i32
    %c0_i32_1 = arith.constant 0 : i32
    return %c0_i32, %c0_i32_0 : i32, i32
  }
  func.func @transform_1(%arg0: i32) -> (i32, i32) {
    %c0_i32 = arith.constant 0 : i32
    %c0_i32_0 = arith.constant 0 : i32
    return %c0_i32, %arg0 : i32, i32
  }
  func.func @transform_2(%arg0: i32) -> (i32, i32) {
    %c0_i32 = arith.constant 0 : i32
    %c0_i32_0 = arith.constant 0 : i32
    %c0_i32_1 = arith.constant 0 : i32
    return %c0_i32, %c0_i32_0 : i32, i32
  }
  func.func @transform_3(%arg0: i32) -> (i32, i32) {
    %c0_i32 = arith.constant 0 : i32
    %c0_i32_0 = arith.constant 0 : i32
    return %c0_i32, %arg0 : i32, i32
  }
}

module attributes {stable_mosaic.version = 11 : i64} {
  func.func @_matmul_bias_kernel(%arg0: i32, %arg1: memref<16x8xbf16, #tpu.memory_space<vmem>>, %arg2: memref<8x16xbf16, #tpu.memory_space<vmem>>, %arg3: memref<16x1xf32, #tpu.memory_space<vmem>>, %arg4: memref<16x16xf32, #tpu.memory_space<vmem>>) attributes {dimension_semantics = [#tpu.dimension_semantics<parallel>], iteration_bounds = array<i64: 1>, scalar_prefetch = 0 : i64, scratch_operands = 0 : i64, tpu.core_type = #tpu.core_type<tc>, window_params = [{pipeline_mode = #tpu.pipeline_mode<synchronous>, transform_indices = @transform_0, window_bounds = array<i64: 16, 8>}, {transform_indices = @transform_1, window_bounds = array<i64: 8, 16>}, {pipeline_mode = #tpu.pipeline_mode<synchronous>, transform_indices = @transform_2, window_bounds = array<i64: 16, 1>}, {transform_indices = @transform_3, window_bounds = array<i64: 16, 16>}]} {
    %c0 = arith.constant 0 : index
    %c0_0 = arith.constant 0 : index
    %0 = vector.load %arg1[%c0, %c0_0] : memref<16x8xbf16, #tpu.memory_space<vmem>>, vector<16x8xbf16>
    %c0_1 = arith.constant 0 : index
    %c0_2 = arith.constant 0 : index
    %1 = vector.load %arg2[%c0_1, %c0_2] : memref<8x16xbf16, #tpu.memory_space<vmem>>, vector<8x16xbf16>
    %cst = arith.constant dense<0.000000e+00> : vector<16x16xf32>
    %2 = tpu.matmul %0, %1, %cst {dimension_numbers = #tpu.dot_dimension_numbers<[1], [0], [0], [1], [0, 0, 1, 1], [], []>} : vector<16x8xbf16>, vector<8x16xbf16>, vector<16x16xf32> -> vector<16x16xf32>
    %c0_3 = arith.constant 0 : index
    %c0_4 = arith.constant 0 : index
    %3 = vector.load %arg3[%c0_3, %c0_4] : memref<16x1xf32, #tpu.memory_space<vmem>>, vector<16x1xf32>
    %4 = vector.broadcast %3 : vector<16x1xf32> to vector<16x16xf32>
    %5 = arith.addf %2, %4 : vector<16x16xf32>
    %c0_5 = arith.constant 0 : index
    %c0_6 = arith.constant 0 : index
    %6 = vector.load %arg4[%c0_5, %c0_6] : memref<16x16xf32, #tpu.memory_space<vmem>>, vector<16x16xf32>
    tpu.vector_store %arg4[%c0_5, %c0_6], %5 {strides = array<i32>} : memref<16x16xf32, #tpu.memory_space<vmem>>, vector<16x16xf32>,
    return
  }
  func.func @transform_0(%arg0: i32) -> (i32, i32) {
    %c0_i32 = arith.constant 0 : i32
    %c0_i32_0 = arith.constant 0 : i32
    %c0_i32_1 = arith.constant 0 : i32
    return %c0_i32, %c0_i32_0 : i32, i32
  }
  func.func @transform_1(%arg0: i32) -> (i32, i32) {
    %c0_i32 = arith.constant 0 : i32
    %c0_i32_0 = arith.constant 0 : i32
    return %c0_i32, %arg0 : i32, i32
  }
  func.func @transform_2(%arg0: i32) -> (i32, i32) {
    %c0_i32 = arith.constant 0 : i32
    %c0_i32_0 = arith.constant 0 : i32
    %c0_i32_1 = arith.constant 0 : i32
    return %c0_i32, %c0_i32_0 : i32, i32
  }
  func.func @transform_3(%arg0: i32) -> (i32, i32) {
    %c0_i32 = arith.constant 0 : i32
    %c0_i32_0 = arith.constant 0 : i32
    return %c0_i32, %arg0 : i32, i32
  }
}

module attributes {stable_mosaic.version = 11 : i64} {
  func.func @_matmul_bias_kernel(%arg0: i32, %arg1: memref<16x64xbf16, #tpu.memory_space<vmem>>, %arg2: memref<64x128xbf16, #tpu.memory_space<vmem>>, %arg3: memref<16x1xf32, #tpu.memory_space<vmem>>, %arg4: memref<16x128xf32, #tpu.memory_space<vmem>>) attributes {dimension_semantics = [#tpu.dimension_semantics<parallel>], iteration_bounds = array<i64: 1>, scalar_prefetch = 0 : i64, scratch_operands = 0 : i64, tpu.core_type = #tpu.core_type<tc>, window_params = [{pipeline_mode = #tpu.pipeline_mode<synchronous>, transform_indices = @transform_0, window_bounds = array<i64: 16, 64>}, {transform_indices = @transform_1, window_bounds = array<i64: 64, 128>}, {pipeline_mode = #tpu.pipeline_mode<synchronous>, transform_indices = @transform_2, window_bounds = array<i64: 16, 1>}, {transform_indices = @transform_3, window_bounds = array<i64: 16, 128>}]} {
    %c0 = arith.constant 0 : index
    %c0_0 = arith.constant 0 : index
    %0 = vector.load %arg1[%c0, %c0_0] : memref<16x64xbf16, #tpu.memory_space<vmem>>, vector<16x64xbf16>
    %c0_1 = arith.constant 0 : index
    %c0_2 = arith.constant 0 : index
    %1 = vector.load %arg2[%c0_1, %c0_2] : memref<64x128xbf16, #tpu.memory_space<vmem>>, vector<64x128xbf16>
    %cst = arith.constant dense<0.000000e+00> : vector<16x128xf32>
    %2 = tpu.matmul %0, %1, %cst {dimension_numbers = #tpu.dot_dimension_numbers<[1], [0], [0], [1], [0, 0, 1, 1], [], []>} : vector<16x64xbf16>, vector<64x128xbf16>, vector<16x128xf32> -> vector<16x128xf32>
    %c0_3 = arith.constant 0 : index
    %c0_4 = arith.constant 0 : index
    %3 = vector.load %arg3[%c0_3, %c0_4] : memref<16x1xf32, #tpu.memory_space<vmem>>, vector<16x1xf32>
    %4 = vector.broadcast %3 : vector<16x1xf32> to vector<16x128xf32>
    %5 = arith.addf %2, %4 : vector<16x128xf32>
    %c0_5 = arith.constant 0 : index
    %c0_6 = arith.constant 0 : index
    %6 = vector.load %arg4[%c0_5, %c0_6] : memref<16x128xf32, #tpu.memory_space<vmem>>, vector<16x128xf32>
    tpu.vector_store %arg4[%c0_5, %c0_6], %5 {strides = array<i32>} : memref<16x128xf32, #tpu.memory_space<vmem>>, vector<16x128xf32>,
    return
  }
  func.func @transform_0(%arg0: i32) -> (i32, i32) {
    %c0_i32 = arith.constant 0 : i32
    %c0_i32_0 = arith.constant 0 : i32
    %c0_i32_1 = arith.constant 0 : i32
    return %c0_i32, %c0_i32_0 : i32, i32
  }
  func.func @transform_1(%arg0: i32) -> (i32, i32) {
    %c0_i32 = arith.constant 0 : i32
    %c0_i32_0 = arith.constant 0 : i32
    return %c0_i32, %arg0 : i32, i32
  }
  func.func @transform_2(%arg0: i32) -> (i32, i32) {
    %c0_i32 = arith.constant 0 : i32
    %c0_i32_0 = arith.constant 0 : i32
    %c0_i32_1 = arith.constant 0 : i32
    return %c0_i32, %c0_i32_0 : i32, i32
  }
  func.func @transform_3(%arg0: i32) -> (i32, i32) {
    %c0_i32 = arith.constant 0 : i32
    %c0_i32_0 = arith.constant 0 : i32
    return %c0_i32, %arg0 : i32, i32
  }
}

module attributes {stable_mosaic.version = 11 : i64} {
  func.func @_matmul_bias_kernel(%arg0: i32, %arg1: memref<16x32xbf16, #tpu.memory_space<vmem>>, %arg2: memref<32x128xbf16, #tpu.memory_space<vmem>>, %arg3: memref<16x1xf32, #tpu.memory_space<vmem>>, %arg4: memref<16x128xf32, #tpu.memory_space<vmem>>) attributes {dimension_semantics = [#tpu.dimension_semantics<parallel>], iteration_bounds = array<i64: 1>, scalar_prefetch = 0 : i64, scratch_operands = 0 : i64, tpu.core_type = #tpu.core_type<tc>, window_params = [{pipeline_mode = #tpu.pipeline_mode<synchronous>, transform_indices = @transform_0, window_bounds = array<i64: 16, 32>}, {transform_indices = @transform_1, window_bounds = array<i64: 32, 128>}, {pipeline_mode = #tpu.pipeline_mode<synchronous>, transform_indices = @transform_2, window_bounds = array<i64: 16, 1>}, {transform_indices = @transform_3, window_bounds = array<i64: 16, 128>}]} {
    %c0 = arith.constant 0 : index
    %c0_0 = arith.constant 0 : index
    %0 = vector.load %arg1[%c0, %c0_0] : memref<16x32xbf16, #tpu.memory_space<vmem>>, vector<16x32xbf16>
    %c0_1 = arith.constant 0 : index
    %c0_2 = arith.constant 0 : index
    %1 = vector.load %arg2[%c0_1, %c0_2] : memref<32x128xbf16, #tpu.memory_space<vmem>>, vector<32x128xbf16>
    %cst = arith.constant dense<0.000000e+00> : vector<16x128xf32>
    %2 = tpu.matmul %0, %1, %cst {dimension_numbers = #tpu.dot_dimension_numbers<[1], [0], [0], [1], [0, 0, 1, 1], [], []>} : vector<16x32xbf16>, vector<32x128xbf16>, vector<16x128xf32> -> vector<16x128xf32>
    %c0_3 = arith.constant 0 : index
    %c0_4 = arith.constant 0 : index
    %3 = vector.load %arg3[%c0_3, %c0_4] : memref<16x1xf32, #tpu.memory_space<vmem>>, vector<16x1xf32>
    %4 = vector.broadcast %3 : vector<16x1xf32> to vector<16x128xf32>
    %5 = arith.addf %2, %4 : vector<16x128xf32>
    %c0_5 = arith.constant 0 : index
    %c0_6 = arith.constant 0 : index
    %6 = vector.load %arg4[%c0_5, %c0_6] : memref<16x128xf32, #tpu.memory_space<vmem>>, vector<16x128xf32>
    tpu.vector_store %arg4[%c0_5, %c0_6], %5 {strides = array<i32>} : memref<16x128xf32, #tpu.memory_space<vmem>>, vector<16x128xf32>,
    return
  }
  func.func @transform_0(%arg0: i32) -> (i32, i32) {
    %c0_i32 = arith.constant 0 : i32
    %c0_i32_0 = arith.constant 0 : i32
    %c0_i32_1 = arith.constant 0 : i32
    return %c0_i32, %c0_i32_0 : i32, i32
  }
  func.func @transform_1(%arg0: i32) -> (i32, i32) {
    %c0_i32 = arith.constant 0 : i32
    %c0_i32_0 = arith.constant 0 : i32
    return %c0_i32, %arg0 : i32, i32
  }
  func.func @transform_2(%arg0: i32) -> (i32, i32) {
    %c0_i32 = arith.constant 0 : i32
    %c0_i32_0 = arith.constant 0 : i32
    %c0_i32_1 = arith.constant 0 : i32
    return %c0_i32, %c0_i32_0 : i32, i32
  }
  func.func @transform_3(%arg0: i32) -> (i32, i32) {
    %c0_i32 = arith.constant 0 : i32
    %c0_i32_0 = arith.constant 0 : i32
    return %c0_i32, %arg0 : i32, i32
  }
}

module attributes {stable_mosaic.version = 11 : i64} {
  func.func @_matmul_bias_kernel(%arg0: i32, %arg1: memref<16x16xbf16, #tpu.memory_space<vmem>>, %arg2: memref<16x128xbf16, #tpu.memory_space<vmem>>, %arg3: memref<16x1xf32, #tpu.memory_space<vmem>>, %arg4: memref<16x128xf32, #tpu.memory_space<vmem>>) attributes {dimension_semantics = [#tpu.dimension_semantics<parallel>], iteration_bounds = array<i64: 1>, scalar_prefetch = 0 : i64, scratch_operands = 0 : i64, tpu.core_type = #tpu.core_type<tc>, window_params = [{pipeline_mode = #tpu.pipeline_mode<synchronous>, transform_indices = @transform_0, window_bounds = array<i64: 16, 16>}, {transform_indices = @transform_1, window_bounds = array<i64: 16, 128>}, {pipeline_mode = #tpu.pipeline_mode<synchronous>, transform_indices = @transform_2, window_bounds = array<i64: 16, 1>}, {transform_indices = @transform_3, window_bounds = array<i64: 16, 128>}]} {
    %c0 = arith.constant 0 : index
    %c0_0 = arith.constant 0 : index
    %0 = vector.load %arg1[%c0, %c0_0] : memref<16x16xbf16, #tpu.memory_space<vmem>>, vector<16x16xbf16>
    %c0_1 = arith.constant 0 : index
    %c0_2 = arith.constant 0 : index
    %1 = vector.load %arg2[%c0_1, %c0_2] : memref<16x128xbf16, #tpu.memory_space<vmem>>, vector<16x128xbf16>
    %cst = arith.constant dense<0.000000e+00> : vector<16x128xf32>
    %2 = tpu.matmul %0, %1, %cst {dimension_numbers = #tpu.dot_dimension_numbers<[1], [0], [0], [1], [0, 0, 1, 1], [], []>} : vector<16x16xbf16>, vector<16x128xbf16>, vector<16x128xf32> -> vector<16x128xf32>
    %c0_3 = arith.constant 0 : index
    %c0_4 = arith.constant 0 : index
    %3 = vector.load %arg3[%c0_3, %c0_4] : memref<16x1xf32, #tpu.memory_space<vmem>>, vector<16x1xf32>
    %4 = vector.broadcast %3 : vector<16x1xf32> to vector<16x128xf32>
    %5 = arith.addf %2, %4 : vector<16x128xf32>
    %c0_5 = arith.constant 0 : index
    %c0_6 = arith.constant 0 : index
    %6 = vector.load %arg4[%c0_5, %c0_6] : memref<16x128xf32, #tpu.memory_space<vmem>>, vector<16x128xf32>
    tpu.vector_store %arg4[%c0_5, %c0_6], %5 {strides = array<i32>} : memref<16x128xf32, #tpu.memory_space<vmem>>, vector<16x128xf32>,
    return
  }
  func.func @transform_0(%arg0: i32) -> (i32, i32) {
    %c0_i32 = arith.constant 0 : i32
    %c0_i32_0 = arith.constant 0 : i32
    %c0_i32_1 = arith.constant 0 : i32
    return %c0_i32, %c0_i32_0 : i32, i32
  }
  func.func @transform_1(%arg0: i32) -> (i32, i32) {
    %c0_i32 = arith.constant 0 : i32
    %c0_i32_0 = arith.constant 0 : i32
    return %c0_i32, %arg0 : i32, i32
  }
  func.func @transform_2(%arg0: i32) -> (i32, i32) {
    %c0_i32 = arith.constant 0 : i32
    %c0_i32_0 = arith.constant 0 : i32
    %c0_i32_1 = arith.constant 0 : i32
    return %c0_i32, %c0_i32_0 : i32, i32
  }
  func.func @transform_3(%arg0: i32) -> (i32, i32) {
    %c0_i32 = arith.constant 0 : i32
    %c0_i32_0 = arith.constant 0 : i32
    return %c0_i32, %arg0 : i32, i32
  }
}

module attributes {stable_mosaic.version = 11 : i64} {
  func.func @_matmul_bias_kernel(%arg0: i32, %arg1: memref<16x216xbf16, #tpu.memory_space<vmem>>, %arg2: memref<216x16xbf16, #tpu.memory_space<vmem>>, %arg3: memref<16x1xf32, #tpu.memory_space<vmem>>, %arg4: memref<16x16xf32, #tpu.memory_space<vmem>>) attributes {dimension_semantics = [#tpu.dimension_semantics<parallel>], iteration_bounds = array<i64: 1>, scalar_prefetch = 0 : i64, scratch_operands = 0 : i64, tpu.core_type = #tpu.core_type<tc>, window_params = [{pipeline_mode = #tpu.pipeline_mode<synchronous>, transform_indices = @transform_0, window_bounds = array<i64: 16, 216>}, {transform_indices = @transform_1, window_bounds = array<i64: 216, 16>}, {pipeline_mode = #tpu.pipeline_mode<synchronous>, transform_indices = @transform_2, window_bounds = array<i64: 16, 1>}, {transform_indices = @transform_3, window_bounds = array<i64: 16, 16>}]} {
    %c0 = arith.constant 0 : index
    %c0_0 = arith.constant 0 : index
    %0 = vector.load %arg1[%c0, %c0_0] : memref<16x216xbf16, #tpu.memory_space<vmem>>, vector<16x216xbf16>
    %c0_1 = arith.constant 0 : index
    %c0_2 = arith.constant 0 : index
    %1 = vector.load %arg2[%c0_1, %c0_2] : memref<216x16xbf16, #tpu.memory_space<vmem>>, vector<216x16xbf16>
    %cst = arith.constant dense<0.000000e+00> : vector<16x16xf32>
    %2 = tpu.matmul %0, %1, %cst {dimension_numbers = #tpu.dot_dimension_numbers<[1], [0], [0], [1], [0, 0, 1, 1], [], []>} : vector<16x216xbf16>, vector<216x16xbf16>, vector<16x16xf32> -> vector<16x16xf32>
    %c0_3 = arith.constant 0 : index
    %c0_4 = arith.constant 0 : index
    %3 = vector.load %arg3[%c0_3, %c0_4] : memref<16x1xf32, #tpu.memory_space<vmem>>, vector<16x1xf32>
    %4 = vector.broadcast %3 : vector<16x1xf32> to vector<16x16xf32>
    %5 = arith.addf %2, %4 : vector<16x16xf32>
    %c0_5 = arith.constant 0 : index
    %c0_6 = arith.constant 0 : index
    %6 = vector.load %arg4[%c0_5, %c0_6] : memref<16x16xf32, #tpu.memory_space<vmem>>, vector<16x16xf32>
    tpu.vector_store %arg4[%c0_5, %c0_6], %5 {strides = array<i32>} : memref<16x16xf32, #tpu.memory_space<vmem>>, vector<16x16xf32>,
    return
  }
  func.func @transform_0(%arg0: i32) -> (i32, i32) {
    %c0_i32 = arith.constant 0 : i32
    %c0_i32_0 = arith.constant 0 : i32
    %c0_i32_1 = arith.constant 0 : i32
    return %c0_i32, %c0_i32_0 : i32, i32
  }
  func.func @transform_1(%arg0: i32) -> (i32, i32) {
    %c0_i32 = arith.constant 0 : i32
    %c0_i32_0 = arith.constant 0 : i32
    return %c0_i32, %arg0 : i32, i32
  }
  func.func @transform_2(%arg0: i32) -> (i32, i32) {
    %c0_i32 = arith.constant 0 : i32
    %c0_i32_0 = arith.constant 0 : i32
    %c0_i32_1 = arith.constant 0 : i32
    return %c0_i32, %c0_i32_0 : i32, i32
  }
  func.func @transform_3(%arg0: i32) -> (i32, i32) {
    %c0_i32 = arith.constant 0 : i32
    %c0_i32_0 = arith.constant 0 : i32
    return %c0_i32, %arg0 : i32, i32
  }
}

module attributes {stable_mosaic.version = 11 : i64} {
  func.func @_bn_relu6_kernel(%arg0: i32, %arg1: memref<16x16xf32, #tpu.memory_space<vmem>>, %arg2: memref<16x1xf32, #tpu.memory_space<vmem>>, %arg3: memref<16x1xf32, #tpu.memory_space<vmem>>, %arg4: memref<16x16xbf16, #tpu.memory_space<vmem>>) attributes {dimension_semantics = [#tpu.dimension_semantics<parallel>], iteration_bounds = array<i64: 1>, scalar_prefetch = 0 : i64, scratch_operands = 0 : i64, tpu.core_type = #tpu.core_type<tc>, window_params = [{transform_indices = @transform_0, window_bounds = array<i64: 16, 16>}, {pipeline_mode = #tpu.pipeline_mode<synchronous>, transform_indices = @transform_1, window_bounds = array<i64: 16, 1>}, {pipeline_mode = #tpu.pipeline_mode<synchronous>, transform_indices = @transform_2, window_bounds = array<i64: 16, 1>}, {transform_indices = @transform_3, window_bounds = array<i64: 16, 16>}]} {
    %c0 = arith.constant 0 : index
    %c0_0 = arith.constant 0 : index
    %0 = vector.load %arg1[%c0, %c0_0] : memref<16x16xf32, #tpu.memory_space<vmem>>, vector<16x16xf32>
    %c0_1 = arith.constant 0 : index
    %c0_2 = arith.constant 0 : index
    %1 = vector.load %arg2[%c0_1, %c0_2] : memref<16x1xf32, #tpu.memory_space<vmem>>, vector<16x1xf32>
    %2 = vector.broadcast %1 : vector<16x1xf32> to vector<16x16xf32>
    %3 = arith.mulf %0, %2 : vector<16x16xf32>
    %c0_3 = arith.constant 0 : index
    %c0_4 = arith.constant 0 : index
    %4 = vector.load %arg3[%c0_3, %c0_4] : memref<16x1xf32, #tpu.memory_space<vmem>>, vector<16x1xf32>
    %5 = vector.broadcast %4 : vector<16x1xf32> to vector<16x16xf32>
    %6 = arith.addf %3, %5 : vector<16x16xf32>
    %cst = arith.constant 0.000000e+00 : f32
    %cst_5 = arith.constant 6.000000e+00 : f32
    %7 = vector.broadcast %cst : f32 to vector<16x16xf32>
    %8 = arith.maximumf %7, %6 : vector<16x16xf32>
    %9 = vector.broadcast %cst_5 : f32 to vector<16x16xf32>
    %10 = arith.minimumf %9, %8 : vector<16x16xf32>
    %11 = arith.truncf %10 : vector<16x16xf32> to vector<16x16xbf16>
    %c0_6 = arith.constant 0 : index
    %c0_7 = arith.constant 0 : index
    %12 = vector.load %arg4[%c0_6, %c0_7] : memref<16x16xbf16, #tpu.memory_space<vmem>>, vector<16x16xbf16>
    tpu.vector_store %arg4[%c0_6, %c0_7], %11 {strides = array<i32>} : memref<16x16xbf16, #tpu.memory_space<vmem>>, vector<16x16xbf16>,
    return
  }
  func.func @transform_0(%arg0: i32) -> (i32, i32) {
    %c0_i32 = arith.constant 0 : i32
    %c0_i32_0 = arith.constant 0 : i32
    return %c0_i32, %arg0 : i32, i32
  }
  func.func @transform_1(%arg0: i32) -> (i32, i32) {
    %c0_i32 = arith.constant 0 : i32
    %c0_i32_0 = arith.constant 0 : i32
    %c0_i32_1 = arith.constant 0 : i32
    return %c0_i32, %c0_i32_0 : i32, i32
  }
  func.func @transform_2(%arg0: i32) -> (i32, i32) {
    %c0_i32 = arith.constant 0 : i32
    %c0_i32_0 = arith.constant 0 : i32
    %c0_i32_1 = arith.constant 0 : i32
    return %c0_i32, %c0_i32_0 : i32, i32
  }
  func.func @transform_3(%arg0: i32) -> (i32, i32) {
    %c0_i32 = arith.constant 0 : i32
    %c0_i32_0 = arith.constant 0 : i32
    return %c0_i32, %arg0 : i32, i32
  }
}

module attributes {stable_mosaic.version = 11 : i64} {
  func.func @_matmul_bias_kernel(%arg0: i32, %arg1: memref<16x432xbf16, #tpu.memory_space<vmem>>, %arg2: memref<432x16xbf16, #tpu.memory_space<vmem>>, %arg3: memref<16x1xf32, #tpu.memory_space<vmem>>, %arg4: memref<16x16xf32, #tpu.memory_space<vmem>>) attributes {dimension_semantics = [#tpu.dimension_semantics<parallel>], iteration_bounds = array<i64: 1>, scalar_prefetch = 0 : i64, scratch_operands = 0 : i64, tpu.core_type = #tpu.core_type<tc>, window_params = [{pipeline_mode = #tpu.pipeline_mode<synchronous>, transform_indices = @transform_0, window_bounds = array<i64: 16, 432>}, {transform_indices = @transform_1, window_bounds = array<i64: 432, 16>}, {pipeline_mode = #tpu.pipeline_mode<synchronous>, transform_indices = @transform_2, window_bounds = array<i64: 16, 1>}, {transform_indices = @transform_3, window_bounds = array<i64: 16, 16>}]} {
    %c0 = arith.constant 0 : index
    %c0_0 = arith.constant 0 : index
    %0 = vector.load %arg1[%c0, %c0_0] : memref<16x432xbf16, #tpu.memory_space<vmem>>, vector<16x432xbf16>
    %c0_1 = arith.constant 0 : index
    %c0_2 = arith.constant 0 : index
    %1 = vector.load %arg2[%c0_1, %c0_2] : memref<432x16xbf16, #tpu.memory_space<vmem>>, vector<432x16xbf16>
    %cst = arith.constant dense<0.000000e+00> : vector<16x16xf32>
    %2 = tpu.matmul %0, %1, %cst {dimension_numbers = #tpu.dot_dimension_numbers<[1], [0], [0], [1], [0, 0, 1, 1], [], []>} : vector<16x432xbf16>, vector<432x16xbf16>, vector<16x16xf32> -> vector<16x16xf32>
    %c0_3 = arith.constant 0 : index
    %c0_4 = arith.constant 0 : index
    %3 = vector.load %arg3[%c0_3, %c0_4] : memref<16x1xf32, #tpu.memory_space<vmem>>, vector<16x1xf32>
    %4 = vector.broadcast %3 : vector<16x1xf32> to vector<16x16xf32>
    %5 = arith.addf %2, %4 : vector<16x16xf32>
    %c0_5 = arith.constant 0 : index
    %c0_6 = arith.constant 0 : index
    %6 = vector.load %arg4[%c0_5, %c0_6] : memref<16x16xf32, #tpu.memory_space<vmem>>, vector<16x16xf32>
    tpu.vector_store %arg4[%c0_5, %c0_6], %5 {strides = array<i32>} : memref<16x16xf32, #tpu.memory_space<vmem>>, vector<16x16xf32>,
    return
  }
  func.func @transform_0(%arg0: i32) -> (i32, i32) {
    %c0_i32 = arith.constant 0 : i32
    %c0_i32_0 = arith.constant 0 : i32
    %c0_i32_1 = arith.constant 0 : i32
    return %c0_i32, %c0_i32_0 : i32, i32
  }
  func.func @transform_1(%arg0: i32) -> (i32, i32) {
    %c0_i32 = arith.constant 0 : i32
    %c0_i32_0 = arith.constant 0 : i32
    return %c0_i32, %arg0 : i32, i32
  }
  func.func @transform_2(%arg0: i32) -> (i32, i32) {
    %c0_i32 = arith.constant 0 : i32
    %c0_i32_0 = arith.constant 0 : i32
    %c0_i32_1 = arith.constant 0 : i32
    return %c0_i32, %c0_i32_0 : i32, i32
  }
  func.func @transform_3(%arg0: i32) -> (i32, i32) {
    %c0_i32 = arith.constant 0 : i32
    %c0_i32_0 = arith.constant 0 : i32
    return %c0_i32, %arg0 : i32, i32
  }
}

module attributes {stable_mosaic.version = 11 : i64} {
  func.func @_matmul_bias_add_kernel(%arg0: i32, %arg1: memref<16x432xbf16, #tpu.memory_space<vmem>>, %arg2: memref<432x16xbf16, #tpu.memory_space<vmem>>, %arg3: memref<16x1xf32, #tpu.memory_space<vmem>>, %arg4: memref<16x16xf32, #tpu.memory_space<vmem>>, %arg5: memref<16x16xf32, #tpu.memory_space<vmem>>) attributes {dimension_semantics = [#tpu.dimension_semantics<parallel>], iteration_bounds = array<i64: 1>, scalar_prefetch = 0 : i64, scratch_operands = 0 : i64, tpu.core_type = #tpu.core_type<tc>, window_params = [{pipeline_mode = #tpu.pipeline_mode<synchronous>, transform_indices = @transform_0, window_bounds = array<i64: 16, 432>}, {transform_indices = @transform_1, window_bounds = array<i64: 432, 16>}, {pipeline_mode = #tpu.pipeline_mode<synchronous>, transform_indices = @transform_2, window_bounds = array<i64: 16, 1>}, {transform_indices = @transform_3, window_bounds = array<i64: 16, 16>}, {transform_indices = @transform_4, window_bounds = array<i64: 16, 16>}]} {
    %c0 = arith.constant 0 : index
    %c0_0 = arith.constant 0 : index
    %0 = vector.load %arg1[%c0, %c0_0] : memref<16x432xbf16, #tpu.memory_space<vmem>>, vector<16x432xbf16>
    %c0_1 = arith.constant 0 : index
    %c0_2 = arith.constant 0 : index
    %1 = vector.load %arg2[%c0_1, %c0_2] : memref<432x16xbf16, #tpu.memory_space<vmem>>, vector<432x16xbf16>
    %cst = arith.constant dense<0.000000e+00> : vector<16x16xf32>
    %2 = tpu.matmul %0, %1, %cst {dimension_numbers = #tpu.dot_dimension_numbers<[1], [0], [0], [1], [0, 0, 1, 1], [], []>} : vector<16x432xbf16>, vector<432x16xbf16>, vector<16x16xf32> -> vector<16x16xf32>
    %c0_3 = arith.constant 0 : index
    %c0_4 = arith.constant 0 : index
    %3 = vector.load %arg3[%c0_3, %c0_4] : memref<16x1xf32, #tpu.memory_space<vmem>>, vector<16x1xf32>
    %4 = vector.broadcast %3 : vector<16x1xf32> to vector<16x16xf32>
    %5 = arith.addf %2, %4 : vector<16x16xf32>
    %c0_5 = arith.constant 0 : index
    %c0_6 = arith.constant 0 : index
    %6 = vector.load %arg4[%c0_5, %c0_6] : memref<16x16xf32, #tpu.memory_space<vmem>>, vector<16x16xf32>
    %7 = arith.addf %5, %6 : vector<16x16xf32>
    %c0_7 = arith.constant 0 : index
    %c0_8 = arith.constant 0 : index
    %8 = vector.load %arg5[%c0_7, %c0_8] : memref<16x16xf32, #tpu.memory_space<vmem>>, vector<16x16xf32>
    tpu.vector_store %arg5[%c0_7, %c0_8], %7 {strides = array<i32>} : memref<16x16xf32, #tpu.memory_space<vmem>>, vector<16x16xf32>,
    return
  }
  func.func @transform_0(%arg0: i32) -> (i32, i32) {
    %c0_i32 = arith.constant 0 : i32
    %c0_i32_0 = arith.constant 0 : i32
    %c0_i32_1 = arith.constant 0 : i32
    return %c0_i32, %c0_i32_0 : i32, i32
  }
  func.func @transform_1(%arg0: i32) -> (i32, i32) {
    %c0_i32 = arith.constant 0 : i32
    %c0_i32_0 = arith.constant 0 : i32
    return %c0_i32, %arg0 : i32, i32
  }
  func.func @transform_2(%arg0: i32) -> (i32, i32) {
    %c0_i32 = arith.constant 0 : i32
    %c0_i32_0 = arith.constant 0 : i32
    %c0_i32_1 = arith.constant 0 : i32
    return %c0_i32, %c0_i32_0 : i32, i32
  }
  func.func @transform_3(%arg0: i32) -> (i32, i32) {
    %c0_i32 = arith.constant 0 : i32
    %c0_i32_0 = arith.constant 0 : i32
    return %c0_i32, %arg0 : i32, i32
  }
  func.func @transform_4(%arg0: i32) -> (i32, i32) {
    %c0_i32 = arith.constant 0 : i32
    %c0_i32_0 = arith.constant 0 : i32
    return %c0_i32, %arg0 : i32, i32
  }
}

module attributes {stable_mosaic.version = 11 : i64} {
  func.func @_matmul_bias_kernel(%arg0: i32, %arg1: memref<16x16xbf16, #tpu.memory_space<vmem>>, %arg2: memref<16x16xbf16, #tpu.memory_space<vmem>>, %arg3: memref<16x1xf32, #tpu.memory_space<vmem>>, %arg4: memref<16x16xf32, #tpu.memory_space<vmem>>) attributes {dimension_semantics = [#tpu.dimension_semantics<parallel>], iteration_bounds = array<i64: 1>, scalar_prefetch = 0 : i64, scratch_operands = 0 : i64, tpu.core_type = #tpu.core_type<tc>, window_params = [{pipeline_mode = #tpu.pipeline_mode<synchronous>, transform_indices = @transform_0, window_bounds = array<i64: 16, 16>}, {transform_indices = @transform_1, window_bounds = array<i64: 16, 16>}, {pipeline_mode = #tpu.pipeline_mode<synchronous>, transform_indices = @transform_2, window_bounds = array<i64: 16, 1>}, {transform_indices = @transform_3, window_bounds = array<i64: 16, 16>}]} {
    %c0 = arith.constant 0 : index
    %c0_0 = arith.constant 0 : index
    %0 = vector.load %arg1[%c0, %c0_0] : memref<16x16xbf16, #tpu.memory_space<vmem>>, vector<16x16xbf16>
    %c0_1 = arith.constant 0 : index
    %c0_2 = arith.constant 0 : index
    %1 = vector.load %arg2[%c0_1, %c0_2] : memref<16x16xbf16, #tpu.memory_space<vmem>>, vector<16x16xbf16>
    %cst = arith.constant dense<0.000000e+00> : vector<16x16xf32>
    %2 = tpu.matmul %0, %1, %cst {dimension_numbers = #tpu.dot_dimension_numbers<[1], [0], [0], [1], [0, 0, 1, 1], [], []>} : vector<16x16xbf16>, vector<16x16xbf16>, vector<16x16xf32> -> vector<16x16xf32>
    %c0_3 = arith.constant 0 : index
    %c0_4 = arith.constant 0 : index
    %3 = vector.load %arg3[%c0_3, %c0_4] : memref<16x1xf32, #tpu.memory_space<vmem>>, vector<16x1xf32>
    %4 = vector.broadcast %3 : vector<16x1xf32> to vector<16x16xf32>
    %5 = arith.addf %2, %4 : vector<16x16xf32>
    %c0_5 = arith.constant 0 : index
    %c0_6 = arith.constant 0 : index
    %6 = vector.load %arg4[%c0_5, %c0_6] : memref<16x16xf32, #tpu.memory_space<vmem>>, vector<16x16xf32>
    tpu.vector_store %arg4[%c0_5, %c0_6], %5 {strides = array<i32>} : memref<16x16xf32, #tpu.memory_space<vmem>>, vector<16x16xf32>,
    return
  }
  func.func @transform_0(%arg0: i32) -> (i32, i32) {
    %c0_i32 = arith.constant 0 : i32
    %c0_i32_0 = arith.constant 0 : i32
    %c0_i32_1 = arith.constant 0 : i32
    return %c0_i32, %c0_i32_0 : i32, i32
  }
  func.func @transform_1(%arg0: i32) -> (i32, i32) {
    %c0_i32 = arith.constant 0 : i32
    %c0_i32_0 = arith.constant 0 : i32
    return %c0_i32, %arg0 : i32, i32
  }
  func.func @transform_2(%arg0: i32) -> (i32, i32) {
    %c0_i32 = arith.constant 0 : i32
    %c0_i32_0 = arith.constant 0 : i32
    %c0_i32_1 = arith.constant 0 : i32
    return %c0_i32, %c0_i32_0 : i32, i32
  }
  func.func @transform_3(%arg0: i32) -> (i32, i32) {
    %c0_i32 = arith.constant 0 : i32
    %c0_i32_0 = arith.constant 0 : i32
    return %c0_i32, %arg0 : i32, i32
  }
}

module attributes {stable_mosaic.version = 11 : i64} {
  func.func @_attn_kernel(%arg0: i32, %arg1: memref<1x8x8xbf16, #tpu.memory_space<vmem>>, %arg2: memref<1x8x8xbf16, #tpu.memory_space<vmem>>, %arg3: memref<1x8x8xbf16, #tpu.memory_space<vmem>>, %arg4: memref<1x8x8xf32, #tpu.memory_space<vmem>>) attributes {dimension_semantics = [#tpu.dimension_semantics<parallel>], iteration_bounds = array<i64: 4>, scalar_prefetch = 0 : i64, scratch_operands = 0 : i64, tpu.core_type = #tpu.core_type<tc>, window_params = [{transform_indices = @transform_0, window_bounds = array<i64: 1, 8, 8>}, {transform_indices = @transform_1, window_bounds = array<i64: 1, 8, 8>}, {transform_indices = @transform_2, window_bounds = array<i64: 1, 8, 8>}, {transform_indices = @transform_3, window_bounds = array<i64: 1, 8, 8>}]} {
    %c0 = arith.constant 0 : index
    %c0_0 = arith.constant 0 : index
    %c0_1 = arith.constant 0 : index
    %0 = vector.load %arg1[%c0, %c0_0, %c0_1] : memref<1x8x8xbf16, #tpu.memory_space<vmem>>, vector<1x8x8xbf16>
    %1 = vector.shape_cast %0 : vector<1x8x8xbf16> to vector<8x8xbf16>
    %c0_2 = arith.constant 0 : index
    %c0_3 = arith.constant 0 : index
    %c0_4 = arith.constant 0 : index
    %2 = vector.load %arg2[%c0_2, %c0_3, %c0_4] : memref<1x8x8xbf16, #tpu.memory_space<vmem>>, vector<1x8x8xbf16>
    %3 = vector.shape_cast %2 : vector<1x8x8xbf16> to vector<8x8xbf16>
    %c0_5 = arith.constant 0 : index
    %c0_6 = arith.constant 0 : index
    %c0_7 = arith.constant 0 : index
    %4 = vector.load %arg3[%c0_5, %c0_6, %c0_7] : memref<1x8x8xbf16, #tpu.memory_space<vmem>>, vector<1x8x8xbf16>
    %5 = vector.shape_cast %4 : vector<1x8x8xbf16> to vector<8x8xbf16>
    %cst = arith.constant dense<0.000000e+00> : vector<8x8xf32>
    %6 = tpu.matmul %1, %3, %cst {dimension_numbers = #tpu.dot_dimension_numbers<[1], [0], [0], [1], [0, 0, 1, 1], [], []>} : vector<8x8xbf16>, vector<8x8xbf16>, vector<8x8xf32> -> vector<8x8xf32>
    %cst_8 = arith.constant dense<0xFF800000> : vector<8xf32>
    %7 = vector.multi_reduction <maximumf>, %6, %cst_8 [1] : vector<8x8xf32> to vector<8xf32>
    %8 = vector.shape_cast %7 : vector<8xf32> to vector<8x1xf32>
    %9 = vector.broadcast %8 : vector<8x1xf32> to vector<8x8xf32>
    %10 = arith.subf %6, %9 : vector<8x8xf32>
    %11 = math.exp %10 : vector<8x8xf32>
    %cst_9 = arith.constant dense<0.000000e+00> : vector<8xf32>
    %12 = vector.multi_reduction <add>, %11, %cst_9 [1] : vector<8x8xf32> to vector<8xf32>
    %13 = vector.shape_cast %12 : vector<8xf32> to vector<8x1xf32>
    %14 = tpu.reciprocal %13 {approx = true} : vector<8x1xf32> -> vector<8x1xf32>
    %15 = vector.broadcast %14 : vector<8x1xf32> to vector<8x8xf32>
    %16 = arith.mulf %11, %15 : vector<8x8xf32>
    %17 = arith.truncf %16 : vector<8x8xf32> to vector<8x8xbf16>
    %cst_10 = arith.constant dense<0.000000e+00> : vector<8x8xf32>
    %18 = tpu.matmul %5, %17, %cst_10 {dimension_numbers = #tpu.dot_dimension_numbers<[1], [1], [0], [0], [0, 0, 1, 0], [], []>} : vector<8x8xbf16>, vector<8x8xbf16>, vector<8x8xf32> -> vector<8x8xf32>
    %c0_11 = arith.constant 0 : index
    %c0_12 = arith.constant 0 : index
    %c0_13 = arith.constant 0 : index
    %19 = vector.load %arg4[%c0_11, %c0_12, %c0_13] : memref<1x8x8xf32, #tpu.memory_space<vmem>>, vector<1x8x8xf32>
    %20 = vector.shape_cast %19 : vector<1x8x8xf32> to vector<8x8xf32>
    %21 = vector.shape_cast %18 : vector<8x8xf32> to vector<1x8x8xf32>
    tpu.vector_store %arg4[%c0_11, %c0_12, %c0_13], %21 {strides = array<i32>} : memref<1x8x8xf32, #tpu.memory_space<vmem>>, vector<1x8x8xf32>,
    return
  }
  func.func @transform_0(%arg0: i32) -> (i32, i32, i32) {
    %c0_i32 = arith.constant 0 : i32
    %c0_i32_0 = arith.constant 0 : i32
    %c0_i32_1 = arith.constant 0 : i32
    return %arg0, %c0_i32, %c0_i32_0 : i32, i32, i32
  }
  func.func @transform_1(%arg0: i32) -> (i32, i32, i32) {
    %c0_i32 = arith.constant 0 : i32
    %c0_i32_0 = arith.constant 0 : i32
    %c0_i32_1 = arith.constant 0 : i32
    return %arg0, %c0_i32, %c0_i32_0 : i32, i32, i32
  }
  func.func @transform_2(%arg0: i32) -> (i32, i32, i32) {
    %c0_i32 = arith.constant 0 : i32
    %c0_i32_0 = arith.constant 0 : i32
    %c0_i32_1 = arith.constant 0 : i32
    return %arg0, %c0_i32, %c0_i32_0 : i32, i32, i32
  }
  func.func @transform_3(%arg0: i32) -> (i32, i32, i32) {
    %c0_i32 = arith.constant 0 : i32
    %c0_i32_0 = arith.constant 0 : i32
    %c0_i32_1 = arith.constant 0 : i32
    return %arg0, %c0_i32, %c0_i32_0 : i32, i32, i32
  }
}

module attributes {stable_mosaic.version = 11 : i64} {
  func.func @_matmul_bias_add_kernel(%arg0: i32, %arg1: memref<16x16xbf16, #tpu.memory_space<vmem>>, %arg2: memref<16x16xbf16, #tpu.memory_space<vmem>>, %arg3: memref<16x1xf32, #tpu.memory_space<vmem>>, %arg4: memref<16x16xf32, #tpu.memory_space<vmem>>, %arg5: memref<16x16xf32, #tpu.memory_space<vmem>>) attributes {dimension_semantics = [#tpu.dimension_semantics<parallel>], iteration_bounds = array<i64: 1>, scalar_prefetch = 0 : i64, scratch_operands = 0 : i64, tpu.core_type = #tpu.core_type<tc>, window_params = [{pipeline_mode = #tpu.pipeline_mode<synchronous>, transform_indices = @transform_0, window_bounds = array<i64: 16, 16>}, {transform_indices = @transform_1, window_bounds = array<i64: 16, 16>}, {pipeline_mode = #tpu.pipeline_mode<synchronous>, transform_indices = @transform_2, window_bounds = array<i64: 16, 1>}, {transform_indices = @transform_3, window_bounds = array<i64: 16, 16>}, {transform_indices = @transform_4, window_bounds = array<i64: 16, 16>}]} {
    %c0 = arith.constant 0 : index
    %c0_0 = arith.constant 0 : index
    %0 = vector.load %arg1[%c0, %c0_0] : memref<16x16xbf16, #tpu.memory_space<vmem>>, vector<16x16xbf16>
    %c0_1 = arith.constant 0 : index
    %c0_2 = arith.constant 0 : index
    %1 = vector.load %arg2[%c0_1, %c0_2] : memref<16x16xbf16, #tpu.memory_space<vmem>>, vector<16x16xbf16>
    %cst = arith.constant dense<0.000000e+00> : vector<16x16xf32>
    %2 = tpu.matmul %0, %1, %cst {dimension_numbers = #tpu.dot_dimension_numbers<[1], [0], [0], [1], [0, 0, 1, 1], [], []>} : vector<16x16xbf16>, vector<16x16xbf16>, vector<16x16xf32> -> vector<16x16xf32>
    %c0_3 = arith.constant 0 : index
    %c0_4 = arith.constant 0 : index
    %3 = vector.load %arg3[%c0_3, %c0_4] : memref<16x1xf32, #tpu.memory_space<vmem>>, vector<16x1xf32>
    %4 = vector.broadcast %3 : vector<16x1xf32> to vector<16x16xf32>
    %5 = arith.addf %2, %4 : vector<16x16xf32>
    %c0_5 = arith.constant 0 : index
    %c0_6 = arith.constant 0 : index
    %6 = vector.load %arg4[%c0_5, %c0_6] : memref<16x16xf32, #tpu.memory_space<vmem>>, vector<16x16xf32>
    %7 = arith.addf %5, %6 : vector<16x16xf32>
    %c0_7 = arith.constant 0 : index
    %c0_8 = arith.constant 0 : index
    %8 = vector.load %arg5[%c0_7, %c0_8] : memref<16x16xf32, #tpu.memory_space<vmem>>, vector<16x16xf32>
    tpu.vector_store %arg5[%c0_7, %c0_8], %7 {strides = array<i32>} : memref<16x16xf32, #tpu.memory_space<vmem>>, vector<16x16xf32>,
    return
  }
  func.func @transform_0(%arg0: i32) -> (i32, i32) {
    %c0_i32 = arith.constant 0 : i32
    %c0_i32_0 = arith.constant 0 : i32
    %c0_i32_1 = arith.constant 0 : i32
    return %c0_i32, %c0_i32_0 : i32, i32
  }
  func.func @transform_1(%arg0: i32) -> (i32, i32) {
    %c0_i32 = arith.constant 0 : i32
    %c0_i32_0 = arith.constant 0 : i32
    return %c0_i32, %arg0 : i32, i32
  }
  func.func @transform_2(%arg0: i32) -> (i32, i32) {
    %c0_i32 = arith.constant 0 : i32
    %c0_i32_0 = arith.constant 0 : i32
    %c0_i32_1 = arith.constant 0 : i32
    return %c0_i32, %c0_i32_0 : i32, i32
  }
  func.func @transform_3(%arg0: i32) -> (i32, i32) {
    %c0_i32 = arith.constant 0 : i32
    %c0_i32_0 = arith.constant 0 : i32
    return %c0_i32, %arg0 : i32, i32
  }
  func.func @transform_4(%arg0: i32) -> (i32, i32) {
    %c0_i32 = arith.constant 0 : i32
    %c0_i32_0 = arith.constant 0 : i32
    return %c0_i32, %arg0 : i32, i32
  }
}

module attributes {stable_mosaic.version = 11 : i64} {
  func.func @_matmul_bias_kernel(%arg0: i32, %arg1: memref<16x32xbf16, #tpu.memory_space<vmem>>, %arg2: memref<32x16xbf16, #tpu.memory_space<vmem>>, %arg3: memref<16x1xf32, #tpu.memory_space<vmem>>, %arg4: memref<16x16xf32, #tpu.memory_space<vmem>>) attributes {dimension_semantics = [#tpu.dimension_semantics<parallel>], iteration_bounds = array<i64: 1>, scalar_prefetch = 0 : i64, scratch_operands = 0 : i64, tpu.core_type = #tpu.core_type<tc>, window_params = [{pipeline_mode = #tpu.pipeline_mode<synchronous>, transform_indices = @transform_0, window_bounds = array<i64: 16, 32>}, {transform_indices = @transform_1, window_bounds = array<i64: 32, 16>}, {pipeline_mode = #tpu.pipeline_mode<synchronous>, transform_indices = @transform_2, window_bounds = array<i64: 16, 1>}, {transform_indices = @transform_3, window_bounds = array<i64: 16, 16>}]} {
    %c0 = arith.constant 0 : index
    %c0_0 = arith.constant 0 : index
    %0 = vector.load %arg1[%c0, %c0_0] : memref<16x32xbf16, #tpu.memory_space<vmem>>, vector<16x32xbf16>
    %c0_1 = arith.constant 0 : index
    %c0_2 = arith.constant 0 : index
    %1 = vector.load %arg2[%c0_1, %c0_2] : memref<32x16xbf16, #tpu.memory_space<vmem>>, vector<32x16xbf16>
    %cst = arith.constant dense<0.000000e+00> : vector<16x16xf32>
    %2 = tpu.matmul %0, %1, %cst {dimension_numbers = #tpu.dot_dimension_numbers<[1], [0], [0], [1], [0, 0, 1, 1], [], []>} : vector<16x32xbf16>, vector<32x16xbf16>, vector<16x16xf32> -> vector<16x16xf32>
    %c0_3 = arith.constant 0 : index
    %c0_4 = arith.constant 0 : index
    %3 = vector.load %arg3[%c0_3, %c0_4] : memref<16x1xf32, #tpu.memory_space<vmem>>, vector<16x1xf32>
    %4 = vector.broadcast %3 : vector<16x1xf32> to vector<16x16xf32>
    %5 = arith.addf %2, %4 : vector<16x16xf32>
    %c0_5 = arith.constant 0 : index
    %c0_6 = arith.constant 0 : index
    %6 = vector.load %arg4[%c0_5, %c0_6] : memref<16x16xf32, #tpu.memory_space<vmem>>, vector<16x16xf32>
    tpu.vector_store %arg4[%c0_5, %c0_6], %5 {strides = array<i32>} : memref<16x16xf32, #tpu.memory_space<vmem>>, vector<16x16xf32>,
    return
  }
  func.func @transform_0(%arg0: i32) -> (i32, i32) {
    %c0_i32 = arith.constant 0 : i32
    %c0_i32_0 = arith.constant 0 : i32
    %c0_i32_1 = arith.constant 0 : i32
    return %c0_i32, %c0_i32_0 : i32, i32
  }
  func.func @transform_1(%arg0: i32) -> (i32, i32) {
    %c0_i32 = arith.constant 0 : i32
    %c0_i32_0 = arith.constant 0 : i32
    return %c0_i32, %arg0 : i32, i32
  }
  func.func @transform_2(%arg0: i32) -> (i32, i32) {
    %c0_i32 = arith.constant 0 : i32
    %c0_i32_0 = arith.constant 0 : i32
    %c0_i32_1 = arith.constant 0 : i32
    return %c0_i32, %c0_i32_0 : i32, i32
  }
  func.func @transform_3(%arg0: i32) -> (i32, i32) {
    %c0_i32 = arith.constant 0 : i32
    %c0_i32_0 = arith.constant 0 : i32
    return %c0_i32, %arg0 : i32, i32
  }
}

module attributes {stable_mosaic.version = 11 : i64} {
  func.func @_matmul_bias_kernel(%arg0: i32, %arg1: memref<16x64xbf16, #tpu.memory_space<vmem>>, %arg2: memref<64x16xbf16, #tpu.memory_space<vmem>>, %arg3: memref<16x1xf32, #tpu.memory_space<vmem>>, %arg4: memref<16x16xf32, #tpu.memory_space<vmem>>) attributes {dimension_semantics = [#tpu.dimension_semantics<parallel>], iteration_bounds = array<i64: 1>, scalar_prefetch = 0 : i64, scratch_operands = 0 : i64, tpu.core_type = #tpu.core_type<tc>, window_params = [{pipeline_mode = #tpu.pipeline_mode<synchronous>, transform_indices = @transform_0, window_bounds = array<i64: 16, 64>}, {transform_indices = @transform_1, window_bounds = array<i64: 64, 16>}, {pipeline_mode = #tpu.pipeline_mode<synchronous>, transform_indices = @transform_2, window_bounds = array<i64: 16, 1>}, {transform_indices = @transform_3, window_bounds = array<i64: 16, 16>}]} {
    %c0 = arith.constant 0 : index
    %c0_0 = arith.constant 0 : index
    %0 = vector.load %arg1[%c0, %c0_0] : memref<16x64xbf16, #tpu.memory_space<vmem>>, vector<16x64xbf16>
    %c0_1 = arith.constant 0 : index
    %c0_2 = arith.constant 0 : index
    %1 = vector.load %arg2[%c0_1, %c0_2] : memref<64x16xbf16, #tpu.memory_space<vmem>>, vector<64x16xbf16>
    %cst = arith.constant dense<0.000000e+00> : vector<16x16xf32>
    %2 = tpu.matmul %0, %1, %cst {dimension_numbers = #tpu.dot_dimension_numbers<[1], [0], [0], [1], [0, 0, 1, 1], [], []>} : vector<16x64xbf16>, vector<64x16xbf16>, vector<16x16xf32> -> vector<16x16xf32>
    %c0_3 = arith.constant 0 : index
    %c0_4 = arith.constant 0 : index
    %3 = vector.load %arg3[%c0_3, %c0_4] : memref<16x1xf32, #tpu.memory_space<vmem>>, vector<16x1xf32>
    %4 = vector.broadcast %3 : vector<16x1xf32> to vector<16x16xf32>
    %5 = arith.addf %2, %4 : vector<16x16xf32>
    %c0_5 = arith.constant 0 : index
    %c0_6 = arith.constant 0 : index
    %6 = vector.load %arg4[%c0_5, %c0_6] : memref<16x16xf32, #tpu.memory_space<vmem>>, vector<16x16xf32>
    tpu.vector_store %arg4[%c0_5, %c0_6], %5 {strides = array<i32>} : memref<16x16xf32, #tpu.memory_space<vmem>>, vector<16x16xf32>,
    return
  }
  func.func @transform_0(%arg0: i32) -> (i32, i32) {
    %c0_i32 = arith.constant 0 : i32
    %c0_i32_0 = arith.constant 0 : i32
    %c0_i32_1 = arith.constant 0 : i32
    return %c0_i32, %c0_i32_0 : i32, i32
  }
  func.func @transform_1(%arg0: i32) -> (i32, i32) {
    %c0_i32 = arith.constant 0 : i32
    %c0_i32_0 = arith.constant 0 : i32
    return %c0_i32, %arg0 : i32, i32
  }
  func.func @transform_2(%arg0: i32) -> (i32, i32) {
    %c0_i32 = arith.constant 0 : i32
    %c0_i32_0 = arith.constant 0 : i32
    %c0_i32_1 = arith.constant 0 : i32
    return %c0_i32, %c0_i32_0 : i32, i32
  }
  func.func @transform_3(%arg0: i32) -> (i32, i32) {
    %c0_i32 = arith.constant 0 : i32
    %c0_i32_0 = arith.constant 0 : i32
    return %c0_i32, %arg0 : i32, i32
  }
}

module attributes {stable_mosaic.version = 11 : i64} {
  func.func @_matmul_bias_kernel(%arg0: i32, %arg1: memref<16x128xbf16, #tpu.memory_space<vmem>>, %arg2: memref<128x16xbf16, #tpu.memory_space<vmem>>, %arg3: memref<16x1xf32, #tpu.memory_space<vmem>>, %arg4: memref<16x16xf32, #tpu.memory_space<vmem>>) attributes {dimension_semantics = [#tpu.dimension_semantics<parallel>], iteration_bounds = array<i64: 1>, scalar_prefetch = 0 : i64, scratch_operands = 0 : i64, tpu.core_type = #tpu.core_type<tc>, window_params = [{pipeline_mode = #tpu.pipeline_mode<synchronous>, transform_indices = @transform_0, window_bounds = array<i64: 16, 128>}, {transform_indices = @transform_1, window_bounds = array<i64: 128, 16>}, {pipeline_mode = #tpu.pipeline_mode<synchronous>, transform_indices = @transform_2, window_bounds = array<i64: 16, 1>}, {transform_indices = @transform_3, window_bounds = array<i64: 16, 16>}]} {
    %c0 = arith.constant 0 : index
    %c0_0 = arith.constant 0 : index
    %0 = vector.load %arg1[%c0, %c0_0] : memref<16x128xbf16, #tpu.memory_space<vmem>>, vector<16x128xbf16>
    %c0_1 = arith.constant 0 : index
    %c0_2 = arith.constant 0 : index
    %1 = vector.load %arg2[%c0_1, %c0_2] : memref<128x16xbf16, #tpu.memory_space<vmem>>, vector<128x16xbf16>
    %cst = arith.constant dense<0.000000e+00> : vector<16x16xf32>
    %2 = tpu.matmul %0, %1, %cst {dimension_numbers = #tpu.dot_dimension_numbers<[1], [0], [0], [1], [0, 0, 1, 1], [], []>} : vector<16x128xbf16>, vector<128x16xbf16>, vector<16x16xf32> -> vector<16x16xf32>
    %c0_3 = arith.constant 0 : index
    %c0_4 = arith.constant 0 : index
    %3 = vector.load %arg3[%c0_3, %c0_4] : memref<16x1xf32, #tpu.memory_space<vmem>>, vector<16x1xf32>
    %4 = vector.broadcast %3 : vector<16x1xf32> to vector<16x16xf32>
    %5 = arith.addf %2, %4 : vector<16x16xf32>
    %c0_5 = arith.constant 0 : index
    %c0_6 = arith.constant 0 : index
    %6 = vector.load %arg4[%c0_5, %c0_6] : memref<16x16xf32, #tpu.memory_space<vmem>>, vector<16x16xf32>
    tpu.vector_store %arg4[%c0_5, %c0_6], %5 {strides = array<i32>} : memref<16x16xf32, #tpu.memory_space<vmem>>, vector<16x16xf32>,
    return
  }
  func.func @transform_0(%arg0: i32) -> (i32, i32) {
    %c0_i32 = arith.constant 0 : i32
    %c0_i32_0 = arith.constant 0 : i32
    %c0_i32_1 = arith.constant 0 : i32
    return %c0_i32, %c0_i32_0 : i32, i32
  }
  func.func @transform_1(%arg0: i32) -> (i32, i32) {
    %c0_i32 = arith.constant 0 : i32
    %c0_i32_0 = arith.constant 0 : i32
    return %c0_i32, %arg0 : i32, i32
  }
  func.func @transform_2(%arg0: i32) -> (i32, i32) {
    %c0_i32 = arith.constant 0 : i32
    %c0_i32_0 = arith.constant 0 : i32
    %c0_i32_1 = arith.constant 0 : i32
    return %c0_i32, %c0_i32_0 : i32, i32
  }
  func.func @transform_3(%arg0: i32) -> (i32, i32) {
    %c0_i32 = arith.constant 0 : i32
    %c0_i32_0 = arith.constant 0 : i32
    return %c0_i32, %arg0 : i32, i32
  }
}

module attributes {stable_mosaic.version = 11 : i64} {
  func.func @_attn_kernel(%arg0: i32, %arg1: memref<1x64x16xbf16, #tpu.memory_space<vmem>>, %arg2: memref<1x16x8xbf16, #tpu.memory_space<vmem>>, %arg3: memref<1x16x8xbf16, #tpu.memory_space<vmem>>, %arg4: memref<1x16x64xf32, #tpu.memory_space<vmem>>) attributes {dimension_semantics = [#tpu.dimension_semantics<parallel>], iteration_bounds = array<i64: 2>, scalar_prefetch = 0 : i64, scratch_operands = 0 : i64, tpu.core_type = #tpu.core_type<tc>, window_params = [{transform_indices = @transform_0, window_bounds = array<i64: 1, 64, 16>}, {transform_indices = @transform_1, window_bounds = array<i64: 1, 16, 8>}, {transform_indices = @transform_2, window_bounds = array<i64: 1, 16, 8>}, {transform_indices = @transform_3, window_bounds = array<i64: 1, 16, 64>}]} {
    %c0 = arith.constant 0 : index
    %c0_0 = arith.constant 0 : index
    %c0_1 = arith.constant 0 : index
    %0 = vector.load %arg1[%c0, %c0_0, %c0_1] : memref<1x64x16xbf16, #tpu.memory_space<vmem>>, vector<1x64x16xbf16>
    %1 = vector.shape_cast %0 : vector<1x64x16xbf16> to vector<64x16xbf16>
    %c0_2 = arith.constant 0 : index
    %c0_3 = arith.constant 0 : index
    %c0_4 = arith.constant 0 : index
    %2 = vector.load %arg2[%c0_2, %c0_3, %c0_4] : memref<1x16x8xbf16, #tpu.memory_space<vmem>>, vector<1x16x8xbf16>
    %3 = vector.shape_cast %2 : vector<1x16x8xbf16> to vector<16x8xbf16>
    %c0_5 = arith.constant 0 : index
    %c0_6 = arith.constant 0 : index
    %c0_7 = arith.constant 0 : index
    %4 = vector.load %arg3[%c0_5, %c0_6, %c0_7] : memref<1x16x8xbf16, #tpu.memory_space<vmem>>, vector<1x16x8xbf16>
    %5 = vector.shape_cast %4 : vector<1x16x8xbf16> to vector<16x8xbf16>
    %cst = arith.constant dense<0.000000e+00> : vector<64x8xf32>
    %6 = tpu.matmul %1, %3, %cst {dimension_numbers = #tpu.dot_dimension_numbers<[1], [0], [0], [1], [0, 0, 1, 1], [], []>} : vector<64x16xbf16>, vector<16x8xbf16>, vector<64x8xf32> -> vector<64x8xf32>
    %cst_8 = arith.constant dense<0xFF800000> : vector<64xf32>
    %7 = vector.multi_reduction <maximumf>, %6, %cst_8 [1] : vector<64x8xf32> to vector<64xf32>
    %8 = vector.shape_cast %7 : vector<64xf32> to vector<64x1xf32>
    %9 = vector.broadcast %8 : vector<64x1xf32> to vector<64x8xf32>
    %10 = arith.subf %6, %9 : vector<64x8xf32>
    %11 = math.exp %10 : vector<64x8xf32>
    %cst_9 = arith.constant dense<0.000000e+00> : vector<64xf32>
    %12 = vector.multi_reduction <add>, %11, %cst_9 [1] : vector<64x8xf32> to vector<64xf32>
    %13 = vector.shape_cast %12 : vector<64xf32> to vector<64x1xf32>
    %14 = tpu.reciprocal %13 {approx = true} : vector<64x1xf32> -> vector<64x1xf32>
    %15 = vector.broadcast %14 : vector<64x1xf32> to vector<64x8xf32>
    %16 = arith.mulf %11, %15 : vector<64x8xf32>
    %17 = arith.truncf %16 : vector<64x8xf32> to vector<64x8xbf16>
    %cst_10 = arith.constant dense<0.000000e+00> : vector<16x64xf32>
    %18 = tpu.matmul %5, %17, %cst_10 {dimension_numbers = #tpu.dot_dimension_numbers<[1], [1], [0], [0], [0, 0, 1, 0], [], []>} : vector<16x8xbf16>, vector<64x8xbf16>, vector<16x64xf32> -> vector<16x64xf32>
    %c0_11 = arith.constant 0 : index
    %c0_12 = arith.constant 0 : index
    %c0_13 = arith.constant 0 : index
    %19 = vector.load %arg4[%c0_11, %c0_12, %c0_13] : memref<1x16x64xf32, #tpu.memory_space<vmem>>, vector<1x16x64xf32>
    %20 = vector.shape_cast %19 : vector<1x16x64xf32> to vector<16x64xf32>
    %21 = vector.shape_cast %18 : vector<16x64xf32> to vector<1x16x64xf32>
    tpu.vector_store %arg4[%c0_11, %c0_12, %c0_13], %21 {strides = array<i32>} : memref<1x16x64xf32, #tpu.memory_space<vmem>>, vector<1x16x64xf32>,
    return
  }
  func.func @transform_0(%arg0: i32) -> (i32, i32, i32) {
    %c0_i32 = arith.constant 0 : i32
    %c0_i32_0 = arith.constant 0 : i32
    %c0_i32_1 = arith.constant 0 : i32
    return %arg0, %c0_i32, %c0_i32_0 : i32, i32, i32
  }
  func.func @transform_1(%arg0: i32) -> (i32, i32, i32) {
    %c0_i32 = arith.constant 0 : i32
    %c0_i32_0 = arith.constant 0 : i32
    %c0_i32_1 = arith.constant 0 : i32
    return %arg0, %c0_i32, %c0_i32_0 : i32, i32, i32
  }
  func.func @transform_2(%arg0: i32) -> (i32, i32, i32) {
    %c0_i32 = arith.constant 0 : i32
    %c0_i32_0 = arith.constant 0 : i32
    %c0_i32_1 = arith.constant 0 : i32
    return %arg0, %c0_i32, %c0_i32_0 : i32, i32, i32
  }
  func.func @transform_3(%arg0: i32) -> (i32, i32, i32) {
    %c0_i32 = arith.constant 0 : i32
    %c0_i32_0 = arith.constant 0 : i32
    %c0_i32_1 = arith.constant 0 : i32
    return %arg0, %c0_i32, %c0_i32_0 : i32, i32, i32
  }
}

module attributes {stable_mosaic.version = 11 : i64} {
  func.func @_matmul_bias_add_kernel(%arg0: i32, %arg1: memref<16x16xbf16, #tpu.memory_space<vmem>>, %arg2: memref<16x128xbf16, #tpu.memory_space<vmem>>, %arg3: memref<16x1xf32, #tpu.memory_space<vmem>>, %arg4: memref<16x128xf32, #tpu.memory_space<vmem>>, %arg5: memref<16x128xf32, #tpu.memory_space<vmem>>) attributes {dimension_semantics = [#tpu.dimension_semantics<parallel>], iteration_bounds = array<i64: 1>, scalar_prefetch = 0 : i64, scratch_operands = 0 : i64, tpu.core_type = #tpu.core_type<tc>, window_params = [{pipeline_mode = #tpu.pipeline_mode<synchronous>, transform_indices = @transform_0, window_bounds = array<i64: 16, 16>}, {transform_indices = @transform_1, window_bounds = array<i64: 16, 128>}, {pipeline_mode = #tpu.pipeline_mode<synchronous>, transform_indices = @transform_2, window_bounds = array<i64: 16, 1>}, {transform_indices = @transform_3, window_bounds = array<i64: 16, 128>}, {transform_indices = @transform_4, window_bounds = array<i64: 16, 128>}]} {
    %c0 = arith.constant 0 : index
    %c0_0 = arith.constant 0 : index
    %0 = vector.load %arg1[%c0, %c0_0] : memref<16x16xbf16, #tpu.memory_space<vmem>>, vector<16x16xbf16>
    %c0_1 = arith.constant 0 : index
    %c0_2 = arith.constant 0 : index
    %1 = vector.load %arg2[%c0_1, %c0_2] : memref<16x128xbf16, #tpu.memory_space<vmem>>, vector<16x128xbf16>
    %cst = arith.constant dense<0.000000e+00> : vector<16x128xf32>
    %2 = tpu.matmul %0, %1, %cst {dimension_numbers = #tpu.dot_dimension_numbers<[1], [0], [0], [1], [0, 0, 1, 1], [], []>} : vector<16x16xbf16>, vector<16x128xbf16>, vector<16x128xf32> -> vector<16x128xf32>
    %c0_3 = arith.constant 0 : index
    %c0_4 = arith.constant 0 : index
    %3 = vector.load %arg3[%c0_3, %c0_4] : memref<16x1xf32, #tpu.memory_space<vmem>>, vector<16x1xf32>
    %4 = vector.broadcast %3 : vector<16x1xf32> to vector<16x128xf32>
    %5 = arith.addf %2, %4 : vector<16x128xf32>
    %c0_5 = arith.constant 0 : index
    %c0_6 = arith.constant 0 : index
    %6 = vector.load %arg4[%c0_5, %c0_6] : memref<16x128xf32, #tpu.memory_space<vmem>>, vector<16x128xf32>
    %7 = arith.addf %5, %6 : vector<16x128xf32>
    %c0_7 = arith.constant 0 : index
    %c0_8 = arith.constant 0 : index
    %8 = vector.load %arg5[%c0_7, %c0_8] : memref<16x128xf32, #tpu.memory_space<vmem>>, vector<16x128xf32>
    tpu.vector_store %arg5[%c0_7, %c0_8], %7 {strides = array<i32>} : memref<16x128xf32, #tpu.memory_space<vmem>>, vector<16x128xf32>,
    return
  }
  func.func @transform_0(%arg0: i32) -> (i32, i32) {
    %c0_i32 = arith.constant 0 : i32
    %c0_i32_0 = arith.constant 0 : i32
    %c0_i32_1 = arith.constant 0 : i32
    return %c0_i32, %c0_i32_0 : i32, i32
  }
  func.func @transform_1(%arg0: i32) -> (i32, i32) {
    %c0_i32 = arith.constant 0 : i32
    %c0_i32_0 = arith.constant 0 : i32
    return %c0_i32, %arg0 : i32, i32
  }
  func.func @transform_2(%arg0: i32) -> (i32, i32) {
    %c0_i32 = arith.constant 0 : i32
    %c0_i32_0 = arith.constant 0 : i32
    %c0_i32_1 = arith.constant 0 : i32
    return %c0_i32, %c0_i32_0 : i32, i32
  }
  func.func @transform_3(%arg0: i32) -> (i32, i32) {
    %c0_i32 = arith.constant 0 : i32
    %c0_i32_0 = arith.constant 0 : i32
    return %c0_i32, %arg0 : i32, i32
  }
  func.func @transform_4(%arg0: i32) -> (i32, i32) {
    %c0_i32 = arith.constant 0 : i32
    %c0_i32_0 = arith.constant 0 : i32
    return %c0_i32, %arg0 : i32, i32
  }
}

module attributes {stable_mosaic.version = 11 : i64} {
  func.func @_bn_relu6_kernel(%arg0: i32, %arg1: memref<16x128xf32, #tpu.memory_space<vmem>>, %arg2: memref<16x1xf32, #tpu.memory_space<vmem>>, %arg3: memref<16x1xf32, #tpu.memory_space<vmem>>, %arg4: memref<16x128xbf16, #tpu.memory_space<vmem>>) attributes {dimension_semantics = [#tpu.dimension_semantics<parallel>], iteration_bounds = array<i64: 1>, scalar_prefetch = 0 : i64, scratch_operands = 0 : i64, tpu.core_type = #tpu.core_type<tc>, window_params = [{transform_indices = @transform_0, window_bounds = array<i64: 16, 128>}, {pipeline_mode = #tpu.pipeline_mode<synchronous>, transform_indices = @transform_1, window_bounds = array<i64: 16, 1>}, {pipeline_mode = #tpu.pipeline_mode<synchronous>, transform_indices = @transform_2, window_bounds = array<i64: 16, 1>}, {transform_indices = @transform_3, window_bounds = array<i64: 16, 128>}]} {
    %c0 = arith.constant 0 : index
    %c0_0 = arith.constant 0 : index
    %0 = vector.load %arg1[%c0, %c0_0] : memref<16x128xf32, #tpu.memory_space<vmem>>, vector<16x128xf32>
    %c0_1 = arith.constant 0 : index
    %c0_2 = arith.constant 0 : index
    %1 = vector.load %arg2[%c0_1, %c0_2] : memref<16x1xf32, #tpu.memory_space<vmem>>, vector<16x1xf32>
    %2 = vector.broadcast %1 : vector<16x1xf32> to vector<16x128xf32>
    %3 = arith.mulf %0, %2 : vector<16x128xf32>
    %c0_3 = arith.constant 0 : index
    %c0_4 = arith.constant 0 : index
    %4 = vector.load %arg3[%c0_3, %c0_4] : memref<16x1xf32, #tpu.memory_space<vmem>>, vector<16x1xf32>
    %5 = vector.broadcast %4 : vector<16x1xf32> to vector<16x128xf32>
    %6 = arith.addf %3, %5 : vector<16x128xf32>
    %cst = arith.constant 0.000000e+00 : f32
    %cst_5 = arith.constant 6.000000e+00 : f32
    %7 = vector.broadcast %cst : f32 to vector<16x128xf32>
    %8 = arith.maximumf %7, %6 : vector<16x128xf32>
    %9 = vector.broadcast %cst_5 : f32 to vector<16x128xf32>
    %10 = arith.minimumf %9, %8 : vector<16x128xf32>
    %11 = arith.truncf %10 : vector<16x128xf32> to vector<16x128xbf16>
    %c0_6 = arith.constant 0 : index
    %c0_7 = arith.constant 0 : index
    %12 = vector.load %arg4[%c0_6, %c0_7] : memref<16x128xbf16, #tpu.memory_space<vmem>>, vector<16x128xbf16>
    tpu.vector_store %arg4[%c0_6, %c0_7], %11 {strides = array<i32>} : memref<16x128xbf16, #tpu.memory_space<vmem>>, vector<16x128xbf16>,
    return
  }
  func.func @transform_0(%arg0: i32) -> (i32, i32) {
    %c0_i32 = arith.constant 0 : i32
    %c0_i32_0 = arith.constant 0 : i32
    return %c0_i32, %arg0 : i32, i32
  }
  func.func @transform_1(%arg0: i32) -> (i32, i32) {
    %c0_i32 = arith.constant 0 : i32
    %c0_i32_0 = arith.constant 0 : i32
    %c0_i32_1 = arith.constant 0 : i32
    return %c0_i32, %c0_i32_0 : i32, i32
  }
  func.func @transform_2(%arg0: i32) -> (i32, i32) {
    %c0_i32 = arith.constant 0 : i32
    %c0_i32_0 = arith.constant 0 : i32
    %c0_i32_1 = arith.constant 0 : i32
    return %c0_i32, %c0_i32_0 : i32, i32
  }
  func.func @transform_3(%arg0: i32) -> (i32, i32) {
    %c0_i32 = arith.constant 0 : i32
    %c0_i32_0 = arith.constant 0 : i32
    return %c0_i32, %arg0 : i32, i32
  }
}

module attributes {stable_mosaic.version = 11 : i64} {
  func.func @_matmul_bias_kernel(%arg0: i32, %arg1: memref<16x432xbf16, #tpu.memory_space<vmem>>, %arg2: memref<432x128xbf16, #tpu.memory_space<vmem>>, %arg3: memref<16x1xf32, #tpu.memory_space<vmem>>, %arg4: memref<16x128xf32, #tpu.memory_space<vmem>>) attributes {dimension_semantics = [#tpu.dimension_semantics<parallel>], iteration_bounds = array<i64: 1>, scalar_prefetch = 0 : i64, scratch_operands = 0 : i64, tpu.core_type = #tpu.core_type<tc>, window_params = [{pipeline_mode = #tpu.pipeline_mode<synchronous>, transform_indices = @transform_0, window_bounds = array<i64: 16, 432>}, {transform_indices = @transform_1, window_bounds = array<i64: 432, 128>}, {pipeline_mode = #tpu.pipeline_mode<synchronous>, transform_indices = @transform_2, window_bounds = array<i64: 16, 1>}, {transform_indices = @transform_3, window_bounds = array<i64: 16, 128>}]} {
    %c0 = arith.constant 0 : index
    %c0_0 = arith.constant 0 : index
    %0 = vector.load %arg1[%c0, %c0_0] : memref<16x432xbf16, #tpu.memory_space<vmem>>, vector<16x432xbf16>
    %c0_1 = arith.constant 0 : index
    %c0_2 = arith.constant 0 : index
    %1 = vector.load %arg2[%c0_1, %c0_2] : memref<432x128xbf16, #tpu.memory_space<vmem>>, vector<432x128xbf16>
    %cst = arith.constant dense<0.000000e+00> : vector<16x128xf32>
    %2 = tpu.matmul %0, %1, %cst {dimension_numbers = #tpu.dot_dimension_numbers<[1], [0], [0], [1], [0, 0, 1, 1], [], []>} : vector<16x432xbf16>, vector<432x128xbf16>, vector<16x128xf32> -> vector<16x128xf32>
    %c0_3 = arith.constant 0 : index
    %c0_4 = arith.constant 0 : index
    %3 = vector.load %arg3[%c0_3, %c0_4] : memref<16x1xf32, #tpu.memory_space<vmem>>, vector<16x1xf32>
    %4 = vector.broadcast %3 : vector<16x1xf32> to vector<16x128xf32>
    %5 = arith.addf %2, %4 : vector<16x128xf32>
    %c0_5 = arith.constant 0 : index
    %c0_6 = arith.constant 0 : index
    %6 = vector.load %arg4[%c0_5, %c0_6] : memref<16x128xf32, #tpu.memory_space<vmem>>, vector<16x128xf32>
    tpu.vector_store %arg4[%c0_5, %c0_6], %5 {strides = array<i32>} : memref<16x128xf32, #tpu.memory_space<vmem>>, vector<16x128xf32>,
    return
  }
  func.func @transform_0(%arg0: i32) -> (i32, i32) {
    %c0_i32 = arith.constant 0 : i32
    %c0_i32_0 = arith.constant 0 : i32
    %c0_i32_1 = arith.constant 0 : i32
    return %c0_i32, %c0_i32_0 : i32, i32
  }
  func.func @transform_1(%arg0: i32) -> (i32, i32) {
    %c0_i32 = arith.constant 0 : i32
    %c0_i32_0 = arith.constant 0 : i32
    return %c0_i32, %arg0 : i32, i32
  }
  func.func @transform_2(%arg0: i32) -> (i32, i32) {
    %c0_i32 = arith.constant 0 : i32
    %c0_i32_0 = arith.constant 0 : i32
    %c0_i32_1 = arith.constant 0 : i32
    return %c0_i32, %c0_i32_0 : i32, i32
  }
  func.func @transform_3(%arg0: i32) -> (i32, i32) {
    %c0_i32 = arith.constant 0 : i32
    %c0_i32_0 = arith.constant 0 : i32
    return %c0_i32, %arg0 : i32, i32
  }
}

module attributes {stable_mosaic.version = 11 : i64} {
  func.func @_matmul_bias_add_kernel(%arg0: i32, %arg1: memref<16x432xbf16, #tpu.memory_space<vmem>>, %arg2: memref<432x128xbf16, #tpu.memory_space<vmem>>, %arg3: memref<16x1xf32, #tpu.memory_space<vmem>>, %arg4: memref<16x128xf32, #tpu.memory_space<vmem>>, %arg5: memref<16x128xf32, #tpu.memory_space<vmem>>) attributes {dimension_semantics = [#tpu.dimension_semantics<parallel>], iteration_bounds = array<i64: 1>, scalar_prefetch = 0 : i64, scratch_operands = 0 : i64, tpu.core_type = #tpu.core_type<tc>, window_params = [{pipeline_mode = #tpu.pipeline_mode<synchronous>, transform_indices = @transform_0, window_bounds = array<i64: 16, 432>}, {transform_indices = @transform_1, window_bounds = array<i64: 432, 128>}, {pipeline_mode = #tpu.pipeline_mode<synchronous>, transform_indices = @transform_2, window_bounds = array<i64: 16, 1>}, {transform_indices = @transform_3, window_bounds = array<i64: 16, 128>}, {transform_indices = @transform_4, window_bounds = array<i64: 16, 128>}]} {
    %c0 = arith.constant 0 : index
    %c0_0 = arith.constant 0 : index
    %0 = vector.load %arg1[%c0, %c0_0] : memref<16x432xbf16, #tpu.memory_space<vmem>>, vector<16x432xbf16>
    %c0_1 = arith.constant 0 : index
    %c0_2 = arith.constant 0 : index
    %1 = vector.load %arg2[%c0_1, %c0_2] : memref<432x128xbf16, #tpu.memory_space<vmem>>, vector<432x128xbf16>
    %cst = arith.constant dense<0.000000e+00> : vector<16x128xf32>
    %2 = tpu.matmul %0, %1, %cst {dimension_numbers = #tpu.dot_dimension_numbers<[1], [0], [0], [1], [0, 0, 1, 1], [], []>} : vector<16x432xbf16>, vector<432x128xbf16>, vector<16x128xf32> -> vector<16x128xf32>
    %c0_3 = arith.constant 0 : index
    %c0_4 = arith.constant 0 : index
    %3 = vector.load %arg3[%c0_3, %c0_4] : memref<16x1xf32, #tpu.memory_space<vmem>>, vector<16x1xf32>
    %4 = vector.broadcast %3 : vector<16x1xf32> to vector<16x128xf32>
    %5 = arith.addf %2, %4 : vector<16x128xf32>
    %c0_5 = arith.constant 0 : index
    %c0_6 = arith.constant 0 : index
    %6 = vector.load %arg4[%c0_5, %c0_6] : memref<16x128xf32, #tpu.memory_space<vmem>>, vector<16x128xf32>
    %7 = arith.addf %5, %6 : vector<16x128xf32>
    %c0_7 = arith.constant 0 : index
    %c0_8 = arith.constant 0 : index
    %8 = vector.load %arg5[%c0_7, %c0_8] : memref<16x128xf32, #tpu.memory_space<vmem>>, vector<16x128xf32>
    tpu.vector_store %arg5[%c0_7, %c0_8], %7 {strides = array<i32>} : memref<16x128xf32, #tpu.memory_space<vmem>>, vector<16x128xf32>,
    return
  }
  func.func @transform_0(%arg0: i32) -> (i32, i32) {
    %c0_i32 = arith.constant 0 : i32
    %c0_i32_0 = arith.constant 0 : i32
    %c0_i32_1 = arith.constant 0 : i32
    return %c0_i32, %c0_i32_0 : i32, i32
  }
  func.func @transform_1(%arg0: i32) -> (i32, i32) {
    %c0_i32 = arith.constant 0 : i32
    %c0_i32_0 = arith.constant 0 : i32
    return %c0_i32, %arg0 : i32, i32
  }
  func.func @transform_2(%arg0: i32) -> (i32, i32) {
    %c0_i32 = arith.constant 0 : i32
    %c0_i32_0 = arith.constant 0 : i32
    %c0_i32_1 = arith.constant 0 : i32
    return %c0_i32, %c0_i32_0 : i32, i32
  }
  func.func @transform_3(%arg0: i32) -> (i32, i32) {
    %c0_i32 = arith.constant 0 : i32
    %c0_i32_0 = arith.constant 0 : i32
    return %c0_i32, %arg0 : i32, i32
  }
  func.func @transform_4(%arg0: i32) -> (i32, i32) {
    %c0_i32 = arith.constant 0 : i32
    %c0_i32_0 = arith.constant 0 : i32
    return %c0_i32, %arg0 : i32, i32
  }
}

module attributes {stable_mosaic.version = 11 : i64} {
  func.func @_matmul_bias_kernel(%arg0: i32, %arg1: memref<16x128xbf16, #tpu.memory_space<vmem>>, %arg2: memref<128x128xbf16, #tpu.memory_space<vmem>>, %arg3: memref<16x1xf32, #tpu.memory_space<vmem>>, %arg4: memref<16x128xf32, #tpu.memory_space<vmem>>) attributes {dimension_semantics = [#tpu.dimension_semantics<parallel>], iteration_bounds = array<i64: 1>, scalar_prefetch = 0 : i64, scratch_operands = 0 : i64, tpu.core_type = #tpu.core_type<tc>, window_params = [{pipeline_mode = #tpu.pipeline_mode<synchronous>, transform_indices = @transform_0, window_bounds = array<i64: 16, 128>}, {transform_indices = @transform_1, window_bounds = array<i64: 128, 128>}, {pipeline_mode = #tpu.pipeline_mode<synchronous>, transform_indices = @transform_2, window_bounds = array<i64: 16, 1>}, {transform_indices = @transform_3, window_bounds = array<i64: 16, 128>}]} {
    %c0 = arith.constant 0 : index
    %c0_0 = arith.constant 0 : index
    %0 = vector.load %arg1[%c0, %c0_0] : memref<16x128xbf16, #tpu.memory_space<vmem>>, vector<16x128xbf16>
    %c0_1 = arith.constant 0 : index
    %c0_2 = arith.constant 0 : index
    %1 = vector.load %arg2[%c0_1, %c0_2] : memref<128x128xbf16, #tpu.memory_space<vmem>>, vector<128x128xbf16>
    %cst = arith.constant dense<0.000000e+00> : vector<16x128xf32>
    %2 = tpu.matmul %0, %1, %cst {dimension_numbers = #tpu.dot_dimension_numbers<[1], [0], [0], [1], [0, 0, 1, 1], [], []>} : vector<16x128xbf16>, vector<128x128xbf16>, vector<16x128xf32> -> vector<16x128xf32>
    %c0_3 = arith.constant 0 : index
    %c0_4 = arith.constant 0 : index
    %3 = vector.load %arg3[%c0_3, %c0_4] : memref<16x1xf32, #tpu.memory_space<vmem>>, vector<16x1xf32>
    %4 = vector.broadcast %3 : vector<16x1xf32> to vector<16x128xf32>
    %5 = arith.addf %2, %4 : vector<16x128xf32>
    %c0_5 = arith.constant 0 : index
    %c0_6 = arith.constant 0 : index
    %6 = vector.load %arg4[%c0_5, %c0_6] : memref<16x128xf32, #tpu.memory_space<vmem>>, vector<16x128xf32>
    tpu.vector_store %arg4[%c0_5, %c0_6], %5 {strides = array<i32>} : memref<16x128xf32, #tpu.memory_space<vmem>>, vector<16x128xf32>,
    return
  }
  func.func @transform_0(%arg0: i32) -> (i32, i32) {
    %c0_i32 = arith.constant 0 : i32
    %c0_i32_0 = arith.constant 0 : i32
    %c0_i32_1 = arith.constant 0 : i32
    return %c0_i32, %c0_i32_0 : i32, i32
  }
  func.func @transform_1(%arg0: i32) -> (i32, i32) {
    %c0_i32 = arith.constant 0 : i32
    %c0_i32_0 = arith.constant 0 : i32
    return %c0_i32, %arg0 : i32, i32
  }
  func.func @transform_2(%arg0: i32) -> (i32, i32) {
    %c0_i32 = arith.constant 0 : i32
    %c0_i32_0 = arith.constant 0 : i32
    %c0_i32_1 = arith.constant 0 : i32
    return %c0_i32, %c0_i32_0 : i32, i32
  }
  func.func @transform_3(%arg0: i32) -> (i32, i32) {
    %c0_i32 = arith.constant 0 : i32
    %c0_i32_0 = arith.constant 0 : i32
    return %c0_i32, %arg0 : i32, i32
  }
}

module attributes {stable_mosaic.version = 11 : i64} {
  func.func @_attn_kernel(%arg0: i32, %arg1: memref<1x512x16xbf16, #tpu.memory_space<vmem>>, %arg2: memref<1x16x64xbf16, #tpu.memory_space<vmem>>, %arg3: memref<1x16x64xbf16, #tpu.memory_space<vmem>>, %arg4: memref<1x16x512xf32, #tpu.memory_space<vmem>>) attributes {dimension_semantics = [#tpu.dimension_semantics<parallel>], iteration_bounds = array<i64: 2>, scalar_prefetch = 0 : i64, scratch_operands = 0 : i64, tpu.core_type = #tpu.core_type<tc>, window_params = [{transform_indices = @transform_0, window_bounds = array<i64: 1, 512, 16>}, {transform_indices = @transform_1, window_bounds = array<i64: 1, 16, 64>}, {transform_indices = @transform_2, window_bounds = array<i64: 1, 16, 64>}, {transform_indices = @transform_3, window_bounds = array<i64: 1, 16, 512>}]} {
    %c0 = arith.constant 0 : index
    %c0_0 = arith.constant 0 : index
    %c0_1 = arith.constant 0 : index
    %0 = vector.load %arg1[%c0, %c0_0, %c0_1] : memref<1x512x16xbf16, #tpu.memory_space<vmem>>, vector<1x512x16xbf16>
    %1 = vector.shape_cast %0 : vector<1x512x16xbf16> to vector<512x16xbf16>
    %c0_2 = arith.constant 0 : index
    %c0_3 = arith.constant 0 : index
    %c0_4 = arith.constant 0 : index
    %2 = vector.load %arg2[%c0_2, %c0_3, %c0_4] : memref<1x16x64xbf16, #tpu.memory_space<vmem>>, vector<1x16x64xbf16>
    %3 = vector.shape_cast %2 : vector<1x16x64xbf16> to vector<16x64xbf16>
    %c0_5 = arith.constant 0 : index
    %c0_6 = arith.constant 0 : index
    %c0_7 = arith.constant 0 : index
    %4 = vector.load %arg3[%c0_5, %c0_6, %c0_7] : memref<1x16x64xbf16, #tpu.memory_space<vmem>>, vector<1x16x64xbf16>
    %5 = vector.shape_cast %4 : vector<1x16x64xbf16> to vector<16x64xbf16>
    %cst = arith.constant dense<0.000000e+00> : vector<512x64xf32>
    %6 = tpu.matmul %1, %3, %cst {dimension_numbers = #tpu.dot_dimension_numbers<[1], [0], [0], [1], [0, 0, 1, 1], [], []>} : vector<512x16xbf16>, vector<16x64xbf16>, vector<512x64xf32> -> vector<512x64xf32>
    %cst_8 = arith.constant dense<0xFF800000> : vector<512xf32>
    %7 = vector.multi_reduction <maximumf>, %6, %cst_8 [1] : vector<512x64xf32> to vector<512xf32>
    %8 = vector.shape_cast %7 : vector<512xf32> to vector<512x1xf32>
    %9 = vector.broadcast %8 : vector<512x1xf32> to vector<512x64xf32>
    %10 = arith.subf %6, %9 : vector<512x64xf32>
    %11 = math.exp %10 : vector<512x64xf32>
    %cst_9 = arith.constant dense<0.000000e+00> : vector<512xf32>
    %12 = vector.multi_reduction <add>, %11, %cst_9 [1] : vector<512x64xf32> to vector<512xf32>
    %13 = vector.shape_cast %12 : vector<512xf32> to vector<512x1xf32>
    %14 = tpu.reciprocal %13 {approx = true} : vector<512x1xf32> -> vector<512x1xf32>
    %15 = vector.broadcast %14 : vector<512x1xf32> to vector<512x64xf32>
    %16 = arith.mulf %11, %15 : vector<512x64xf32>
    %17 = arith.truncf %16 : vector<512x64xf32> to vector<512x64xbf16>
    %cst_10 = arith.constant dense<0.000000e+00> : vector<16x512xf32>
    %18 = tpu.matmul %5, %17, %cst_10 {dimension_numbers = #tpu.dot_dimension_numbers<[1], [1], [0], [0], [0, 0, 1, 0], [], []>} : vector<16x64xbf16>, vector<512x64xbf16>, vector<16x512xf32> -> vector<16x512xf32>
    %c0_11 = arith.constant 0 : index
    %c0_12 = arith.constant 0 : index
    %c0_13 = arith.constant 0 : index
    %19 = vector.load %arg4[%c0_11, %c0_12, %c0_13] : memref<1x16x512xf32, #tpu.memory_space<vmem>>, vector<1x16x512xf32>
    %20 = vector.shape_cast %19 : vector<1x16x512xf32> to vector<16x512xf32>
    %21 = vector.shape_cast %18 : vector<16x512xf32> to vector<1x16x512xf32>
    tpu.vector_store %arg4[%c0_11, %c0_12, %c0_13], %21 {strides = array<i32>} : memref<1x16x512xf32, #tpu.memory_space<vmem>>, vector<1x16x512xf32>,
    return
  }
  func.func @transform_0(%arg0: i32) -> (i32, i32, i32) {
    %c0_i32 = arith.constant 0 : i32
    %c0_i32_0 = arith.constant 0 : i32
    %c0_i32_1 = arith.constant 0 : i32
    return %arg0, %c0_i32, %c0_i32_0 : i32, i32, i32
  }
  func.func @transform_1(%arg0: i32) -> (i32, i32, i32) {
    %c0_i32 = arith.constant 0 : i32
    %c0_i32_0 = arith.constant 0 : i32
    %c0_i32_1 = arith.constant 0 : i32
    return %arg0, %c0_i32, %c0_i32_0 : i32, i32, i32
  }
  func.func @transform_2(%arg0: i32) -> (i32, i32, i32) {
    %c0_i32 = arith.constant 0 : i32
    %c0_i32_0 = arith.constant 0 : i32
    %c0_i32_1 = arith.constant 0 : i32
    return %arg0, %c0_i32, %c0_i32_0 : i32, i32, i32
  }
  func.func @transform_3(%arg0: i32) -> (i32, i32, i32) {
    %c0_i32 = arith.constant 0 : i32
    %c0_i32_0 = arith.constant 0 : i32
    %c0_i32_1 = arith.constant 0 : i32
    return %arg0, %c0_i32, %c0_i32_0 : i32, i32, i32
  }
}

module attributes {stable_mosaic.version = 11 : i64} {
  func.func @_matmul_bias_add_kernel(%arg0: i32, %arg1: memref<16x16xbf16, #tpu.memory_space<vmem>>, %arg2: memref<16x512xbf16, #tpu.memory_space<vmem>>, %arg3: memref<16x1xf32, #tpu.memory_space<vmem>>, %arg4: memref<16x512xf32, #tpu.memory_space<vmem>>, %arg5: memref<16x512xf32, #tpu.memory_space<vmem>>) attributes {dimension_semantics = [#tpu.dimension_semantics<parallel>], iteration_bounds = array<i64: 2>, scalar_prefetch = 0 : i64, scratch_operands = 0 : i64, tpu.core_type = #tpu.core_type<tc>, window_params = [{pipeline_mode = #tpu.pipeline_mode<synchronous>, transform_indices = @transform_0, window_bounds = array<i64: 16, 16>}, {transform_indices = @transform_1, window_bounds = array<i64: 16, 512>}, {pipeline_mode = #tpu.pipeline_mode<synchronous>, transform_indices = @transform_2, window_bounds = array<i64: 16, 1>}, {transform_indices = @transform_3, window_bounds = array<i64: 16, 512>}, {transform_indices = @transform_4, window_bounds = array<i64: 16, 512>}]} {
    %c0 = arith.constant 0 : index
    %c0_0 = arith.constant 0 : index
    %0 = vector.load %arg1[%c0, %c0_0] : memref<16x16xbf16, #tpu.memory_space<vmem>>, vector<16x16xbf16>
    %c0_1 = arith.constant 0 : index
    %c0_2 = arith.constant 0 : index
    %1 = vector.load %arg2[%c0_1, %c0_2] : memref<16x512xbf16, #tpu.memory_space<vmem>>, vector<16x512xbf16>
    %cst = arith.constant dense<0.000000e+00> : vector<16x512xf32>
    %2 = tpu.matmul %0, %1, %cst {dimension_numbers = #tpu.dot_dimension_numbers<[1], [0], [0], [1], [0, 0, 1, 1], [], []>} : vector<16x16xbf16>, vector<16x512xbf16>, vector<16x512xf32> -> vector<16x512xf32>
    %c0_3 = arith.constant 0 : index
    %c0_4 = arith.constant 0 : index
    %3 = vector.load %arg3[%c0_3, %c0_4] : memref<16x1xf32, #tpu.memory_space<vmem>>, vector<16x1xf32>
    %4 = vector.broadcast %3 : vector<16x1xf32> to vector<16x512xf32>
    %5 = arith.addf %2, %4 : vector<16x512xf32>
    %c0_5 = arith.constant 0 : index
    %c0_6 = arith.constant 0 : index
    %6 = vector.load %arg4[%c0_5, %c0_6] : memref<16x512xf32, #tpu.memory_space<vmem>>, vector<16x512xf32>
    %7 = arith.addf %5, %6 : vector<16x512xf32>
    %c0_7 = arith.constant 0 : index
    %c0_8 = arith.constant 0 : index
    %8 = vector.load %arg5[%c0_7, %c0_8] : memref<16x512xf32, #tpu.memory_space<vmem>>, vector<16x512xf32>
    tpu.vector_store %arg5[%c0_7, %c0_8], %7 {strides = array<i32>} : memref<16x512xf32, #tpu.memory_space<vmem>>, vector<16x512xf32>,
    return
  }
  func.func @transform_0(%arg0: i32) -> (i32, i32) {
    %c0_i32 = arith.constant 0 : i32
    %c0_i32_0 = arith.constant 0 : i32
    %c0_i32_1 = arith.constant 0 : i32
    return %c0_i32, %c0_i32_0 : i32, i32
  }
  func.func @transform_1(%arg0: i32) -> (i32, i32) {
    %c0_i32 = arith.constant 0 : i32
    %c0_i32_0 = arith.constant 0 : i32
    return %c0_i32, %arg0 : i32, i32
  }
  func.func @transform_2(%arg0: i32) -> (i32, i32) {
    %c0_i32 = arith.constant 0 : i32
    %c0_i32_0 = arith.constant 0 : i32
    %c0_i32_1 = arith.constant 0 : i32
    return %c0_i32, %c0_i32_0 : i32, i32
  }
  func.func @transform_3(%arg0: i32) -> (i32, i32) {
    %c0_i32 = arith.constant 0 : i32
    %c0_i32_0 = arith.constant 0 : i32
    return %c0_i32, %arg0 : i32, i32
  }
  func.func @transform_4(%arg0: i32) -> (i32, i32) {
    %c0_i32 = arith.constant 0 : i32
    %c0_i32_0 = arith.constant 0 : i32
    return %c0_i32, %arg0 : i32, i32
  }
}

module attributes {stable_mosaic.version = 11 : i64} {
  func.func @_bn_relu6_kernel(%arg0: i32, %arg1: memref<16x512xf32, #tpu.memory_space<vmem>>, %arg2: memref<16x1xf32, #tpu.memory_space<vmem>>, %arg3: memref<16x1xf32, #tpu.memory_space<vmem>>, %arg4: memref<16x512xbf16, #tpu.memory_space<vmem>>) attributes {dimension_semantics = [#tpu.dimension_semantics<parallel>], iteration_bounds = array<i64: 2>, scalar_prefetch = 0 : i64, scratch_operands = 0 : i64, tpu.core_type = #tpu.core_type<tc>, window_params = [{transform_indices = @transform_0, window_bounds = array<i64: 16, 512>}, {pipeline_mode = #tpu.pipeline_mode<synchronous>, transform_indices = @transform_1, window_bounds = array<i64: 16, 1>}, {pipeline_mode = #tpu.pipeline_mode<synchronous>, transform_indices = @transform_2, window_bounds = array<i64: 16, 1>}, {transform_indices = @transform_3, window_bounds = array<i64: 16, 512>}]} {
    %c0 = arith.constant 0 : index
    %c0_0 = arith.constant 0 : index
    %0 = vector.load %arg1[%c0, %c0_0] : memref<16x512xf32, #tpu.memory_space<vmem>>, vector<16x512xf32>
    %c0_1 = arith.constant 0 : index
    %c0_2 = arith.constant 0 : index
    %1 = vector.load %arg2[%c0_1, %c0_2] : memref<16x1xf32, #tpu.memory_space<vmem>>, vector<16x1xf32>
    %2 = vector.broadcast %1 : vector<16x1xf32> to vector<16x512xf32>
    %3 = arith.mulf %0, %2 : vector<16x512xf32>
    %c0_3 = arith.constant 0 : index
    %c0_4 = arith.constant 0 : index
    %4 = vector.load %arg3[%c0_3, %c0_4] : memref<16x1xf32, #tpu.memory_space<vmem>>, vector<16x1xf32>
    %5 = vector.broadcast %4 : vector<16x1xf32> to vector<16x512xf32>
    %6 = arith.addf %3, %5 : vector<16x512xf32>
    %cst = arith.constant 0.000000e+00 : f32
    %cst_5 = arith.constant 6.000000e+00 : f32
    %7 = vector.broadcast %cst : f32 to vector<16x512xf32>
    %8 = arith.maximumf %7, %6 : vector<16x512xf32>
    %9 = vector.broadcast %cst_5 : f32 to vector<16x512xf32>
    %10 = arith.minimumf %9, %8 : vector<16x512xf32>
    %11 = arith.truncf %10 : vector<16x512xf32> to vector<16x512xbf16>
    %c0_6 = arith.constant 0 : index
    %c0_7 = arith.constant 0 : index
    %12 = vector.load %arg4[%c0_6, %c0_7] : memref<16x512xbf16, #tpu.memory_space<vmem>>, vector<16x512xbf16>
    tpu.vector_store %arg4[%c0_6, %c0_7], %11 {strides = array<i32>} : memref<16x512xbf16, #tpu.memory_space<vmem>>, vector<16x512xbf16>,
    return
  }
  func.func @transform_0(%arg0: i32) -> (i32, i32) {
    %c0_i32 = arith.constant 0 : i32
    %c0_i32_0 = arith.constant 0 : i32
    return %c0_i32, %arg0 : i32, i32
  }
  func.func @transform_1(%arg0: i32) -> (i32, i32) {
    %c0_i32 = arith.constant 0 : i32
    %c0_i32_0 = arith.constant 0 : i32
    %c0_i32_1 = arith.constant 0 : i32
    return %c0_i32, %c0_i32_0 : i32, i32
  }
  func.func @transform_2(%arg0: i32) -> (i32, i32) {
    %c0_i32 = arith.constant 0 : i32
    %c0_i32_0 = arith.constant 0 : i32
    %c0_i32_1 = arith.constant 0 : i32
    return %c0_i32, %c0_i32_0 : i32, i32
  }
  func.func @transform_3(%arg0: i32) -> (i32, i32) {
    %c0_i32 = arith.constant 0 : i32
    %c0_i32_0 = arith.constant 0 : i32
    return %c0_i32, %arg0 : i32, i32
  }
}

module attributes {stable_mosaic.version = 11 : i64} {
  func.func @_matmul_bias_add_kernel(%arg0: i32, %arg1: memref<16x432xbf16, #tpu.memory_space<vmem>>, %arg2: memref<432x512xbf16, #tpu.memory_space<vmem>>, %arg3: memref<16x1xf32, #tpu.memory_space<vmem>>, %arg4: memref<16x512xf32, #tpu.memory_space<vmem>>, %arg5: memref<16x512xf32, #tpu.memory_space<vmem>>) attributes {dimension_semantics = [#tpu.dimension_semantics<parallel>], iteration_bounds = array<i64: 2>, scalar_prefetch = 0 : i64, scratch_operands = 0 : i64, tpu.core_type = #tpu.core_type<tc>, window_params = [{pipeline_mode = #tpu.pipeline_mode<synchronous>, transform_indices = @transform_0, window_bounds = array<i64: 16, 432>}, {transform_indices = @transform_1, window_bounds = array<i64: 432, 512>}, {pipeline_mode = #tpu.pipeline_mode<synchronous>, transform_indices = @transform_2, window_bounds = array<i64: 16, 1>}, {transform_indices = @transform_3, window_bounds = array<i64: 16, 512>}, {transform_indices = @transform_4, window_bounds = array<i64: 16, 512>}]} {
    %c0 = arith.constant 0 : index
    %c0_0 = arith.constant 0 : index
    %0 = vector.load %arg1[%c0, %c0_0] : memref<16x432xbf16, #tpu.memory_space<vmem>>, vector<16x432xbf16>
    %c0_1 = arith.constant 0 : index
    %c0_2 = arith.constant 0 : index
    %1 = vector.load %arg2[%c0_1, %c0_2] : memref<432x512xbf16, #tpu.memory_space<vmem>>, vector<432x512xbf16>
    %cst = arith.constant dense<0.000000e+00> : vector<16x512xf32>
    %2 = tpu.matmul %0, %1, %cst {dimension_numbers = #tpu.dot_dimension_numbers<[1], [0], [0], [1], [0, 0, 1, 1], [], []>} : vector<16x432xbf16>, vector<432x512xbf16>, vector<16x512xf32> -> vector<16x512xf32>
    %c0_3 = arith.constant 0 : index
    %c0_4 = arith.constant 0 : index
    %3 = vector.load %arg3[%c0_3, %c0_4] : memref<16x1xf32, #tpu.memory_space<vmem>>, vector<16x1xf32>
    %4 = vector.broadcast %3 : vector<16x1xf32> to vector<16x512xf32>
    %5 = arith.addf %2, %4 : vector<16x512xf32>
    %c0_5 = arith.constant 0 : index
    %c0_6 = arith.constant 0 : index
    %6 = vector.load %arg4[%c0_5, %c0_6] : memref<16x512xf32, #tpu.memory_space<vmem>>, vector<16x512xf32>
    %7 = arith.addf %5, %6 : vector<16x512xf32>
    %c0_7 = arith.constant 0 : index
    %c0_8 = arith.constant 0 : index
    %8 = vector.load %arg5[%c0_7, %c0_8] : memref<16x512xf32, #tpu.memory_space<vmem>>, vector<16x512xf32>
    tpu.vector_store %arg5[%c0_7, %c0_8], %7 {strides = array<i32>} : memref<16x512xf32, #tpu.memory_space<vmem>>, vector<16x512xf32>,
    return
  }
  func.func @transform_0(%arg0: i32) -> (i32, i32) {
    %c0_i32 = arith.constant 0 : i32
    %c0_i32_0 = arith.constant 0 : i32
    %c0_i32_1 = arith.constant 0 : i32
    return %c0_i32, %c0_i32_0 : i32, i32
  }
  func.func @transform_1(%arg0: i32) -> (i32, i32) {
    %c0_i32 = arith.constant 0 : i32
    %c0_i32_0 = arith.constant 0 : i32
    return %c0_i32, %arg0 : i32, i32
  }
  func.func @transform_2(%arg0: i32) -> (i32, i32) {
    %c0_i32 = arith.constant 0 : i32
    %c0_i32_0 = arith.constant 0 : i32
    %c0_i32_1 = arith.constant 0 : i32
    return %c0_i32, %c0_i32_0 : i32, i32
  }
  func.func @transform_3(%arg0: i32) -> (i32, i32) {
    %c0_i32 = arith.constant 0 : i32
    %c0_i32_0 = arith.constant 0 : i32
    return %c0_i32, %arg0 : i32, i32
  }
  func.func @transform_4(%arg0: i32) -> (i32, i32) {
    %c0_i32 = arith.constant 0 : i32
    %c0_i32_0 = arith.constant 0 : i32
    return %c0_i32, %arg0 : i32, i32
  }
}

module attributes {stable_mosaic.version = 11 : i64} {
  func.func @_matmul_bias_kernel(%arg0: i32, %arg1: memref<16x432xbf16, #tpu.memory_space<vmem>>, %arg2: memref<432x512xbf16, #tpu.memory_space<vmem>>, %arg3: memref<16x1xf32, #tpu.memory_space<vmem>>, %arg4: memref<16x512xf32, #tpu.memory_space<vmem>>) attributes {dimension_semantics = [#tpu.dimension_semantics<parallel>], iteration_bounds = array<i64: 2>, scalar_prefetch = 0 : i64, scratch_operands = 0 : i64, tpu.core_type = #tpu.core_type<tc>, window_params = [{pipeline_mode = #tpu.pipeline_mode<synchronous>, transform_indices = @transform_0, window_bounds = array<i64: 16, 432>}, {transform_indices = @transform_1, window_bounds = array<i64: 432, 512>}, {pipeline_mode = #tpu.pipeline_mode<synchronous>, transform_indices = @transform_2, window_bounds = array<i64: 16, 1>}, {transform_indices = @transform_3, window_bounds = array<i64: 16, 512>}]} {
    %c0 = arith.constant 0 : index
    %c0_0 = arith.constant 0 : index
    %0 = vector.load %arg1[%c0, %c0_0] : memref<16x432xbf16, #tpu.memory_space<vmem>>, vector<16x432xbf16>
    %c0_1 = arith.constant 0 : index
    %c0_2 = arith.constant 0 : index
    %1 = vector.load %arg2[%c0_1, %c0_2] : memref<432x512xbf16, #tpu.memory_space<vmem>>, vector<432x512xbf16>
    %cst = arith.constant dense<0.000000e+00> : vector<16x512xf32>
    %2 = tpu.matmul %0, %1, %cst {dimension_numbers = #tpu.dot_dimension_numbers<[1], [0], [0], [1], [0, 0, 1, 1], [], []>} : vector<16x432xbf16>, vector<432x512xbf16>, vector<16x512xf32> -> vector<16x512xf32>
    %c0_3 = arith.constant 0 : index
    %c0_4 = arith.constant 0 : index
    %3 = vector.load %arg3[%c0_3, %c0_4] : memref<16x1xf32, #tpu.memory_space<vmem>>, vector<16x1xf32>
    %4 = vector.broadcast %3 : vector<16x1xf32> to vector<16x512xf32>
    %5 = arith.addf %2, %4 : vector<16x512xf32>
    %c0_5 = arith.constant 0 : index
    %c0_6 = arith.constant 0 : index
    %6 = vector.load %arg4[%c0_5, %c0_6] : memref<16x512xf32, #tpu.memory_space<vmem>>, vector<16x512xf32>
    tpu.vector_store %arg4[%c0_5, %c0_6], %5 {strides = array<i32>} : memref<16x512xf32, #tpu.memory_space<vmem>>, vector<16x512xf32>,
    return
  }
  func.func @transform_0(%arg0: i32) -> (i32, i32) {
    %c0_i32 = arith.constant 0 : i32
    %c0_i32_0 = arith.constant 0 : i32
    %c0_i32_1 = arith.constant 0 : i32
    return %c0_i32, %c0_i32_0 : i32, i32
  }
  func.func @transform_1(%arg0: i32) -> (i32, i32) {
    %c0_i32 = arith.constant 0 : i32
    %c0_i32_0 = arith.constant 0 : i32
    return %c0_i32, %arg0 : i32, i32
  }
  func.func @transform_2(%arg0: i32) -> (i32, i32) {
    %c0_i32 = arith.constant 0 : i32
    %c0_i32_0 = arith.constant 0 : i32
    %c0_i32_1 = arith.constant 0 : i32
    return %c0_i32, %c0_i32_0 : i32, i32
  }
  func.func @transform_3(%arg0: i32) -> (i32, i32) {
    %c0_i32 = arith.constant 0 : i32
    %c0_i32_0 = arith.constant 0 : i32
    return %c0_i32, %arg0 : i32, i32
  }
}

module attributes {stable_mosaic.version = 11 : i64} {
  func.func @_matmul_bias_kernel(%arg0: i32, %arg1: memref<2x16xbf16, #tpu.memory_space<vmem>>, %arg2: memref<16x512xbf16, #tpu.memory_space<vmem>>, %arg3: memref<2x1xf32, #tpu.memory_space<vmem>>, %arg4: memref<2x512xf32, #tpu.memory_space<vmem>>) attributes {dimension_semantics = [#tpu.dimension_semantics<parallel>], iteration_bounds = array<i64: 2>, scalar_prefetch = 0 : i64, scratch_operands = 0 : i64, tpu.core_type = #tpu.core_type<tc>, window_params = [{pipeline_mode = #tpu.pipeline_mode<synchronous>, transform_indices = @transform_0, window_bounds = array<i64: 2, 16>}, {transform_indices = @transform_1, window_bounds = array<i64: 16, 512>}, {pipeline_mode = #tpu.pipeline_mode<synchronous>, transform_indices = @transform_2, window_bounds = array<i64: 2, 1>}, {transform_indices = @transform_3, window_bounds = array<i64: 2, 512>}]} {
    %c0 = arith.constant 0 : index
    %c0_0 = arith.constant 0 : index
    %0 = vector.load %arg1[%c0, %c0_0] : memref<2x16xbf16, #tpu.memory_space<vmem>>, vector<2x16xbf16>
    %c0_1 = arith.constant 0 : index
    %c0_2 = arith.constant 0 : index
    %1 = vector.load %arg2[%c0_1, %c0_2] : memref<16x512xbf16, #tpu.memory_space<vmem>>, vector<16x512xbf16>
    %cst = arith.constant dense<0.000000e+00> : vector<2x512xf32>
    %2 = tpu.matmul %0, %1, %cst {dimension_numbers = #tpu.dot_dimension_numbers<[1], [0], [0], [1], [0, 0, 1, 1], [], []>} : vector<2x16xbf16>, vector<16x512xbf16>, vector<2x512xf32> -> vector<2x512xf32>
    %c0_3 = arith.constant 0 : index
    %c0_4 = arith.constant 0 : index
    %3 = vector.load %arg3[%c0_3, %c0_4] : memref<2x1xf32, #tpu.memory_space<vmem>>, vector<2x1xf32>
    %4 = vector.broadcast %3 : vector<2x1xf32> to vector<2x512xf32>
    %5 = arith.addf %2, %4 : vector<2x512xf32>
    %c0_5 = arith.constant 0 : index
    %c0_6 = arith.constant 0 : index
    %6 = vector.load %arg4[%c0_5, %c0_6] : memref<2x512xf32, #tpu.memory_space<vmem>>, vector<2x512xf32>
    tpu.vector_store %arg4[%c0_5, %c0_6], %5 {strides = array<i32>} : memref<2x512xf32, #tpu.memory_space<vmem>>, vector<2x512xf32>,
    return
  }
  func.func @transform_0(%arg0: i32) -> (i32, i32) {
    %c0_i32 = arith.constant 0 : i32
    %c0_i32_0 = arith.constant 0 : i32
    %c0_i32_1 = arith.constant 0 : i32
    return %c0_i32, %c0_i32_0 : i32, i32
  }
  func.func @transform_1(%arg0: i32) -> (i32, i32) {
    %c0_i32 = arith.constant 0 : i32
    %c0_i32_0 = arith.constant 0 : i32
    return %c0_i32, %arg0 : i32, i32
  }
  func.func @transform_2(%arg0: i32) -> (i32, i32) {
    %c0_i32 = arith.constant 0 : i32
    %c0_i32_0 = arith.constant 0 : i32
    %c0_i32_1 = arith.constant 0 : i32
    return %c0_i32, %c0_i32_0 : i32, i32
  }
  func.func @transform_3(%arg0: i32) -> (i32, i32) {
    %c0_i32 = arith.constant 0 : i32
    %c0_i32_0 = arith.constant 0 : i32
    return %c0_i32, %arg0 : i32, i32
  }
}

</mosaic_0001>

<bundles_post_ra>
// kernel: network_forward.95
= control target key start
LH: loop header
LB: loop body
LE: loop exit
PB: predicated region body
PF: predicated region fallthrough
CT: control target
= control target key end

     0   :  { %s355_s12 = smov 0   ;;  %s382_s0 = inlined_call_operand.vmem [shape: f32[4,1024], index: 0, kind: input, shape index: {}]   ;;  %s383_s1 = inlined_call_operand.vmem [shape: f32[4,1], index: 1, kind: input, shape index: {}]   ;;  %s384_s2 = inlined_call_operand.vmem [shape: f32[4,1], index: 2, kind: input, shape index: {}]   ;;  %s385_s3 = inlined_call_operand.vmem [shape: bf16[4,1024], index: 3, kind: output, shape index: {}]  }
   0x1 LB: > { %s299_s13 = sadd.s32 4294967295, %s330_s12   ;;  %p303_p0 = scmp.ge.s32.totalorder %s330_s12, 1  ;;  %s330_s12 = sphi %s355_s12, %s13_s12  }
   0x2   : > { %p138_p1 = scmp.lt.s32.totalorder %s330_s12, 3 }
   0x4   : > { %p139_p2 = pnand %p303_p0, %p138_p1 }
   0x5   : > { %v176_v0 = vld [vmem:[%s383_s1] sm:$0xf] (!%p139_p2)  ;;  %v332_v1 = vmov (!%p139_p2), 0   ;;  %s304_s18 = sshll.u32 (!%p139_p2), %s299_s13, 2  ;;  %v333_v3 = vmov (!%p139_p2), 839922192   ;;  %v184_v5 = vlaneseq (!%p139_p2) }
   0x6   : > { %142 = sbr.rel (%p139_p2) target bundleno = 156 (0x9c), region = 32  ;;  %323 = vset.pattern.permute.xlu0 (!%p139_p2), %v332_v1  ;;  %v191_v2 = vld [vmem:[%s384_s2] sm:$0xf] (!%p139_p2)  ;;  %p163_p3 = scmp.lt.s32.totalorder (!%p139_p2), %s304_s18, 7  ;;  %v182_v4 = vunpack.c.l.s4 (!%p139_p2), %v333_v3  ;;  %v334_v14 = vmov (!%p139_p2), 1983009808  }
   0x7   : > { %179 = vperm.xlu0 (!%p139_p2), %323, %v176_v0   ;;  %v185_v7 = vshrl.u32 (!%p139_p2), %v184_v5, 7  ;;  %v227_v15 = vunpack.c.l.s4 (!%p139_p2), %v334_v14 }
   0x8   : > { %v183_v6 = vunpack.c.0.s8 (!%p139_p2), %v182_v4 }
   0x9   : > { %v228_v21 = vunpack.c.0.s8 (!%p139_p2), %v227_v15 }
   0xa   : > { %v186_v8 = vsub.s32 (!%p139_p2), %v183_v6, %v185_v7 }
   0xb   : > { %194 = vperm.xlu0 (!%p139_p2), %323, %v191_v2   ;;  %v231_v26 = vsub.s32 (!%p139_p2), %v228_v21, %v185_v7 }
   0xd   : > { %s387_s18 = smov (!%p163_p3, %s304_s18), 7 }
   0xe   : > { %s305_s19 = sshll.u32 %s387_s18, 2  ;;  %s307_s23 = sshll.u32 %s387_s18, 1 }
   0xf   : > { %s166_s22 = scalar_lea.vmem %s382_s0, %s305_s19  ;;  %s172_s26 = scalar_lea.vmem %s385_s3, %s307_s23 }
  0x10   : > { %v174_v11 = vld [vmem:[%s166_s22] sm:$0xff]  ;;  %v175_v12 = vld [vmem:[%s166_s22 + $0x8] sm:$0xff] }
  0x86   : > { %v180_v9 = vpop.permute.xlu0 %179 }
  0x87   : > { %v187_v10 = vrot.slane %v180_v9, %v186_v8 }
  0x89   : > { %v189_v16 = vmul.f32 %v187_v10, %v174_v11  ;;  %v190_v17 = vmul.f32 %v187_v10, %v175_v12 }
  0x8a   : > { %v195_v13 = vpop.permute.xlu0 %194 }
  0x8b   : > { %v202_v18 = vrot.slane %v195_v13, %v186_v8 }
  0x8d   : > { %v204_v19 = vadd.f32 %v202_v18, %v189_v16  ;;  %v205_v20 = vadd.f32 %v202_v18, %v190_v17 }
  0x8f   : > { %v206_v22 = vmax.f32 %v204_v19, 0.0  ;;  %v207_v23 = vmax.f32 %v205_v20, 0.0 }
  0x91   : > { %v208_v24 = vmin.f32 %v206_v22, 6.0  ;;  %v209_v25 = vmin.f32 %v207_v23, 6.0 }
  0x93   : > { %v212_v27 = vcombine.high %v208_v24, %v208_v24  ;;  %v213_v28 = vcombine.high %v209_v25, %v209_v25 }
  0x95   : > { %v308_v29 = vpack.c.bf16 %v212_v27, %v208_v24  ;;  %v309_v30 = vpack.c.bf16 %v213_v28, %v209_v25 }
  0x97   : > { %v232_v31 = vrot.slane %v308_v29, %v231_v26  ;;  %v239_v32 = vrot.slane %v309_v30, %v231_v26 }
  0x99   : > { %v240_v33 = vcombine.low %v232_v31, %v239_v32 }
  0x9b   : > { %242 = vst [vmem:[%s172_s26] sm:$0xff] %v240_v33 }
  0x9c PF: > { %s13_s12 = sadd.s32 1, %s330_s12  }
  0x9d   : > { %p10_p4 = scmp.ge.s32.totalorder %s13_s12, 4  }
  0x9f   :  { %12 = sbr.rel (!%p10_p4) target bundleno = 1 (0x1), region = 62 }

// kernel: network_forward.93
= control target key start
LH: loop header
LB: loop body
LE: loop exit
PB: predicated region body
PF: predicated region fallthrough
CT: control target
= control target key end

     0   :  { %s542_s12 = smov 0   ;;  %s544_s13 = smov 0   ;;  %s600_s0 = inlined_call_operand.vmem [shape: bf16[4,27], index: 0, kind: input, shape index: {}]   ;;  %s601_s1 = inlined_call_operand.vmem [shape: bf16[27,1024], index: 1, kind: input, shape index: {}]   ;;  %s602_s2 = inlined_call_operand.vmem [shape: f32[4,1], index: 2, kind: input, shape index: {}]   ;;  %s603_s3 = inlined_call_operand.vmem [shape: f32[4,1024], index: 3, kind: output, shape index: {}]  }
   0x1   :  { %s546_s14 = smov 0  }
   0x2 LB: > { %s433_s15 = sadd.s32 4294967295, %s518_s14   ;;  %s559_s16 = sadd.s32 1, %s518_s14   ;;  %s518_s14 = sphi %s546_s14, %s606_s14   ;;  %s514_s13 = sphi %s544_s13, %s605_s13   ;;  %s510_s12 = sphi %s542_s12, %s604_s12  }
   0x3   : > { %s38_s17 = ssub.s32 %s518_s14, %s559_s16  ;;  %s41_s18 = sadd.s32 1, %s514_s13 }
   0x4   : > { %p39_p0 = scmp.eq.s32.totalorder %s38_s17, 0  ;;  %p48_p1 = scmp.ne.s32.totalorder %s514_s13, %s510_s12 }
   0x5   : > { %p49_p2 = scmp.eq.s32.totalorder %s518_s14, 0  ;;  %p436_p4 = scmp.ge.s32.totalorder %s518_s14, 2 }
   0x6   : > { %s568_s19 = scalar_select %p39_p0, %s514_s13, %s41_s18  }
   0x7   : > { %p50_p3 = por %p49_p2, %p48_p1  ;;  %127 = sbr.rel (%p436_p4) target bundleno = 22 (0x16), region = 24 }
   0xe   : > { %130 = sbr.rel (!%p50_p3) target bundleno = 22 (0x16), region = 28  ;;  %s132_s20 = sand.u32 (%p50_p3), 1, %s514_s13  }
   0xf   : > { %s456_s21 = sshll.u32 (%p50_p3), %s518_s14, 4  ;;  %s437_s22 = sshll.u32 (%p50_p3), %s132_s20, 6 }
  0x10   : > { %s137_s25 = scalar_lea.vmem (%p50_p3), %s601_s1, %s456_s21  ;;  %s134_s26 = scalar_lea.vmem (%p50_p3), [#allocation2], %s437_s22 }
  0x11   : > { %v150_v0 = vld [vmem:[%s137_s25] sm:$0xff] (%p50_p3)  ;;  %v152_v1 = vld [vmem:[%s137_s25 + $0x8] sm:$0xff] (%p50_p3) }
  0x12   : > { %v154_v2 = vld [vmem:[%s137_s25 + $0x20] sm:$0xff] (%p50_p3)  ;;  %151 = vst [vmem:[%s134_s26] sm:$0xff] (%p50_p3), %v150_v0  ;;  %153 = vst [vmem:[%s134_s26 + $0x8] sm:$0xff] (%p50_p3), %v152_v1  ;;  %v156_v3 = vld [vmem:[%s137_s25 + $0x28] sm:$0xff] (%p50_p3) }
  0x13   : > { %155 = vst [vmem:[%s134_s26 + $0x10] sm:$0xff] (%p50_p3), %v154_v2  ;;  %v158_v4 = vld [vmem:[%s137_s25 + $0x40] sm:$0xff] (%p50_p3)  ;;  %v160_v5 = vld [vmem:[%s137_s25 + $0x48] sm:$0xff] (%p50_p3)  ;;  %157 = vst [vmem:[%s134_s26 + $0x18] sm:$0xff] (%p50_p3), %v156_v3 }
  0x14   : > { %159 = vst [vmem:[%s134_s26 + $0x20] sm:$0xff] (%p50_p3), %v158_v4  ;;  %161 = vst [vmem:[%s134_s26 + $0x28] sm:$0xff] (%p50_p3), %v160_v5  ;;  %v162_v6 = vld [vmem:[%s137_s25 + $0x60] sm:$0xff] (%p50_p3)  ;;  %v164_v7 = vld [vmem:[%s137_s25 + $0x68] sm:$0xff] (%p50_p3) }
  0x15   : > { %163 = vst [vmem:[%s134_s26 + $0x30] sm:$0xff] %v162_v6  ;;  %165 = vst [vmem:[%s134_s26 + $0x38] sm:$0xff] %v164_v7 }
  0x16 PF: > { %p440_p5 = scmp.ge.s32.totalorder %s518_s14, 1  ;;  %p170_p6 = scmp.lt.s32.totalorder %s518_s14, 3 }
  0x18   : > { %p171_p7 = pnand %p440_p5, %p170_p6 }
  0x19   : > { %s177_s27 = sand.u32 (!%p171_p7), 1, %s510_s12   ;;  %vm263_vm0 = vcmask (!%p171_p7), 1044480   ;;  %v520_v8 = vmov (!%p171_p7), 0   ;;  %vm264_vm1 = vcmask (!%p171_p7), 1045504   ;;  %v521_v9 = vmov (!%p171_p7), 65535   ;;  %s442_s7 = sshll.u32 (!%p171_p7), %s433_s15, 2 }
  0x1a   : > { %174 = sbr.rel (%p171_p7) target bundleno = 255 (0xff), region = 51  ;;  %s441_s28 = sshll.u32 (!%p171_p7), %s177_s27, 6  ;;  %311 = vmatprep.mubr.bf16.mxu0 (!%p171_p7), %v520_v8  ;;  %352 = vmatprep.mubr.bf16.mxu1 (!%p171_p7), %v520_v8  ;;  %v265_v10 = vsel (!%p171_p7), %vm263_vm0, 4294967295, %v521_v9  ;;  %v217_v11 = vld [vmem:[%s602_s2] sm:$0xf] (!%p171_p7)  ;;  %vm259_vm2 = vcmask (!%p171_p7), 220160  }
  0x1b   : > { %483 = vset.pattern.permute.xlu0 (!%p171_p7), %v520_v8  ;;  %s179_s4 = scalar_lea.vmem (!%p171_p7), [#allocation2], %s441_s28  ;;  %v266_v16 = vsel (!%p171_p7), %vm264_vm1, %v265_v10, 0  ;;  %v208_v25 = vld [vmem:[%s600_s0] sm:$0x3] (!%p171_p7)  ;;  %p202_p8 = scmp.lt.s32.totalorder (!%p171_p7), %s442_s7, 7 }
  0x1c   : > { %v484_v12 = vld [vmem:[%s179_s4 + $0x4] ss:$16 sps:$4 sm:$0xff] (!%p171_p7)   ;;  %220 = vperm.xlu0 (!%p171_p7), %483, %v217_v11   ;;  %v486_v13 = vld [vmem:[%s179_s4 + $0xc] ss:$16 sps:$4 sm:$0xff] (!%p171_p7)   ;;  %v488_v14 = vld [vmem:[%s179_s4] ss:$16 sps:$4 sm:$0xff] (!%p171_p7)  }
  0x1d   : > { %279 = vmatprep.subr.bf16.mxu0 (!%p171_p7), %v484_v12  ;;  %v489_v15 = vld [vmem:[%s179_s4 + $0x8] ss:$16 sps:$4 sm:$0xff] (!%p171_p7)   ;;  %320 = vmatprep.subr.bf16.mxu1 (!%p171_p7), %v486_v13  ;;  %v490_v17 = vld [vmem:[%s179_s4 + $0x24] ss:$16 sps:$4 sm:$0x3f] (!%p171_p7)  }
  0x1e   : > { %280 = vmatpush1.bf16.msra.mxu0 (!%p171_p7), %v488_v14  ;;  %321 = vmatpush1.bf16.msra.mxu1 (!%p171_p7), %v489_v15  ;;  %v492_v18 = vld [vmem:[%s179_s4 + $0x2c] ss:$16 sps:$4 sm:$0x3f] (!%p171_p7)   ;;  %v271_v19 = vand.u32 (!%p171_p7), %v490_v17, %v266_v16  ;;  %v494_v20 = vld [vmem:[%s179_s4 + $0x20] ss:$16 sps:$4 sm:$0x3f] (!%p171_p7)  }
  0x1f   : > { %v495_v21 = vld [vmem:[%s179_s4 + $0x28] ss:$16 sps:$4 sm:$0x3f] (!%p171_p7)   ;;  %v277_v22 = vand.u32 (!%p171_p7), %v492_v18, %v266_v16  ;;  %v268_v23 = vand.u32 (!%p171_p7), %v494_v20, %v266_v16 }
  0x20   : > { %281 = vmatprep.subr.bf16.mxu0 (!%p171_p7), %v271_v19  ;;  %v274_v24 = vand.u32 (!%p171_p7), %v495_v21, %v266_v16 }
  0x21   : > { %322 = vmatprep.subr.bf16.mxu1 %v277_v22  ;;  %s608_s7 = smov (!%p202_p8, %s442_s7), 7 }
  0x22   : > { %282 = vmatpush1.bf16.msra.mxu0 %v268_v23  ;;  %323 = vmatpush1.bf16.msra.mxu1 %v274_v24  ;;  %s443_s8 = sshll.u32 %s608_s7, 2 }
  0x23   : > { %s205_s11 = scalar_lea.vmem %s603_s3, %s443_s8 }
  0x25   : > { %452 = vmatmul.mubr.msk.bf16.vlgmr.msra.gmra.mrb[0].mxu0 %vm259_vm2, %v208_v25  ;;  %453 = vmatmul.mubr.msk.bf16.vlgmr.msra.gmra.mrb[0].mxu1 %vm259_vm2, %v208_v25 }
  0x9b   : > { %v221_v26 = vpop.permute.xlu0 %220 }
  0xf8   : > { %v313_v27 = vpop.f32.mrb[0].mxu0  ;;  %v354_v28 = vpop.f32.mrb[0].mxu1 }
  0xf9   : > { %v314_v29 = vadd.f32 %v313_v27, %v221_v26  ;;  %v355_v30 = vadd.f32 %v354_v28, %v221_v26  ;;  %v315_v31 = vpop.f32.mrb[1].mxu0  ;;  %v356_v32 = vpop.f32.mrb[1].mxu1 }
  0xfa   : > { %v316_v33 = vadd.f32 %v315_v31, %v221_v26  ;;  %v357_v34 = vadd.f32 %v356_v32, %v221_v26  ;;  %v317_v35 = vpop.f32.mrb[2].mxu0  ;;  %v358_v36 = vpop.f32.mrb[2].mxu1 }
  0xfb   : > { %v318_v37 = vpop.f32.mrb[3].mxu0  ;;  %v359_v38 = vpop.f32.mrb[3].mxu1 }
  0xfc   : > { %v365_v39 = vcombine.low %v314_v29, %v316_v33  ;;  %v366_v40 = vcombine.low %v355_v30, %v357_v34 }
  0xfe   : > { %369 = vst [vmem:[%s205_s11] sm:$0xff] %v365_v39  ;;  %370 = vst [vmem:[%s205_s11 + $0x8] sm:$0xff] %v366_v40 }
  0xff PF: > { %p10_p9 = scmp.ge.s32.totalorder %s559_s16, 4   ;;  %s604_s12 = smov %s514_s13 }
 0x100   : > { %s605_s13 = smov %s568_s19  ;;  %s606_s14 = smov %s559_s16 }
 0x101   :  { %12 = sbr.rel (!%p10_p9) target bundleno = 2 (0x2), region = 90 }

// kernel: network_forward.94
= control target key start
LH: loop header
LB: loop body
LE: loop exit
PB: predicated region body
PF: predicated region fallthrough
CT: control target
= control target key end

     0   :  { %vm27_vm0 = vcmask 1041408   ;;  %v89_v0 = vmov 0.0   ;;  %vm90_vm1 = vmmov 0   ;;  %v91_v4 = vmov 0   ;;  %s124_s1 = inlined_call_operand.vmem [shape: bf16[4,128], index: 1, kind: input, shape index: {}]   ;;  %s125_s0 = inlined_call_operand.vmem [shape: bf16[8,4], index: 0, kind: input, shape index: {}]   ;;  %s126_s2 = inlined_call_operand.vmem [shape: f32[8,1], index: 2, kind: input, shape index: {}]   ;;  %s127_s3 = inlined_call_operand.vmem [shape: f32[8,128], index: 3, kind: output, shape index: {}]  }
   0x1   :  { %79 = vmatprep.subr.bf16.mxu0 %v89_v0  ;;  %v16_v1 = vld [vmem:[%s124_s1] sm:$0x3]  ;;  %81 = vmatprep.mubr.msk.bf16.mxu0 %vm90_vm1, %v89_v0  ;;  %vm23_vm2 = vcmask 31744  }
   0x2   :  { %v17_v2 = vld [vmem:[%s126_s2] sm:$0xff]  ;;  %v29_v3 = vsel %vm27_vm0, %v16_v1, 0  ;;  %88 = vset.pattern.permute.xlu0 %v91_v4 }
   0x3   :  { %80 = vmatpush3.bf16.msra.mxu0 %v29_v3  ;;  %v15_v5 = vld [vmem:[%s125_s0] sm:$0xf]  ;;  %20 = vperm.xlu0 %88, %v17_v2  }
   0x6   :  { %82 = vmatmul.mubr.msk.bf16.vlgmr.msra.gmra.mrb[0].mxu0 %vm23_vm2, %v15_v5 }
  0x82   :  { %v21_v6 = vpop.permute.xlu0 %20 }
  0xd9   :  { %v65_v7 = vpop.f32.mrb[0].mxu0 }
  0xda   :  { %v66_v8 = vadd.f32 %v65_v7, %v21_v6  ;;  %v83_v9 = vpop.f32.mrb[1].mxu0 }
  0xdb   :  { %v68_v10 = vpop.f32.mrb[2].mxu0 }
  0xdc   :  { %71 = vst [vmem:[%s127_s3] sm:$0xff] %v66_v8  ;;  %v84_v11 = vpop.f32.mrb[3].mxu0 }

// kernel: network_forward.97
= control target key start
LH: loop header
LB: loop body
LE: loop exit
PB: predicated region body
PF: predicated region fallthrough
CT: control target
= control target key end

     0   :  { %v39_v0 = vmov 0   ;;  %s72_s1 = inlined_call_operand.vmem [shape: f32[8,1], index: 1, kind: input, shape index: {}]   ;;  %s73_s2 = inlined_call_operand.vmem [shape: f32[8,1], index: 2, kind: input, shape index: {}]   ;;  %s74_s0 = inlined_call_operand.vmem [shape: f32[8,128], index: 0, kind: input, shape index: {}]   ;;  %s75_s3 = inlined_call_operand.vmem [shape: bf16[8,128], index: 3, kind: output, shape index: {}]  }
   0x1   :  { %38 = vset.pattern.permute.xlu0 %v39_v0  ;;  %v15_v1 = vld [vmem:[%s72_s1] sm:$0xff] }
   0x2   :  { %18 = vperm.xlu0 %38, %v15_v1   ;;  %v22_v2 = vld [vmem:[%s73_s2] sm:$0xff] }
   0x3   :  { %v14_v4 = vld [vmem:[%s74_s0] sm:$0xff] }
   0x6   :  { %25 = vperm.xlu0 %38, %v22_v2  }
  0x81   :  { %v19_v3 = vpop.permute.xlu0 %18 }
  0x82   :  { %v21_v5 = vmul.f32 %v19_v3, %v14_v4 }
  0x85   :  { %v26_v6 = vpop.permute.xlu0 %25 }
  0x86   :  { %v28_v7 = vadd.f32 %v26_v6, %v21_v5 }
  0x88   :  { %v29_v8 = vmax.f32 %v28_v7, 0.0 }
  0x8a   :  { %v30_v9 = vmin.f32 %v29_v8, 6.0 }
  0x8c   :  { %v31_v10 = vpack.c.bf16 %v30_v9, %v30_v9 }
  0x8e   :  { %32 = vst [vmem:[%s75_s3] sm:$0xf] %v31_v10 }

// kernel: network_forward.96
= control target key start
LH: loop header
LB: loop body
LE: loop exit
PB: predicated region body
PF: predicated region fallthrough
CT: control target
= control target key end

     0   :  { %v175_v0 = vmov 0.0   ;;  %vm176_vm0 = vmmov 0   ;;  %v177_v2 = vmov 0   ;;  %vm81_vm1 = vcmask 1045504   ;;  %s228_s1 = inlined_call_operand.vmem [shape: bf16[108,128], index: 1, kind: input, shape index: {}]   ;;  %s229_s2 = inlined_call_operand.vmem [shape: f32[8,1], index: 2, kind: input, shape index: {}]   ;;  %s230_s0 = inlined_call_operand.vmem [shape: bf16[8,108], index: 0, kind: input, shape index: {}]   ;;  %s231_s3 = inlined_call_operand.vmem [shape: f32[8,128], index: 3, kind: output, shape index: {}]  }
   0x1   :  { %146 = vmatprep.subr.bf16.mxu0 %v175_v0  ;;  %v168_v1 = vld [vmem:[%s228_s1] sm:$0xff]   ;;  %160 = vmatprep.mubr.msk.bf16.mxu0 %vm176_vm0, %v175_v0  ;;  %v169_v3 = vld [vmem:[%s228_s1 + $0x8] sm:$0xff]   ;;  %v170_v4 = vld [vmem:[%s228_s1 + $0x10] sm:$0xff]   ;;  %vm77_vm2 = vcmask 883712  }
   0x2   :  { %167 = vset.pattern.permute.xlu0 %v177_v2  ;;  %147 = vmatpush3.bf16.msra.mxu0 %v168_v1  ;;  %v30_v5 = vld [vmem:[%s229_s2] sm:$0xff]  ;;  %v171_v6 = vld [vmem:[%s228_s1 + $0x18] sm:$0xff]   ;;  %v173_v8 = vld [vmem:[%s228_s1 + $0x28] sm:$0xff]  }
   0x3   :  { %148 = vmatprep.subr.bf16.mxu0 %v175_v0  ;;  %33 = vperm.xlu0 %167, %v30_v5   ;;  %v172_v7 = vld [vmem:[%s228_s1 + $0x20] sm:$0xff]   ;;  %v174_v9 = vld [vmem:[%s228_s1 + $0x30] sm:$0x3f]  }
   0x4   :  { %v83_v10 = vsel %vm81_vm1, %v174_v9, 0  ;;  %v15_v11 = vld [vmem:[%s230_s0] sm:$0xf] }
   0x6   :  { %149 = vmatpush3.bf16.msra.mxu0 %v169_v3 }
   0x7   :  { %150 = vmatprep.subr.bf16.mxu0 %v175_v0 }
   0xa   :  { %151 = vmatpush3.bf16.msra.mxu0 %v170_v4 }
   0xb   :  { %152 = vmatprep.subr.bf16.mxu0 %v175_v0 }
   0xe   :  { %153 = vmatpush3.bf16.msra.mxu0 %v171_v6 }
   0xf   :  { %154 = vmatprep.subr.bf16.mxu0 %v175_v0 }
  0x12   :  { %155 = vmatpush3.bf16.msra.mxu0 %v172_v7 }
  0x13   :  { %156 = vmatprep.subr.bf16.mxu0 %v175_v0 }
  0x16   :  { %157 = vmatpush3.bf16.msra.mxu0 %v173_v8 }
  0x17   :  { %158 = vmatprep.subr.bf16.mxu0 %v175_v0 }
  0x1a   :  { %159 = vmatpush3.bf16.msra.mxu0 %v83_v10 }
  0x1d   :  { %161 = vmatmul.mubr.msk.bf16.vlgmr.msra.gmra.mrb[0].mxu0 %vm77_vm2, %v15_v11 }
  0x82   :  { %v34_v12 = vpop.permute.xlu0 %33 }
  0xf0   :  { %v119_v13 = vpop.f32.mrb[0].mxu0 }
  0xf1   :  { %v120_v14 = vadd.f32 %v119_v13, %v34_v12  ;;  %v162_v15 = vpop.f32.mrb[1].mxu0 }
  0xf2   :  { %v122_v16 = vpop.f32.mrb[2].mxu0 }
  0xf3   :  { %125 = vst [vmem:[%s231_s3] sm:$0xff] %v120_v14  ;;  %v163_v17 = vpop.f32.mrb[3].mxu0 }

// kernel: network_forward.100
= control target key start
LH: loop header
LB: loop body
LE: loop exit
PB: predicated region body
PF: predicated region fallthrough
CT: control target
= control target key end

     0   :  { %v224_v0 = vmov 0   ;;  %vm136_vm0 = vcmask 719872   ;;  %vm140_vm1 = vcmask 1043456   ;;  %s296_s1 = inlined_call_operand.vmem [shape: bf16[216,128], index: 1, kind: input, shape index: {}]   ;;  %s297_s0 = inlined_call_operand.vmem [shape: bf16[8,216], index: 0, kind: input, shape index: {}]   ;;  %s298_s2 = inlined_call_operand.vmem [shape: f32[8,1], index: 2, kind: input, shape index: {}]   ;;  %s299_s3 = inlined_call_operand.vmem [shape: f32[8,128], index: 3, kind: output, shape index: {}]  }
   0x1   :  { %144 = vmatprep.subr.bf16.mxu0 %v224_v0  ;;  %v208_v1 = vld [vmem:[%s296_s1] sm:$0xff]   ;;  %207 = vset.pattern.permute.xlu0 %v224_v0  ;;  %v209_v2 = vld [vmem:[%s296_s1 + $0x8] sm:$0xff]   ;;  %v210_v3 = vld [vmem:[%s296_s1 + $0x10] sm:$0xff]  }
   0x2   :  { %145 = vmatpush1.bf16.msra.mxu0 %v208_v1  ;;  %v211_v4 = vld [vmem:[%s296_s1 + $0x18] sm:$0xff]   ;;  %v15_v5 = vld [vmem:[%s297_s0] sm:$0xff]  ;;  %v213_v9 = vld [vmem:[%s296_s1 + $0x28] sm:$0xff]  }
   0x3   :  { %146 = vmatprep.subr.bf16.mxu0 %v224_v0  ;;  %v212_v6 = vld [vmem:[%s296_s1 + $0x20] sm:$0xff]   ;;  %v190_v7 = vcombine.high %v15_v5, %v15_v5  ;;  %v214_v10 = vld [vmem:[%s296_s1 + $0x30] sm:$0xff]   ;;  %v215_v11 = vld [vmem:[%s296_s1 + $0x38] sm:$0xff]   ;;  %v189_v19 = vcombine.low %v15_v5, %v15_v5 }
   0x4   :  { %v43_v8 = vld [vmem:[%s298_s2] sm:$0xff]  ;;  %v217_v13 = vld [vmem:[%s296_s1 + $0x48] sm:$0xff]   ;;  %v218_v14 = vld [vmem:[%s296_s1 + $0x50] sm:$0xff]  }
   0x5   :  { %46 = vperm.xlu0 %207, %v43_v8   ;;  %205 = vmatprep.mubr.msk.bf16.mxu0 %vm136_vm0, %v190_v7  ;;  %v216_v12 = vld [vmem:[%s296_s1 + $0x40] sm:$0xff]   ;;  %v219_v15 = vld [vmem:[%s296_s1 + $0x58] sm:$0xff]   ;;  %v221_v17 = vld [vmem:[%s296_s1 + $0x68] ss:$0 sps:$4 sm:$0xff]  }
   0x6   :  { %147 = vmatpush1.bf16.msra.mxu0 %v209_v2  ;;  %v220_v16 = vld [vmem:[%s296_s1 + $0x60] sm:$0xff]   ;;  %v142_v18 = vsel %vm140_vm1, %v221_v17, 0 }
   0x7   :  { %148 = vmatprep.subr.bf16.mxu0 %v224_v0 }
   0xa   :  { %149 = vmatpush1.bf16.msra.mxu0 %v210_v3 }
   0xb   :  { %150 = vmatprep.subr.bf16.mxu0 %v224_v0 }
   0xe   :  { %151 = vmatpush1.bf16.msra.mxu0 %v211_v4 }
   0xf   :  { %152 = vmatprep.subr.bf16.mxu0 %v224_v0 }
  0x12   :  { %153 = vmatpush1.bf16.msra.mxu0 %v212_v6 }
  0x13   :  { %154 = vmatprep.subr.bf16.mxu0 %v224_v0 }
  0x16   :  { %155 = vmatpush1.bf16.msra.mxu0 %v213_v9 }
  0x17   :  { %156 = vmatprep.subr.bf16.mxu0 %v224_v0 }
  0x1a   :  { %157 = vmatpush1.bf16.msra.mxu0 %v214_v10 }
  0x1b   :  { %158 = vmatprep.subr.bf16.mxu0 %v224_v0 }
  0x1e   :  { %159 = vmatpush1.bf16.msra.mxu0 %v215_v11 }
  0x1f   :  { %160 = vmatprep.subr.bf16.mxu0 %v224_v0 }
  0x22   :  { %161 = vmatpush1.bf16.msra.mxu0 %v216_v12 }
  0x23   :  { %162 = vmatprep.subr.bf16.mxu0 %v224_v0 }
  0x26   :  { %163 = vmatpush1.bf16.msra.mxu0 %v217_v13 }
  0x27   :  { %164 = vmatprep.subr.bf16.mxu0 %v224_v0 }
  0x2a   :  { %165 = vmatpush1.bf16.msra.mxu0 %v218_v14 }
  0x2b   :  { %166 = vmatprep.subr.bf16.mxu0 %v224_v0 }
  0x2e   :  { %167 = vmatpush1.bf16.msra.mxu0 %v219_v15 }
  0x2f   :  { %168 = vmatprep.subr.bf16.mxu0 %v224_v0 }
  0x32   :  { %169 = vmatpush1.bf16.msra.mxu0 %v220_v16 }
  0x33   :  { %170 = vmatprep.subr.bf16.mxu0 %v224_v0 }
  0x36   :  { %171 = vmatpush1.bf16.msra.mxu0 %v142_v18 }
  0x39   :  { %177 = vmatmul.mubr.bf16.vlgmr.msra.gmra.mrb[0].mxu0 %v189_v19 }
  0x84   :  { %v47_v20 = vpop.permute.xlu0 %46 }
 0x10c   :  { %v178_v21 = vpop.f32.mrb[0].mxu0 }
 0x10d   :  { %v179_v22 = vadd.f32 %v178_v21, %v47_v20  ;;  %v180_v23 = vpop.f32.mrb[1].mxu0 }
 0x10e   :  { %v181_v24 = vpop.f32.mrb[2].mxu0 }
 0x10f   :  { %184 = vst [vmem:[%s299_s3] sm:$0xff] %v179_v22  ;;  %v182_v25 = vpop.f32.mrb[3].mxu0 }

// kernel: network_forward.98
= control target key start
LH: loop header
LB: loop body
LE: loop exit
PB: predicated region body
PF: predicated region fallthrough
CT: control target
= control target key end

     0   :  { %v229_v0 = vmov 0   ;;  %vm139_vm0 = vcmask 719872   ;;  %vm143_vm1 = vcmask 1043456   ;;  %s309_s1 = inlined_call_operand.vmem [shape: bf16[216,128], index: 1, kind: input, shape index: {}]   ;;  %s310_s0 = inlined_call_operand.vmem [shape: bf16[8,216], index: 0, kind: input, shape index: {}]   ;;  %s311_s2 = inlined_call_operand.vmem [shape: f32[8,1], index: 2, kind: input, shape index: {}]   ;;  %s312_s3 = inlined_call_operand.vmem [shape: f32[8,128], index: 3, kind: input, shape index: {}]   ;;  %s313_s4 = inlined_call_operand.vmem [shape: f32[8,128], index: 4, kind: output, shape index: {}]  }
   0x1   :  { %147 = vmatprep.subr.bf16.mxu0 %v229_v0  ;;  %v213_v1 = vld [vmem:[%s309_s1] sm:$0xff]   ;;  %212 = vset.pattern.permute.xlu0 %v229_v0  ;;  %v214_v2 = vld [vmem:[%s309_s1 + $0x8] sm:$0xff]   ;;  %v215_v3 = vld [vmem:[%s309_s1 + $0x10] sm:$0xff]  }
   0x2   :  { %148 = vmatpush1.bf16.msra.mxu0 %v213_v1  ;;  %v216_v4 = vld [vmem:[%s309_s1 + $0x18] sm:$0xff]   ;;  %v18_v5 = vld [vmem:[%s310_s0] sm:$0xff]  ;;  %v218_v9 = vld [vmem:[%s309_s1 + $0x28] sm:$0xff]  }
   0x3   :  { %149 = vmatprep.subr.bf16.mxu0 %v229_v0  ;;  %v217_v6 = vld [vmem:[%s309_s1 + $0x20] sm:$0xff]   ;;  %v195_v7 = vcombine.high %v18_v5, %v18_v5  ;;  %v219_v10 = vld [vmem:[%s309_s1 + $0x30] sm:$0xff]   ;;  %v220_v11 = vld [vmem:[%s309_s1 + $0x38] sm:$0xff]   ;;  %v194_v19 = vcombine.low %v18_v5, %v18_v5 }
   0x4   :  { %v46_v8 = vld [vmem:[%s311_s2] sm:$0xff]  ;;  %v222_v13 = vld [vmem:[%s309_s1 + $0x48] sm:$0xff]   ;;  %v223_v14 = vld [vmem:[%s309_s1 + $0x50] sm:$0xff]  }
   0x5   :  { %49 = vperm.xlu0 %212, %v46_v8   ;;  %210 = vmatprep.mubr.msk.bf16.mxu0 %vm139_vm0, %v195_v7  ;;  %v221_v12 = vld [vmem:[%s309_s1 + $0x40] sm:$0xff]   ;;  %v224_v15 = vld [vmem:[%s309_s1 + $0x58] sm:$0xff]   ;;  %v226_v17 = vld [vmem:[%s309_s1 + $0x68] ss:$0 sps:$4 sm:$0xff]  }
   0x6   :  { %150 = vmatpush1.bf16.msra.mxu0 %v214_v2  ;;  %v225_v16 = vld [vmem:[%s309_s1 + $0x60] sm:$0xff]   ;;  %v145_v18 = vsel %vm143_vm1, %v226_v17, 0 }
   0x7   :  { %151 = vmatprep.subr.bf16.mxu0 %v229_v0  ;;  %v187_v22 = vld [vmem:[%s312_s3] sm:$0xff] }
   0xa   :  { %152 = vmatpush1.bf16.msra.mxu0 %v215_v3 }
   0xb   :  { %153 = vmatprep.subr.bf16.mxu0 %v229_v0 }
   0xe   :  { %154 = vmatpush1.bf16.msra.mxu0 %v216_v4 }
   0xf   :  { %155 = vmatprep.subr.bf16.mxu0 %v229_v0 }
  0x12   :  { %156 = vmatpush1.bf16.msra.mxu0 %v217_v6 }
  0x13   :  { %157 = vmatprep.subr.bf16.mxu0 %v229_v0 }
  0x16   :  { %158 = vmatpush1.bf16.msra.mxu0 %v218_v9 }
  0x17   :  { %159 = vmatprep.subr.bf16.mxu0 %v229_v0 }
  0x1a   :  { %160 = vmatpush1.bf16.msra.mxu0 %v219_v10 }
  0x1b   :  { %161 = vmatprep.subr.bf16.mxu0 %v229_v0 }
  0x1e   :  { %162 = vmatpush1.bf16.msra.mxu0 %v220_v11 }
  0x1f   :  { %163 = vmatprep.subr.bf16.mxu0 %v229_v0 }
  0x22   :  { %164 = vmatpush1.bf16.msra.mxu0 %v221_v12 }
  0x23   :  { %165 = vmatprep.subr.bf16.mxu0 %v229_v0 }
  0x26   :  { %166 = vmatpush1.bf16.msra.mxu0 %v222_v13 }
  0x27   :  { %167 = vmatprep.subr.bf16.mxu0 %v229_v0 }
  0x2a   :  { %168 = vmatpush1.bf16.msra.mxu0 %v223_v14 }
  0x2b   :  { %169 = vmatprep.subr.bf16.mxu0 %v229_v0 }
  0x2e   :  { %170 = vmatpush1.bf16.msra.mxu0 %v224_v15 }
  0x2f   :  { %171 = vmatprep.subr.bf16.mxu0 %v229_v0 }
  0x32   :  { %172 = vmatpush1.bf16.msra.mxu0 %v225_v16 }
  0x33   :  { %173 = vmatprep.subr.bf16.mxu0 %v229_v0 }
  0x36   :  { %174 = vmatpush1.bf16.msra.mxu0 %v145_v18 }
  0x39   :  { %180 = vmatmul.mubr.bf16.vlgmr.msra.gmra.mrb[0].mxu0 %v194_v19 }
  0x84   :  { %v50_v20 = vpop.permute.xlu0 %49 }
 0x10c   :  { %v181_v21 = vpop.f32.mrb[0].mxu0 }
 0x10d   :  { %v182_v23 = vadd.f32 %v181_v21, %v50_v20  ;;  %v183_v24 = vpop.f32.mrb[1].mxu0 }
 0x10e   :  { %v184_v25 = vpop.f32.mrb[2].mxu0 }
 0x10f   :  { %v188_v26 = vadd.f32 %v187_v22, %v182_v23  ;;  %v185_v27 = vpop.f32.mrb[3].mxu0 }
 0x111   :  { %189 = vst [vmem:[%s313_s4] sm:$0xff] %v188_v26 }

// kernel: network_forward.151
= control target key start
LH: loop header
LB: loop body
LE: loop exit
PB: predicated region body
PF: predicated region fallthrough
CT: control target
= control target key end

     0   :  { %vm39_vm0 = vcmask 1043456   ;;  %v105_v0 = vmov 0.0   ;;  %vm106_vm1 = vmmov 0   ;;  %vm35_vm2 = vcmask 64512   ;;  %s146_s1 = inlined_call_operand.vmem [shape: bf16[8,128], index: 1, kind: input, shape index: {}]   ;;  %s147_s0 = inlined_call_operand.vmem [shape: bf16[16,8], index: 0, kind: input, shape index: {}]   ;;  %s148_s2 = inlined_call_operand.vmem [shape: f32[16,1], index: 2, kind: input, shape index: {}]   ;;  %s149_s3 = inlined_call_operand.vmem [shape: f32[16,128], index: 3, kind: output, shape index: {}]  }
   0x1   :  { %94 = vmatprep.subr.bf16.mxu0 %v105_v0  ;;  %v17_v1 = vld [vmem:[%s146_s1] sm:$0xf]  ;;  %96 = vmatprep.mubr.msk.bf16.mxu0 %vm106_vm1, %v105_v0  ;;  %v107_v5 = vmov 0   ;;  %v19_v6 = vld [vmem:[%s148_s2 + $0x8] sm:$0xff] }
   0x2   :  { %v41_v2 = vsel %vm39_vm0, %v17_v1, 0  ;;  %v104_v3 = vld [vmem:[%s147_s0] sm:$0xff]   ;;  %103 = vset.pattern.permute.xlu0 %v107_v5 }
   0x3   :  { %v18_v4 = vld [vmem:[%s148_s2] sm:$0xff]  ;;  %95 = vmatpush3.bf16.msra.mxu0 %v41_v2 }
   0x4   :  { %22 = vperm.xlu0 %103, %v18_v4  }
   0x6   :  { %97 = vmatmul.mubr.msk.bf16.vlgmr.msra.gmra.mrb[0].mxu0 %vm35_vm2, %v104_v3 }
   0x8   :  { %27 = vperm.xlu0 %103, %v19_v6  }
  0x83   :  { %v23_v7 = vpop.permute.xlu0 %22 }
  0x87   :  { %v28_v11 = vpop.permute.xlu0 %27 }
  0xd9   :  { %v77_v8 = vpop.f32.mrb[0].mxu0 }
  0xda   :  { %v78_v9 = vadd.f32 %v77_v8, %v23_v7  ;;  %v98_v10 = vpop.f32.mrb[1].mxu0 }
  0xdb   :  { %v80_v12 = vpop.f32.mrb[2].mxu0 }
  0xdc   :  { %84 = vst [vmem:[%s149_s3] sm:$0xff] %v78_v9  ;;  %v81_v13 = vadd.f32 %v80_v12, %v28_v11  ;;  %v99_v14 = vpop.f32.mrb[3].mxu0 }
  0xde   :  { %85 = vst [vmem:[%s149_s3 + $0x8] sm:$0xff] %v81_v13 }

// kernel: network_forward.103
= control target key start
LH: loop header
LB: loop body
LE: loop exit
PB: predicated region body
PF: predicated region fallthrough
CT: control target
= control target key end

     0   :  { %vm39_vm0 = vcmask 1043456   ;;  %v106_v0 = vmov 0.0   ;;  %vm107_vm1 = vmmov 0   ;;  %vm35_vm2 = vcmask 64512   ;;  %s147_s1 = inlined_call_operand.vmem [shape: bf16[8,16], index: 1, kind: input, shape index: {}]   ;;  %s148_s0 = inlined_call_operand.vmem [shape: bf16[16,8], index: 0, kind: input, shape index: {}]   ;;  %s149_s2 = inlined_call_operand.vmem [shape: f32[16,1], index: 2, kind: input, shape index: {}]   ;;  %s150_s3 = inlined_call_operand.vmem [shape: f32[16,16], index: 3, kind: output, shape index: {}]  }
   0x1   :  { %95 = vmatprep.subr.bf16.mxu0 %v106_v0  ;;  %v17_v1 = vld [vmem:[%s147_s1] sm:$0xf]  ;;  %97 = vmatprep.mubr.msk.bf16.mxu0 %vm107_vm1, %v106_v0  ;;  %v108_v5 = vmov 0   ;;  %v19_v6 = vld [vmem:[%s149_s2 + $0x8] sm:$0xff]  ;;  %vm84_vm3 = vcmask 130048  }
   0x2   :  { %v41_v2 = vsel %vm39_vm0, %v17_v1, 0  ;;  %v105_v3 = vld [vmem:[%s148_s0] sm:$0xff]   ;;  %104 = vset.pattern.permute.xlu0 %v108_v5 }
   0x3   :  { %v18_v4 = vld [vmem:[%s149_s2] sm:$0xff]  ;;  %96 = vmatpush3.bf16.msra.mxu0 %v41_v2 }
   0x4   :  { %22 = vperm.xlu0 %104, %v18_v4  }
   0x6   :  { %98 = vmatmul.mubr.msk.bf16.vlgmr.msra.gmra.mrb[0].mxu0 %vm35_vm2, %v105_v3 }
   0x8   :  { %27 = vperm.xlu0 %104, %v19_v6  }
  0x83   :  { %v23_v7 = vpop.permute.xlu0 %22 }
  0x87   :  { %v28_v11 = vpop.permute.xlu0 %27 }
  0xd9   :  { %v77_v8 = vpop.f32.mrb[0].mxu0 }
  0xda   :  { %v78_v9 = vadd.f32 %v77_v8, %v23_v7  ;;  %v99_v10 = vpop.f32.mrb[1].mxu0 }
  0xdb   :  { %v80_v12 = vpop.f32.mrb[2].mxu0 }
  0xdc   :  { %85 = vst.msk [vmem:[%s150_s3] sm:$0xff] %vm84_vm3, %v78_v9  ;;  %v81_v13 = vadd.f32 %v80_v12, %v28_v11  ;;  %v100_v14 = vpop.f32.mrb[3].mxu0 }
  0xde   :  { %86 = vst.msk [vmem:[%s150_s3 + $0x8] sm:$0xff] %vm84_vm3, %v81_v13 }

// kernel: network_forward.158
= control target key start
LH: loop header
LB: loop body
LE: loop exit
PB: predicated region body
PF: predicated region fallthrough
CT: control target
= control target key end

     0   :  { %v149_v0 = vmov 0.0   ;;  %vm150_vm0 = vmmov 0   ;;  %v151_v2 = vmov 0   ;;  %vm66_vm1 = vcmask 523264   ;;  %s199_s1 = inlined_call_operand.vmem [shape: bf16[64,128], index: 1, kind: input, shape index: {}]   ;;  %s200_s2 = inlined_call_operand.vmem [shape: f32[16,1], index: 2, kind: input, shape index: {}]   ;;  %s201_s0 = inlined_call_operand.vmem [shape: bf16[16,64], index: 0, kind: input, shape index: {}]   ;;  %s202_s3 = inlined_call_operand.vmem [shape: f32[16,128], index: 3, kind: output, shape index: {}]  }
   0x1   :  { %128 = vmatprep.subr.bf16.mxu0 %v149_v0  ;;  %v144_v1 = vld [vmem:[%s199_s1] sm:$0xff]   ;;  %136 = vmatprep.mubr.msk.bf16.mxu0 %vm150_vm0, %v149_v0  ;;  %v145_v3 = vld [vmem:[%s199_s1 + $0x8] sm:$0xff]   ;;  %v146_v5 = vld [vmem:[%s199_s1 + $0x10] sm:$0xff]  }
   0x2   :  { %143 = vset.pattern.permute.xlu0 %v151_v2  ;;  %129 = vmatpush3.bf16.msra.mxu0 %v144_v1  ;;  %v25_v4 = vld [vmem:[%s200_s2] sm:$0xff]  ;;  %v26_v6 = vld [vmem:[%s200_s2 + $0x8] sm:$0xff]  ;;  %v147_v7 = vld [vmem:[%s199_s1 + $0x18] sm:$0xff]  }
   0x3   :  { %130 = vmatprep.subr.bf16.mxu0 %v149_v0  ;;  %29 = vperm.xlu0 %143, %v25_v4   ;;  %v148_v8 = vld [vmem:[%s201_s0] sm:$0xff]  }
   0x6   :  { %131 = vmatpush3.bf16.msra.mxu0 %v145_v3 }
   0x7   :  { %132 = vmatprep.subr.bf16.mxu0 %v149_v0  ;;  %34 = vperm.xlu0 %143, %v26_v6  }
   0xa   :  { %133 = vmatpush3.bf16.msra.mxu0 %v146_v5 }
   0xb   :  { %134 = vmatprep.subr.bf16.mxu0 %v149_v0 }
   0xe   :  { %135 = vmatpush3.bf16.msra.mxu0 %v147_v7 }
  0x11   :  { %137 = vmatmul.mubr.msk.bf16.vlgmr.msra.gmra.mrb[0].mxu0 %vm66_vm1, %v148_v8 }
  0x82   :  { %v30_v9 = vpop.permute.xlu0 %29 }
  0x86   :  { %v35_v13 = vpop.permute.xlu0 %34 }
  0xe4   :  { %v104_v10 = vpop.f32.mrb[0].mxu0 }
  0xe5   :  { %v105_v11 = vadd.f32 %v104_v10, %v30_v9  ;;  %v138_v12 = vpop.f32.mrb[1].mxu0 }
  0xe6   :  { %v107_v14 = vpop.f32.mrb[2].mxu0 }
  0xe7   :  { %111 = vst [vmem:[%s202_s3] sm:$0xff] %v105_v11  ;;  %v108_v15 = vadd.f32 %v107_v14, %v35_v13  ;;  %v139_v16 = vpop.f32.mrb[3].mxu0 }
  0xe9   :  { %112 = vst [vmem:[%s202_s3 + $0x8] sm:$0xff] %v108_v15 }

// kernel: network_forward.157
= control target key start
LH: loop header
LB: loop body
LE: loop exit
PB: predicated region body
PF: predicated region fallthrough
CT: control target
= control target key end

     0   :  { %v123_v0 = vmov 0.0   ;;  %vm124_vm0 = vmmov 0   ;;  %v125_v2 = vmov 0   ;;  %vm50_vm1 = vcmask 261120   ;;  %s167_s1 = inlined_call_operand.vmem [shape: bf16[32,128], index: 1, kind: input, shape index: {}]   ;;  %s168_s2 = inlined_call_operand.vmem [shape: f32[16,1], index: 2, kind: input, shape index: {}]   ;;  %s169_s0 = inlined_call_operand.vmem [shape: bf16[16,32], index: 0, kind: input, shape index: {}]   ;;  %s170_s3 = inlined_call_operand.vmem [shape: f32[16,128], index: 3, kind: output, shape index: {}]  }
   0x1   :  { %108 = vmatprep.subr.bf16.mxu0 %v123_v0  ;;  %v120_v1 = vld [vmem:[%s167_s1] sm:$0xff]   ;;  %112 = vmatprep.mubr.msk.bf16.mxu0 %vm124_vm0, %v123_v0  ;;  %v121_v3 = vld [vmem:[%s167_s1 + $0x8] sm:$0xff]  }
   0x2   :  { %119 = vset.pattern.permute.xlu0 %v125_v2  ;;  %109 = vmatpush3.bf16.msra.mxu0 %v120_v1  ;;  %v21_v4 = vld [vmem:[%s168_s2] sm:$0xff]  ;;  %v22_v6 = vld [vmem:[%s168_s2 + $0x8] sm:$0xff] }
   0x3   :  { %110 = vmatprep.subr.bf16.mxu0 %v123_v0  ;;  %25 = vperm.xlu0 %119, %v21_v4   ;;  %v122_v5 = vld [vmem:[%s169_s0] sm:$0xff]  }
   0x6   :  { %111 = vmatpush3.bf16.msra.mxu0 %v121_v3 }
   0x7   :  { %30 = vperm.xlu0 %119, %v22_v6  }
   0x9   :  { %113 = vmatmul.mubr.msk.bf16.vlgmr.msra.gmra.mrb[0].mxu0 %vm50_vm1, %v122_v5 }
  0x82   :  { %v26_v7 = vpop.permute.xlu0 %25 }
  0x86   :  { %v31_v11 = vpop.permute.xlu0 %30 }
  0xdc   :  { %v88_v8 = vpop.f32.mrb[0].mxu0 }
  0xdd   :  { %v89_v9 = vadd.f32 %v88_v8, %v26_v7  ;;  %v114_v10 = vpop.f32.mrb[1].mxu0 }
  0xde   :  { %v91_v12 = vpop.f32.mrb[2].mxu0 }
  0xdf   :  { %95 = vst [vmem:[%s170_s3] sm:$0xff] %v89_v9  ;;  %v92_v13 = vadd.f32 %v91_v12, %v31_v11  ;;  %v115_v14 = vpop.f32.mrb[3].mxu0 }
  0xe1   :  { %96 = vst [vmem:[%s170_s3 + $0x8] sm:$0xff] %v92_v13 }

// kernel: network_forward.153
= control target key start
LH: loop header
LB: loop body
LE: loop exit
PB: predicated region body
PF: predicated region fallthrough
CT: control target
= control target key end

     0   :  { %v110_v0 = vmov 0.0   ;;  %vm111_vm0 = vmmov 0   ;;  %v112_v3 = vmov 0   ;;  %vm42_vm1 = vcmask 130048   ;;  %s151_s1 = inlined_call_operand.vmem [shape: bf16[16,128], index: 1, kind: input, shape index: {}]   ;;  %s152_s0 = inlined_call_operand.vmem [shape: bf16[16,16], index: 0, kind: input, shape index: {}]   ;;  %s153_s2 = inlined_call_operand.vmem [shape: f32[16,1], index: 2, kind: input, shape index: {}]   ;;  %s154_s3 = inlined_call_operand.vmem [shape: f32[16,128], index: 3, kind: output, shape index: {}]  }
   0x1   :  { %98 = vmatprep.subr.bf16.mxu0 %v110_v0  ;;  %v108_v1 = vld [vmem:[%s151_s1] sm:$0xff]   ;;  %100 = vmatprep.mubr.msk.bf16.mxu0 %vm111_vm0, %v110_v0  ;;  %v20_v5 = vld [vmem:[%s153_s2 + $0x8] sm:$0xff] }
   0x2   :  { %v109_v2 = vld [vmem:[%s152_s0] sm:$0xff]   ;;  %107 = vset.pattern.permute.xlu0 %v112_v3  ;;  %99 = vmatpush3.bf16.msra.mxu0 %v108_v1 }
   0x3   :  { %v19_v4 = vld [vmem:[%s153_s2] sm:$0xff] }
   0x4   :  { %23 = vperm.xlu0 %107, %v19_v4  }
   0x5   :  { %101 = vmatmul.mubr.msk.bf16.vlgmr.msra.gmra.mrb[0].mxu0 %vm42_vm1, %v109_v2 }
   0x8   :  { %28 = vperm.xlu0 %107, %v20_v5  }
  0x83   :  { %v24_v6 = vpop.permute.xlu0 %23 }
  0x87   :  { %v29_v10 = vpop.permute.xlu0 %28 }
  0xd8   :  { %v80_v7 = vpop.f32.mrb[0].mxu0 }
  0xd9   :  { %v81_v8 = vadd.f32 %v80_v7, %v24_v6  ;;  %v102_v9 = vpop.f32.mrb[1].mxu0 }
  0xda   :  { %v83_v11 = vpop.f32.mrb[2].mxu0 }
  0xdb   :  { %87 = vst [vmem:[%s154_s3] sm:$0xff] %v81_v8  ;;  %v84_v12 = vadd.f32 %v83_v11, %v29_v10  ;;  %v103_v13 = vpop.f32.mrb[3].mxu0 }
  0xdd   :  { %88 = vst [vmem:[%s154_s3 + $0x8] sm:$0xff] %v84_v12 }

// kernel: network_forward.105
= control target key start
LH: loop header
LB: loop body
LE: loop exit
PB: predicated region body
PF: predicated region fallthrough
CT: control target
= control target key end

     0   :  { %v238_v0 = vmov 0   ;;  %vm146_vm0 = vcmask 719872   ;;  %vm150_vm1 = vcmask 1043456   ;;  %vm195_vm2 = vcmask 130048   ;;  %s319_s1 = inlined_call_operand.vmem [shape: bf16[216,16], index: 1, kind: input, shape index: {}]   ;;  %s320_s0 = inlined_call_operand.vmem [shape: bf16[16,216], index: 0, kind: input, shape index: {}]   ;;  %s321_s2 = inlined_call_operand.vmem [shape: f32[16,1], index: 2, kind: input, shape index: {}]   ;;  %s322_s3 = inlined_call_operand.vmem [shape: f32[16,16], index: 3, kind: output, shape index: {}]  }
   0x1   :  { %154 = vmatprep.subr.bf16.mxu0 %v238_v0  ;;  %v221_v1 = vld [vmem:[%s319_s1] sm:$0xff]   ;;  %220 = vset.pattern.permute.xlu0 %v238_v0  ;;  %v222_v2 = vld [vmem:[%s319_s1 + $0x8] sm:$0xff]   ;;  %v223_v3 = vld [vmem:[%s319_s1 + $0x10] sm:$0xff]  }
   0x2   :  { %155 = vmatpush1.bf16.msra.mxu0 %v221_v1  ;;  %v224_v4 = vld [vmem:[%s319_s1 + $0x18] sm:$0xff]   ;;  %v225_v5 = vld [vmem:[%s319_s1 + $0x20] sm:$0xff]   ;;  %v45_v8 = vld [vmem:[%s321_s2 + $0x8] sm:$0xff] }
   0x3   :  { %156 = vmatprep.subr.bf16.mxu0 %v238_v0  ;;  %v237_v6 = vld [vmem:[%s320_s0 + $0x4] ss:$8 sps:$4 sm:$0xff]   ;;  %v227_v10 = vld [vmem:[%s319_s1 + $0x30] sm:$0xff]   ;;  %v228_v11 = vld [vmem:[%s319_s1 + $0x38] sm:$0xff]  }
   0x4   :  { %v44_v7 = vld [vmem:[%s321_s2] sm:$0xff]  ;;  %218 = vmatprep.mubr.msk.bf16.mxu0 %vm146_vm0, %v237_v6  ;;  %v226_v9 = vld [vmem:[%s319_s1 + $0x28] sm:$0xff]   ;;  %v231_v14 = vld [vmem:[%s319_s1 + $0x50] sm:$0xff]  }
   0x5   :  { %48 = vperm.xlu0 %220, %v44_v7   ;;  %v229_v12 = vld [vmem:[%s319_s1 + $0x40] sm:$0xff]   ;;  %v230_v13 = vld [vmem:[%s319_s1 + $0x48] sm:$0xff]   ;;  %v232_v15 = vld [vmem:[%s319_s1 + $0x58] sm:$0xff]  }
   0x6   :  { %157 = vmatpush1.bf16.msra.mxu0 %v222_v2  ;;  %v233_v16 = vld [vmem:[%s319_s1 + $0x60] sm:$0xff]   ;;  %v234_v17 = vld [vmem:[%s319_s1 + $0x68] ss:$0 sps:$4 sm:$0xff]  }
   0x7   :  { %158 = vmatprep.subr.bf16.mxu0 %v238_v0  ;;  %v152_v18 = vsel %vm150_vm1, %v234_v17, 0  ;;  %v235_v19 = vld [vmem:[%s320_s0] ss:$8 sps:$4 sm:$0xff]  }
   0x9   :  { %53 = vperm.xlu0 %220, %v45_v8  }
   0xa   :  { %159 = vmatpush1.bf16.msra.mxu0 %v223_v3 }
   0xb   :  { %160 = vmatprep.subr.bf16.mxu0 %v238_v0 }
   0xe   :  { %161 = vmatpush1.bf16.msra.mxu0 %v224_v4 }
   0xf   :  { %162 = vmatprep.subr.bf16.mxu0 %v238_v0 }
  0x12   :  { %163 = vmatpush1.bf16.msra.mxu0 %v225_v5 }
  0x13   :  { %164 = vmatprep.subr.bf16.mxu0 %v238_v0 }
  0x16   :  { %165 = vmatpush1.bf16.msra.mxu0 %v226_v9 }
  0x17   :  { %166 = vmatprep.subr.bf16.mxu0 %v238_v0 }
  0x1a   :  { %167 = vmatpush1.bf16.msra.mxu0 %v227_v10 }
  0x1b   :  { %168 = vmatprep.subr.bf16.mxu0 %v238_v0 }
  0x1e   :  { %169 = vmatpush1.bf16.msra.mxu0 %v228_v11 }
  0x1f   :  { %170 = vmatprep.subr.bf16.mxu0 %v238_v0 }
  0x22   :  { %171 = vmatpush1.bf16.msra.mxu0 %v229_v12 }
  0x23   :  { %172 = vmatprep.subr.bf16.mxu0 %v238_v0 }
  0x26   :  { %173 = vmatpush1.bf16.msra.mxu0 %v230_v13 }
  0x27   :  { %174 = vmatprep.subr.bf16.mxu0 %v238_v0 }
  0x2a   :  { %175 = vmatpush1.bf16.msra.mxu0 %v231_v14 }
  0x2b   :  { %176 = vmatprep.subr.bf16.mxu0 %v238_v0 }
  0x2e   :  { %177 = vmatpush1.bf16.msra.mxu0 %v232_v15 }
  0x2f   :  { %178 = vmatprep.subr.bf16.mxu0 %v238_v0 }
  0x32   :  { %179 = vmatpush1.bf16.msra.mxu0 %v233_v16 }
  0x33   :  { %180 = vmatprep.subr.bf16.mxu0 %v238_v0 }
  0x36   :  { %181 = vmatpush1.bf16.msra.mxu0 %v152_v18 }
  0x39   :  { %187 = vmatmul.mubr.bf16.vlgmr.msra.gmra.mrb[0].mxu0 %v235_v19 }
  0x84   :  { %v49_v20 = vpop.permute.xlu0 %48 }
  0x88   :  { %v54_v24 = vpop.permute.xlu0 %53 }
 0x10c   :  { %v188_v21 = vpop.f32.mrb[0].mxu0 }
 0x10d   :  { %v189_v22 = vadd.f32 %v188_v21, %v49_v20  ;;  %v190_v23 = vpop.f32.mrb[1].mxu0 }
 0x10e   :  { %v191_v25 = vpop.f32.mrb[2].mxu0 }
 0x10f   :  { %196 = vst.msk [vmem:[%s322_s3] sm:$0xff] %vm195_vm2, %v189_v22  ;;  %v192_v26 = vadd.f32 %v191_v25, %v54_v24  ;;  %v193_v27 = vpop.f32.mrb[3].mxu0 }
 0x111   :  { %197 = vst.msk [vmem:[%s322_s3 + $0x8] sm:$0xff] %vm195_vm2, %v192_v26 }

// kernel: network_forward.106
= control target key start
LH: loop header
LB: loop body
LE: loop exit
PB: predicated region body
PF: predicated region fallthrough
CT: control target
= control target key end

     0   :  { %v70_v0 = vmov 0   ;;  %vm56_vm0 = vcmask 125952   ;;  %s115_s2 = inlined_call_operand.vmem [shape: f32[16,1], index: 2, kind: input, shape index: {}]   ;;  %s116_s1 = inlined_call_operand.vmem [shape: f32[16,1], index: 1, kind: input, shape index: {}]   ;;  %s117_s0 = inlined_call_operand.vmem [shape: f32[16,16], index: 0, kind: input, shape index: {}]   ;;  %s118_s3 = inlined_call_operand.vmem [shape: bf16[16,16], index: 3, kind: output, shape index: {}]  }
   0x1   :  { %69 = vset.pattern.permute.xlu1 %v70_v0  ;;  %68 = vset.pattern.permute.xlu0 %v70_v0  ;;  %v30_v1 = vld [vmem:[%s115_s2] sm:$0xff]  ;;  %v31_v3 = vld [vmem:[%s115_s2 + $0x8] sm:$0xff] }
   0x2   :  { %v16_v2 = vld [vmem:[%s116_s1] sm:$0xff]  ;;  %34 = vperm.xlu1 %69, %v30_v1   ;;  %v17_v4 = vld [vmem:[%s116_s1 + $0x8] sm:$0xff] }
   0x3   :  { %20 = vperm.xlu0 %68, %v16_v2   ;;  %v14_v5 = vld [vmem:[%s117_s0] sm:$0xff]  ;;  %v15_v9 = vld [vmem:[%s117_s0 + $0x8] sm:$0xff] }
   0x6   :  { %39 = vperm.xlu1 %69, %v31_v3  }
   0x7   :  { %25 = vperm.xlu0 %68, %v17_v4  }
  0x81   :  { %v35_v6 = vpop.permute.xlu1 %34 }
  0x82   :  { %v21_v7 = vpop.permute.xlu0 %20 }
  0x83   :  { %v28_v8 = vmul.f32 %v21_v7, %v14_v5 }
  0x85   :  { %v42_v10 = vadd.f32 %v35_v6, %v28_v8  ;;  %v40_v14 = vpop.permute.xlu1 %39 }
  0x86   :  { %v26_v11 = vpop.permute.xlu0 %25 }
  0x87   :  { %v44_v12 = vmax.f32 %v42_v10, 0.0  ;;  %v29_v13 = vmul.f32 %v26_v11, %v15_v9 }
  0x89   :  { %v46_v15 = vmin.f32 %v44_v12, 6.0  ;;  %v43_v16 = vadd.f32 %v40_v14, %v29_v13 }
  0x8b   :  { %v65_v17 = vpack.c.bf16 %v46_v15, %v46_v15  ;;  %v45_v18 = vmax.f32 %v43_v16, 0.0 }
  0x8d   :  { %57 = vst.msk [vmem:[%s118_s3] sm:$0xf] %vm56_vm0, %v65_v17  ;;  %v47_v19 = vmin.f32 %v45_v18, 6.0 }
  0x8f   :  { %v66_v20 = vpack.c.bf16 %v47_v19, %v47_v19 }
  0x91   :  { %58 = vst.msk [vmem:[%s118_s3 + $0x4] sm:$0xf] %vm56_vm0, %v66_v20 }

// kernel: network_forward.109
= control target key start
LH: loop header
LB: loop body
LE: loop exit
PB: predicated region body
PF: predicated region fallthrough
CT: control target
= control target key end

     0   :  { %v448_v0 = vmov 0   ;;  %vm266_vm0 = vcmask 392192   ;;  %vm352_vm1 = vcmask 130048   ;;  %s586_s1 = inlined_call_operand.vmem [shape: bf16[432,16], index: 1, kind: input, shape index: {}]   ;;  %s587_s0 = inlined_call_operand.vmem [shape: bf16[16,432], index: 0, kind: input, shape index: {}]   ;;  %s588_s2 = inlined_call_operand.vmem [shape: f32[16,1], index: 2, kind: input, shape index: {}]   ;;  %s589_s3 = inlined_call_operand.vmem [shape: f32[16,16], index: 3, kind: output, shape index: {}]  }
   0x1   :  { %311 = vmatprep.subr.bf16.mxu1 %v448_v0  ;;  %v415_v1 = vld [vmem:[%s586_s1 + $0x80] sm:$0xff]   ;;  %414 = vset.pattern.permute.xlu0 %v448_v0  ;;  %v418_v4 = vld [vmem:[%s586_s1 + $0x88] sm:$0xff]   ;;  %v421_v7 = vld [vmem:[%s586_s1 + $0x90] sm:$0xff]  }
   0x2   :  { %v416_v2 = vld [vmem:[%s586_s1 + $0x40] sm:$0xff]   ;;  %312 = vmatpush1.bf16.msra.mxu1 %v415_v1  ;;  %v419_v5 = vld [vmem:[%s586_s1 + $0x48] sm:$0xff]   ;;  %v422_v8 = vld [vmem:[%s586_s1 + $0x50] sm:$0xff]  }
   0x3   :  { %v417_v3 = vld [vmem:[%s586_s1] sm:$0xff]   ;;  %391 = vmatprep.subr.bf16.mxu0 %v416_v2  ;;  %313 = vmatprep.subr.bf16.mxu1 %v448_v0  ;;  %v420_v6 = vld [vmem:[%s586_s1 + $0x8] sm:$0xff]   ;;  %v423_v9 = vld [vmem:[%s586_s1 + $0x10] sm:$0xff]  }
   0x4   :  { %392 = vmatpush3.bf16.msra.mxu0 %v417_v3  ;;  %v424_v10 = vld [vmem:[%s586_s1 + $0x98] sm:$0xff]   ;;  %v428_v13 = vld [vmem:[%s586_s1 + $0x60] sm:$0xff]   ;;  %v431_v16 = vld [vmem:[%s586_s1 + $0x68] sm:$0xff]  }
   0x5   :  { %393 = vmatprep.subr.bf16.mxu0 %v419_v5  ;;  %v425_v11 = vld [vmem:[%s586_s1 + $0x58] sm:$0xff]   ;;  %v427_v14 = vld [vmem:[%s586_s1 + $0xa0] sm:$0xff]   ;;  %v430_v17 = vld [vmem:[%s586_s1 + $0xa8] sm:$0xff]  }
   0x6   :  { %314 = vmatpush1.bf16.msra.mxu1 %v418_v4  ;;  %v426_v12 = vld [vmem:[%s586_s1 + $0x18] sm:$0xff]   ;;  %v429_v15 = vld [vmem:[%s586_s1 + $0x20] sm:$0xff]   ;;  %v432_v18 = vld [vmem:[%s586_s1 + $0x28] sm:$0xff]  }
   0x7   :  { %315 = vmatprep.subr.bf16.mxu1 %v448_v0  ;;  %v434_v19 = vld [vmem:[%s586_s1 + $0x70] sm:$0xff]   ;;  %v436_v22 = vld [vmem:[%s586_s1 + $0xb8] sm:$0xff]   ;;  %v73_v27 = vld [vmem:[%s588_s2] sm:$0xff] }
   0x8   :  { %394 = vmatpush3.bf16.msra.mxu0 %v420_v6  ;;  %v433_v20 = vld [vmem:[%s586_s1 + $0xb0] sm:$0xff]   ;;  %v437_v23 = vld [vmem:[%s586_s1 + $0x78] sm:$0xff]   ;;  %v439_v28 = vld [vmem:[%s586_s1 + $0xc0] sm:$0xff]   ;;  %77 = vperm.xlu0 %414, %v73_v27  }
   0x9   :  { %395 = vmatprep.subr.bf16.mxu0 %v422_v8  ;;  %v435_v21 = vld [vmem:[%s586_s1 + $0x30] sm:$0xff]   ;;  %v438_v25 = vld [vmem:[%s586_s1 + $0x38] sm:$0xff]   ;;  %v74_v30 = vld [vmem:[%s588_s2 + $0x8] sm:$0xff] }
   0xa   :  { %316 = vmatpush1.bf16.msra.mxu1 %v421_v7  ;;  %v442_v24 = vld [vmem:[%s587_s0 + $0x4] ss:$16 sps:$4 sm:$0xff]   ;;  %v447_v26 = vld [vmem:[%s587_s0 + $0xc] ss:$16 sps:$4 sm:$0xff]   ;;  %v440_v29 = vld [vmem:[%s587_s0] ss:$16 sps:$4 sm:$0xff]  }
   0xb   :  { %317 = vmatprep.subr.bf16.mxu1 %v448_v0  ;;  %302 = vmatprep.mubr.bf16.mxu0 %v442_v24  ;;  %v443_v31 = vld [vmem:[%s586_s1 + $0xc8] sm:$0xff]   ;;  %v444_v32 = vld [vmem:[%s586_s1 + $0xd0] sm:$0xff]  }
   0xc   :  { %396 = vmatpush3.bf16.msra.mxu0 %v423_v9  ;;  %390 = vmatprep.mubr.msk.bf16.mxu1 %vm266_vm0, %v447_v26  ;;  %v445_v33 = vld [vmem:[%s587_s0 + $0x8] ss:$16 sps:$4 sm:$0xff]  }
   0xd   :  { %397 = vmatprep.subr.bf16.mxu0 %v425_v11  ;;  %82 = vperm.xlu0 %414, %v74_v30  }
   0xe   :  { %318 = vmatpush1.bf16.msra.mxu1 %v424_v10 }
   0xf   :  { %319 = vmatprep.subr.bf16.mxu1 %v448_v0 }
  0x10   :  { %398 = vmatpush3.bf16.msra.mxu0 %v426_v12 }
  0x11   :  { %399 = vmatprep.subr.bf16.mxu0 %v428_v13 }
  0x12   :  { %320 = vmatpush1.bf16.msra.mxu1 %v427_v14 }
  0x13   :  { %321 = vmatprep.subr.bf16.mxu1 %v448_v0 }
  0x14   :  { %400 = vmatpush3.bf16.msra.mxu0 %v429_v15 }
  0x15   :  { %401 = vmatprep.subr.bf16.mxu0 %v431_v16 }
  0x16   :  { %322 = vmatpush1.bf16.msra.mxu1 %v430_v17 }
  0x17   :  { %323 = vmatprep.subr.bf16.mxu1 %v448_v0 }
  0x18   :  { %402 = vmatpush3.bf16.msra.mxu0 %v432_v18 }
  0x19   :  { %403 = vmatprep.subr.bf16.mxu0 %v434_v19 }
  0x1a   :  { %324 = vmatpush1.bf16.msra.mxu1 %v433_v20 }
  0x1b   :  { %325 = vmatprep.subr.bf16.mxu1 %v448_v0 }
  0x1c   :  { %404 = vmatpush3.bf16.msra.mxu0 %v435_v21 }
  0x1d   :  { %405 = vmatprep.subr.bf16.mxu0 %v437_v23 }
  0x1e   :  { %326 = vmatpush1.bf16.msra.mxu1 %v436_v22 }
  0x1f   :  { %327 = vmatprep.subr.bf16.mxu1 %v448_v0 }
  0x20   :  { %406 = vmatpush3.bf16.msra.mxu0 %v438_v25 }
  0x22   :  { %328 = vmatpush1.bf16.msra.mxu1 %v439_v28 }
  0x23   :  { %303 = vmatmul.mubr.bf16.vlgmr.msra.gmra.mrb[0].mxu0 %v440_v29  ;;  %329 = vmatprep.subr.bf16.mxu1 %v448_v0 }
  0x26   :  { %330 = vmatpush1.bf16.msra.mxu1 %v443_v31 }
  0x27   :  { %331 = vmatprep.subr.bf16.mxu1 %v448_v0 }
  0x2a   :  { %332 = vmatpush1.bf16.msra.mxu1 %v444_v32 }
  0x2d   :  { %344 = vmatmul.mubr.bf16.vlgmr.msra.gmra.mrb[0].mxu1 %v445_v33 }
  0x87   :  { %v78_v36 = vpop.permute.xlu0 %77 }
  0x8c   :  { %v83_v41 = vpop.permute.xlu0 %82 }
  0xf6   :  { %v407_v34 = vpop.f32.mrb[0].mxu0 }
  0xf7   :  { %v408_v35 = vpop.f32.mrb[1].mxu0 }
  0xf8   :  { %v409_v37 = vadd.f32 %v408_v35, %v407_v34  ;;  %v410_v38 = vpop.f32.mrb[2].mxu0 }
  0xf9   :  { %v411_v39 = vpop.f32.mrb[3].mxu0 }
  0xfa   :  { %v412_v40 = vadd.f32 %v411_v39, %v410_v38  ;;  %v305_v42 = vadd.f32 %v409_v37, %v78_v36 }
  0xfc   :  { %v308_v44 = vadd.f32 %v412_v40, %v83_v41 }
 0x100   :  { %v345_v43 = vpop.f32.mrb[0].mxu1 }
 0x101   :  { %v346_v45 = vadd.f32 %v345_v43, %v305_v42  ;;  %v347_v46 = vpop.f32.mrb[1].mxu1 }
 0x102   :  { %v348_v47 = vpop.f32.mrb[2].mxu1 }
 0x103   :  { %353 = vst.msk [vmem:[%s589_s3] sm:$0xff] %vm352_vm1, %v346_v45  ;;  %v349_v48 = vadd.f32 %v348_v47, %v308_v44  ;;  %v350_v49 = vpop.f32.mrb[3].mxu1 }
 0x105   :  { %354 = vst.msk [vmem:[%s589_s3 + $0x8] sm:$0xff] %vm352_vm1, %v349_v48 }

// kernel: network_forward.118
= control target key start
LH: loop header
LB: loop body
LE: loop exit
PB: predicated region body
PF: predicated region fallthrough
CT: control target
= control target key end

     0   :  { %v110_v0 = vmov 0.0   ;;  %vm111_vm0 = vmmov 0   ;;  %v112_v3 = vmov 0   ;;  %vm42_vm1 = vcmask 130048   ;;  %s154_s1 = inlined_call_operand.vmem [shape: bf16[16,16], index: 1, kind: input, shape index: {}]   ;;  %s155_s0 = inlined_call_operand.vmem [shape: bf16[16,16], index: 0, kind: input, shape index: {}]   ;;  %s156_s2 = inlined_call_operand.vmem [shape: f32[16,1], index: 2, kind: input, shape index: {}]   ;;  %s157_s3 = inlined_call_operand.vmem [shape: f32[16,16], index: 3, kind: output, shape index: {}]  }
   0x1   :  { %98 = vmatprep.subr.bf16.mxu0 %v110_v0  ;;  %v108_v1 = vld [vmem:[%s154_s1] sm:$0xff]   ;;  %100 = vmatprep.mubr.msk.bf16.mxu0 %vm111_vm0, %v110_v0  ;;  %v20_v5 = vld [vmem:[%s156_s2 + $0x8] sm:$0xff] }
   0x2   :  { %v109_v2 = vld [vmem:[%s155_s0] sm:$0xff]   ;;  %107 = vset.pattern.permute.xlu0 %v112_v3  ;;  %99 = vmatpush3.bf16.msra.mxu0 %v108_v1 }
   0x3   :  { %v19_v4 = vld [vmem:[%s156_s2] sm:$0xff] }
   0x4   :  { %23 = vperm.xlu0 %107, %v19_v4  }
   0x5   :  { %101 = vmatmul.mubr.msk.bf16.vlgmr.msra.gmra.mrb[0].mxu0 %vm42_vm1, %v109_v2 }
   0x8   :  { %28 = vperm.xlu0 %107, %v20_v5  }
  0x83   :  { %v24_v6 = vpop.permute.xlu0 %23 }
  0x87   :  { %v29_v10 = vpop.permute.xlu0 %28 }
  0xd8   :  { %v80_v7 = vpop.f32.mrb[0].mxu0 }
  0xd9   :  { %v81_v8 = vadd.f32 %v80_v7, %v24_v6  ;;  %v102_v9 = vpop.f32.mrb[1].mxu0 }
  0xda   :  { %v83_v11 = vpop.f32.mrb[2].mxu0 }
  0xdb   :  { %87 = vst.msk [vmem:[%s157_s3] sm:$0xff] %vm42_vm1, %v81_v8  ;;  %v84_v12 = vadd.f32 %v83_v11, %v29_v10  ;;  %v103_v13 = vpop.f32.mrb[3].mxu0 }
  0xdd   :  { %88 = vst.msk [vmem:[%s157_s3 + $0x8] sm:$0xff] %vm42_vm1, %v84_v12 }

// kernel: network_forward.107
= control target key start
LH: loop header
LB: loop body
LE: loop exit
PB: predicated region body
PF: predicated region fallthrough
CT: control target
= control target key end

     0   :  { %v455_v0 = vmov 0   ;;  %vm269_vm0 = vcmask 392192   ;;  %vm359_vm1 = vcmask 130048   ;;  %s604_s1 = inlined_call_operand.vmem [shape: bf16[432,16], index: 1, kind: input, shape index: {}]   ;;  %s605_s0 = inlined_call_operand.vmem [shape: bf16[16,432], index: 0, kind: input, shape index: {}]   ;;  %s606_s2 = inlined_call_operand.vmem [shape: f32[16,1], index: 2, kind: input, shape index: {}]   ;;  %s607_s3 = inlined_call_operand.vmem [shape: f32[16,16], index: 3, kind: input, shape index: {}]   ;;  %s608_s4 = inlined_call_operand.vmem [shape: f32[16,16], index: 4, kind: output, shape index: {}]  }
   0x1   :  { %314 = vmatprep.subr.bf16.mxu1 %v455_v0  ;;  %v422_v1 = vld [vmem:[%s604_s1 + $0x80] sm:$0xff]   ;;  %421 = vset.pattern.permute.xlu0 %v455_v0  ;;  %v425_v4 = vld [vmem:[%s604_s1 + $0x88] sm:$0xff]   ;;  %v428_v7 = vld [vmem:[%s604_s1 + $0x90] sm:$0xff]  }
   0x2   :  { %v423_v2 = vld [vmem:[%s604_s1 + $0x40] sm:$0xff]   ;;  %315 = vmatpush1.bf16.msra.mxu1 %v422_v1  ;;  %v426_v5 = vld [vmem:[%s604_s1 + $0x48] sm:$0xff]   ;;  %v429_v8 = vld [vmem:[%s604_s1 + $0x50] sm:$0xff]  }
   0x3   :  { %v424_v3 = vld [vmem:[%s604_s1] sm:$0xff]   ;;  %398 = vmatprep.subr.bf16.mxu0 %v423_v2  ;;  %316 = vmatprep.subr.bf16.mxu1 %v455_v0  ;;  %v427_v6 = vld [vmem:[%s604_s1 + $0x8] sm:$0xff]   ;;  %v430_v9 = vld [vmem:[%s604_s1 + $0x10] sm:$0xff]  }
   0x4   :  { %399 = vmatpush3.bf16.msra.mxu0 %v424_v3  ;;  %v431_v10 = vld [vmem:[%s604_s1 + $0x98] sm:$0xff]   ;;  %v435_v13 = vld [vmem:[%s604_s1 + $0x60] sm:$0xff]   ;;  %v438_v16 = vld [vmem:[%s604_s1 + $0x68] sm:$0xff]  }
   0x5   :  { %400 = vmatprep.subr.bf16.mxu0 %v426_v5  ;;  %v432_v11 = vld [vmem:[%s604_s1 + $0x58] sm:$0xff]   ;;  %v434_v14 = vld [vmem:[%s604_s1 + $0xa0] sm:$0xff]   ;;  %v437_v17 = vld [vmem:[%s604_s1 + $0xa8] sm:$0xff]  }
   0x6   :  { %317 = vmatpush1.bf16.msra.mxu1 %v425_v4  ;;  %v433_v12 = vld [vmem:[%s604_s1 + $0x18] sm:$0xff]   ;;  %v436_v15 = vld [vmem:[%s604_s1 + $0x20] sm:$0xff]   ;;  %v439_v18 = vld [vmem:[%s604_s1 + $0x28] sm:$0xff]  }
   0x7   :  { %318 = vmatprep.subr.bf16.mxu1 %v455_v0  ;;  %v441_v19 = vld [vmem:[%s604_s1 + $0x70] sm:$0xff]   ;;  %v443_v22 = vld [vmem:[%s604_s1 + $0xb8] sm:$0xff]   ;;  %v76_v27 = vld [vmem:[%s606_s2] sm:$0xff] }
   0x8   :  { %401 = vmatpush3.bf16.msra.mxu0 %v427_v6  ;;  %v440_v20 = vld [vmem:[%s604_s1 + $0xb0] sm:$0xff]   ;;  %v444_v23 = vld [vmem:[%s604_s1 + $0x78] sm:$0xff]   ;;  %v446_v28 = vld [vmem:[%s604_s1 + $0xc0] sm:$0xff]   ;;  %80 = vperm.xlu0 %421, %v76_v27  }
   0x9   :  { %402 = vmatprep.subr.bf16.mxu0 %v429_v8  ;;  %v442_v21 = vld [vmem:[%s604_s1 + $0x30] sm:$0xff]   ;;  %v445_v25 = vld [vmem:[%s604_s1 + $0x38] sm:$0xff]   ;;  %v77_v30 = vld [vmem:[%s606_s2 + $0x8] sm:$0xff] }
   0xa   :  { %319 = vmatpush1.bf16.msra.mxu1 %v428_v7  ;;  %v449_v24 = vld [vmem:[%s605_s0 + $0x4] ss:$16 sps:$4 sm:$0xff]   ;;  %v454_v26 = vld [vmem:[%s605_s0 + $0xc] ss:$16 sps:$4 sm:$0xff]   ;;  %v447_v29 = vld [vmem:[%s605_s0] ss:$16 sps:$4 sm:$0xff]  }
   0xb   :  { %320 = vmatprep.subr.bf16.mxu1 %v455_v0  ;;  %305 = vmatprep.mubr.bf16.mxu0 %v449_v24  ;;  %v450_v31 = vld [vmem:[%s604_s1 + $0xc8] sm:$0xff]   ;;  %v451_v32 = vld [vmem:[%s604_s1 + $0xd0] sm:$0xff]   ;;  %v355_v44 = vld [vmem:[%s607_s3] sm:$0xff] }
   0xc   :  { %403 = vmatpush3.bf16.msra.mxu0 %v430_v9  ;;  %397 = vmatprep.mubr.msk.bf16.mxu1 %vm269_vm0, %v454_v26  ;;  %v452_v33 = vld [vmem:[%s605_s0 + $0x8] ss:$16 sps:$4 sm:$0xff]  }
   0xd   :  { %404 = vmatprep.subr.bf16.mxu0 %v432_v11  ;;  %85 = vperm.xlu0 %421, %v77_v30   ;;  %v356_v49 = vld [vmem:[%s607_s3 + $0x8] sm:$0xff] }
   0xe   :  { %321 = vmatpush1.bf16.msra.mxu1 %v431_v10 }
   0xf   :  { %322 = vmatprep.subr.bf16.mxu1 %v455_v0 }
  0x10   :  { %405 = vmatpush3.bf16.msra.mxu0 %v433_v12 }
  0x11   :  { %406 = vmatprep.subr.bf16.mxu0 %v435_v13 }
  0x12   :  { %323 = vmatpush1.bf16.msra.mxu1 %v434_v14 }
  0x13   :  { %324 = vmatprep.subr.bf16.mxu1 %v455_v0 }
  0x14   :  { %407 = vmatpush3.bf16.msra.mxu0 %v436_v15 }
  0x15   :  { %408 = vmatprep.subr.bf16.mxu0 %v438_v16 }
  0x16   :  { %325 = vmatpush1.bf16.msra.mxu1 %v437_v17 }
  0x17   :  { %326 = vmatprep.subr.bf16.mxu1 %v455_v0 }
  0x18   :  { %409 = vmatpush3.bf16.msra.mxu0 %v439_v18 }
  0x19   :  { %410 = vmatprep.subr.bf16.mxu0 %v441_v19 }
  0x1a   :  { %327 = vmatpush1.bf16.msra.mxu1 %v440_v20 }
  0x1b   :  { %328 = vmatprep.subr.bf16.mxu1 %v455_v0 }
  0x1c   :  { %411 = vmatpush3.bf16.msra.mxu0 %v442_v21 }
  0x1d   :  { %412 = vmatprep.subr.bf16.mxu0 %v444_v23 }
  0x1e   :  { %329 = vmatpush1.bf16.msra.mxu1 %v443_v22 }
  0x1f   :  { %330 = vmatprep.subr.bf16.mxu1 %v455_v0 }
  0x20   :  { %413 = vmatpush3.bf16.msra.mxu0 %v445_v25 }
  0x22   :  { %331 = vmatpush1.bf16.msra.mxu1 %v446_v28 }
  0x23   :  { %306 = vmatmul.mubr.bf16.vlgmr.msra.gmra.mrb[0].mxu0 %v447_v29  ;;  %332 = vmatprep.subr.bf16.mxu1 %v455_v0 }
  0x26   :  { %333 = vmatpush1.bf16.msra.mxu1 %v450_v31 }
  0x27   :  { %334 = vmatprep.subr.bf16.mxu1 %v455_v0 }
  0x2a   :  { %335 = vmatpush1.bf16.msra.mxu1 %v451_v32 }
  0x2d   :  { %347 = vmatmul.mubr.bf16.vlgmr.msra.gmra.mrb[0].mxu1 %v452_v33 }
  0x87   :  { %v81_v36 = vpop.permute.xlu0 %80 }
  0x8c   :  { %v86_v41 = vpop.permute.xlu0 %85 }
  0xf6   :  { %v414_v34 = vpop.f32.mrb[0].mxu0 }
  0xf7   :  { %v415_v35 = vpop.f32.mrb[1].mxu0 }
  0xf8   :  { %v416_v37 = vadd.f32 %v415_v35, %v414_v34  ;;  %v417_v38 = vpop.f32.mrb[2].mxu0 }
  0xf9   :  { %v418_v39 = vpop.f32.mrb[3].mxu0 }
  0xfa   :  { %v419_v40 = vadd.f32 %v418_v39, %v417_v38  ;;  %v308_v42 = vadd.f32 %v416_v37, %v81_v36 }
  0xfc   :  { %v311_v45 = vadd.f32 %v419_v40, %v86_v41 }
 0x100   :  { %v348_v43 = vpop.f32.mrb[0].mxu1 }
 0x101   :  { %v349_v46 = vadd.f32 %v348_v43, %v308_v42  ;;  %v350_v47 = vpop.f32.mrb[1].mxu1 }
 0x102   :  { %v351_v48 = vpop.f32.mrb[2].mxu1 }
 0x103   :  { %v357_v50 = vadd.f32 %v355_v44, %v349_v46  ;;  %v352_v51 = vadd.f32 %v351_v48, %v311_v45  ;;  %v353_v52 = vpop.f32.mrb[3].mxu1 }
 0x105   :  { %360 = vst.msk [vmem:[%s608_s4] sm:$0xff] %vm359_vm1, %v357_v50  ;;  %v358_v53 = vadd.f32 %v356_v49, %v352_v51 }
 0x107   :  { %361 = vst.msk [vmem:[%s608_s4 + $0x8] sm:$0xff] %vm359_vm1, %v358_v53 }

// kernel: network_forward.116
= control target key start
LH: loop header
LB: loop body
LE: loop exit
PB: predicated region body
PF: predicated region fallthrough
CT: control target
= control target key end

     0   :  { %s461_s12 = smov 0   ;;  %s499_s0 = inlined_call_operand.vmem [shape: bf16[4,8,8], index: 0, kind: input, shape index: {}]   ;;  %s500_s1 = inlined_call_operand.vmem [shape: bf16[4,8,8], index: 1, kind: input, shape index: {}]   ;;  %s501_s2 = inlined_call_operand.vmem [shape: bf16[4,8,8], index: 2, kind: input, shape index: {}]   ;;  %s502_s3 = inlined_call_operand.vmem [shape: f32[4,8,8], index: 3, kind: output, shape index: {}]  }
   0x1 LB: > { %s388_s13 = sadd.s32 4294967295, %s437_s12   ;;  %p392_p0 = scmp.ge.s32.totalorder %s437_s12, 1  ;;  %s437_s12 = sphi %s461_s12, %s13_s12  }
   0x2   : > { %p154_p1 = scmp.lt.s32.totalorder %s437_s12, 5 }
   0x4   : > { %p155_p2 = pnand %p392_p0, %p154_p1 }
   0x5   : > { %p184_p3 = scmp.lt.s32.totalorder (!%p155_p2), %s388_s13, 3  ;;  %v439_v0 = vmov (!%p155_p2), 0.0   ;;  %vm440_vm0 = vmmov (!%p155_p2), 0   ;;  %vm208_vm1 = vcmask (!%p155_p2), 1043456   ;;  %vm204_vm2 = vcmask (!%p155_p2), 64512  }
   0x6   : > { %158 = sbr.rel (%p155_p2) target bundleno = 772 (0x304), region = 32  ;;  %405 = vmatprep.subr.bf16.mxu0 (!%p155_p2), %v439_v0  ;;  %407 = vmatprep.mubr.msk.bf16.mxu0 (!%p155_p2), %vm440_vm0, %v439_v0 }
   0x7   : > { %411 = vmatprep.subr.bf16.mxu1 (!%p155_p2), %v439_v0  ;;  %413 = vmatprep.mubr.msk.bf16.mxu1 (!%p155_p2), %vm440_vm0, %v439_v0 }
   0xd   : > { %s504_s13 = smov (!%p184_p3, %s388_s13), 3 }
   0xe   : > { %s472_s14 = sshll.u32 %s504_s13, 2  ;;  %s396_s24 = sshll.u32 %s504_s13, 3 }
   0xf   : > { %s191_s17 = scalar_lea.vmem %s500_s1, %s472_s14  ;;  %s187_s20 = scalar_lea.vmem %s499_s0, %s472_s14 }
  0x10   : > { %v202_v1 = vld [vmem:[%s191_s17] sm:$0xf]  ;;  %s195_s23 = scalar_lea.vmem %s501_s2, %s472_s14  ;;  %s199_s27 = scalar_lea.vmem %s502_s3, %s396_s24 }
  0x11   : > { %v210_v2 = vsel %vm208_vm1, %v202_v1, 0  ;;  %v201_v3 = vld [vmem:[%s187_s20] sm:$0xf] }
  0x12   : > { %406 = vmatpush3.bf16.msra.mxu0 %v210_v2  ;;  %v203_v19 = vld [vmem:[%s195_s23] sm:$0xf] }
  0x15   : > { %408 = vmatmul.mubr.msk.bf16.vlgmr.msra.gmra.mrb[0].mxu0 %vm204_vm2, %v201_v3 }
  0xe8   : > { %v246_v4 = vpop.f32.mrb[0].mxu0 }
  0xe9   : > { %v409_v5 = vpop.f32.mrb[1].mxu0  ;;  %v252_v6 = vsel %vm204_vm2, %v246_v4, -inf }
  0xea   : > { %253 = vmax.xlane.f32.xlu0 %v252_v6  ;;  %v249_v7 = vpop.f32.mrb[2].mxu0 }
  0xeb   : > { %v410_v8 = vpop.f32.mrb[3].mxu0 }
 0x177   : > { %v254_v9 = vpop.xlane.xlu0 %253 }
 0x178   : > { %v255_v10 = vsub.f32 %v246_v4, %v254_v9 }
 0x17a   : > { %v256_v11 = vmul.f32 1.442695, %v255_v10 }
 0x17c   : > { %427 = vpow2.f32 %v256_v11 }
 0x186   : > { %v428_v12 = vpop.eup %427 }
 0x187   : > { %v258_v13 = vsel %vm204_vm2, %v428_v12, 0.0 }
 0x188   : > { %259 = vadd.xlane.f32.xlu0 %v258_v13 }
 0x215   : > { %v260_v14 = vpop.xlane.xlu0 %259 }
 0x216   : > { %429 = vrcp.f32 %v260_v14 }
 0x220   : > { %v430_v15 = vpop.eup %429 }
 0x221   : > { %v262_v16 = vmul.f32 %v430_v15, %v428_v12 }
 0x223   : > { %v263_v17 = vpack.c.bf16 %v262_v16, %v262_v16 }
 0x225   : > { %v268_v18 = vsel %vm204_vm2, %v263_v17, 0 }
 0x226   : > { %412 = vmatpush3.bf16.xpose.msra.mxu1 %v268_v18 }
 0x22d   : > { %414 = vmatmul.mubr.msk.bf16.vlgmr.msra.gmra.mrb[0].mxu1 %vm204_vm2, %v203_v19 }
 0x300   : > { %v304_v20 = vpop.f32.mrb[0].mxu1 }
 0x301   : > { %310 = vst.msk [vmem:[%s199_s27] sm:$0xff] %vm204_vm2, %v304_v20  ;;  %v415_v21 = vpop.f32.mrb[1].mxu1 }
 0x302   : > { %v307_v22 = vpop.f32.mrb[2].mxu1 }
 0x303   : > { %v416_v23 = vpop.f32.mrb[3].mxu1 }
 0x304 PF: > { %s13_s12 = sadd.s32 1, %s437_s12  }
 0x305   : > { %p10_p4 = scmp.ge.s32.totalorder %s13_s12, 6  }
 0x307   :  { %12 = sbr.rel (!%p10_p4) target bundleno = 1 (0x1), region = 68 }

// kernel: network_forward.117
= control target key start
LH: loop header
LB: loop body
LE: loop exit
PB: predicated region body
PF: predicated region fallthrough
CT: control target
= control target key end

     0   :  { %v117_v0 = vmov 0.0   ;;  %vm118_vm0 = vmmov 0   ;;  %v119_v3 = vmov 0   ;;  %vm45_vm1 = vcmask 130048   ;;  %s172_s1 = inlined_call_operand.vmem [shape: bf16[16,16], index: 1, kind: input, shape index: {}]   ;;  %s173_s0 = inlined_call_operand.vmem [shape: bf16[16,16], index: 0, kind: input, shape index: {}]   ;;  %s174_s2 = inlined_call_operand.vmem [shape: f32[16,1], index: 2, kind: input, shape index: {}]   ;;  %s175_s3 = inlined_call_operand.vmem [shape: f32[16,16], index: 3, kind: input, shape index: {}]   ;;  %s176_s4 = inlined_call_operand.vmem [shape: f32[16,16], index: 4, kind: output, shape index: {}]  }
   0x1   :  { %105 = vmatprep.subr.bf16.mxu0 %v117_v0  ;;  %v115_v1 = vld [vmem:[%s172_s1] sm:$0xff]   ;;  %107 = vmatprep.mubr.msk.bf16.mxu0 %vm118_vm0, %v117_v0  ;;  %v23_v5 = vld [vmem:[%s174_s2 + $0x8] sm:$0xff] }
   0x2   :  { %v116_v2 = vld [vmem:[%s173_s0] sm:$0xff]   ;;  %114 = vset.pattern.permute.xlu0 %v119_v3  ;;  %106 = vmatpush3.bf16.msra.mxu0 %v115_v1  ;;  %v91_v13 = vld [vmem:[%s175_s3 + $0x8] sm:$0xff] }
   0x3   :  { %v22_v4 = vld [vmem:[%s174_s2] sm:$0xff] }
   0x4   :  { %26 = vperm.xlu0 %114, %v22_v4   ;;  %v90_v8 = vld [vmem:[%s175_s3] sm:$0xff] }
   0x5   :  { %108 = vmatmul.mubr.msk.bf16.vlgmr.msra.gmra.mrb[0].mxu0 %vm45_vm1, %v116_v2 }
   0x8   :  { %31 = vperm.xlu0 %114, %v23_v5  }
  0x83   :  { %v27_v6 = vpop.permute.xlu0 %26 }
  0x87   :  { %v32_v11 = vpop.permute.xlu0 %31 }
  0xd8   :  { %v83_v7 = vpop.f32.mrb[0].mxu0 }
  0xd9   :  { %v84_v9 = vadd.f32 %v83_v7, %v27_v6  ;;  %v109_v10 = vpop.f32.mrb[1].mxu0 }
  0xda   :  { %v86_v12 = vpop.f32.mrb[2].mxu0 }
  0xdb   :  { %v92_v14 = vadd.f32 %v90_v8, %v84_v9  ;;  %v87_v15 = vadd.f32 %v86_v12, %v32_v11  ;;  %v110_v16 = vpop.f32.mrb[3].mxu0 }
  0xdd   :  { %94 = vst.msk [vmem:[%s176_s4] sm:$0xff] %vm45_vm1, %v92_v14  ;;  %v93_v17 = vadd.f32 %v91_v13, %v87_v15 }
  0xdf   :  { %95 = vst.msk [vmem:[%s176_s4 + $0x8] sm:$0xff] %vm45_vm1, %v93_v17 }

// kernel: network_forward.129
= control target key start
LH: loop header
LB: loop body
LE: loop exit
PB: predicated region body
PF: predicated region fallthrough
CT: control target
= control target key end

     0   :  { %v124_v0 = vmov 0.0   ;;  %vm125_vm0 = vmmov 0   ;;  %v126_v2 = vmov 0   ;;  %vm50_vm1 = vcmask 261120   ;;  %s168_s1 = inlined_call_operand.vmem [shape: bf16[32,16], index: 1, kind: input, shape index: {}]   ;;  %s169_s2 = inlined_call_operand.vmem [shape: f32[16,1], index: 2, kind: input, shape index: {}]   ;;  %s170_s0 = inlined_call_operand.vmem [shape: bf16[16,32], index: 0, kind: input, shape index: {}]   ;;  %s171_s3 = inlined_call_operand.vmem [shape: f32[16,16], index: 3, kind: output, shape index: {}]  }
   0x1   :  { %109 = vmatprep.subr.bf16.mxu0 %v124_v0  ;;  %v121_v1 = vld [vmem:[%s168_s1] sm:$0xff]   ;;  %113 = vmatprep.mubr.msk.bf16.mxu0 %vm125_vm0, %v124_v0  ;;  %v122_v3 = vld [vmem:[%s168_s1 + $0x8] sm:$0xff]   ;;  %vm95_vm2 = vcmask 130048  }
   0x2   :  { %120 = vset.pattern.permute.xlu0 %v126_v2  ;;  %110 = vmatpush3.bf16.msra.mxu0 %v121_v1  ;;  %v21_v4 = vld [vmem:[%s169_s2] sm:$0xff]  ;;  %v22_v6 = vld [vmem:[%s169_s2 + $0x8] sm:$0xff] }
   0x3   :  { %111 = vmatprep.subr.bf16.mxu0 %v124_v0  ;;  %25 = vperm.xlu0 %120, %v21_v4   ;;  %v123_v5 = vld [vmem:[%s170_s0] sm:$0xff]  }
   0x6   :  { %112 = vmatpush3.bf16.msra.mxu0 %v122_v3 }
   0x7   :  { %30 = vperm.xlu0 %120, %v22_v6  }
   0x9   :  { %114 = vmatmul.mubr.msk.bf16.vlgmr.msra.gmra.mrb[0].mxu0 %vm50_vm1, %v123_v5 }
  0x82   :  { %v26_v7 = vpop.permute.xlu0 %25 }
  0x86   :  { %v31_v11 = vpop.permute.xlu0 %30 }
  0xdc   :  { %v88_v8 = vpop.f32.mrb[0].mxu0 }
  0xdd   :  { %v89_v9 = vadd.f32 %v88_v8, %v26_v7  ;;  %v115_v10 = vpop.f32.mrb[1].mxu0 }
  0xde   :  { %v91_v12 = vpop.f32.mrb[2].mxu0 }
  0xdf   :  { %96 = vst.msk [vmem:[%s171_s3] sm:$0xff] %vm95_vm2, %v89_v9  ;;  %v92_v13 = vadd.f32 %v91_v12, %v31_v11  ;;  %v116_v14 = vpop.f32.mrb[3].mxu0 }
  0xe1   :  { %97 = vst.msk [vmem:[%s171_s3 + $0x8] sm:$0xff] %vm95_vm2, %v92_v13 }

// kernel: network_forward.132
= control target key start
LH: loop header
LB: loop body
LE: loop exit
PB: predicated region body
PF: predicated region fallthrough
CT: control target
= control target key end

     0   :  { %v150_v0 = vmov 0.0   ;;  %vm151_vm0 = vmmov 0   ;;  %v152_v2 = vmov 0   ;;  %vm66_vm1 = vcmask 523264   ;;  %s200_s1 = inlined_call_operand.vmem [shape: bf16[64,16], index: 1, kind: input, shape index: {}]   ;;  %s201_s2 = inlined_call_operand.vmem [shape: f32[16,1], index: 2, kind: input, shape index: {}]   ;;  %s202_s0 = inlined_call_operand.vmem [shape: bf16[16,64], index: 0, kind: input, shape index: {}]   ;;  %s203_s3 = inlined_call_operand.vmem [shape: f32[16,16], index: 3, kind: output, shape index: {}]  }
   0x1   :  { %129 = vmatprep.subr.bf16.mxu0 %v150_v0  ;;  %v145_v1 = vld [vmem:[%s200_s1] sm:$0xff]   ;;  %137 = vmatprep.mubr.msk.bf16.mxu0 %vm151_vm0, %v150_v0  ;;  %v146_v3 = vld [vmem:[%s200_s1 + $0x8] sm:$0xff]   ;;  %v147_v5 = vld [vmem:[%s200_s1 + $0x10] sm:$0xff]   ;;  %vm111_vm2 = vcmask 130048  }
   0x2   :  { %144 = vset.pattern.permute.xlu0 %v152_v2  ;;  %130 = vmatpush3.bf16.msra.mxu0 %v145_v1  ;;  %v25_v4 = vld [vmem:[%s201_s2] sm:$0xff]  ;;  %v26_v6 = vld [vmem:[%s201_s2 + $0x8] sm:$0xff]  ;;  %v148_v7 = vld [vmem:[%s200_s1 + $0x18] sm:$0xff]  }
   0x3   :  { %131 = vmatprep.subr.bf16.mxu0 %v150_v0  ;;  %29 = vperm.xlu0 %144, %v25_v4   ;;  %v149_v8 = vld [vmem:[%s202_s0] sm:$0xff]  }
   0x6   :  { %132 = vmatpush3.bf16.msra.mxu0 %v146_v3 }
   0x7   :  { %133 = vmatprep.subr.bf16.mxu0 %v150_v0  ;;  %34 = vperm.xlu0 %144, %v26_v6  }
   0xa   :  { %134 = vmatpush3.bf16.msra.mxu0 %v147_v5 }
   0xb   :  { %135 = vmatprep.subr.bf16.mxu0 %v150_v0 }
   0xe   :  { %136 = vmatpush3.bf16.msra.mxu0 %v148_v7 }
  0x11   :  { %138 = vmatmul.mubr.msk.bf16.vlgmr.msra.gmra.mrb[0].mxu0 %vm66_vm1, %v149_v8 }
  0x82   :  { %v30_v9 = vpop.permute.xlu0 %29 }
  0x86   :  { %v35_v13 = vpop.permute.xlu0 %34 }
  0xe4   :  { %v104_v10 = vpop.f32.mrb[0].mxu0 }
  0xe5   :  { %v105_v11 = vadd.f32 %v104_v10, %v30_v9  ;;  %v139_v12 = vpop.f32.mrb[1].mxu0 }
  0xe6   :  { %v107_v14 = vpop.f32.mrb[2].mxu0 }
  0xe7   :  { %112 = vst.msk [vmem:[%s203_s3] sm:$0xff] %vm111_vm2, %v105_v11  ;;  %v108_v15 = vadd.f32 %v107_v14, %v35_v13  ;;  %v140_v16 = vpop.f32.mrb[3].mxu0 }
  0xe9   :  { %113 = vst.msk [vmem:[%s203_s3 + $0x8] sm:$0xff] %vm111_vm2, %v108_v15 }

// kernel: network_forward.134
= control target key start
LH: loop header
LB: loop body
LE: loop exit
PB: predicated region body
PF: predicated region fallthrough
CT: control target
= control target key end

     0   :  { %v198_v0 = vmov 0.0   ;;  %vm199_vm0 = vmmov 0   ;;  %v200_v2 = vmov 0   ;;  %vm140_vm1 = vcmask 130048   ;;  %s260_s1 = inlined_call_operand.vmem [shape: bf16[128,16], index: 1, kind: input, shape index: {}]   ;;  %s261_s2 = inlined_call_operand.vmem [shape: f32[16,1], index: 2, kind: input, shape index: {}]   ;;  %s262_s0 = inlined_call_operand.vmem [shape: bf16[16,128], index: 0, kind: input, shape index: {}]   ;;  %s263_s3 = inlined_call_operand.vmem [shape: f32[16,16], index: 3, kind: output, shape index: {}]  }
   0x1   :  { %165 = vmatprep.subr.bf16.mxu0 %v198_v0  ;;  %v189_v1 = vld [vmem:[%s260_s1] sm:$0xff]   ;;  %181 = vmatprep.mubr.msk.bf16.mxu0 %vm199_vm0, %v198_v0  ;;  %v190_v3 = vld [vmem:[%s260_s1 + $0x8] sm:$0xff]   ;;  %v191_v4 = vld [vmem:[%s260_s1 + $0x10] sm:$0xff]  }
   0x2   :  { %188 = vset.pattern.permute.xlu0 %v200_v2  ;;  %166 = vmatpush3.bf16.msra.mxu0 %v189_v1  ;;  %v33_v5 = vld [vmem:[%s261_s2] sm:$0xff]  ;;  %v192_v6 = vld [vmem:[%s260_s1 + $0x18] sm:$0xff]   ;;  %v34_v7 = vld [vmem:[%s261_s2 + $0x8] sm:$0xff] }
   0x3   :  { %167 = vmatprep.subr.bf16.mxu0 %v198_v0  ;;  %37 = vperm.xlu0 %188, %v33_v5   ;;  %v193_v8 = vld [vmem:[%s260_s1 + $0x20] sm:$0xff]   ;;  %v194_v9 = vld [vmem:[%s260_s1 + $0x28] sm:$0xff]   ;;  %v195_v10 = vld [vmem:[%s260_s1 + $0x30] sm:$0xff]  }
   0x4   :  { %v196_v11 = vld [vmem:[%s260_s1 + $0x38] sm:$0xff]   ;;  %v197_v12 = vld [vmem:[%s262_s0] sm:$0xff]  }
   0x6   :  { %168 = vmatpush3.bf16.msra.mxu0 %v190_v3 }
   0x7   :  { %169 = vmatprep.subr.bf16.mxu0 %v198_v0  ;;  %42 = vperm.xlu0 %188, %v34_v7  }
   0xa   :  { %170 = vmatpush3.bf16.msra.mxu0 %v191_v4 }
   0xb   :  { %171 = vmatprep.subr.bf16.mxu0 %v198_v0 }
   0xe   :  { %172 = vmatpush3.bf16.msra.mxu0 %v192_v6 }
   0xf   :  { %173 = vmatprep.subr.bf16.mxu0 %v198_v0 }
  0x12   :  { %174 = vmatpush3.bf16.msra.mxu0 %v193_v8 }
  0x13   :  { %175 = vmatprep.subr.bf16.mxu0 %v198_v0 }
  0x16   :  { %176 = vmatpush3.bf16.msra.mxu0 %v194_v9 }
  0x17   :  { %177 = vmatprep.subr.bf16.mxu0 %v198_v0 }
  0x1a   :  { %178 = vmatpush3.bf16.msra.mxu0 %v195_v10 }
  0x1b   :  { %179 = vmatprep.subr.bf16.mxu0 %v198_v0 }
  0x1e   :  { %180 = vmatpush3.bf16.msra.mxu0 %v196_v11 }
  0x21   :  { %182 = vmatmul.mubr.bf16.vlgmr.msra.gmra.mrb[0].mxu0 %v197_v12 }
  0x82   :  { %v38_v13 = vpop.permute.xlu0 %37 }
  0x86   :  { %v43_v17 = vpop.permute.xlu0 %42 }
  0xf4   :  { %v133_v14 = vpop.f32.mrb[0].mxu0 }
  0xf5   :  { %v134_v15 = vadd.f32 %v133_v14, %v38_v13  ;;  %v183_v16 = vpop.f32.mrb[1].mxu0 }
  0xf6   :  { %v136_v18 = vpop.f32.mrb[2].mxu0 }
  0xf7   :  { %141 = vst.msk [vmem:[%s263_s3] sm:$0xff] %vm140_vm1, %v134_v15  ;;  %v137_v19 = vadd.f32 %v136_v18, %v43_v17  ;;  %v184_v20 = vpop.f32.mrb[3].mxu0 }
  0xf9   :  { %142 = vst.msk [vmem:[%s263_s3 + $0x8] sm:$0xff] %vm140_vm1, %v137_v19 }

// kernel: network_forward.145
= control target key start
LH: loop header
LB: loop body
LE: loop exit
PB: predicated region body
PF: predicated region fallthrough
CT: control target
= control target key end

     0   :  { %s704_s12 = smov 0   ;;  %s756_s0 = inlined_call_operand.vmem [shape: bf16[2,64,16], index: 0, kind: input, shape index: {}]   ;;  %s757_s1 = inlined_call_operand.vmem [shape: bf16[2,16,8], index: 1, kind: input, shape index: {}]   ;;  %s758_s2 = inlined_call_operand.vmem [shape: bf16[2,16,8], index: 2, kind: input, shape index: {}]   ;;  %s759_s3 = inlined_call_operand.vmem [shape: f32[2,16,64], index: 3, kind: output, shape index: {}]  }
   0x1 LB: > { %s564_s13 = sadd.s32 4294967295, %s680_s12   ;;  %p568_p0 = scmp.ge.s32.totalorder %s680_s12, 1  ;;  %s680_s12 = sphi %s704_s12, %s13_s12  }
   0x2   : > { %p157_p1 = scmp.lt.s32.totalorder %s680_s12, 3 }
   0x4   : > { %p158_p2 = pnand %p568_p0, %p157_p1 }
   0x5   : > { %p191_p3 = scmp.lt.s32.totalorder (!%p158_p2), %s564_s13, 1  ;;  %vm250_vm0 = vcmask (!%p158_p2), 130048   ;;  %vm328_vm1 = vcmask (!%p158_p2), 64512   ;;  %v682_v61 = vmov (!%p158_p2), 0.0   ;;  %vm683_vm2 = vmmov (!%p158_p2), 0  }
   0x6   : > { %161 = sbr.rel (%p158_p2) target bundleno = 801 (0x321), region = 32  ;;  %614 = vmatprep.subr.bf16.mxu1 (!%p158_p2), %v682_v61  ;;  %622 = vmatprep.mubr.msk.bf16.mxu1 (!%p158_p2), %vm683_vm2, %v682_v61  ;;  %vm482_vm3 = vcmask (!%p158_p2), 523264  }
   0xd   : > { %s761_s13 = smov (!%p191_p3, %s564_s13), 1 }
   0xe   : > { %s590_s14 = sshll.u32 %s761_s13, 5  ;;  %s591_s15 = sshll.u32 %s761_s13, 3 }
   0xf   : > { %s195_s18 = scalar_lea.vmem %s756_s0, %s590_s14  ;;  %s200_s21 = scalar_lea.vmem %s757_s1, %s591_s15 }
  0x10   : > { %s725_s24 = scalar_lea.vmem %s758_s2, %s591_s15  ;;  %v636_v0 = vld [vmem:[%s200_s21] sm:$0xff]   ;;  %v638_v2 = vld [vmem:[%s195_s18 + $0x8] sm:$0xff]   ;;  %v639_v3 = vld [vmem:[%s195_s18 + $0x10] sm:$0xff]   ;;  %s593_s25 = sshll.u32 %s761_s13, 4 }
  0x11   : > { %604 = vmatprep.subr.bf16.mxu0 %v636_v0  ;;  %v637_v1 = vld [vmem:[%s195_s18] sm:$0xff]   ;;  %v640_v4 = vld [vmem:[%s195_s18 + $0x18] sm:$0xff]   ;;  %s210_s28 = scalar_lea.vmem %s759_s3, %s593_s25 }
  0x12   : > { %605 = vmatpush3.bf16.msra.mxu0 %v636_v0  ;;  %606 = vmatprep.mubr.msk.bf16.mxu0 %vm250_vm0, %v637_v1 }
  0x15   : > { %607 = vmatmul.mubr.msk.bf16.vlgmr.msra.gmra.mrb[0].mxu0 %vm250_vm0, %v638_v2 }
  0x16   : > { %610 = vmatprep.mubr.msk.bf16.mxu0 %vm250_vm0, %v639_v3 }
  0x1d   : > { %611 = vmatmul.mubr.msk.bf16.gmra.mrb[4].mxu0 %vm250_vm0, %v640_v4 }
  0xe8   : > { %v608_v5 = vpop.f32.mrb[0].mxu0 }
  0xe9   : > { %v297_v6 = vpop.f32.mrb[1].mxu0  ;;  %v335_v7 = vsel %vm328_vm1, %v608_v5, -inf }
  0xea   : > { %336 = vmax.xlane.f32.xlu1 %v335_v7  ;;  %v609_v8 = vpop.f32.mrb[2].mxu0  ;;  %v329_v9 = vsel %vm328_vm1, %v297_v6, -inf }
  0xeb   : > { %330 = vmax.xlane.f32.xlu0 %v329_v9  ;;  %v300_v10 = vpop.f32.mrb[3].mxu0  ;;  %v338_v11 = vsel %vm328_vm1, %v609_v8, -inf }
  0xec   : > { %v332_v12 = vsel %vm328_vm1, %v300_v10, -inf }
  0xee   : > { %339 = vmax.xlane.f32.xlu1 %v338_v11 }
  0xef   : > { %333 = vmax.xlane.f32.xlu0 %v332_v12 }
  0xf0   : > { %v612_v13 = vpop.f32.mrb[4].mxu0 }
  0xf1   : > { %v313_v14 = vpop.f32.mrb[5].mxu0  ;;  %v347_v19 = vsel %vm328_vm1, %v612_v13, -inf }
  0xf2   : > { %v613_v15 = vpop.f32.mrb[6].mxu0  ;;  %v341_v16 = vsel %vm328_vm1, %v313_v14, -inf }
  0xf3   : > { %342 = vmax.xlane.f32.xlu0 %v341_v16  ;;  %v316_v17 = vpop.f32.mrb[7].mxu0  ;;  %v350_v20 = vsel %vm328_vm1, %v613_v15, -inf }
  0xf4   : > { %v344_v18 = vsel %vm328_vm1, %v316_v17, -inf }
  0xf5   : > { %345 = vmax.xlane.f32.xlu1 %v344_v18 }
  0xf7   : > { %348 = vmax.xlane.f32.xlu0 %v347_v19 }
  0xf9   : > { %351 = vmax.xlane.f32.xlu1 %v350_v20 }
 0x177   : > { %v337_v21 = vpop.xlane.xlu1 %336 }
 0x178   : > { %v355_v22 = vsub.f32 %v608_v5, %v337_v21  ;;  %v331_v23 = vpop.xlane.xlu0 %330 }
 0x179   : > { %v353_v24 = vsub.f32 %v297_v6, %v331_v23 }
 0x17a   : > { %v365_v25 = vmul.f32 1.442695, %v355_v22 }
 0x17b   : > { %v361_v26 = vmul.f32 1.442695, %v353_v24  ;;  %v340_v27 = vpop.xlane.xlu1 %339 }
 0x17c   : > { %v356_v28 = vsub.f32 %v609_v8, %v340_v27  ;;  %v334_v29 = vpop.xlane.xlu0 %333 }
 0x17d   : > { %642 = vpow2.f32 %v361_v26  ;;  %v354_v30 = vsub.f32 %v300_v10, %v334_v29 }
 0x17e   : > { %644 = vpow2.f32 %v365_v25  ;;  %v367_v31 = vmul.f32 1.442695, %v356_v28 }
 0x17f   : > { %v363_v32 = vmul.f32 1.442695, %v354_v30  ;;  %v641_v30 = vld [vmem:[%s725_s24] sm:$0xff]  }
 0x180   : > { %v343_v33 = vpop.xlane.xlu0 %342 }
 0x181   : > { %646 = vpow2.f32 %v363_v32  ;;  %v357_v34 = vsub.f32 %v313_v14, %v343_v33 }
 0x182   : > { %v346_v35 = vpop.xlane.xlu1 %345  ;;  %648 = vpow2.f32 %v367_v31 }
 0x183   : > { %v369_v36 = vmul.f32 1.442695, %v357_v34  ;;  %v358_v37 = vsub.f32 %v316_v17, %v346_v35 }
 0x184   : > { %v349_v38 = vpop.xlane.xlu0 %348 }
 0x185   : > { %650 = vpow2.f32 %v369_v36  ;;  %v371_v39 = vmul.f32 1.442695, %v358_v37  ;;  %v359_v40 = vsub.f32 %v612_v13, %v349_v38 }
 0x186   : > { %v352_v41 = vpop.xlane.xlu1 %351 }
 0x187   : > { %v643_v42 = vpop.eup %642  ;;  %652 = vpow2.f32 %v371_v39  ;;  %v373_v43 = vmul.f32 1.442695, %v359_v40  ;;  %v360_v44 = vsub.f32 %v613_v15, %v352_v41 }
 0x188   : > { %v377_v45 = vsel %vm328_vm1, %v643_v42, 0.0  ;;  %v645_v46 = vpop.eup %644 }
 0x189   : > { %654 = vpow2.f32 %v373_v43  ;;  %v375_v47 = vmul.f32 1.442695, %v360_v44  ;;  %378 = vadd.xlane.f32.xlu0 %v377_v45  ;;  %v383_v49 = vsel %vm328_vm1, %v645_v46, 0.0 }
 0x18b   : > { %v647_v48 = vpop.eup %646  ;;  %656 = vpow2.f32 %v375_v47 }
 0x18c   : > { %v380_v50 = vsel %vm328_vm1, %v647_v48, 0.0  ;;  %v649_v51 = vpop.eup %648 }
 0x18d   : > { %384 = vadd.xlane.f32.xlu0 %v383_v49  ;;  %381 = vadd.xlane.f32.xlu1 %v380_v50  ;;  %v386_v54 = vsel %vm328_vm1, %v649_v51, 0.0 }
 0x18f   : > { %v651_v52 = vpop.eup %650 }
 0x190   : > { %v389_v53 = vsel %vm328_vm1, %v651_v52, 0.0 }
 0x191   : > { %v653_v55 = vpop.eup %652  ;;  %390 = vadd.xlane.f32.xlu0 %v389_v53  ;;  %387 = vadd.xlane.f32.xlu1 %v386_v54 }
 0x192   : > { %v392_v58 = vsel %vm328_vm1, %v653_v55, 0.0 }
 0x193   : > { %v655_v56 = vpop.eup %654 }
 0x194   : > { %v395_v57 = vsel %vm328_vm1, %v655_v56, 0.0 }
 0x195   : > { %v657_v59 = vpop.eup %656  ;;  %396 = vadd.xlane.f32.xlu0 %v395_v57  ;;  %393 = vadd.xlane.f32.xlu1 %v392_v58 }
 0x196   : > { %v398_v60 = vsel %vm328_vm1, %v657_v59, 0.0 }
 0x199   : > { %399 = vadd.xlane.f32.xlu1 %v398_v60 }
 0x216   : > { %v379_v62 = vpop.xlane.xlu0 %378 }
 0x217   : > { %658 = vrcp.f32 %v379_v62 }
 0x21a   : > { %v382_v63 = vpop.xlane.xlu1 %381  ;;  %v385_v0 = vpop.xlane.xlu0 %384 }
 0x21b   : > { %660 = vrcp.f32 %v382_v63 }
 0x21c   : > { %662 = vrcp.f32 %v385_v0 }
 0x21e   : > { %v388_v1 = vpop.xlane.xlu1 %387  ;;  %v391_v4 = vpop.xlane.xlu0 %390 }
 0x21f   : > { %664 = vrcp.f32 %v388_v1 }
 0x221   : > { %v659_v3 = vpop.eup %658 }
 0x222   : > { %v394_v2 = vpop.xlane.xlu1 %393  ;;  %v409_v6 = vmul.f32 %v659_v3, %v643_v42  ;;  %v397_v14 = vpop.xlane.xlu0 %396 }
 0x223   : > { %666 = vrcp.f32 %v394_v2 }
 0x224   : > { %668 = vrcp.f32 %v391_v4 }
 0x225   : > { %v661_v5 = vpop.eup %660 }
 0x226   : > { %v410_v7 = vmul.f32 %v661_v5, %v647_v48  ;;  %v663_v8 = vpop.eup %662  ;;  %v400_v11 = vpop.xlane.xlu1 %399 }
 0x227   : > { %v411_v15 = vmul.f32 %v663_v8, %v645_v46  ;;  %670 = vrcp.f32 %v400_v11 }
 0x228   : > { %v417_v9 = vpack.c.bf16 %v410_v7, %v409_v6  ;;  %672 = vrcp.f32 %v397_v14 }
 0x229   : > { %v665_v10 = vpop.eup %664 }
 0x22a   : > { %v430_v12 = vsel %vm328_vm1, %v417_v9, 0  ;;  %v412_v13 = vmul.f32 %v665_v10, %v649_v51 }
 0x22b   : > { %615 = vmatpush3.bf16.xpose.msra.mxu1 %v430_v12 }
 0x22c   : > { %616 = vmatprep.subr.bf16.mxu1 %v682_v61  ;;  %v418_v16 = vpack.c.bf16 %v412_v13, %v411_v15 }
 0x22d   : > { %v667_v17 = vpop.eup %666 }
 0x22e   : > { %v669_v18 = vpop.eup %668  ;;  %v433_v19 = vsel %vm328_vm1, %v418_v16, 0  ;;  %v414_v20 = vmul.f32 %v667_v17, %v653_v55 }
 0x22f   : > { %v413_v21 = vmul.f32 %v669_v18, %v651_v52 }
 0x231   : > { %v419_v22 = vpack.c.bf16 %v414_v20, %v413_v21  ;;  %v671_v23 = vpop.eup %670 }
 0x232   : > { %v673_v24 = vpop.eup %672  ;;  %v416_v26 = vmul.f32 %v671_v23, %v657_v59 }
 0x233   : > { %617 = vmatpush3.bf16.xpose.msra.mxu1 %v433_v19  ;;  %v436_v25 = vsel %vm328_vm1, %v419_v22, 0  ;;  %v415_v27 = vmul.f32 %v673_v24, %v655_v56 }
 0x234   : > { %618 = vmatprep.subr.bf16.mxu1 %v682_v61 }
 0x235   : > { %v420_v28 = vpack.c.bf16 %v416_v26, %v415_v27 }
 0x237   : > { %v439_v29 = vsel %vm328_vm1, %v420_v28, 0 }
 0x23b   : > { %619 = vmatpush3.bf16.xpose.msra.mxu1 %v436_v25 }
 0x23c   : > { %620 = vmatprep.subr.bf16.mxu1 %v682_v61 }
 0x243   : > { %621 = vmatpush3.bf16.xpose.msra.mxu1 %v439_v29 }
 0x24a   : > { %623 = vmatmul.mubr.msk.bf16.vlgmr.msra.gmra.mrb[0].mxu1 %vm328_vm1, %v641_v30 }
 0x31d   : > { %v475_v31 = vpop.f32.mrb[0].mxu1 }
 0x31e   : > { %483 = vst.msk [vmem:[%s210_s28] sm:$0xff] %vm482_vm3, %v475_v31  ;;  %v624_v32 = vpop.f32.mrb[1].mxu1 }
 0x31f   : > { %v478_v33 = vpop.f32.mrb[2].mxu1 }
 0x320   : > { %484 = vst.msk [vmem:[%s210_s28 + $0x8] sm:$0xff] %vm482_vm3, %v478_v33  ;;  %v625_v34 = vpop.f32.mrb[3].mxu1 }
 0x321 PF: > { %s13_s12 = sadd.s32 1, %s680_s12  }
 0x322   : > { %p10_p4 = scmp.ge.s32.totalorder %s13_s12, 4  }
 0x324   :  { %12 = sbr.rel (!%p10_p4) target bundleno = 1 (0x1), region = 68 }

// kernel: network_forward.146
= control target key start
LH: loop header
LB: loop body
LE: loop exit
PB: predicated region body
PF: predicated region fallthrough
CT: control target
= control target key end

     0   :  { %v117_v0 = vmov 0.0   ;;  %vm118_vm0 = vmmov 0   ;;  %v119_v3 = vmov 0   ;;  %vm45_vm1 = vcmask 130048   ;;  %s169_s1 = inlined_call_operand.vmem [shape: bf16[16,128], index: 1, kind: input, shape index: {}]   ;;  %s170_s0 = inlined_call_operand.vmem [shape: bf16[16,16], index: 0, kind: input, shape index: {}]   ;;  %s171_s2 = inlined_call_operand.vmem [shape: f32[16,1], index: 2, kind: input, shape index: {}]   ;;  %s172_s3 = inlined_call_operand.vmem [shape: f32[16,128], index: 3, kind: input, shape index: {}]   ;;  %s173_s4 = inlined_call_operand.vmem [shape: f32[16,128], index: 4, kind: output, shape index: {}]  }
   0x1   :  { %105 = vmatprep.subr.bf16.mxu0 %v117_v0  ;;  %v115_v1 = vld [vmem:[%s169_s1] sm:$0xff]   ;;  %107 = vmatprep.mubr.msk.bf16.mxu0 %vm118_vm0, %v117_v0  ;;  %v23_v5 = vld [vmem:[%s171_s2 + $0x8] sm:$0xff] }
   0x2   :  { %v116_v2 = vld [vmem:[%s170_s0] sm:$0xff]   ;;  %114 = vset.pattern.permute.xlu0 %v119_v3  ;;  %106 = vmatpush3.bf16.msra.mxu0 %v115_v1  ;;  %v91_v13 = vld [vmem:[%s172_s3 + $0x8] sm:$0xff] }
   0x3   :  { %v22_v4 = vld [vmem:[%s171_s2] sm:$0xff] }
   0x4   :  { %26 = vperm.xlu0 %114, %v22_v4   ;;  %v90_v8 = vld [vmem:[%s172_s3] sm:$0xff] }
   0x5   :  { %108 = vmatmul.mubr.msk.bf16.vlgmr.msra.gmra.mrb[0].mxu0 %vm45_vm1, %v116_v2 }
   0x8   :  { %31 = vperm.xlu0 %114, %v23_v5  }
  0x83   :  { %v27_v6 = vpop.permute.xlu0 %26 }
  0x87   :  { %v32_v11 = vpop.permute.xlu0 %31 }
  0xd8   :  { %v83_v7 = vpop.f32.mrb[0].mxu0 }
  0xd9   :  { %v84_v9 = vadd.f32 %v83_v7, %v27_v6  ;;  %v109_v10 = vpop.f32.mrb[1].mxu0 }
  0xda   :  { %v86_v12 = vpop.f32.mrb[2].mxu0 }
  0xdb   :  { %v92_v14 = vadd.f32 %v90_v8, %v84_v9  ;;  %v87_v15 = vadd.f32 %v86_v12, %v32_v11  ;;  %v110_v16 = vpop.f32.mrb[3].mxu0 }
  0xdd   :  { %94 = vst [vmem:[%s173_s4] sm:$0xff] %v92_v14  ;;  %v93_v17 = vadd.f32 %v91_v13, %v87_v15 }
  0xdf   :  { %95 = vst [vmem:[%s173_s4 + $0x8] sm:$0xff] %v93_v17 }

// kernel: network_forward.147
= control target key start
LH: loop header
LB: loop body
LE: loop exit
PB: predicated region body
PF: predicated region fallthrough
CT: control target
= control target key end

     0   :  { %v74_v0 = vmov 0   ;;  %s116_s2 = inlined_call_operand.vmem [shape: f32[16,1], index: 2, kind: input, shape index: {}]   ;;  %s117_s1 = inlined_call_operand.vmem [shape: f32[16,1], index: 1, kind: input, shape index: {}]   ;;  %s118_s0 = inlined_call_operand.vmem [shape: f32[16,128], index: 0, kind: input, shape index: {}]   ;;  %s119_s3 = inlined_call_operand.vmem [shape: bf16[16,128], index: 3, kind: output, shape index: {}]  }
   0x1   :  { %73 = vset.pattern.permute.xlu1 %v74_v0  ;;  %72 = vset.pattern.permute.xlu0 %v74_v0  ;;  %v30_v1 = vld [vmem:[%s116_s2] sm:$0xff]  ;;  %v31_v3 = vld [vmem:[%s116_s2 + $0x8] sm:$0xff] }
   0x2   :  { %v16_v2 = vld [vmem:[%s117_s1] sm:$0xff]  ;;  %34 = vperm.xlu1 %73, %v30_v1   ;;  %v17_v4 = vld [vmem:[%s117_s1 + $0x8] sm:$0xff] }
   0x3   :  { %20 = vperm.xlu0 %72, %v16_v2   ;;  %v14_v5 = vld [vmem:[%s118_s0] sm:$0xff]  ;;  %v15_v9 = vld [vmem:[%s118_s0 + $0x8] sm:$0xff] }
   0x6   :  { %39 = vperm.xlu1 %73, %v31_v3  }
   0x7   :  { %25 = vperm.xlu0 %72, %v17_v4  }
  0x81   :  { %v35_v6 = vpop.permute.xlu1 %34 }
  0x82   :  { %v21_v7 = vpop.permute.xlu0 %20 }
  0x83   :  { %v28_v8 = vmul.f32 %v21_v7, %v14_v5 }
  0x85   :  { %v42_v10 = vadd.f32 %v35_v6, %v28_v8  ;;  %v40_v13 = vpop.permute.xlu1 %39 }
  0x86   :  { %v26_v11 = vpop.permute.xlu0 %25 }
  0x87   :  { %v29_v12 = vmul.f32 %v26_v11, %v15_v9  ;;  %v44_v14 = vmax.f32 %v42_v10, 0.0 }
  0x89   :  { %v43_v15 = vadd.f32 %v40_v13, %v29_v12  ;;  %v46_v17 = vmin.f32 %v44_v14, 6.0 }
  0x8b   :  { %v45_v16 = vmax.f32 %v43_v15, 0.0 }
  0x8d   :  { %v47_v18 = vmin.f32 %v45_v16, 6.0 }
  0x8f   :  { %v69_v19 = vpack.c.bf16 %v47_v18, %v46_v17 }
  0x91   :  { %70 = vst [vmem:[%s119_s3] sm:$0xff] %v69_v19  }

// kernel: network_forward.148
= control target key start
LH: loop header
LB: loop body
LE: loop exit
PB: predicated region body
PF: predicated region fallthrough
CT: control target
= control target key end

     0   :  { %v447_v0 = vmov 0   ;;  %vm266_vm0 = vcmask 392192   ;;  %s585_s1 = inlined_call_operand.vmem [shape: bf16[432,128], index: 1, kind: input, shape index: {}]   ;;  %s586_s0 = inlined_call_operand.vmem [shape: bf16[16,432], index: 0, kind: input, shape index: {}]   ;;  %s587_s2 = inlined_call_operand.vmem [shape: f32[16,1], index: 2, kind: input, shape index: {}]   ;;  %s588_s3 = inlined_call_operand.vmem [shape: f32[16,128], index: 3, kind: output, shape index: {}]  }
   0x1   :  { %311 = vmatprep.subr.bf16.mxu1 %v447_v0  ;;  %v414_v1 = vld [vmem:[%s585_s1 + $0x80] sm:$0xff]   ;;  %413 = vset.pattern.permute.xlu0 %v447_v0  ;;  %v417_v4 = vld [vmem:[%s585_s1 + $0x88] sm:$0xff]   ;;  %v420_v7 = vld [vmem:[%s585_s1 + $0x90] sm:$0xff]  }
   0x2   :  { %v415_v2 = vld [vmem:[%s585_s1 + $0x40] sm:$0xff]   ;;  %312 = vmatpush1.bf16.msra.mxu1 %v414_v1  ;;  %v418_v5 = vld [vmem:[%s585_s1 + $0x48] sm:$0xff]   ;;  %v421_v8 = vld [vmem:[%s585_s1 + $0x50] sm:$0xff]  }
   0x3   :  { %v416_v3 = vld [vmem:[%s585_s1] sm:$0xff]   ;;  %390 = vmatprep.subr.bf16.mxu0 %v415_v2  ;;  %313 = vmatprep.subr.bf16.mxu1 %v447_v0  ;;  %v419_v6 = vld [vmem:[%s585_s1 + $0x8] sm:$0xff]   ;;  %v422_v9 = vld [vmem:[%s585_s1 + $0x10] sm:$0xff]  }
   0x4   :  { %391 = vmatpush3.bf16.msra.mxu0 %v416_v3  ;;  %v423_v10 = vld [vmem:[%s585_s1 + $0x98] sm:$0xff]   ;;  %v427_v13 = vld [vmem:[%s585_s1 + $0x60] sm:$0xff]   ;;  %v430_v16 = vld [vmem:[%s585_s1 + $0x68] sm:$0xff]  }
   0x5   :  { %392 = vmatprep.subr.bf16.mxu0 %v418_v5  ;;  %v424_v11 = vld [vmem:[%s585_s1 + $0x58] sm:$0xff]   ;;  %v426_v14 = vld [vmem:[%s585_s1 + $0xa0] sm:$0xff]   ;;  %v429_v17 = vld [vmem:[%s585_s1 + $0xa8] sm:$0xff]  }
   0x6   :  { %314 = vmatpush1.bf16.msra.mxu1 %v417_v4  ;;  %v425_v12 = vld [vmem:[%s585_s1 + $0x18] sm:$0xff]   ;;  %v428_v15 = vld [vmem:[%s585_s1 + $0x20] sm:$0xff]   ;;  %v431_v18 = vld [vmem:[%s585_s1 + $0x28] sm:$0xff]  }
   0x7   :  { %315 = vmatprep.subr.bf16.mxu1 %v447_v0  ;;  %v433_v19 = vld [vmem:[%s585_s1 + $0x70] sm:$0xff]   ;;  %v435_v22 = vld [vmem:[%s585_s1 + $0xb8] sm:$0xff]   ;;  %v73_v27 = vld [vmem:[%s587_s2] sm:$0xff] }
   0x8   :  { %393 = vmatpush3.bf16.msra.mxu0 %v419_v6  ;;  %v432_v20 = vld [vmem:[%s585_s1 + $0xb0] sm:$0xff]   ;;  %v436_v23 = vld [vmem:[%s585_s1 + $0x78] sm:$0xff]   ;;  %v438_v28 = vld [vmem:[%s585_s1 + $0xc0] sm:$0xff]   ;;  %77 = vperm.xlu0 %413, %v73_v27  }
   0x9   :  { %394 = vmatprep.subr.bf16.mxu0 %v421_v8  ;;  %v434_v21 = vld [vmem:[%s585_s1 + $0x30] sm:$0xff]   ;;  %v437_v25 = vld [vmem:[%s585_s1 + $0x38] sm:$0xff]   ;;  %v74_v30 = vld [vmem:[%s587_s2 + $0x8] sm:$0xff] }
   0xa   :  { %316 = vmatpush1.bf16.msra.mxu1 %v420_v7  ;;  %v441_v24 = vld [vmem:[%s586_s0 + $0x4] ss:$16 sps:$4 sm:$0xff]   ;;  %v446_v26 = vld [vmem:[%s586_s0 + $0xc] ss:$16 sps:$4 sm:$0xff]   ;;  %v439_v29 = vld [vmem:[%s586_s0] ss:$16 sps:$4 sm:$0xff]  }
   0xb   :  { %317 = vmatprep.subr.bf16.mxu1 %v447_v0  ;;  %302 = vmatprep.mubr.bf16.mxu0 %v441_v24  ;;  %v442_v31 = vld [vmem:[%s585_s1 + $0xc8] sm:$0xff]   ;;  %v443_v32 = vld [vmem:[%s585_s1 + $0xd0] sm:$0xff]  }
   0xc   :  { %395 = vmatpush3.bf16.msra.mxu0 %v422_v9  ;;  %389 = vmatprep.mubr.msk.bf16.mxu1 %vm266_vm0, %v446_v26  ;;  %v444_v33 = vld [vmem:[%s586_s0 + $0x8] ss:$16 sps:$4 sm:$0xff]  }
   0xd   :  { %396 = vmatprep.subr.bf16.mxu0 %v424_v11  ;;  %82 = vperm.xlu0 %413, %v74_v30  }
   0xe   :  { %318 = vmatpush1.bf16.msra.mxu1 %v423_v10 }
   0xf   :  { %319 = vmatprep.subr.bf16.mxu1 %v447_v0 }
  0x10   :  { %397 = vmatpush3.bf16.msra.mxu0 %v425_v12 }
  0x11   :  { %398 = vmatprep.subr.bf16.mxu0 %v427_v13 }
  0x12   :  { %320 = vmatpush1.bf16.msra.mxu1 %v426_v14 }
  0x13   :  { %321 = vmatprep.subr.bf16.mxu1 %v447_v0 }
  0x14   :  { %399 = vmatpush3.bf16.msra.mxu0 %v428_v15 }
  0x15   :  { %400 = vmatprep.subr.bf16.mxu0 %v430_v16 }
  0x16   :  { %322 = vmatpush1.bf16.msra.mxu1 %v429_v17 }
  0x17   :  { %323 = vmatprep.subr.bf16.mxu1 %v447_v0 }
  0x18   :  { %401 = vmatpush3.bf16.msra.mxu0 %v431_v18 }
  0x19   :  { %402 = vmatprep.subr.bf16.mxu0 %v433_v19 }
  0x1a   :  { %324 = vmatpush1.bf16.msra.mxu1 %v432_v20 }
  0x1b   :  { %325 = vmatprep.subr.bf16.mxu1 %v447_v0 }
  0x1c   :  { %403 = vmatpush3.bf16.msra.mxu0 %v434_v21 }
  0x1d   :  { %404 = vmatprep.subr.bf16.mxu0 %v436_v23 }
  0x1e   :  { %326 = vmatpush1.bf16.msra.mxu1 %v435_v22 }
  0x1f   :  { %327 = vmatprep.subr.bf16.mxu1 %v447_v0 }
  0x20   :  { %405 = vmatpush3.bf16.msra.mxu0 %v437_v25 }
  0x22   :  { %328 = vmatpush1.bf16.msra.mxu1 %v438_v28 }
  0x23   :  { %303 = vmatmul.mubr.bf16.vlgmr.msra.gmra.mrb[0].mxu0 %v439_v29  ;;  %329 = vmatprep.subr.bf16.mxu1 %v447_v0 }
  0x26   :  { %330 = vmatpush1.bf16.msra.mxu1 %v442_v31 }
  0x27   :  { %331 = vmatprep.subr.bf16.mxu1 %v447_v0 }
  0x2a   :  { %332 = vmatpush1.bf16.msra.mxu1 %v443_v32 }
  0x2d   :  { %344 = vmatmul.mubr.bf16.vlgmr.msra.gmra.mrb[0].mxu1 %v444_v33 }
  0x87   :  { %v78_v36 = vpop.permute.xlu0 %77 }
  0x8c   :  { %v83_v41 = vpop.permute.xlu0 %82 }
  0xf6   :  { %v406_v34 = vpop.f32.mrb[0].mxu0 }
  0xf7   :  { %v407_v35 = vpop.f32.mrb[1].mxu0 }
  0xf8   :  { %v408_v37 = vadd.f32 %v407_v35, %v406_v34  ;;  %v409_v38 = vpop.f32.mrb[2].mxu0 }
  0xf9   :  { %v410_v39 = vpop.f32.mrb[3].mxu0 }
  0xfa   :  { %v411_v40 = vadd.f32 %v410_v39, %v409_v38  ;;  %v305_v42 = vadd.f32 %v408_v37, %v78_v36 }
  0xfc   :  { %v308_v44 = vadd.f32 %v411_v40, %v83_v41 }
 0x100   :  { %v345_v43 = vpop.f32.mrb[0].mxu1 }
 0x101   :  { %v346_v45 = vadd.f32 %v345_v43, %v305_v42  ;;  %v347_v46 = vpop.f32.mrb[1].mxu1 }
 0x102   :  { %v348_v47 = vpop.f32.mrb[2].mxu1 }
 0x103   :  { %352 = vst [vmem:[%s588_s3] sm:$0xff] %v346_v45  ;;  %v349_v48 = vadd.f32 %v348_v47, %v308_v44  ;;  %v350_v49 = vpop.f32.mrb[3].mxu1 }
 0x105   :  { %353 = vst [vmem:[%s588_s3 + $0x8] sm:$0xff] %v349_v48 }

// kernel: network_forward.150
= control target key start
LH: loop header
LB: loop body
LE: loop exit
PB: predicated region body
PF: predicated region fallthrough
CT: control target
= control target key end

     0   :  { %v454_v0 = vmov 0   ;;  %vm269_vm0 = vcmask 392192   ;;  %s603_s1 = inlined_call_operand.vmem [shape: bf16[432,128], index: 1, kind: input, shape index: {}]   ;;  %s604_s0 = inlined_call_operand.vmem [shape: bf16[16,432], index: 0, kind: input, shape index: {}]   ;;  %s605_s2 = inlined_call_operand.vmem [shape: f32[16,1], index: 2, kind: input, shape index: {}]   ;;  %s606_s3 = inlined_call_operand.vmem [shape: f32[16,128], index: 3, kind: input, shape index: {}]   ;;  %s607_s4 = inlined_call_operand.vmem [shape: f32[16,128], index: 4, kind: output, shape index: {}]  }
   0x1   :  { %314 = vmatprep.subr.bf16.mxu1 %v454_v0  ;;  %v421_v1 = vld [vmem:[%s603_s1 + $0x80] sm:$0xff]   ;;  %420 = vset.pattern.permute.xlu0 %v454_v0  ;;  %v424_v4 = vld [vmem:[%s603_s1 + $0x88] sm:$0xff]   ;;  %v427_v7 = vld [vmem:[%s603_s1 + $0x90] sm:$0xff]  }
   0x2   :  { %v422_v2 = vld [vmem:[%s603_s1 + $0x40] sm:$0xff]   ;;  %315 = vmatpush1.bf16.msra.mxu1 %v421_v1  ;;  %v425_v5 = vld [vmem:[%s603_s1 + $0x48] sm:$0xff]   ;;  %v428_v8 = vld [vmem:[%s603_s1 + $0x50] sm:$0xff]  }
   0x3   :  { %v423_v3 = vld [vmem:[%s603_s1] sm:$0xff]   ;;  %397 = vmatprep.subr.bf16.mxu0 %v422_v2  ;;  %316 = vmatprep.subr.bf16.mxu1 %v454_v0  ;;  %v426_v6 = vld [vmem:[%s603_s1 + $0x8] sm:$0xff]   ;;  %v429_v9 = vld [vmem:[%s603_s1 + $0x10] sm:$0xff]  }
   0x4   :  { %398 = vmatpush3.bf16.msra.mxu0 %v423_v3  ;;  %v430_v10 = vld [vmem:[%s603_s1 + $0x98] sm:$0xff]   ;;  %v434_v13 = vld [vmem:[%s603_s1 + $0x60] sm:$0xff]   ;;  %v437_v16 = vld [vmem:[%s603_s1 + $0x68] sm:$0xff]  }
   0x5   :  { %399 = vmatprep.subr.bf16.mxu0 %v425_v5  ;;  %v431_v11 = vld [vmem:[%s603_s1 + $0x58] sm:$0xff]   ;;  %v433_v14 = vld [vmem:[%s603_s1 + $0xa0] sm:$0xff]   ;;  %v436_v17 = vld [vmem:[%s603_s1 + $0xa8] sm:$0xff]  }
   0x6   :  { %317 = vmatpush1.bf16.msra.mxu1 %v424_v4  ;;  %v432_v12 = vld [vmem:[%s603_s1 + $0x18] sm:$0xff]   ;;  %v435_v15 = vld [vmem:[%s603_s1 + $0x20] sm:$0xff]   ;;  %v438_v18 = vld [vmem:[%s603_s1 + $0x28] sm:$0xff]  }
   0x7   :  { %318 = vmatprep.subr.bf16.mxu1 %v454_v0  ;;  %v440_v19 = vld [vmem:[%s603_s1 + $0x70] sm:$0xff]   ;;  %v442_v22 = vld [vmem:[%s603_s1 + $0xb8] sm:$0xff]   ;;  %v76_v27 = vld [vmem:[%s605_s2] sm:$0xff] }
   0x8   :  { %400 = vmatpush3.bf16.msra.mxu0 %v426_v6  ;;  %v439_v20 = vld [vmem:[%s603_s1 + $0xb0] sm:$0xff]   ;;  %v443_v23 = vld [vmem:[%s603_s1 + $0x78] sm:$0xff]   ;;  %v445_v28 = vld [vmem:[%s603_s1 + $0xc0] sm:$0xff]   ;;  %80 = vperm.xlu0 %420, %v76_v27  }
   0x9   :  { %401 = vmatprep.subr.bf16.mxu0 %v428_v8  ;;  %v441_v21 = vld [vmem:[%s603_s1 + $0x30] sm:$0xff]   ;;  %v444_v25 = vld [vmem:[%s603_s1 + $0x38] sm:$0xff]   ;;  %v77_v30 = vld [vmem:[%s605_s2 + $0x8] sm:$0xff] }
   0xa   :  { %319 = vmatpush1.bf16.msra.mxu1 %v427_v7  ;;  %v448_v24 = vld [vmem:[%s604_s0 + $0x4] ss:$16 sps:$4 sm:$0xff]   ;;  %v453_v26 = vld [vmem:[%s604_s0 + $0xc] ss:$16 sps:$4 sm:$0xff]   ;;  %v446_v29 = vld [vmem:[%s604_s0] ss:$16 sps:$4 sm:$0xff]  }
   0xb   :  { %320 = vmatprep.subr.bf16.mxu1 %v454_v0  ;;  %305 = vmatprep.mubr.bf16.mxu0 %v448_v24  ;;  %v449_v31 = vld [vmem:[%s603_s1 + $0xc8] sm:$0xff]   ;;  %v450_v32 = vld [vmem:[%s603_s1 + $0xd0] sm:$0xff]   ;;  %v355_v44 = vld [vmem:[%s606_s3] sm:$0xff] }
   0xc   :  { %402 = vmatpush3.bf16.msra.mxu0 %v429_v9  ;;  %396 = vmatprep.mubr.msk.bf16.mxu1 %vm269_vm0, %v453_v26  ;;  %v451_v33 = vld [vmem:[%s604_s0 + $0x8] ss:$16 sps:$4 sm:$0xff]  }
   0xd   :  { %403 = vmatprep.subr.bf16.mxu0 %v431_v11  ;;  %85 = vperm.xlu0 %420, %v77_v30   ;;  %v356_v49 = vld [vmem:[%s606_s3 + $0x8] sm:$0xff] }
   0xe   :  { %321 = vmatpush1.bf16.msra.mxu1 %v430_v10 }
   0xf   :  { %322 = vmatprep.subr.bf16.mxu1 %v454_v0 }
  0x10   :  { %404 = vmatpush3.bf16.msra.mxu0 %v432_v12 }
  0x11   :  { %405 = vmatprep.subr.bf16.mxu0 %v434_v13 }
  0x12   :  { %323 = vmatpush1.bf16.msra.mxu1 %v433_v14 }
  0x13   :  { %324 = vmatprep.subr.bf16.mxu1 %v454_v0 }
  0x14   :  { %406 = vmatpush3.bf16.msra.mxu0 %v435_v15 }
  0x15   :  { %407 = vmatprep.subr.bf16.mxu0 %v437_v16 }
  0x16   :  { %325 = vmatpush1.bf16.msra.mxu1 %v436_v17 }
  0x17   :  { %326 = vmatprep.subr.bf16.mxu1 %v454_v0 }
  0x18   :  { %408 = vmatpush3.bf16.msra.mxu0 %v438_v18 }
  0x19   :  { %409 = vmatprep.subr.bf16.mxu0 %v440_v19 }
  0x1a   :  { %327 = vmatpush1.bf16.msra.mxu1 %v439_v20 }
  0x1b   :  { %328 = vmatprep.subr.bf16.mxu1 %v454_v0 }
  0x1c   :  { %410 = vmatpush3.bf16.msra.mxu0 %v441_v21 }
  0x1d   :  { %411 = vmatprep.subr.bf16.mxu0 %v443_v23 }
  0x1e   :  { %329 = vmatpush1.bf16.msra.mxu1 %v442_v22 }
  0x1f   :  { %330 = vmatprep.subr.bf16.mxu1 %v454_v0 }
  0x20   :  { %412 = vmatpush3.bf16.msra.mxu0 %v444_v25 }
  0x22   :  { %331 = vmatpush1.bf16.msra.mxu1 %v445_v28 }
  0x23   :  { %306 = vmatmul.mubr.bf16.vlgmr.msra.gmra.mrb[0].mxu0 %v446_v29  ;;  %332 = vmatprep.subr.bf16.mxu1 %v454_v0 }
  0x26   :  { %333 = vmatpush1.bf16.msra.mxu1 %v449_v31 }
  0x27   :  { %334 = vmatprep.subr.bf16.mxu1 %v454_v0 }
  0x2a   :  { %335 = vmatpush1.bf16.msra.mxu1 %v450_v32 }
  0x2d   :  { %347 = vmatmul.mubr.bf16.vlgmr.msra.gmra.mrb[0].mxu1 %v451_v33 }
  0x87   :  { %v81_v36 = vpop.permute.xlu0 %80 }
  0x8c   :  { %v86_v41 = vpop.permute.xlu0 %85 }
  0xf6   :  { %v413_v34 = vpop.f32.mrb[0].mxu0 }
  0xf7   :  { %v414_v35 = vpop.f32.mrb[1].mxu0 }
  0xf8   :  { %v415_v37 = vadd.f32 %v414_v35, %v413_v34  ;;  %v416_v38 = vpop.f32.mrb[2].mxu0 }
  0xf9   :  { %v417_v39 = vpop.f32.mrb[3].mxu0 }
  0xfa   :  { %v418_v40 = vadd.f32 %v417_v39, %v416_v38  ;;  %v308_v42 = vadd.f32 %v415_v37, %v81_v36 }
  0xfc   :  { %v311_v45 = vadd.f32 %v418_v40, %v86_v41 }
 0x100   :  { %v348_v43 = vpop.f32.mrb[0].mxu1 }
 0x101   :  { %v349_v46 = vadd.f32 %v348_v43, %v308_v42  ;;  %v350_v47 = vpop.f32.mrb[1].mxu1 }
 0x102   :  { %v351_v48 = vpop.f32.mrb[2].mxu1 }
 0x103   :  { %v357_v50 = vadd.f32 %v355_v44, %v349_v46  ;;  %v352_v51 = vadd.f32 %v351_v48, %v311_v45  ;;  %v353_v52 = vpop.f32.mrb[3].mxu1 }
 0x105   :  { %359 = vst [vmem:[%s607_s4] sm:$0xff] %v357_v50  ;;  %v358_v53 = vadd.f32 %v356_v49, %v352_v51 }
 0x107   :  { %360 = vst [vmem:[%s607_s4 + $0x8] sm:$0xff] %v358_v53 }

// kernel: network_forward.167
= control target key start
LH: loop header
LB: loop body
LE: loop exit
PB: predicated region body
PF: predicated region fallthrough
CT: control target
= control target key end

     0   :  { %v197_v0 = vmov 0.0   ;;  %vm198_vm0 = vmmov 0   ;;  %v199_v2 = vmov 0   ;;  %s259_s1 = inlined_call_operand.vmem [shape: bf16[128,128], index: 1, kind: input, shape index: {}]   ;;  %s260_s2 = inlined_call_operand.vmem [shape: f32[16,1], index: 2, kind: input, shape index: {}]   ;;  %s261_s0 = inlined_call_operand.vmem [shape: bf16[16,128], index: 0, kind: input, shape index: {}]   ;;  %s262_s3 = inlined_call_operand.vmem [shape: f32[16,128], index: 3, kind: output, shape index: {}]  }
   0x1   :  { %164 = vmatprep.subr.bf16.mxu0 %v197_v0  ;;  %v188_v1 = vld [vmem:[%s259_s1] sm:$0xff]   ;;  %180 = vmatprep.mubr.msk.bf16.mxu0 %vm198_vm0, %v197_v0  ;;  %v189_v3 = vld [vmem:[%s259_s1 + $0x8] sm:$0xff]   ;;  %v190_v4 = vld [vmem:[%s259_s1 + $0x10] sm:$0xff]  }
   0x2   :  { %187 = vset.pattern.permute.xlu0 %v199_v2  ;;  %165 = vmatpush3.bf16.msra.mxu0 %v188_v1  ;;  %v33_v5 = vld [vmem:[%s260_s2] sm:$0xff]  ;;  %v191_v6 = vld [vmem:[%s259_s1 + $0x18] sm:$0xff]   ;;  %v34_v7 = vld [vmem:[%s260_s2 + $0x8] sm:$0xff] }
   0x3   :  { %166 = vmatprep.subr.bf16.mxu0 %v197_v0  ;;  %37 = vperm.xlu0 %187, %v33_v5   ;;  %v192_v8 = vld [vmem:[%s259_s1 + $0x20] sm:$0xff]   ;;  %v193_v9 = vld [vmem:[%s259_s1 + $0x28] sm:$0xff]   ;;  %v194_v10 = vld [vmem:[%s259_s1 + $0x30] sm:$0xff]  }
   0x4   :  { %v195_v11 = vld [vmem:[%s259_s1 + $0x38] sm:$0xff]   ;;  %v196_v12 = vld [vmem:[%s261_s0] sm:$0xff]  }
   0x6   :  { %167 = vmatpush3.bf16.msra.mxu0 %v189_v3 }
   0x7   :  { %168 = vmatprep.subr.bf16.mxu0 %v197_v0  ;;  %42 = vperm.xlu0 %187, %v34_v7  }
   0xa   :  { %169 = vmatpush3.bf16.msra.mxu0 %v190_v4 }
   0xb   :  { %170 = vmatprep.subr.bf16.mxu0 %v197_v0 }
   0xe   :  { %171 = vmatpush3.bf16.msra.mxu0 %v191_v6 }
   0xf   :  { %172 = vmatprep.subr.bf16.mxu0 %v197_v0 }
  0x12   :  { %173 = vmatpush3.bf16.msra.mxu0 %v192_v8 }
  0x13   :  { %174 = vmatprep.subr.bf16.mxu0 %v197_v0 }
  0x16   :  { %175 = vmatpush3.bf16.msra.mxu0 %v193_v9 }
  0x17   :  { %176 = vmatprep.subr.bf16.mxu0 %v197_v0 }
  0x1a   :  { %177 = vmatpush3.bf16.msra.mxu0 %v194_v10 }
  0x1b   :  { %178 = vmatprep.subr.bf16.mxu0 %v197_v0 }
  0x1e   :  { %179 = vmatpush3.bf16.msra.mxu0 %v195_v11 }
  0x21   :  { %181 = vmatmul.mubr.bf16.vlgmr.msra.gmra.mrb[0].mxu0 %v196_v12 }
  0x82   :  { %v38_v13 = vpop.permute.xlu0 %37 }
  0x86   :  { %v43_v17 = vpop.permute.xlu0 %42 }
  0xf4   :  { %v133_v14 = vpop.f32.mrb[0].mxu0 }
  0xf5   :  { %v134_v15 = vadd.f32 %v133_v14, %v38_v13  ;;  %v182_v16 = vpop.f32.mrb[1].mxu0 }
  0xf6   :  { %v136_v18 = vpop.f32.mrb[2].mxu0 }
  0xf7   :  { %140 = vst [vmem:[%s262_s3] sm:$0xff] %v134_v15  ;;  %v137_v19 = vadd.f32 %v136_v18, %v43_v17  ;;  %v183_v20 = vpop.f32.mrb[3].mxu0 }
  0xf9   :  { %141 = vst [vmem:[%s262_s3 + $0x8] sm:$0xff] %v137_v19 }

// kernel: network_forward.178
= control target key start
LH: loop header
LB: loop body
LE: loop exit
PB: predicated region body
PF: predicated region fallthrough
CT: control target
= control target key end

     0   :  { %s2410_s12 = smov 0   ;;  %s3285_s0 = inlined_call_operand.vmem [shape: bf16[2,512,16], index: 0, kind: input, shape index: {}]   ;;  %s3286_s1 = inlined_call_operand.vmem [shape: bf16[2,16,64], index: 1, kind: input, shape index: {}]   ;;  %s3287_s2 = inlined_call_operand.vmem [shape: bf16[2,16,64], index: 2, kind: input, shape index: {}]   ;;  %s3288_s3 = inlined_call_operand.vmem [shape: f32[2,16,512], index: 3, kind: output, shape index: {}]  }
   0x1 LB: > { %s1846_s13 = sadd.s32 4294967295, %s2388_s12   ;;  %p1850_p0 = scmp.ge.s32.totalorder %s2388_s12, 1  ;;  %s2388_s12 = sphi %s2410_s12, %s13_s12  }
   0x2   : > { %p157_p1 = scmp.lt.s32.totalorder %s2388_s12, 3 }
   0x4   : > { %p158_p2 = pnand %p1850_p0, %p157_p1 }
   0x6   : > { %161 = sbr.rel (%p158_p2) target bundleno = 999 (0x3e7), region = 32 }
   0xd   : > { %p191_p3 = scmp.lt.s32.totalorder %s1846_s13, 1  ;;  %vm446_vm0 = vcmask 130048   ;;  %vm832_vm1 = vcmask 523264  }
   0xf   : > { %s3407_s13 = smov (!%p191_p3, %s1846_s13), 1 }
  0x10   : > { %s1929_s14 = sshll.u32 %s3407_s13, 8  ;;  %s1930_s15 = sshll.u32 %s3407_s13, 3 }
  0x11   : > { %s2425_s18 = scalar_lea.vmem %s3285_s0, %s1929_s14  ;;  %s200_s21 = scalar_lea.vmem %s3286_s1, %s1930_s15 }
  0x12   : > { %s2433_s24 = scalar_lea.vmem %s3287_s2, %s1930_s15  ;;  %v2092_v0 = vld [vmem:[%s200_s21] sm:$0xff]   ;;  %v2094_v2 = vld [vmem:[%s2425_s18 + $0x8] sm:$0xff]   ;;  %v2095_v3 = vld [vmem:[%s2425_s18 + $0x10] sm:$0xff]   ;;  %s1932_s25 = sshll.u32 %s3407_s13, 6 }
  0x13   : > { %2002 = vmatprep.subr.bf16.mxu0 %v2092_v0  ;;  %v2093_v1 = vld [vmem:[%s2425_s18] sm:$0xff]   ;;  %v2096_v4 = vld [vmem:[%s2425_s18 + $0x18] sm:$0xff]   ;;  %v2098_v6 = vld [vmem:[%s2425_s18 + $0x28] sm:$0xff]   ;;  %s210_s28 = scalar_lea.vmem %s3288_s3, %s1932_s25 }
  0x14   : > { %2003 = vmatpush3.bf16.msra.mxu0 %v2092_v0  ;;  %2004 = vmatprep.mubr.msk.bf16.mxu0 %vm446_vm0, %v2093_v1  ;;  %v2097_v5 = vld [vmem:[%s2425_s18 + $0x20] sm:$0xff]   ;;  %v2099_v7 = vld [vmem:[%s2425_s18 + $0x30] sm:$0xff]   ;;  %v2100_v8 = vld [vmem:[%s2425_s18 + $0x38] sm:$0xff]  }
  0x15   : > { %v2101_v9 = vld [vmem:[%s2425_s18 + $0x40] sm:$0xff]   ;;  %v2102_v10 = vld [vmem:[%s2425_s18 + $0x48] sm:$0xff]   ;;  %v2103_v11 = vld [vmem:[%s2425_s18 + $0x50] sm:$0xff]  }
  0x16   : > { %v2104_v12 = vld [vmem:[%s2425_s18 + $0x58] sm:$0xff]   ;;  %v2105_v13 = vld [vmem:[%s2425_s18 + $0x60] sm:$0xff]   ;;  %v2106_v14 = vld [vmem:[%s2425_s18 + $0x68] sm:$0xff]  }
  0x17   : > { %2005 = vmatmul.mubr.msk.bf16.vlgmr.msra.gmra.mrb[0].mxu0 %vm446_vm0, %v2094_v2  ;;  %v2107_v15 = vld [vmem:[%s2425_s18 + $0x70] sm:$0xff]   ;;  %v2108_v16 = vld [vmem:[%s2425_s18 + $0x78] sm:$0xff]   ;;  %v2109_v17 = vld [vmem:[%s2425_s18 + $0x80] sm:$0xff]  }
  0x18   : > { %2008 = vmatprep.mubr.msk.bf16.mxu0 %vm446_vm0, %v2095_v3  ;;  %v2110_v18 = vld [vmem:[%s2425_s18 + $0x88] sm:$0xff]   ;;  %v2111_v19 = vld [vmem:[%s2425_s18 + $0x90] sm:$0xff]   ;;  %v2112_v20 = vld [vmem:[%s2425_s18 + $0x98] sm:$0xff]  }
  0x19   : > { %v2113_v21 = vld [vmem:[%s2425_s18 + $0xa0] sm:$0xff]   ;;  %v2114_v22 = vld [vmem:[%s2425_s18 + $0xa8] sm:$0xff]   ;;  %v2115_v23 = vld [vmem:[%s2425_s18 + $0xb0] sm:$0xff]  }
  0x1a   : > { %v2116_v24 = vld [vmem:[%s2425_s18 + $0xb8] sm:$0xff]   ;;  %v2117_v25 = vld [vmem:[%s2425_s18 + $0xc0] sm:$0xff]   ;;  %v2118_v26 = vld [vmem:[%s2425_s18 + $0xc8] sm:$0xff]  }
  0x1b   : > { %v2119_v27 = vld [vmem:[%s2425_s18 + $0xd0] sm:$0xff]   ;;  %v2120_v28 = vld [vmem:[%s2425_s18 + $0xd8] sm:$0xff]   ;;  %v2121_v29 = vld [vmem:[%s2425_s18 + $0xe0] sm:$0xff]  }
  0x1c   : > { %v2122_v30 = vld [vmem:[%s2425_s18 + $0xe8] sm:$0xff]   ;;  %v2123_v31 = vld [vmem:[%s2425_s18 + $0xf0] sm:$0xff]   ;;  %v2124_v32 = vld [vmem:[%s2425_s18 + $0xf8] sm:$0xff]  }
  0x1f   : > { %2009 = vmatmul.mubr.msk.bf16.gmra.mrb[4].mxu0 %vm446_vm0, %v2096_v4 }
  0x20   : > { %2012 = vmatprep.mubr.msk.bf16.mxu0 %vm446_vm0, %v2097_v5 }
  0x27   : > { %2013 = vmatmul.mubr.msk.bf16.gmra.mrb[8].mxu0 %vm446_vm0, %v2098_v6 }
  0x28   : > { %2016 = vmatprep.mubr.msk.bf16.mxu0 %vm446_vm0, %v2099_v7 }
  0x2f   : > { %2017 = vmatmul.mubr.msk.bf16.gmra.mrb[12].mxu0 %vm446_vm0, %v2100_v8 }
  0x30   : > { %2020 = vmatprep.mubr.msk.bf16.mxu0 %vm446_vm0, %v2101_v9 }
  0x37   : > { %2021 = vmatmul.mubr.msk.bf16.gmra.mrb[16].mxu0 %vm446_vm0, %v2102_v10 }
  0x38   : > { %2024 = vmatprep.mubr.msk.bf16.mxu0 %vm446_vm0, %v2103_v11 }
  0x3f   : > { %2025 = vmatmul.mubr.msk.bf16.gmra.mrb[20].mxu0 %vm446_vm0, %v2104_v12 }
  0x40   : > { %2028 = vmatprep.mubr.msk.bf16.mxu0 %vm446_vm0, %v2105_v13 }
  0x47   : > { %2029 = vmatmul.mubr.msk.bf16.gmra.mrb[24].mxu0 %vm446_vm0, %v2106_v14 }
  0x48   : > { %2032 = vmatprep.mubr.msk.bf16.mxu0 %vm446_vm0, %v2107_v15 }
  0x4f   : > { %2033 = vmatmul.mubr.msk.bf16.gmra.mrb[28].mxu0 %vm446_vm0, %v2108_v16 }
  0x50   : > { %2036 = vmatprep.mubr.msk.bf16.mxu0 %vm446_vm0, %v2109_v17 }
  0x57   : > { %2037 = vmatmul.mubr.msk.bf16.gmra.mrb[32].mxu0 %vm446_vm0, %v2110_v18 }
  0x58   : > { %2040 = vmatprep.mubr.msk.bf16.mxu0 %vm446_vm0, %v2111_v19 }
  0x5f   : > { %2041 = vmatmul.mubr.msk.bf16.gmra.mrb[36].mxu0 %vm446_vm0, %v2112_v20 }
  0x60   : > { %2044 = vmatprep.mubr.msk.bf16.mxu0 %vm446_vm0, %v2113_v21 }
  0x67   : > { %2045 = vmatmul.mubr.msk.bf16.gmra.mrb[40].mxu0 %vm446_vm0, %v2114_v22 }
  0x68   : > { %2048 = vmatprep.mubr.msk.bf16.mxu0 %vm446_vm0, %v2115_v23 }
  0x6f   : > { %2049 = vmatmul.mubr.msk.bf16.gmra.mrb[44].mxu0 %vm446_vm0, %v2116_v24 }
  0x70   : > { %2052 = vmatprep.mubr.msk.bf16.mxu0 %vm446_vm0, %v2117_v25 }
  0x77   : > { %2053 = vmatmul.mubr.msk.bf16.gmra.mrb[48].mxu0 %vm446_vm0, %v2118_v26 }
  0x78   : > { %2056 = vmatprep.mubr.msk.bf16.mxu0 %vm446_vm0, %v2119_v27 }
  0x7f   : > { %2057 = vmatmul.mubr.msk.bf16.gmra.mrb[52].mxu0 %vm446_vm0, %v2120_v28 }
  0x80   : > { %2060 = vmatprep.mubr.msk.bf16.mxu0 %vm446_vm0, %v2121_v29 }
  0x87   : > { %2061 = vmatmul.mubr.msk.bf16.gmra.mrb[56].mxu0 %vm446_vm0, %v2122_v30 }
  0x88   : > { %2064 = vmatprep.mubr.msk.bf16.mxu0 %vm446_vm0, %v2123_v31 }
  0x8f   : > { %2065 = vmatmul.mubr.msk.bf16.gmra.mrb[60].mxu0 %vm446_vm0, %v2124_v32 }
  0xea   : > { %v2499_v33 = vpop.f32.mrb[0].mxu0 }
  0xeb   : > { %v2501_v34 = vpop.f32.mrb[1].mxu0  ;;  %v839_v35 = vsel %vm832_vm1, %v2499_v33, -inf }
  0xec   : > { %840 = vmax.xlane.f32.xlu0 %v839_v35  ;;  %v2505_v36 = vpop.f32.mrb[2].mxu0  ;;  %v833_v39 = vsel %vm832_vm1, %v2501_v34, -inf }
  0xed   : > { %v2507_v37 = vpop.f32.mrb[3].mxu0  ;;  %v842_v38 = vsel %vm832_vm1, %v2505_v36, -inf }
  0xee   : > { %843 = vmax.xlane.f32.xlu1 %v842_v38  ;;  %v836_v42 = vsel %vm832_vm1, %v2507_v37, -inf }
  0xf0   : > { %834 = vmax.xlane.f32.xlu0 %v833_v39 }
  0xf2   : > { %v2513_v40 = vpop.f32.mrb[4].mxu0 }
  0xf3   : > { %v2515_v41 = vpop.f32.mrb[5].mxu0  ;;  %v851_v46 = vsel %vm832_vm1, %v2513_v40, -inf }
  0xf4   : > { %837 = vmax.xlane.f32.xlu0 %v836_v42  ;;  %v2519_v43 = vpop.f32.mrb[6].mxu0  ;;  %v845_v50 = vsel %vm832_vm1, %v2515_v41, -inf }
  0xf5   : > { %v2521_v44 = vpop.f32.mrb[7].mxu0  ;;  %v854_v45 = vsel %vm832_vm1, %v2519_v43, -inf }
  0xf6   : > { %855 = vmax.xlane.f32.xlu1 %v854_v45  ;;  %v848_v47 = vsel %vm832_vm1, %v2521_v44, -inf }
  0xf8   : > { %852 = vmax.xlane.f32.xlu0 %v851_v46 }
  0xfa   : > { %849 = vmax.xlane.f32.xlu1 %v848_v47  ;;  %v2529_v48 = vpop.f32.mrb[8].mxu0 }
  0xfb   : > { %v2531_v49 = vpop.f32.mrb[9].mxu0  ;;  %v863_v54 = vsel %vm832_vm1, %v2529_v48, -inf }
  0xfc   : > { %846 = vmax.xlane.f32.xlu0 %v845_v50  ;;  %v2535_v51 = vpop.f32.mrb[10].mxu0  ;;  %v857_v58 = vsel %vm832_vm1, %v2531_v49, -inf }
  0xfd   : > { %v2537_v52 = vpop.f32.mrb[11].mxu0  ;;  %v866_v53 = vsel %vm832_vm1, %v2535_v51, -inf }
  0xfe   : > { %867 = vmax.xlane.f32.xlu1 %v866_v53  ;;  %v860_v55 = vsel %vm832_vm1, %v2537_v52, -inf }
 0x100   : > { %864 = vmax.xlane.f32.xlu0 %v863_v54 }
 0x102   : > { %861 = vmax.xlane.f32.xlu1 %v860_v55  ;;  %v2545_v56 = vpop.f32.mrb[12].mxu0 }
 0x103   : > { %v2547_v57 = vpop.f32.mrb[13].mxu0  ;;  %v875_v62 = vsel %vm832_vm1, %v2545_v56, -inf }
 0x104   : > { %858 = vmax.xlane.f32.xlu0 %v857_v58  ;;  %v2551_v59 = vpop.f32.mrb[14].mxu0  ;;  %v869_v2 = vsel %vm832_vm1, %v2547_v57, -inf }
 0x105   : > { %v2553_v60 = vpop.f32.mrb[15].mxu0  ;;  %v878_v61 = vsel %vm832_vm1, %v2551_v59, -inf }
 0x106   : > { %879 = vmax.xlane.f32.xlu1 %v878_v61  ;;  %v872_v63 = vsel %vm832_vm1, %v2553_v60, -inf }
 0x108   : > { %876 = vmax.xlane.f32.xlu0 %v875_v62 }
 0x10a   : > { %873 = vmax.xlane.f32.xlu1 %v872_v63  ;;  %v2561_v0 = vpop.f32.mrb[16].mxu0 }
 0x10b   : > { %v2563_v1 = vpop.f32.mrb[17].mxu0  ;;  %v887_v6 = vsel %vm832_vm1, %v2561_v0, -inf }
 0x10c   : > { %870 = vmax.xlane.f32.xlu0 %v869_v2  ;;  %v2567_v3 = vpop.f32.mrb[18].mxu0  ;;  %v881_v4 = vsel %vm832_vm1, %v2563_v1, -inf }
 0x10d   : > { %v2571_v5 = vpop.f32.mrb[19].mxu0  ;;  %v890_v7 = vsel %vm832_vm1, %v2567_v3, -inf }
 0x10e   : > { %882 = vmax.xlane.f32.xlu1 %v881_v4  ;;  %v884_v12 = vsel %vm832_vm1, %v2571_v5, -inf }
 0x110   : > { %888 = vmax.xlane.f32.xlu0 %v887_v6 }
 0x112   : > { %891 = vmax.xlane.f32.xlu1 %v890_v7  ;;  %v2577_v8 = vpop.f32.mrb[20].mxu0 }
 0x113   : > { %v899_v9 = vsel %vm832_vm1, %v2577_v8, -inf  ;;  %v2581_v10 = vpop.f32.mrb[21].mxu0 }
 0x114   : > { %900 = vmax.xlane.f32.xlu0 %v899_v9  ;;  %v2583_v11 = vpop.f32.mrb[22].mxu0  ;;  %v893_v13 = vsel %vm832_vm1, %v2581_v10, -inf }
 0x115   : > { %v2589_v14 = vpop.f32.mrb[23].mxu0  ;;  %v902_v15 = vsel %vm832_vm1, %v2583_v11, -inf }
 0x116   : > { %885 = vmax.xlane.f32.xlu1 %v884_v12  ;;  %v896_v18 = vsel %vm832_vm1, %v2589_v14, -inf }
 0x118   : > { %894 = vmax.xlane.f32.xlu0 %v893_v13 }
 0x11a   : > { %903 = vmax.xlane.f32.xlu1 %v902_v15  ;;  %v2593_v16 = vpop.f32.mrb[24].mxu0 }
 0x11b   : > { %v911_v17 = vsel %vm832_vm1, %v2593_v16, -inf  ;;  %v2599_v19 = vpop.f32.mrb[25].mxu0 }
 0x11c   : > { %912 = vmax.xlane.f32.xlu0 %v911_v17  ;;  %v2601_v20 = vpop.f32.mrb[26].mxu0  ;;  %v905_v21 = vsel %vm832_vm1, %v2599_v19, -inf }
 0x11d   : > { %v2605_v22 = vpop.f32.mrb[27].mxu0  ;;  %v914_v23 = vsel %vm832_vm1, %v2601_v20, -inf }
 0x11e   : > { %897 = vmax.xlane.f32.xlu1 %v896_v18  ;;  %v908_v26 = vsel %vm832_vm1, %v2605_v22, -inf }
 0x120   : > { %906 = vmax.xlane.f32.xlu0 %v905_v21 }
 0x122   : > { %915 = vmax.xlane.f32.xlu1 %v914_v23  ;;  %v2609_v24 = vpop.f32.mrb[28].mxu0 }
 0x123   : > { %v923_v25 = vsel %vm832_vm1, %v2609_v24, -inf  ;;  %v2615_v27 = vpop.f32.mrb[29].mxu0 }
 0x124   : > { %924 = vmax.xlane.f32.xlu0 %v923_v25  ;;  %v2617_v28 = vpop.f32.mrb[30].mxu0  ;;  %v917_v29 = vsel %vm832_vm1, %v2615_v27, -inf }
 0x125   : > { %v2621_v30 = vpop.f32.mrb[31].mxu0  ;;  %v926_v31 = vsel %vm832_vm1, %v2617_v28, -inf }
 0x126   : > { %909 = vmax.xlane.f32.xlu1 %v908_v26  ;;  %v920_v38 = vsel %vm832_vm1, %v2621_v30, -inf }
 0x128   : > { %918 = vmax.xlane.f32.xlu0 %v917_v29 }
 0x12a   : > { %927 = vmax.xlane.f32.xlu1 %v926_v31  ;;  %v2625_v32 = vpop.f32.mrb[32].mxu0 }
 0x12b   : > { %v935_v35 = vsel %vm832_vm1, %v2625_v32, -inf  ;;  %v2631_v39 = vpop.f32.mrb[33].mxu0 }
 0x12c   : > { %936 = vmax.xlane.f32.xlu0 %v935_v35  ;;  %v2633_v42 = vpop.f32.mrb[34].mxu0  ;;  %v929_v45 = vsel %vm832_vm1, %v2631_v39, -inf }
 0x12d   : > { %v2637_v46 = vpop.f32.mrb[35].mxu0  ;;  %v938_v47 = vsel %vm832_vm1, %v2633_v42, -inf }
 0x12e   : > { %921 = vmax.xlane.f32.xlu1 %v920_v38  ;;  %v932_v54 = vsel %vm832_vm1, %v2637_v46, -inf }
 0x130   : > { %930 = vmax.xlane.f32.xlu0 %v929_v45 }
 0x132   : > { %939 = vmax.xlane.f32.xlu1 %v938_v47  ;;  %v2641_v50 = vpop.f32.mrb[36].mxu0 }
 0x133   : > { %3328 = vst [vmem:[#allocation2_spill] sm:$0xff] %v2641_v50  ;;  %v947_v53 = vsel %vm832_vm1, %v2641_v50, -inf  ;;  %v2647_v55 = vpop.f32.mrb[37].mxu0 }
 0x134   : > { %3329 = vst [vmem:[#allocation3_spill] sm:$0xff] %v2647_v55  ;;  %948 = vmax.xlane.f32.xlu0 %v947_v53  ;;  %v2649_v58 = vpop.f32.mrb[38].mxu0  ;;  %v941_v61 = vsel %vm832_vm1, %v2647_v55, -inf }
 0x135   : > { %3330 = vst [vmem:[#allocation4_spill] sm:$0xff] %v2649_v58  ;;  %v2653_v62 = vpop.f32.mrb[39].mxu0  ;;  %v950_v63 = vsel %vm832_vm1, %v2649_v58, -inf }
 0x136   : > { %3331 = vst [vmem:[#allocation5_spill] sm:$0xff] %v2653_v62  ;;  %933 = vmax.xlane.f32.xlu1 %v932_v54  ;;  %v944_v6 = vsel %vm832_vm1, %v2653_v62, -inf }
 0x138   : > { %942 = vmax.xlane.f32.xlu0 %v941_v61 }
 0x13a   : > { %951 = vmax.xlane.f32.xlu1 %v950_v63  ;;  %v2657_v2 = vpop.f32.mrb[40].mxu0 }
 0x13b   : > { %3332 = vst [vmem:[#allocation6_spill] sm:$0xff] %v2657_v2  ;;  %v959_v4 = vsel %vm832_vm1, %v2657_v2, -inf  ;;  %v2663_v7 = vpop.f32.mrb[41].mxu0 }
 0x13c   : > { %3333 = vst [vmem:[#allocation7_spill] sm:$0xff] %v2663_v7  ;;  %960 = vmax.xlane.f32.xlu0 %v959_v4  ;;  %v2665_v9 = vpop.f32.mrb[42].mxu0  ;;  %v953_v12 = vsel %vm832_vm1, %v2663_v7, -inf }
 0x13d   : > { %3334 = vst [vmem:[#allocation8_spill] sm:$0xff] %v2665_v9  ;;  %v2669_v13 = vpop.f32.mrb[43].mxu0  ;;  %v962_v15 = vsel %vm832_vm1, %v2665_v9, -inf }
 0x13e   : > { %3335 = vst [vmem:[#allocation9_spill] sm:$0xff] %v2669_v13  ;;  %945 = vmax.xlane.f32.xlu1 %v944_v6  ;;  %v956_v21 = vsel %vm832_vm1, %v2669_v13, -inf }
 0x140   : > { %954 = vmax.xlane.f32.xlu0 %v953_v12 }
 0x142   : > { %963 = vmax.xlane.f32.xlu1 %v962_v15  ;;  %v2673_v17 = vpop.f32.mrb[44].mxu0 }
 0x143   : > { %v2675_v18 = vpop.f32.mrb[45].mxu0 }
 0x144   : > { %3336 = vst [vmem:[#allocation10_spill] sm:$0xff] %v2675_v18  ;;  %v965_v23 = vsel %vm832_vm1, %v2675_v18, -inf  ;;  %v2681_v25 = vpop.f32.mrb[46].mxu0 }
 0x145   : > { %966 = vmax.xlane.f32.xlu0 %v965_v23  ;;  %v2683_v26 = vpop.f32.mrb[47].mxu0 }
 0x146   : > { %3337 = vst [vmem:[#allocation11_spill] sm:$0xff] %v2683_v26  ;;  %957 = vmax.xlane.f32.xlu1 %v956_v21  ;;  %v968_v29 = vsel %vm832_vm1, %v2683_v26, -inf }
 0x14a   : > { %969 = vmax.xlane.f32.xlu1 %v968_v29  ;;  %v2687_v31 = vpop.f32.mrb[48].mxu0 }
 0x14b   : > { %v2689_v35 = vpop.f32.mrb[49].mxu0  ;;  %v983_v38 = vsel %vm832_vm1, %v2687_v31, -inf }
 0x14c   : > { %984 = vmax.xlane.f32.xlu0 %v983_v38  ;;  %v2693_v45 = vpop.f32.mrb[50].mxu0  ;;  %v977_v53 = vsel %vm832_vm1, %v2689_v35, -inf }
 0x14d   : > { %v986_v47 = vsel %vm832_vm1, %v2693_v45, -inf  ;;  %v2699_v54 = vpop.f32.mrb[51].mxu0 }
 0x14e   : > { %987 = vmax.xlane.f32.xlu1 %v986_v47  ;;  %v980_v61 = vsel %vm832_vm1, %v2699_v54, -inf }
 0x150   : > { %978 = vmax.xlane.f32.xlu0 %v977_v53 }
 0x152   : > { %981 = vmax.xlane.f32.xlu1 %v980_v61  ;;  %v2703_v63 = vpop.f32.mrb[52].mxu0 }
 0x153   : > { %3338 = vst [vmem:[#allocation12_spill] sm:$0xff] %v2703_v63  ;;  %v2705_v4 = vpop.f32.mrb[53].mxu0  ;;  %v995_v6 = vsel %vm832_vm1, %v2703_v63, -inf }
 0x154   : > { %3339 = vst [vmem:[#allocation13_spill] sm:$0xff] %v2705_v4  ;;  %996 = vmax.xlane.f32.xlu0 %v995_v6  ;;  %v2709_v12 = vpop.f32.mrb[54].mxu0  ;;  %v989_v21 = vsel %vm832_vm1, %v2705_v4, -inf }
 0x155   : > { %3340 = vst [vmem:[#allocation14_spill] sm:$0xff] %v2709_v12  ;;  %v998_v15 = vsel %vm832_vm1, %v2709_v12, -inf  ;;  %v2715_v23 = vpop.f32.mrb[55].mxu0 }
 0x156   : > { %3341 = vst [vmem:[#allocation15_spill] sm:$0xff] %v2715_v23  ;;  %999 = vmax.xlane.f32.xlu1 %v998_v15  ;;  %v992_v29 = vsel %vm832_vm1, %v2715_v23, -inf }
 0x158   : > { %990 = vmax.xlane.f32.xlu0 %v989_v21 }
 0x15a   : > { %993 = vmax.xlane.f32.xlu1 %v992_v29  ;;  %v2719_v38 = vpop.f32.mrb[56].mxu0 }
 0x15b   : > { %3342 = vst [vmem:[#allocation16_spill] sm:$0xff] %v2719_v38  ;;  %v2721_v47 = vpop.f32.mrb[57].mxu0  ;;  %v1007_v53 = vsel %vm832_vm1, %v2719_v38, -inf }
 0x15c   : > { %3343 = vst [vmem:[#allocation17_spill] sm:$0xff] %v2721_v47  ;;  %1008 = vmax.xlane.f32.xlu0 %v1007_v53  ;;  %v2725_v61 = vpop.f32.mrb[58].mxu0  ;;  %v1001_v15 = vsel %vm832_vm1, %v2721_v47, -inf }
 0x15d   : > { %3344 = vst [vmem:[#allocation18_spill] sm:$0xff] %v2725_v61  ;;  %v1010_v6 = vsel %vm832_vm1, %v2725_v61, -inf  ;;  %v2731_v26 = vpop.f32.mrb[59].mxu0 }
 0x15e   : > { %3345 = vst [vmem:[#allocation19_spill] sm:$0xff] %v2731_v26  ;;  %1011 = vmax.xlane.f32.xlu1 %v1010_v6  ;;  %v1004_v21 = vsel %vm832_vm1, %v2731_v26, -inf }
 0x160   : > { %1002 = vmax.xlane.f32.xlu0 %v1001_v15 }
 0x162   : > { %1005 = vmax.xlane.f32.xlu1 %v1004_v21  ;;  %v2735_v29 = vpop.f32.mrb[60].mxu0 }
 0x163   : > { %v2737_v18 = vpop.f32.mrb[61].mxu0 }
 0x164   : > { %v2739_v53 = vpop.f32.mrb[62].mxu0 }
 0x165   : > { %v2741_v38 = vpop.f32.mrb[63].mxu0 }
 0x179   : > { %v841_v61 = vpop.xlane.xlu0 %840 }
 0x17a   : > { %v1027_v9 = vsub.f32 %v2499_v33, %v841_v61 }
 0x17b   : > { %v844_v2 = vpop.xlane.xlu1 %843 }
 0x17c   : > { %v1093_v47 = vmul.f32 1.442695, %v1027_v9  ;;  %v1028_v6 = vsub.f32 %v2505_v36, %v844_v2 }
 0x17d   : > { %v835_v13 = vpop.xlane.xlu0 %834 }
 0x17e   : > { %2126 = vpow2.f32 %v1093_v47  ;;  %v1095_v26 = vmul.f32 1.442695, %v1028_v6  ;;  %v1025_v15 = vsub.f32 %v2501_v34, %v835_v13 }
 0x180   : > { %2128 = vpow2.f32 %v1095_v26  ;;  %v1089_v21 = vmul.f32 1.442695, %v1025_v15 }
 0x181   : > { %v838_v7 = vpop.xlane.xlu0 %837 }
 0x182   : > { %2130 = vpow2.f32 %v1089_v21  ;;  %v1026_v12 = vsub.f32 %v2507_v37, %v838_v7 }
 0x183   : > { %v856_v63 = vpop.xlane.xlu1 %855 }
 0x184   : > { %v1091_v58 = vmul.f32 1.442695, %v1026_v12 }
 0x185   : > { %v853_v50 = vpop.xlane.xlu0 %852 }
 0x186   : > { %2132 = vpow2.f32 %v1091_v58  ;;  %v1031_v55 = vsub.f32 %v2513_v40, %v853_v50 }
 0x187   : > { %v850_v33 = vpop.xlane.xlu1 %849 }
 0x188   : > { %v2747_v61 = vpop.eup %2126  ;;  %v1030_v36 = vsub.f32 %v2521_v44, %v850_v33 }
 0x189   : > { %3346 = vst [vmem:[#allocation20_spill] sm:$0xff] %v2747_v61  ;;  %v847_v2 = vpop.xlane.xlu0 %846  ;;  %v1223_v9 = vsel %vm832_vm1, %v2747_v61, 0.0 }
 0x18a   : > { %v2752_v34 = vpop.eup %2128  ;;  %v1099_v13 = vmul.f32 1.442695, %v1030_v36  ;;  %v1029_v26 = vsub.f32 %v2515_v41, %v847_v2  ;;  %1224 = vadd.xlane.f32.xlu0 %v1223_v9 }
 0x18b   : > { %3347 = vst [vmem:[#allocation21_spill] sm:$0xff] %v2752_v34  ;;  %v2755_v37 = vpop.xlane.xlu1 %867  ;;  %v1226_v58 = vsel %vm832_vm1, %v2752_v34, 0.0 }
 0x18c   : > { %v2759_v7 = vpop.eup %2130  ;;  %2134 = vpow2.f32 %v1099_v13  ;;  %v1097_v12 = vmul.f32 1.442695, %v1029_v26  ;;  %1227 = vadd.xlane.f32.xlu1 %v1226_v58 }
 0x18d   : > { %3348 = vst [vmem:[#allocation22_spill] sm:$0xff] %v2759_v7  ;;  %v2761_v44 = vpop.xlane.xlu0 %864  ;;  %v1217_v47 = vsel %vm832_vm1, %v2759_v7, 0.0 }
 0x18e   : > { %2136 = vpow2.f32 %v1097_v12  ;;  %1218 = vadd.xlane.f32.xlu0 %v1217_v47 }
 0x18f   : > { %v2765_v6 = vpop.xlane.xlu1 %861 }
 0x190   : > { %v2767_v41 = vpop.eup %2132 }
 0x191   : > { %3349 = vst [vmem:[#allocation23_spill] sm:$0xff] %v2767_v41  ;;  %v2769_v15 = vpop.xlane.xlu0 %858  ;;  %v1220_v21 = vsel %vm832_vm1, %v2767_v41, 0.0 }
 0x192   : > { %1221 = vadd.xlane.f32.xlu1 %v1220_v21 }
 0x193   : > { %v2773_v33 = vpop.xlane.xlu1 %879 }
 0x195   : > { %v2775_v36 = vpop.xlane.xlu0 %876 }
 0x196   : > { %v2777_v2 = vpop.eup %2134 }
 0x197   : > { %3350 = vst [vmem:[#allocation24_spill] sm:$0xff] %v2777_v2  ;;  %v2779_v9 = vpop.xlane.xlu1 %873  ;;  %v1232_v13 = vsel %vm832_vm1, %v2777_v2, 0.0 }
 0x198   : > { %v2783_v26 = vpop.eup %2136  ;;  %1233 = vadd.xlane.f32.xlu1 %v1232_v13 }
 0x199   : > { %3351 = vst [vmem:[#allocation25_spill] sm:$0xff] %v2783_v26  ;;  %v2785_v58 = vpop.xlane.xlu0 %870  ;;  %v1229_v12 = vsel %vm832_vm1, %v2783_v26, 0.0 }
 0x19a   : > { %1230 = vadd.xlane.f32.xlu0 %v1229_v12 }
 0x19b   : > { %v883_v47 = vpop.xlane.xlu1 %882 }
 0x19c   : > { %v1041_v21 = vsub.f32 %v2563_v1, %v883_v47  ;;  %v1032_v1 = vsub.f32 %v2519_v43, %v856_v63 }
 0x19d   : > { %v889_v61 = vpop.xlane.xlu0 %888 }
 0x19e   : > { %v1043_v34 = vsub.f32 %v2561_v0, %v889_v61  ;;  %v1121_v7 = vmul.f32 1.442695, %v1041_v21  ;;  %v1101_v61 = vmul.f32 1.442695, %v1031_v55 }
 0x19f   : > { %v892_v41 = vpop.xlane.xlu1 %891 }
 0x1a0   : > { %v1125_v23 = vmul.f32 1.442695, %v1043_v34  ;;  %v1044_v2 = vsub.f32 %v2567_v3, %v892_v41 }
 0x1a1   : > { %v901_v4 = vpop.xlane.xlu0 %900 }
 0x1a2   : > { %2138 = vpow2.f32 %v1125_v23  ;;  %v1127_v13 = vmul.f32 1.442695, %v1044_v2  ;;  %v1047_v34 = vsub.f32 %v2577_v8, %v901_v4  ;;  %v1103_v23 = vmul.f32 1.442695, %v1032_v1 }
 0x1a3   : > { %2140 = vpow2.f32 %v1121_v7  ;;  %v886_v62 = vpop.xlane.xlu1 %885 }
 0x1a4   : > { %2142 = vpow2.f32 %v1127_v13  ;;  %v1042_v12 = vsub.f32 %v2571_v5, %v886_v62  ;;  %v1133_v40 = vmul.f32 1.442695, %v1047_v34 }
 0x1a5   : > { %v895_v26 = vpop.xlane.xlu0 %894 }
 0x1a6   : > { %v1123_v47 = vmul.f32 1.442695, %v1042_v12  ;;  %v1045_v5 = vsub.f32 %v2581_v10, %v895_v26 }
 0x1a7   : > { %v904_v0 = vpop.xlane.xlu1 %903 }
 0x1a8   : > { %2144 = vpow2.f32 %v1123_v47  ;;  %v1048_v7 = vsub.f32 %v2583_v11, %v904_v0  ;;  %v1129_v10 = vmul.f32 1.442695, %v1045_v5  ;;  %v1013_v47 = vsel %vm832_vm1, %v2737_v18, -inf }
 0x1a9   : > { %v2796_v3 = vpop.xlane.xlu0 %912  ;;  %2146 = vpow2.f32 %v1101_v61 }
 0x1aa   : > { %2148 = vpow2.f32 %v1103_v23  ;;  %v1135_v62 = vmul.f32 1.442695, %v1048_v7  ;;  %v1016_v23 = vsel %vm832_vm1, %v2741_v38, -inf }
 0x1ab   : > { %v898_v41 = vpop.xlane.xlu1 %897  ;;  %2150 = vpow2.f32 %v1133_v40 }
 0x1ac   : > { %v2799_v2 = vpop.eup %2138  ;;  %v1046_v63 = vsub.f32 %v2589_v14, %v898_v41  ;;  %2152 = vpow2.f32 %v1135_v62  ;;  %v1033_v41 = vsub.f32 %v2531_v49, %v2769_v15  ;;  %v1034_v62 = vsub.f32 %v2537_v52, %v2765_v6 }
 0x1ad   : > { %v2802_v50 = vpop.eup %2140  ;;  %v907_v43 = vpop.xlane.xlu0 %906  ;;  %v1271_v55 = vsel %vm832_vm1, %v2799_v2, 0.0  ;;  %2154 = vpow2.f32 %v1129_v10 }
 0x1ae   : > { %v2806_v8 = vpop.eup %2142  ;;  %1272 = vadd.xlane.f32.xlu0 %v1271_v55  ;;  %v1265_v21 = vsel %vm832_vm1, %v2802_v50, 0.0  ;;  %v1131_v12 = vmul.f32 1.442695, %v1046_v63  ;;  %v1105_v49 = vmul.f32 1.442695, %v1033_v41  ;;  %v1049_v15 = vsub.f32 %v2599_v19, %v907_v43 }
 0x1af   : > { %v2809_v11 = vpop.xlane.xlu1 %915  ;;  %v1274_v4 = vsel %vm832_vm1, %v2806_v8, 0.0  ;;  %v1107_v52 = vmul.f32 1.442695, %v1034_v62  ;;  %v1035_v19 = vsub.f32 %v2529_v48, %v2761_v44  ;;  %v1051_v44 = vsub.f32 %v2593_v16, %v2796_v3 }
 0x1b0   : > { %1275 = vadd.xlane.f32.xlu1 %v1274_v4  ;;  %2156 = vpow2.f32 %v1131_v12  ;;  %v1137_v43 = vmul.f32 1.442695, %v1049_v15  ;;  %v971_v15 = vsel %vm832_vm1, %v2673_v17, -inf  ;;  %v1037_v16 = vsub.f32 %v2547_v57, %v2785_v58 }
 0x1b1   : > { %v2813_v26 = vpop.xlane.xlu0 %924  ;;  %2158 = vpow2.f32 %v1105_v49  ;;  %v1109_v48 = vmul.f32 1.442695, %v1035_v19  ;;  %v1141_v3 = vmul.f32 1.442695, %v1051_v44  ;;  %v1019_v19 = vsel %vm832_vm1, %v2735_v29, -inf }
 0x1b2   : > { %v2817_v13 = vpop.eup %2144  ;;  %1266 = vadd.xlane.f32.xlu0 %v1265_v21  ;;  %2160 = vpow2.f32 %v1107_v52  ;;  %v1022_v57 = vsel %vm832_vm1, %v2739_v53, -inf }
 0x1b3   : > { %v910_v14 = vpop.xlane.xlu1 %909  ;;  %v1268_v1 = vsel %vm832_vm1, %v2817_v13, 0.0  ;;  %v2825_v61 = vpop.eup %2146  ;;  %2162 = vpow2.f32 %v1137_v43 }
 0x1b4   : > { %1269 = vadd.xlane.f32.xlu1 %v1268_v1  ;;  %v2831_v7 = vpop.eup %2148  ;;  %v1235_v5 = vsel %vm832_vm1, %v2825_v61, 0.0  ;;  %v1050_v6 = vsub.f32 %v2605_v22, %v910_v14  ;;  %v1036_v22 = vsub.f32 %v2535_v51, %v2755_v37  ;;  %v1052_v37 = vsub.f32 %v2601_v20, %v2809_v11 }
 0x1b5   : > { %v2823_v0 = vpop.xlane.xlu0 %918  ;;  %v2839_v55 = vpop.eup %2150  ;;  %v1238_v4 = vsel %vm832_vm1, %v2831_v7, 0.0  ;;  %v1038_v20 = vsub.f32 %v2553_v60, %v2779_v9 }
 0x1b6   : > { %1014 = vmax.xlane.f32.xlu0 %v1013_v47  ;;  %v2847_v10 = vpop.eup %2152  ;;  %v1283_v12 = vsel %vm832_vm1, %v2839_v55, 0.0  ;;  %v1139_v14 = vmul.f32 1.442695, %v1050_v6  ;;  %v1111_v51 = vmul.f32 1.442695, %v1036_v22  ;;  %v974_v6 = vsel %vm832_vm1, %v2681_v25, -inf }
 0x1b7   : > { %v2827_v34 = vpop.xlane.xlu1 %927  ;;  %v2854_v1 = vpop.eup %2154  ;;  %v1143_v11 = vmul.f32 1.442695, %v1052_v37  ;;  %v1113_v22 = vmul.f32 1.442695, %v1037_v16  ;;  %v1115_v60 = vmul.f32 1.442695, %v1038_v20  ;;  %v1055_v20 = vsub.f32 %v2609_v24, %v2813_v26 }
 0x1b8   : > { %1017 = vmax.xlane.f32.xlu1 %v1016_v23  ;;  %v1286_v23 = vsel %vm832_vm1, %v2847_v10, 0.0  ;;  %v1277_v62 = vsel %vm832_vm1, %v2854_v1, 0.0  ;;  %2164 = vpow2.f32 %v1139_v14  ;;  %v1053_v14 = vsub.f32 %v2615_v27, %v2823_v0 }
 0x1b9   : > { %v2835_v40 = vpop.xlane.xlu0 %936  ;;  %2166 = vpow2.f32 %v1109_v48  ;;  %v1039_v0 = vsub.f32 %v2545_v56, %v2775_v36 }
 0x1ba   : > { %1236 = vadd.xlane.f32.xlu0 %v1235_v5  ;;  %v2861_v41 = vpop.eup %2156  ;;  %2168 = vpow2.f32 %v1111_v51  ;;  %v1145_v37 = vmul.f32 1.442695, %v1053_v14 }
 0x1bb   : > { %v2843_v63 = vpop.xlane.xlu1 %921  ;;  %v2893_v43 = vpop.eup %2158  ;;  %2170 = vpow2.f32 %v1141_v3  ;;  %v1117_v36 = vmul.f32 1.442695, %v1039_v0 }
 0x1bc   : > { %1239 = vadd.xlane.f32.xlu1 %v1238_v4  ;;  %v2901_v58 = vpop.eup %2160  ;;  %2172 = vpow2.f32 %v1143_v11  ;;  %v1054_v9 = vsub.f32 %v2621_v30, %v2843_v63  ;;  %v1040_v63 = vsub.f32 %v2551_v59, %v2773_v33 }
 0x1bd   : > { %v2850_v21 = vpop.xlane.xlu0 %930  ;;  %v2907_v48 = vpop.eup %2162  ;;  %v1244_v51 = vsel %vm832_vm1, %v2901_v58, 0.0  ;;  %2174 = vpow2.f32 %v1113_v22  ;;  %v1056_v22 = vsub.f32 %v2617_v28, %v2827_v34 }
 0x1be   : > { %1284 = vadd.xlane.f32.xlu0 %v1283_v12  ;;  %v1280_v12 = vsel %vm832_vm1, %v2861_v41, 0.0  ;;  %2176 = vpow2.f32 %v1115_v60  ;;  %v1147_v16 = vmul.f32 1.442695, %v1054_v9  ;;  %v1057_v60 = vsub.f32 %v2631_v39, %v2850_v21 }
 0x1bf   : > { %v2857_v47 = vpop.xlane.xlu1 %939  ;;  %2178 = vpow2.f32 %v1145_v37  ;;  %v1151_v34 = vmul.f32 1.442695, %v1056_v22 }
 0x1c0   : > { %1287 = vadd.xlane.f32.xlu1 %v1286_v23  ;;  %2180 = vpow2.f32 %v1147_v16  ;;  %v1153_v39 = vmul.f32 1.442695, %v1057_v60 }
 0x1c1   : > { %v2865_v5 = vpop.xlane.xlu0 %948  ;;  %2182 = vpow2.f32 %v1117_v36 }
 0x1c2   : > { %1278 = vadd.xlane.f32.xlu0 %v1277_v62  ;;  %v2917_v27 = vpop.eup %2164 }
 0x1c3   : > { %v2871_v4 = vpop.xlane.xlu1 %933  ;;  %v2923_v30 = vpop.eup %2166 }
 0x1c4   : > { %1281 = vadd.xlane.f32.xlu1 %v1280_v12  ;;  %v1241_v12 = vsel %vm832_vm1, %v2893_v43, 0.0  ;;  %v2931_v56 = vpop.eup %2168  ;;  %v1247_v59 = vsel %vm832_vm1, %v2923_v30, 0.0  ;;  %v1058_v0 = vsub.f32 %v2637_v46, %v2871_v4 }
 0x1c5   : > { %v2877_v49 = vpop.xlane.xlu0 %942  ;;  %v2939_v33 = vpop.eup %2170  ;;  %v1250_v24 = vsel %vm832_vm1, %v2931_v56, 0.0 }
 0x1c6   : > { %972 = vmax.xlane.f32.xlu0 %v971_v15  ;;  %v2947_v26 = vpop.eup %2172  ;;  %v1155_v36 = vmul.f32 1.442695, %v1058_v0 }
 0x1c7   : > { %v2883_v52 = vpop.xlane.xlu1 %951  ;;  %v2953_v28 = vpop.eup %2174 }
 0x1c8   : > { %975 = vmax.xlane.f32.xlu1 %v974_v6  ;;  %v1289_v6 = vsel %vm832_vm1, %v2907_v48, 0.0  ;;  %v1253_v16 = vsel %vm832_vm1, %v2953_v28, 0.0 }
 0x1c9   : > { %v2889_v23 = vpop.xlane.xlu0 %960 }
 0x1ca   : > { %1020 = vmax.xlane.f32.xlu0 %v1019_v19  ;;  %v1292_v19 = vsel %vm832_vm1, %v2917_v27, 0.0 }
 0x1cb   : > { %v2897_v62 = vpop.xlane.xlu1 %945 }
 0x1cc   : > { %1023 = vmax.xlane.f32.xlu1 %v1022_v57  ;;  %v1119_v57 = vmul.f32 1.442695, %v1040_v63  ;;  %v2959_v63 = vpop.eup %2176 }
 0x1cd   : > { %v2911_v44 = vpop.xlane.xlu0 %954 }
 0x1ce   : > { %1242 = vadd.xlane.f32.xlu0 %v1241_v12  ;;  %v1149_v12 = vmul.f32 1.442695, %v1055_v20  ;;  %2184 = vpow2.f32 %v1119_v57  ;;  %v1256_v20 = vsel %vm832_vm1, %v2959_v63, 0.0  ;;  %v1059_v57 = vsub.f32 %v2625_v32, %v2835_v40 }
 0x1cf   : > { %v2913_v15 = vpop.xlane.xlu1 %963 }
 0x1d0   : > { %1245 = vadd.xlane.f32.xlu1 %v1244_v51  ;;  %v1295_v51 = vsel %vm832_vm1, %v2939_v33, 0.0  ;;  %2186 = vpow2.f32 %v1149_v12 }
 0x1d1   : > { %2188 = vpow2.f32 %v1151_v34 }
 0x1d2   : > { %1290 = vadd.xlane.f32.xlu0 %v1289_v6  ;;  %v2935_v11 = vpop.xlane.xlu0 %966  ;;  %v1298_v6 = vsel %vm832_vm1, %v2947_v26, 0.0  ;;  %2190 = vpow2.f32 %v1153_v39 }
 0x1d3   : > { %v2927_v3 = vpop.xlane.xlu1 %957  ;;  %2192 = vpow2.f32 %v1155_v36 }
 0x1d4   : > { %1293 = vadd.xlane.f32.xlu1 %v1292_v19  ;;  %v2963_v19 = vpop.eup %2178 }
 0x1d5   : > { %v1301_v12 = vsel %vm832_vm1, %v2963_v19, 0.0 }
 0x1d6   : > { %1248 = vadd.xlane.f32.xlu0 %v1247_v59  ;;  %v2968_v59 = vpop.eup %2180 }
 0x1d7   : > { %v2943_v14 = vpop.xlane.xlu1 %969  ;;  %v2975_v60 = vpop.eup %2182  ;;  %v1304_v32 = vsel %vm832_vm1, %v2968_v59, 0.0 }
 0x1d8   : > { %1251 = vadd.xlane.f32.xlu1 %v1250_v24  ;;  %v2983_v40 = vpop.eup %2184 }
 0x1d9   : > { %v985_v9 = vpop.xlane.xlu0 %984 }
 0x1da   : > { %1296 = vadd.xlane.f32.xlu0 %v1295_v51  ;;  %v1075_v0 = vsub.f32 %v2687_v31, %v985_v9  ;;  %v3352_v31 = vld [vmem:[#allocation3_spill] sm:$0xff] }
 0x1db   : > { %v988_v37 = vpop.xlane.xlu1 %987  ;;  %v1061_v9 = vsub.f32 %v3352_v31, %v2877_v49  ;;  %v3356_v31 = vld [vmem:[#allocation2_spill] sm:$0xff] }
 0x1dc   : > { %1299 = vadd.xlane.f32.xlu1 %v1298_v6 }
 0x1dd   : > { %v979_v21 = vpop.xlane.xlu0 %978  ;;  %v1161_v49 = vmul.f32 1.442695, %v1061_v9  ;;  %v1063_v9 = vsub.f32 %v3356_v31, %v2865_v5 }
 0x1de   : > { %v1073_v46 = vsub.f32 %v2689_v35, %v979_v21  ;;  %1254 = vadd.xlane.f32.xlu0 %v1253_v16  ;;  %v1060_v35 = vsub.f32 %v2633_v42, %v2857_v47  ;;  %v1259_v42 = vsel %vm832_vm1, %v2975_v60, 0.0  ;;  %v2990_v47 = vpop.eup %2186  ;;  %v1076_v21 = vsub.f32 %v2693_v45, %v988_v37  ;;  %v3353_v45 = vld [vmem:[#allocation5_spill] sm:$0xff] }
 0x1df   : > { %v982_v4 = vpop.xlane.xlu1 %981  ;;  %v1262_v16 = vsel %vm832_vm1, %v2983_v40, 0.0  ;;  %v2995_v36 = vpop.eup %2188  ;;  %v1062_v37 = vsub.f32 %v3353_v45, %v2897_v62  ;;  %v3355_v62 = vld [vmem:[#allocation15_spill] sm:$0xff]  ;;  %v3357_v45 = vld [vmem:[#allocation4_spill] sm:$0xff] }
 0x1e0   : > { %v1185_v22 = vmul.f32 1.442695, %v1073_v46  ;;  %v1074_v24 = vsub.f32 %v2699_v54, %v982_v4  ;;  %1257 = vadd.xlane.f32.xlu1 %v1256_v20  ;;  %v1157_v54 = vmul.f32 1.442695, %v1059_v57  ;;  %v1159_v39 = vmul.f32 1.442695, %v1060_v35  ;;  %v3001_v57 = vpop.eup %2190 }
 0x1e1   : > { %v2979_v34 = vpop.xlane.xlu0 %996  ;;  %v1189_v46 = vmul.f32 1.442695, %v1075_v0  ;;  %v1307_v20 = vsel %vm832_vm1, %v2990_v47, 0.0  ;;  %v3007_v35 = vpop.eup %2192 }
 0x1e2   : > { %v1187_v51 = vmul.f32 1.442695, %v1074_v24  ;;  %1302 = vadd.xlane.f32.xlu0 %v1301_v12  ;;  %2194 = vpow2.f32 %v1185_v22  ;;  %v1191_v22 = vmul.f32 1.442695, %v1076_v21  ;;  %v1310_v12 = vsel %vm832_vm1, %v2995_v36, 0.0 }
 0x1e3   : > { %v2986_v6 = vpop.xlane.xlu1 %999  ;;  %v1316_v21 = vsel %vm832_vm1, %v3007_v35, 0.0 }
 0x1e4   : > { %1305 = vadd.xlane.f32.xlu1 %v1304_v32  ;;  %2196 = vpow2.f32 %v1187_v51  ;;  %v3354_v51 = vld [vmem:[#allocation13_spill] sm:$0xff] }
 0x1e5   : > { %2198 = vpow2.f32 %v1157_v54  ;;  %v991_v4 = vpop.xlane.xlu0 %990  ;;  %v1313_v54 = vsel %vm832_vm1, %v3001_v57, 0.0 }
 0x1e6   : > { %1260 = vadd.xlane.f32.xlu0 %v1259_v42  ;;  %2200 = vpow2.f32 %v1159_v39  ;;  %v1077_v32 = vsub.f32 %v3354_v51, %v991_v4  ;;  %v1163_v42 = vmul.f32 1.442695, %v1062_v37  ;;  %v1064_v37 = vsub.f32 %v3357_v45, %v2883_v52  ;;  %v3358_v51 = vld [vmem:[#allocation12_spill] sm:$0xff] }
 0x1e7   : > { %v994_v24 = vpop.xlane.xlu1 %993  ;;  %2202 = vpow2.f32 %v1189_v46 }
 0x1e8   : > { %1263 = vadd.xlane.f32.xlu1 %v1262_v16  ;;  %2204 = vpow2.f32 %v1191_v22  ;;  %v1078_v39 = vsub.f32 %v3355_v62, %v994_v24  ;;  %v1193_v46 = vmul.f32 1.442695, %v1077_v32  ;;  %v1079_v32 = vsub.f32 %v3358_v51, %v2979_v34  ;;  %v3361_v34 = vld [vmem:[#allocation7_spill] sm:$0xff] }
 0x1e9   : > { %2206 = vpow2.f32 %v1161_v49  ;;  %v3027_v24 = vpop.xlane.xlu0 %1008  ;;  %v1165_v49 = vmul.f32 1.442695, %v1063_v9  ;;  %v1167_v62 = vmul.f32 1.442695, %v1064_v37 }
 0x1ea   : > { %1308 = vadd.xlane.f32.xlu0 %v1307_v20  ;;  %2208 = vpow2.f32 %v1163_v42  ;;  %v1195_v22 = vmul.f32 1.442695, %v1078_v39  ;;  %v3360_v39 = vld [vmem:[#allocation14_spill] sm:$0xff] }
 0x1eb   : > { %2210 = vpow2.f32 %v1193_v46  ;;  %v1065_v46 = vsub.f32 %v3361_v34, %v2911_v44 }
 0x1ec   : > { %1311 = vadd.xlane.f32.xlu1 %v1310_v12  ;;  %v3012_v0 = vpop.eup %2194  ;;  %2212 = vpow2.f32 %v1195_v22 }
 0x1ed   : > { %v1361_v4 = vsel %vm832_vm1, %v3012_v0, 0.0  ;;  %2214 = vpow2.f32 %v1165_v49  ;;  %v1003_v45 = vpop.xlane.xlu0 %1002  ;;  %v1169_v44 = vmul.f32 1.442695, %v1065_v46  ;;  %v3365_v46 = vld [vmem:[#allocation6_spill] sm:$0xff] }
 0x1ee   : > { %1314 = vadd.xlane.f32.xlu0 %v1313_v54  ;;  %v3017_v16 = vpop.eup %2196  ;;  %v3035_v54 = vpop.xlane.xlu1 %1011  ;;  %2216 = vpow2.f32 %v1167_v62 }
 0x1ef   : > { %v3023_v20 = vpop.eup %2198  ;;  %v1364_v12 = vsel %vm832_vm1, %v3017_v16, 0.0 }
 0x1f0   : > { %1317 = vadd.xlane.f32.xlu1 %v1316_v21  ;;  %v3031_v5 = vpop.eup %2200  ;;  %v1319_v52 = vsel %vm832_vm1, %v3023_v20, 0.0  ;;  %v1080_v21 = vsub.f32 %v3360_v39, %v2986_v6  ;;  %v3362_v6 = vld [vmem:[#allocation9_spill] sm:$0xff] }
 0x1f1   : > { %v3039_v42 = vpop.eup %2202  ;;  %v1322_v31 = vsel %vm832_vm1, %v3031_v5, 0.0  ;;  %v1066_v22 = vsub.f32 %v3362_v6, %v2927_v3  ;;  %v3364_v3 = vld [vmem:[#allocation19_spill] sm:$0xff] }
 0x1f2   : > { %1362 = vadd.xlane.f32.xlu0 %v1361_v4  ;;  %3359 = vst [vmem:[#allocation3_spill] sm:$0xff] %v3039_v42  ;;  %v3045_v9 = vpop.eup %2204  ;;  %v1197_v4 = vmul.f32 1.442695, %v1079_v32  ;;  %v1367_v37 = vsel %vm832_vm1, %v3039_v42, 0.0  ;;  %v1199_v51 = vmul.f32 1.442695, %v1080_v21 }
 0x1f3   : > { %v1370_v49 = vsel %vm832_vm1, %v3045_v9, 0.0  ;;  %v3363_v32 = vld [vmem:[#allocation17_spill] sm:$0xff]  ;;  %v1171_v42 = vmul.f32 1.442695, %v1066_v22  ;;  %v3367_v22 = vld [vmem:[#allocation8_spill] sm:$0xff] }
 0x1f4   : > { %1365 = vadd.xlane.f32.xlu1 %v1364_v12  ;;  %v3051_v12 = vpop.eup %2206  ;;  %2218 = vpow2.f32 %v1197_v4  ;;  %v1067_v4 = vsub.f32 %v3365_v46, %v2889_v23 }
 0x1f5   : > { %v3057_v39 = vpop.eup %2208  ;;  %v1325_v34 = vsel %vm832_vm1, %v3051_v12, 0.0  ;;  %2220 = vpow2.f32 %v1199_v51  ;;  %v1068_v51 = vsub.f32 %v3367_v22, %v2913_v15 }
 0x1f6   : > { %1320 = vadd.xlane.f32.xlu0 %v1319_v52  ;;  %v1006_v52 = vpop.xlane.xlu1 %1005  ;;  %v3062_v62 = vpop.eup %2210  ;;  %2222 = vpow2.f32 %v1169_v44  ;;  %v1173_v23 = vmul.f32 1.442695, %v1067_v4  ;;  %v3369_v44 = vld [vmem:[#allocation16_spill] sm:$0xff] }
 0x1f7   : > { %v1082_v21 = vsub.f32 %v3364_v3, %v1006_v52  ;;  %v3067_v6 = vpop.eup %2212  ;;  %2224 = vpow2.f32 %v1171_v42  ;;  %v1175_v15 = vmul.f32 1.442695, %v1068_v51  ;;  %v3371_v42 = vld [vmem:[#allocation18_spill] sm:$0xff] }
 0x1f8   : > { %1323 = vadd.xlane.f32.xlu1 %v1322_v31  ;;  %v1081_v31 = vsub.f32 %v3363_v32, %v1003_v45  ;;  %v3073_v32 = vpop.eup %2214 }
 0x1f9   : > { %3366 = vst [vmem:[#allocation5_spill] sm:$0xff] %v3073_v32  ;;  %v1203_v52 = vmul.f32 1.442695, %v1082_v21  ;;  %v3079_v3 = vpop.eup %2216  ;;  %v1084_v21 = vsub.f32 %v3371_v42, %v3035_v54  ;;  %v3375_v54 = vld [vmem:[#allocation11_spill] sm:$0xff] }
 0x1fa   : > { %1368 = vadd.xlane.f32.xlu0 %v1367_v37  ;;  %v1328_v37 = vsel %vm832_vm1, %v3057_v39, 0.0  ;;  %v1201_v45 = vmul.f32 1.442695, %v1081_v31  ;;  %3368 = vst [vmem:[#allocation13_spill] sm:$0xff] %v3079_v3  ;;  %v1083_v31 = vsub.f32 %v3369_v44, %v3027_v24  ;;  %v3373_v24 = vld [vmem:[#allocation10_spill] sm:$0xff] }
 0x1fb   : > { %v1207_v44 = vmul.f32 1.442695, %v1084_v21 }
 0x1fc   : > { %1371 = vadd.xlane.f32.xlu1 %v1370_v49  ;;  %v1373_v49 = vsel %vm832_vm1, %v3062_v62, 0.0  ;;  %2226 = vpow2.f32 %v1201_v45  ;;  %v1069_v45 = vsub.f32 %v3373_v24, %v2935_v11  ;;  %v1205_v22 = vmul.f32 1.442695, %v1083_v31 }
 0x1fd   : > { %2228 = vpow2.f32 %v1203_v52  ;;  %v1070_v52 = vsub.f32 %v3375_v54, %v2943_v14 }
 0x1fe   : > { %1326 = vadd.xlane.f32.xlu0 %v1325_v34  ;;  %v1376_v34 = vsel %vm832_vm1, %v3067_v6, 0.0  ;;  %v3085_v46 = vpop.eup %2218  ;;  %2230 = vpow2.f32 %v1173_v23  ;;  %v1177_v11 = vmul.f32 1.442695, %v1069_v45 }
 0x1ff   : > { %3370 = vst [vmem:[#allocation15_spill] sm:$0xff] %v3085_v46  ;;  %v3091_v4 = vpop.eup %2220  ;;  %2232 = vpow2.f32 %v1175_v15  ;;  %v1179_v15 = vmul.f32 1.442695, %v1070_v52 }
 0x200   : > { %1329 = vadd.xlane.f32.xlu1 %v1328_v37  ;;  %v1331_v37 = vsel %vm832_vm1, %v3073_v32, 0.0  ;;  %3372 = vst [vmem:[#allocation2_spill] sm:$0xff] %v3091_v4  ;;  %v3097_v51 = vpop.eup %2222  ;;  %v1382_v23 = vsel %vm832_vm1, %v3091_v4, 0.0  ;;  %2234 = vpow2.f32 %v1205_v22 }
 0x201   : > { %3374 = vst [vmem:[#allocation4_spill] sm:$0xff] %v3097_v51  ;;  %v1337_v31 = vsel %vm832_vm1, %v3097_v51, 0.0  ;;  %2236 = vpow2.f32 %v1207_v44 }
 0x202   : > { %1374 = vadd.xlane.f32.xlu0 %v1373_v49  ;;  %v1334_v49 = vsel %vm832_vm1, %v3079_v3, 0.0  ;;  %2238 = vpow2.f32 %v1177_v11 }
 0x203   : > { %2240 = vpow2.f32 %v1179_v15 }
 0x204   : > { %1377 = vadd.xlane.f32.xlu1 %v1376_v34  ;;  %v1379_v34 = vsel %vm832_vm1, %v3085_v46, 0.0 }
 0x206   : > { %1332 = vadd.xlane.f32.xlu0 %v1331_v37  ;;  %v3103_v37 = vpop.eup %2224 }
 0x207   : > { %3376 = vst [vmem:[#allocation12_spill] sm:$0xff] %v3103_v37  ;;  %v3107_v42 = vpop.eup %2226  ;;  %v1340_v14 = vsel %vm832_vm1, %v3103_v37, 0.0 }
 0x208   : > { %1335 = vadd.xlane.f32.xlu1 %v1334_v49  ;;  %3377 = vst [vmem:[#allocation14_spill] sm:$0xff] %v3107_v42  ;;  %v3111_v21 = vpop.eup %2228  ;;  %v3114_v49 = vld [vmem:[%s2433_s24] sm:$0xff]   ;;  %v1385_v24 = vsel %vm832_vm1, %v3107_v42, 0.0 }
 0x209   : > { %3378 = vst [vmem:[#allocation7_spill] sm:$0xff] %v3111_v21  ;;  %v3118_v45 = vpop.eup %2230  ;;  %1982 = vmatprep.mubr.msk.bf16.mxu1 %vm832_vm1, %v3114_v49  ;;  %v1388_v22 = vsel %vm832_vm1, %v3111_v21, 0.0 }
 0x20a   : > { %1380 = vadd.xlane.f32.xlu0 %v1379_v34  ;;  %3379 = vst [vmem:[#allocation9_spill] sm:$0xff] %v3118_v45  ;;  %v3124_v34 = vpop.eup %2232  ;;  %v1343_v54 = vsel %vm832_vm1, %v3118_v45, 0.0 }
 0x20b   : > { %3380 = vst [vmem:[#allocation17_spill] sm:$0xff] %v3124_v34  ;;  %v3128_v52 = vpop.eup %2234  ;;  %v1346_v44 = vsel %vm832_vm1, %v3124_v34, 0.0 }
 0x20c   : > { %1383 = vadd.xlane.f32.xlu1 %v1382_v23  ;;  %3381 = vst [vmem:[#allocation19_spill] sm:$0xff] %v3128_v52  ;;  %v3132_v23 = vpop.eup %2236  ;;  %v1391_v11 = vsel %vm832_vm1, %v3128_v52, 0.0 }
 0x20d   : > { %3382 = vst [vmem:[#allocation6_spill] sm:$0xff] %v3132_v23  ;;  %v1394_v15 = vsel %vm832_vm1, %v3132_v23, 0.0 }
 0x20e   : > { %1338 = vadd.xlane.f32.xlu0 %v1337_v31  ;;  %v3136_v31 = vpop.eup %2238 }
 0x20f   : > { %3383 = vst [vmem:[#allocation8_spill] sm:$0xff] %v3136_v31 }
 0x210   : > { %1341 = vadd.xlane.f32.xlu1 %v1340_v14  ;;  %v3140_v14 = vpop.eup %2240 }
 0x211   : > { %3384 = vst [vmem:[#allocation16_spill] sm:$0xff] %v3140_v14 }
 0x212   : > { %1386 = vadd.xlane.f32.xlu0 %v1385_v24  ;;  %v1349_v24 = vsel %vm832_vm1, %v3136_v31, 0.0 }
 0x214   : > { %1389 = vadd.xlane.f32.xlu1 %v1388_v22  ;;  %v1352_v22 = vsel %vm832_vm1, %v3140_v14, 0.0 }
 0x216   : > { %1344 = vadd.xlane.f32.xlu0 %v1343_v54 }
 0x217   : > { %v1225_v54 = vpop.xlane.xlu0 %1224 }
 0x218   : > { %1347 = vadd.xlane.f32.xlu1 %v1346_v44 }
 0x219   : > { %v1228_v44 = vpop.xlane.xlu1 %1227 }
 0x21a   : > { %1392 = vadd.xlane.f32.xlu0 %v1391_v11 }
 0x21b   : > { %v1219_v52 = vpop.xlane.xlu0 %1218 }
 0x21c   : > { %1395 = vadd.xlane.f32.xlu1 %v1394_v15 }
 0x21e   : > { %1350 = vadd.xlane.f32.xlu0 %v1349_v24 }
 0x21f   : > { %v1222_v45 = vpop.xlane.xlu1 %1221 }
 0x220   : > { %1353 = vadd.xlane.f32.xlu1 %v1352_v22  ;;  %2242 = vrcp.f32 %v1222_v45 }
 0x221   : > { %2244 = vrcp.f32 %v1219_v52 }
 0x225   : > { %v1234_v11 = vpop.xlane.xlu1 %1233 }
 0x227   : > { %v1231_v34 = vpop.xlane.xlu0 %1230 }
 0x22a   : > { %v2243_v42 = vpop.eup %2242 }
 0x22b   : > { %v2245_v45 = vpop.eup %2244 }
 0x23b   : > { %v1273_v21 = vpop.xlane.xlu0 %1272 }
 0x23d   : > { %v1276_v23 = vpop.xlane.xlu1 %1275 }
 0x23e   : > { %2246 = vrcp.f32 %v1276_v23 }
 0x23f   : > { %v1267_v15 = vpop.xlane.xlu0 %1266 }
 0x240   : > { %2248 = vrcp.f32 %v1267_v15  ;;  %v3385_v15 = vld [vmem:[#allocation23_spill] sm:$0xff] }
 0x241   : > { %2250 = vrcp.f32 %v1273_v21  ;;  %v1270_v31 = vpop.xlane.xlu1 %1269  ;;  %v1474_v21 = vmul.f32 %v2243_v42, %v3385_v15 }
 0x242   : > { %2252 = vrcp.f32 %v1270_v31 }
 0x243   : > { %v1015_v24 = vpop.xlane.xlu0 %1014  ;;  %2254 = vrcp.f32 %v1228_v44 }
 0x244   : > { %v1085_v22 = vsub.f32 %v2737_v18, %v1015_v24  ;;  %2256 = vrcp.f32 %v1225_v54  ;;  %v3386_v18 = vld [vmem:[#allocation22_spill] sm:$0xff] }
 0x245   : > { %v1018_v14 = vpop.xlane.xlu1 %1017  ;;  %v1473_v24 = vmul.f32 %v2245_v45, %v3386_v18 }
 0x246   : > { %v1209_v51 = vmul.f32 1.442695, %v1085_v22  ;;  %v1086_v37 = vsub.f32 %v2741_v38, %v1018_v14 }
 0x247   : > { %v1237_v4 = vpop.xlane.xlu0 %1236 }
 0x248   : > { %2258 = vpow2.f32 %v1209_v51  ;;  %v1211_v52 = vmul.f32 1.442695, %v1086_v37  ;;  %v2247_v23 = vpop.eup %2246  ;;  %v1537_v51 = vpack.c.bf16 %v1474_v21, %v1473_v24 }
 0x249   : > { %v1240_v46 = vpop.xlane.xlu1 %1239  ;;  %v1492_v37 = vmul.f32 %v2247_v23, %v2806_v8  ;;  %v3388_v23 = vld [vmem:[#allocation20_spill] sm:$0xff] }
 0x24a   : > { %v2249_v32 = vpop.eup %2248  ;;  %2260 = vpow2.f32 %v1211_v52  ;;  %v1578_v45 = vsel %vm832_vm1, %v1537_v51, 0 }
 0x24b   : > { %v2251_v31 = vpop.eup %2250  ;;  %2262 = vrcp.f32 %v1231_v34  ;;  %v1285_v44 = vpop.xlane.xlu0 %1284  ;;  %v1489_v38 = vmul.f32 %v2249_v32, %v2802_v50  ;;  %v3387_v32 = vld [vmem:[#allocation21_spill] sm:$0xff] }
 0x24c   : > { %v2253_v3 = vpop.eup %2252  ;;  %2264 = vrcp.f32 %v1234_v11  ;;  %v1491_v52 = vmul.f32 %v2251_v31, %v2799_v2 }
 0x24d   : > { %v1288_v54 = vpop.xlane.xlu1 %1287  ;;  %v1490_v14 = vmul.f32 %v2253_v3, %v2817_v13  ;;  %v2255_v22 = vpop.eup %2254 }
 0x24e   : > { %2266 = vrcp.f32 %v1288_v54  ;;  %v2257_v34 = vpop.eup %2256  ;;  %v1546_v50 = vpack.c.bf16 %v1492_v37, %v1491_v52  ;;  %v1476_v13 = vmul.f32 %v2255_v22, %v3387_v32  ;;  %v3390_v32 = vld [vmem:[#allocation24_spill] sm:$0xff] }
 0x24f   : > { %v1279_v42 = vpop.xlane.xlu0 %1278  ;;  %v1545_v15 = vpack.c.bf16 %v1490_v14, %v1489_v38  ;;  %v1475_v21 = vmul.f32 %v2257_v34, %v3388_v23 }
 0x250   : > { %2268 = vrcp.f32 %v1279_v42 }
 0x251   : > { %2270 = vrcp.f32 %v1285_v44  ;;  %2068 = vmatprep.subr.msk.bf16.mxu1 %vm832_vm1, %v1545_v15  ;;  %v1282_v11 = vpop.xlane.xlu1 %1281  ;;  %v1538_v38 = vpack.c.bf16 %v1476_v13, %v1475_v21  ;;  %v3389_v15 = vld [vmem:[#allocation25_spill] sm:$0xff] }
 0x252   : > { %v3157_v3 = vpop.eup %2258  ;;  %2272 = vrcp.f32 %v1282_v11  ;;  %1967 = vmatpush3.bf16.xpose.msra.mxu1 %v1578_v45 }
 0x253   : > { %2069 = vmatprep.subr.msk.bf16.mxu1 %vm832_vm1, %v1546_v50  ;;  %v973_v8 = vpop.xlane.xlu0 %972  ;;  %v1397_v2 = vsel %vm832_vm1, %v3157_v3, 0.0  ;;  %2274 = vrcp.f32 %v1240_v46  ;;  %v1581_v11 = vsel %vm832_vm1, %v1538_v38, 0 }
 0x254   : > { %v3163_v31 = vpop.eup %2260  ;;  %v1071_v44 = vsub.f32 %v2673_v17, %v973_v8  ;;  %1398 = vadd.xlane.f32.xlu0 %v1397_v2  ;;  %2276 = vrcp.f32 %v1237_v4 }
 0x255   : > { %v2263_v18 = vpop.eup %2262  ;;  %v976_v24 = vpop.xlane.xlu1 %975  ;;  %v1400_v54 = vsel %vm832_vm1, %v3163_v31, 0.0 }
 0x256   : > { %v2265_v14 = vpop.eup %2264  ;;  %v1181_v51 = vmul.f32 1.442695, %v1071_v44  ;;  %v1072_v37 = vsub.f32 %v2681_v25, %v976_v24  ;;  %1401 = vadd.xlane.f32.xlu1 %v1400_v54  ;;  %v1477_v17 = vmul.f32 %v2263_v18, %v3389_v15 }
 0x257   : > { %v1021_v22 = vpop.xlane.xlu0 %1020  ;;  %v1478_v25 = vmul.f32 %v2265_v14, %v3390_v32 }
 0x258   : > { %2278 = vpow2.f32 %v1181_v51  ;;  %v1183_v42 = vmul.f32 1.442695, %v1072_v37  ;;  %v1087_v46 = vsub.f32 %v2735_v29, %v1021_v22  ;;  %v2267_v52 = vpop.eup %2266 }
 0x259   : > { %v1024_v34 = vpop.xlane.xlu1 %1023  ;;  %v1539_v29 = vpack.c.bf16 %v1478_v25, %v1477_v17  ;;  %v1496_v24 = vmul.f32 %v2267_v52, %v2847_v10 }
 0x25a   : > { %v2269_v45 = vpop.eup %2268  ;;  %2280 = vpow2.f32 %v1183_v42  ;;  %v1213_v50 = vmul.f32 1.442695, %v1087_v46  ;;  %v1088_v4 = vsub.f32 %v2739_v53, %v1024_v34  ;;  %1969 = vmatpush3.bf16.xpose.msra.mxu1 %v1581_v11 }
 0x25b   : > { %v2271_v13 = vpop.eup %2270  ;;  %v1243_v8 = vpop.xlane.xlu0 %1242  ;;  %v1493_v44 = vmul.f32 %v2269_v45, %v2854_v1  ;;  %v1584_v22 = vsel %vm832_vm1, %v1539_v29, 0 }
 0x25c   : > { %v2273_v2 = vpop.eup %2272  ;;  %2282 = vpow2.f32 %v1213_v50  ;;  %v1215_v23 = vmul.f32 1.442695, %v1088_v4  ;;  %v1495_v14 = vmul.f32 %v2271_v13, %v2839_v55 }
 0x25d   : > { %2284 = vrcp.f32 %v1243_v8  ;;  %v1246_v21 = vpop.xlane.xlu1 %1245  ;;  %v1494_v18 = vmul.f32 %v2273_v2, %v2861_v41  ;;  %v2275_v54 = vpop.eup %2274 }
 0x25e   : > { %2286 = vpow2.f32 %v1215_v23  ;;  %v2277_v51 = vpop.eup %2276  ;;  %v1548_v42 = vpack.c.bf16 %v1496_v24, %v1495_v14  ;;  %v1480_v1 = vmul.f32 %v2275_v54, %v2831_v7 }
 0x25f   : > { %2288 = vrcp.f32 %v1246_v21  ;;  %v1291_v53 = vpop.xlane.xlu0 %1290  ;;  %v1547_v38 = vpack.c.bf16 %v1494_v18, %v1493_v44  ;;  %v1479_v46 = vmul.f32 %v2277_v51, %v2825_v61 }
 0x260   : > { %2290 = vrcp.f32 %v1291_v53 }
 0x261   : > { %2070 = vmatprep.subr.msk.bf16.mxu1 %vm832_vm1, %v1547_v38  ;;  %v1294_v37 = vpop.xlane.xlu1 %1293  ;;  %v1540_v52 = vpack.c.bf16 %v1480_v1, %v1479_v46 }
 0x262   : > { %v3181_v41 = vpop.eup %2278  ;;  %2292 = vrcp.f32 %v1294_v37  ;;  %1971 = vmatpush3.bf16.xpose.msra.mxu1 %v1584_v22 }
 0x263   : > { %v1249_v10 = vpop.xlane.xlu0 %1248  ;;  %2071 = vmatprep.subr.msk.bf16.mxu1 %vm832_vm1, %v1548_v42  ;;  %v1355_v55 = vsel %vm832_vm1, %v3181_v41, 0.0  ;;  %v1587_v25 = vsel %vm832_vm1, %v1540_v52, 0 }
 0x264   : > { %v3187_v15 = vpop.eup %2280  ;;  %1356 = vadd.xlane.f32.xlu0 %v1355_v55  ;;  %2294 = vrcp.f32 %v1249_v10 }
 0x265   : > { %v1252_v17 = vpop.xlane.xlu1 %1251  ;;  %v1358_v7 = vsel %vm832_vm1, %v3187_v15, 0.0 }
 0x266   : > { %v3191_v34 = vpop.eup %2282  ;;  %2296 = vrcp.f32 %v1252_v17  ;;  %1359 = vadd.xlane.f32.xlu1 %v1358_v7 }
 0x267   : > { %v2285_v11 = vpop.eup %2284  ;;  %v1297_v45 = vpop.xlane.xlu0 %1296  ;;  %v1403_v50 = vsel %vm832_vm1, %v3191_v34, 0.0 }
 0x268   : > { %v3195_v4 = vpop.eup %2286  ;;  %2298 = vrcp.f32 %v1297_v45  ;;  %1404 = vadd.xlane.f32.xlu0 %v1403_v50  ;;  %v1481_v29 = vmul.f32 %v2285_v11, %v2893_v43 }
 0x269   : > { %v2289_v61 = vpop.eup %2288  ;;  %v1300_v32 = vpop.xlane.xlu1 %1299  ;;  %v1406_v13 = vsel %vm832_vm1, %v3195_v4, 0.0 }
 0x26a   : > { %v2291_v8 = vpop.eup %2290  ;;  %2300 = vrcp.f32 %v1300_v32  ;;  %1973 = vmatpush3.bf16.xpose.msra.mxu1 %v1587_v25  ;;  %1407 = vadd.xlane.f32.xlu1 %v1406_v13  ;;  %v1482_v2 = vmul.f32 %v2289_v61, %v2901_v58 }
 0x26b   : > { %v1255_v23 = vpop.xlane.xlu0 %1254  ;;  %v1497_v18 = vmul.f32 %v2291_v8, %v2907_v48 }
 0x26c   : > { %v2293_v21 = vpop.eup %2292  ;;  %2302 = vrcp.f32 %v1255_v23  ;;  %v1541_v54 = vpack.c.bf16 %v1482_v2, %v1481_v29 }
 0x26d   : > { %v1258_v44 = vpop.xlane.xlu1 %1257  ;;  %v1498_v24 = vmul.f32 %v2293_v21, %v2917_v27 }
 0x26e   : > { %2304 = vrcp.f32 %v1258_v44  ;;  %v2295_v53 = vpop.eup %2294  ;;  %v1590_v37 = vsel %vm832_vm1, %v1541_v54, 0 }
 0x26f   : > { %v1303_v38 = vpop.xlane.xlu0 %1302  ;;  %v1549_v14 = vpack.c.bf16 %v1498_v24, %v1497_v18  ;;  %v1483_v27 = vmul.f32 %v2295_v53, %v2923_v30 }
 0x270   : > { %v2297_v51 = vpop.eup %2296  ;;  %2306 = vrcp.f32 %v1303_v38 }
 0x271   : > { %2072 = vmatprep.subr.msk.bf16.mxu1 %vm832_vm1, %v1549_v14  ;;  %v1306_v58 = vpop.xlane.xlu1 %1305  ;;  %v1484_v43 = vmul.f32 %v2297_v51, %v2931_v56 }
 0x272   : > { %v2299_v22 = vpop.eup %2298  ;;  %2308 = vrcp.f32 %v1306_v58  ;;  %1975 = vmatpush3.bf16.xpose.msra.mxu1 %v1590_v37 }
 0x273   : > { %v1261_v48 = vpop.xlane.xlu0 %1260  ;;  %v1499_v10 = vmul.f32 %v2299_v22, %v2939_v33  ;;  %v1542_v46 = vpack.c.bf16 %v1484_v43, %v1483_v27 }
 0x274   : > { %v2301_v42 = vpop.eup %2300  ;;  %2310 = vrcp.f32 %v1261_v48 }
 0x275   : > { %v1264_v1 = vpop.xlane.xlu1 %1263  ;;  %v1500_v55 = vmul.f32 %v2301_v42, %v2947_v26  ;;  %v1593_v45 = vsel %vm832_vm1, %v1542_v46, 0 }
 0x276   : > { %2312 = vrcp.f32 %v1264_v1  ;;  %v2303_v17 = vpop.eup %2302 }
 0x277   : > { %v1309_v7 = vpop.xlane.xlu0 %1308  ;;  %v1550_v52 = vpack.c.bf16 %v1500_v55, %v1499_v10  ;;  %v1485_v26 = vmul.f32 %v2303_v17, %v2953_v28 }
 0x278   : > { %v2305_v11 = vpop.eup %2304  ;;  %2314 = vrcp.f32 %v1309_v7 }
 0x279   : > { %2073 = vmatprep.subr.msk.bf16.mxu1 %vm832_vm1, %v1550_v52  ;;  %v1312_v56 = vpop.xlane.xlu1 %1311  ;;  %v1486_v30 = vmul.f32 %v2305_v11, %v2959_v63 }
 0x27a   : > { %v2307_v50 = vpop.eup %2306  ;;  %2316 = vrcp.f32 %v1312_v56  ;;  %1977 = vmatpush3.bf16.xpose.msra.mxu1 %v1593_v45 }
 0x27b   : > { %v1315_v33 = vpop.xlane.xlu0 %1314  ;;  %v1501_v25 = vmul.f32 %v2307_v50, %v2963_v19  ;;  %v1543_v8 = vpack.c.bf16 %v1486_v30, %v1485_v26  ;;  %v3391_v50 = vld [vmem:[#allocation3_spill] sm:$0xff] }
 0x27c   : > { %v2309_v61 = vpop.eup %2308  ;;  %2318 = vrcp.f32 %v1315_v33 }
 0x27d   : > { %v1318_v32 = vpop.xlane.xlu1 %1317  ;;  %v1502_v13 = vmul.f32 %v2309_v61, %v2968_v59  ;;  %v1596_v44 = vsel %vm832_vm1, %v1543_v8, 0 }
 0x27e   : > { %2320 = vrcp.f32 %v1318_v32  ;;  %v2311_v2 = vpop.eup %2310 }
 0x27f   : > { %v1363_v23 = vpop.xlane.xlu0 %1362  ;;  %v1551_v29 = vpack.c.bf16 %v1502_v13, %v1501_v25  ;;  %v1487_v59 = vmul.f32 %v2311_v2, %v2975_v60 }
 0x280   : > { %v2313_v21 = vpop.eup %2312  ;;  %2322 = vrcp.f32 %v1363_v23 }
 0x281   : > { %2074 = vmatprep.subr.msk.bf16.mxu1 %vm832_vm1, %v1551_v29  ;;  %v1366_v63 = vpop.xlane.xlu1 %1365  ;;  %v1488_v28 = vmul.f32 %v2313_v21, %v2983_v40 }
 0x282   : > { %v2315_v18 = vpop.eup %2314  ;;  %2324 = vrcp.f32 %v1366_v63  ;;  %1979 = vmatpush3.bf16.xpose.msra.mxu1 %v1596_v44 }
 0x283   : > { %v1321_v19 = vpop.xlane.xlu0 %1320  ;;  %v1503_v53 = vmul.f32 %v2315_v18, %v2990_v47  ;;  %v1544_v14 = vpack.c.bf16 %v1488_v28, %v1487_v59 }
 0x284   : > { %v2317_v24 = vpop.eup %2316  ;;  %2326 = vrcp.f32 %v1321_v19 }
 0x285   : > { %v1324_v54 = vpop.xlane.xlu1 %1323  ;;  %v1504_v38 = vmul.f32 %v2317_v24, %v2995_v36  ;;  %v1599_v22 = vsel %vm832_vm1, %v1544_v14, 0 }
 0x286   : > { %2328 = vrcp.f32 %v1324_v54  ;;  %v2319_v51 = vpop.eup %2318 }
 0x287   : > { %v1369_v58 = vpop.xlane.xlu0 %1368  ;;  %v1552_v37 = vpack.c.bf16 %v1504_v38, %v1503_v53  ;;  %v1505_v36 = vmul.f32 %v2319_v51, %v3001_v57  ;;  %v3393_v51 = vld [vmem:[#allocation5_spill] sm:$0xff] }
 0x288   : > { %v2321_v43 = vpop.eup %2320  ;;  %2330 = vrcp.f32 %v1369_v58 }
 0x289   : > { %2075 = vmatprep.subr.msk.bf16.mxu1 %vm832_vm1, %v1552_v37  ;;  %v1372_v40 = vpop.xlane.xlu1 %1371  ;;  %v1506_v60 = vmul.f32 %v2321_v43, %v3007_v35  ;;  %v3394_v43 = vld [vmem:[#allocation15_spill] sm:$0xff] }
 0x28a   : > { %v2323_v48 = vpop.eup %2322  ;;  %2332 = vrcp.f32 %v1372_v40  ;;  %1981 = vmatpush3.bf16.xpose.msra.mxu1 %v1599_v22  ;;  %v3395_v22 = vld [vmem:[#allocation2_spill] sm:$0xff] }
 0x28b   : > { %v1327_v47 = vpop.xlane.xlu0 %1326  ;;  %v1521_v1 = vmul.f32 %v2323_v48, %v3012_v0  ;;  %v1553_v55 = vpack.c.bf16 %v1506_v60, %v1505_v36 }
 0x28c   : > { %v2325_v27 = vpop.eup %2324  ;;  %2334 = vrcp.f32 %v1327_v47 }
 0x28d   : > { %v1330_v42 = vpop.xlane.xlu1 %1329  ;;  %v1522_v10 = vmul.f32 %v2325_v27, %v3017_v16  ;;  %v1626_v57 = vsel %vm832_vm1, %v1553_v55, 0  ;;  %v3396_v55 = vld [vmem:[#allocation12_spill] sm:$0xff] }
 0x28e   : > { %2336 = vrcp.f32 %v1330_v42  ;;  %v2327_v46 = vpop.eup %2326 }
 0x28f   : > { %v1375_v17 = vpop.xlane.xlu0 %1374  ;;  %v1561_v7 = vpack.c.bf16 %v1522_v10, %v1521_v1  ;;  %v1507_v56 = vmul.f32 %v2327_v46, %v3023_v20 }
 0x290   : > { %v2329_v52 = vpop.eup %2328  ;;  %2338 = vrcp.f32 %v1375_v17 }
 0x291   : > { %2076 = vmatprep.subr.msk.bf16.mxu1 %vm832_vm1, %v1561_v7  ;;  %v1378_v35 = vpop.xlane.xlu1 %1377  ;;  %1983 = vmatmul.mubr.msk.bf16.vlgmr.msra.gmra.mrb[0].mxu1 %vm832_vm1, %v3114_v49  ;;  %v1508_v11 = vmul.f32 %v2329_v52, %v3031_v5  ;;  %v3397_v7 = vld [vmem:[#allocation4_spill] sm:$0xff] }
 0x292   : > { %v2331_v0 = vpop.eup %2330  ;;  %2340 = vrcp.f32 %v1378_v35  ;;  %1985 = vmatpush3.bf16.xpose.msra.mxu1 %v1626_v57  ;;  %2000 = vmatprep.mubr.msk.bf16.mxu1 %vm832_vm1, %v3114_v49  ;;  %v3398_v57 = vld [vmem:[#allocation14_spill] sm:$0xff] }
 0x293   : > { %v1333_v16 = vpop.xlane.xlu0 %1332  ;;  %v1523_v33 = vmul.f32 %v2331_v0, %v3391_v50  ;;  %v1554_v61 = vpack.c.bf16 %v1508_v11, %v1507_v56  ;;  %v3399_v0 = vld [vmem:[#allocation7_spill] sm:$0xff] }
 0x294   : > { %v2333_v45 = vpop.eup %2332  ;;  %2342 = vrcp.f32 %v1333_v16 }
 0x295   : > { %v1336_v30 = vpop.xlane.xlu1 %1335  ;;  %v1524_v26 = vmul.f32 %v2333_v45, %v3045_v9  ;;  %v1629_v2 = vsel %vm832_vm1, %v1554_v61, 0 }
 0x296   : > { %2344 = vrcp.f32 %v1336_v30  ;;  %v2335_v32 = vpop.eup %2334 }
 0x297   : > { %v1381_v5 = vpop.xlane.xlu0 %1380  ;;  %v1562_v25 = vpack.c.bf16 %v1524_v26, %v1523_v33  ;;  %v1509_v9 = vmul.f32 %v2335_v32, %v3051_v12  ;;  %v3392_v12 = vld [vmem:[#allocation13_spill] sm:$0xff] }
 0x298   : > { %v2337_v13 = vpop.eup %2336  ;;  %2346 = vrcp.f32 %v1381_v5  ;;  %v3400_v26 = vld [vmem:[#allocation17_spill] sm:$0xff] }
 0x299   : > { %2077 = vmatprep.subr.msk.bf16.mxu1 %vm832_vm1, %v1562_v25  ;;  %v1384_v8 = vpop.xlane.xlu1 %1383  ;;  %v1510_v20 = vmul.f32 %v2337_v13, %v3057_v39  ;;  %v3401_v5 = vld [vmem:[#allocation9_spill] sm:$0xff] }
 0x29a   : > { %v2339_v23 = vpop.eup %2338  ;;  %2348 = vrcp.f32 %v1384_v8  ;;  %1987 = vmatpush3.bf16.xpose.msra.mxu1 %v1629_v2  ;;  %v3402_v8 = vld [vmem:[#allocation19_spill] sm:$0xff] }
 0x29b   : > { %v1339_v29 = vpop.xlane.xlu0 %1338  ;;  %v1525_v44 = vmul.f32 %v2339_v23, %v3062_v62  ;;  %v1555_v18 = vpack.c.bf16 %v1510_v20, %v1509_v9  ;;  %v3403_v20 = vld [vmem:[#allocation6_spill] sm:$0xff] }
 0x29c   : > { %v2341_v21 = vpop.eup %2340  ;;  %2350 = vrcp.f32 %v1339_v29 }
 0x29d   : > { %v1342_v63 = vpop.xlane.xlu1 %1341  ;;  %v1526_v28 = vmul.f32 %v2341_v21, %v3067_v6  ;;  %v1632_v53 = vsel %vm832_vm1, %v1555_v18, 0 }
 0x29e   : > { %2352 = vrcp.f32 %v1342_v63  ;;  %v2343_v19 = vpop.eup %2342 }
 0x29f   : > { %v1387_v59 = vpop.xlane.xlu0 %1386  ;;  %v1563_v24 = vpack.c.bf16 %v1526_v28, %v1525_v44  ;;  %v1511_v6 = vmul.f32 %v2343_v19, %v3393_v51 }
 0x2a0   : > { %v2345_v54 = vpop.eup %2344  ;;  %2354 = vrcp.f32 %v1387_v59 }
 0x2a1   : > { %2078 = vmatprep.subr.msk.bf16.mxu1 %vm832_vm1, %v1563_v24  ;;  %v1390_v39 = vpop.xlane.xlu1 %1389  ;;  %v1512_v38 = vmul.f32 %v2345_v54, %v3392_v12  ;;  %v3404_v24 = vld [vmem:[#allocation16_spill] sm:$0xff] }
 0x2a2   : > { %v2347_v14 = vpop.eup %2346  ;;  %2356 = vrcp.f32 %v1390_v39  ;;  %1989 = vmatpush3.bf16.xpose.msra.mxu1 %v1632_v53  ;;  %v3405_v53 = vld [vmem:[#allocation8_spill] sm:$0xff] }
 0x2a3   : > { %v1345_v62 = vpop.xlane.xlu0 %1344  ;;  %v1527_v40 = vmul.f32 %v2347_v14, %v3394_v43  ;;  %v1556_v48 = vpack.c.bf16 %v1512_v38, %v1511_v6 }
 0x2a4   : > { %v2349_v58 = vpop.eup %2348  ;;  %2358 = vrcp.f32 %v1345_v62 }
 0x2a5   : > { %v1348_v37 = vpop.xlane.xlu1 %1347  ;;  %v1528_v60 = vmul.f32 %v2349_v58, %v3395_v22  ;;  %v1635_v10 = vsel %vm832_vm1, %v1556_v48, 0 }
 0x2a6   : > { %2360 = vrcp.f32 %v1348_v37  ;;  %v2351_v47 = vpop.eup %2350 }
 0x2a7   : > { %v1393_v36 = vpop.xlane.xlu0 %1392  ;;  %v1564_v27 = vpack.c.bf16 %v1528_v60, %v1527_v40  ;;  %v1513_v52 = vmul.f32 %v2351_v47, %v3397_v7 }
 0x2a8   : > { %v2353_v42 = vpop.eup %2352  ;;  %2362 = vrcp.f32 %v1393_v36 }
 0x2a9   : > { %2079 = vmatprep.subr.msk.bf16.mxu1 %vm832_vm1, %v1564_v27  ;;  %v1396_v1 = vpop.xlane.xlu1 %1395  ;;  %v1514_v46 = vmul.f32 %v2353_v42, %v3396_v55 }
 0x2aa   : > { %v2355_v17 = vpop.eup %2354  ;;  %2364 = vrcp.f32 %v1396_v1  ;;  %1991 = vmatpush3.bf16.xpose.msra.mxu1 %v1635_v10 }
 0x2ab   : > { %v1529_v11 = vmul.f32 %v2355_v17, %v3398_v57  ;;  %v1557_v56 = vpack.c.bf16 %v1514_v46, %v1513_v52  ;;  %v1351_v44 = vpop.xlane.xlu0 %1350 }
 0x2ac   : > { %v2357_v35 = vpop.eup %2356 }
 0x2ad   : > { %v1530_v16 = vmul.f32 %v2357_v35, %v3399_v0  ;;  %v1638_v33 = vsel %vm832_vm1, %v1557_v56, 0  ;;  %v1354_v63 = vpop.xlane.xlu1 %1353 }
 0x2ae   : > { %v2359_v45 = vpop.eup %2358  ;;  %2366 = vrcp.f32 %v1354_v63 }
 0x2af   : > { %v1565_v30 = vpack.c.bf16 %v1530_v16, %v1529_v11  ;;  %v1515_v25 = vmul.f32 %v2359_v45, %v3401_v5  ;;  %2368 = vrcp.f32 %v1351_v44 }
 0x2b0   : > { %v2361_v50 = vpop.eup %2360 }
 0x2b1   : > { %2080 = vmatprep.subr.msk.bf16.mxu1 %vm832_vm1, %v1565_v30  ;;  %v1516_v61 = vmul.f32 %v2361_v50, %v3400_v26 }
 0x2b2   : > { %v2363_v32 = vpop.eup %2362  ;;  %1993 = vmatpush3.bf16.xpose.msra.mxu1 %v1638_v33 }
 0x2b3   : > { %v1531_v2 = vmul.f32 %v2363_v32, %v3402_v8  ;;  %v1558_v29 = vpack.c.bf16 %v1516_v61, %v1515_v25 }
 0x2b4   : > { %v2365_v13 = vpop.eup %2364 }
 0x2b5   : > { %v1532_v23 = vmul.f32 %v2365_v13, %v3403_v20  ;;  %v1641_v21 = vsel %vm832_vm1, %v1558_v29, 0 }
 0x2b7   : > { %v1566_v9 = vpack.c.bf16 %v1532_v23, %v1531_v2 }
 0x2b8   : > { %v2367_v19 = vpop.eup %2366 }
 0x2b9   : > { %2081 = vmatprep.subr.msk.bf16.mxu1 %vm832_vm1, %v1566_v9  ;;  %v2369_v59 = vpop.eup %2368  ;;  %v1518_v54 = vmul.f32 %v2367_v19, %v3404_v24 }
 0x2ba   : > { %1995 = vmatpush3.bf16.xpose.msra.mxu1 %v1641_v21  ;;  %v1517_v12 = vmul.f32 %v2369_v59, %v3405_v53 }
 0x2bc   : > { %v1559_v51 = vpack.c.bf16 %v1518_v54, %v1517_v12 }
 0x2be   : > { %v1644_v43 = vsel %vm832_vm1, %v1559_v51, 0 }
 0x2e1   : > { %v1399_v28 = vpop.xlane.xlu0 %1398 }
 0x2e2   : > { %2370 = vrcp.f32 %v1399_v28 }
 0x2e3   : > { %v1402_v18 = vpop.xlane.xlu1 %1401 }
 0x2e4   : > { %2372 = vrcp.f32 %v1402_v18 }
 0x2ec   : > { %v2371_v39 = vpop.eup %2370 }
 0x2ed   : > { %v1533_v14 = vmul.f32 %v2371_v39, %v3157_v3 }
 0x2ee   : > { %v2373_v38 = vpop.eup %2372 }
 0x2ef   : > { %v1534_v62 = vmul.f32 %v2373_v38, %v3163_v31 }
 0x2f1   : > { %v1357_v6 = vpop.xlane.xlu0 %1356  ;;  %v1567_v58 = vpack.c.bf16 %v1534_v62, %v1533_v14 }
 0x2f2   : > { %2374 = vrcp.f32 %v1357_v6 }
 0x2f3   : > { %2082 = vmatprep.subr.msk.bf16.mxu1 %vm832_vm1, %v1567_v58  ;;  %v1360_v37 = vpop.xlane.xlu1 %1359 }
 0x2f4   : > { %2376 = vrcp.f32 %v1360_v37  ;;  %1997 = vmatpush3.bf16.xpose.msra.mxu1 %v1644_v43 }
 0x2f5   : > { %v1405_v40 = vpop.xlane.xlu0 %1404 }
 0x2f6   : > { %2378 = vrcp.f32 %v1405_v40 }
 0x2f7   : > { %v1408_v22 = vpop.xlane.xlu1 %1407 }
 0x2f8   : > { %2380 = vrcp.f32 %v1408_v22 }
 0x2fc   : > { %v2375_v60 = vpop.eup %2374 }
 0x2fd   : > { %v1519_v47 = vmul.f32 %v2375_v60, %v3181_v41 }
 0x2fe   : > { %v2377_v3 = vpop.eup %2376 }
 0x2ff   : > { %v1520_v31 = vmul.f32 %v2377_v3, %v3187_v15 }
 0x300   : > { %v2379_v48 = vpop.eup %2378 }
 0x301   : > { %v1535_v27 = vmul.f32 %v2379_v48, %v3191_v34  ;;  %v1560_v1 = vpack.c.bf16 %v1520_v31, %v1519_v47 }
 0x302   : > { %v2381_v36 = vpop.eup %2380 }
 0x303   : > { %v1536_v42 = vmul.f32 %v2381_v36, %v3195_v4  ;;  %v1647_v55 = vsel %vm832_vm1, %v1560_v1, 0 }
 0x305   : > { %v1568_v10 = vpack.c.bf16 %v1536_v42, %v1535_v27 }
 0x307   : > { %2083 = vmatprep.subr.msk.bf16.mxu1 %vm832_vm1, %v1568_v10 }
 0x308   : > { %1999 = vmatpush3.bf16.xpose.msra.mxu1 %v1647_v55 }
 0x30f   : > { %2001 = vmatmul.mubr.msk.bf16.vlgmr.msra.gmra.mrb[4].mxu1 %vm832_vm1, %v3114_v49 }
 0x364   : > { %v1707_v41 = vpop.f32.mrb[0].mxu1 }
 0x365   : > { %1759 = vst [vmem:[%s210_s28] sm:$0xff] %v1707_v41  ;;  %v1709_v15 = vpop.f32.mrb[1].mxu1 }
 0x366   : > { %1760 = vst [vmem:[%s210_s28 + $0x8] sm:$0xff] %v1709_v15  ;;  %v1711_v34 = vpop.f32.mrb[2].mxu1 }
 0x367   : > { %1763 = vst [vmem:[%s210_s28 + $0x20] sm:$0xff] %v1711_v34  ;;  %v1713_v4 = vpop.f32.mrb[3].mxu1 }
 0x368   : > { %1764 = vst [vmem:[%s210_s28 + $0x28] sm:$0xff] %v1713_v4 }
 0x3e2   : > { %v1750_v46 = vpop.f32.mrb[4].mxu1 }
 0x3e3   : > { %1761 = vst [vmem:[%s210_s28 + $0x10] sm:$0xff] %v1750_v46  ;;  %v1752_v17 = vpop.f32.mrb[5].mxu1 }
 0x3e4   : > { %1762 = vst [vmem:[%s210_s28 + $0x18] sm:$0xff] %v1752_v17  ;;  %v1754_v7 = vpop.f32.mrb[6].mxu1 }
 0x3e5   : > { %1765 = vst [vmem:[%s210_s28 + $0x30] sm:$0xff] %v1754_v7  ;;  %v1756_v49 = vpop.f32.mrb[7].mxu1 }
 0x3e6   : > { %1766 = vst [vmem:[%s210_s28 + $0x38] sm:$0xff] %v1756_v49 }
 0x3e7 PF: > { %s13_s12 = sadd.s32 1, %s2388_s12  }
 0x3e8   : > { %p10_p4 = scmp.ge.s32.totalorder %s13_s12, 4  }
 0x3ea   :  { %12 = sbr.rel (!%p10_p4) target bundleno = 1 (0x1), region = 68 }

// kernel: network_forward.179
= control target key start
LH: loop header
LB: loop body
LE: loop exit
PB: predicated region body
PF: predicated region fallthrough
CT: control target
= control target key end

     0   :  { %s660_s15 = smov 0   ;;  %s662_s16 = smov 0   ;;  %s746_s0 = inlined_call_operand.vmem [shape: bf16[16,16], index: 0, kind: input, shape index: {}]   ;;  %s747_s1 = inlined_call_operand.vmem [shape: bf16[16,1024], index: 1, kind: input, shape index: {}]   ;;  %s748_s2 = inlined_call_operand.vmem [shape: f32[16,1], index: 2, kind: input, shape index: {}]   ;;  %s749_s3 = inlined_call_operand.vmem [shape: f32[16,1024], index: 3, kind: input, shape index: {}]   ;;  %s750_s4 = inlined_call_operand.vmem [shape: f32[16,1024], index: 4, kind: output, shape index: {}]  }
   0x1   :  { %s664_s17 = smov 0  }
   0x2 LB: > { %s548_s18 = sadd.s32 4294967295, %s632_s17   ;;  %s677_s19 = sadd.s32 1, %s632_s17   ;;  %s632_s17 = sphi %s664_s17, %s755_s17   ;;  %s628_s16 = sphi %s662_s16, %s754_s16   ;;  %s624_s15 = sphi %s660_s15, %s753_s15  }
   0x3   : > { %s39_s20 = ssub.s32 %s632_s17, %s677_s19  ;;  %s42_s21 = sadd.s32 1, %s628_s16 }
   0x4   : > { %p40_p0 = scmp.eq.s32.totalorder %s39_s20, 0  ;;  %p49_p1 = scmp.ne.s32.totalorder %s628_s16, %s624_s15 }
   0x5   : > { %p50_p2 = scmp.eq.s32.totalorder %s632_s17, 0  ;;  %p126_p3 = scmp.eq.s32.totalorder %s548_s18, 1 }
   0x6   : > { %s688_s22 = scalar_select %p40_p0, %s628_s16, %s42_s21  }
   0x7   : > { %p690_p4 = por %p50_p2, %p49_p1  ;;  %p694_p5 = por %p126_p3, %p49_p1 }
   0x8   : > { %p551_p6 = scmp.ge.s32.totalorder %s632_s17, 2 }
   0xa   : > { %154 = sbr.rel (%p551_p6) target bundleno = 32 (0x20), region = 24 }
  0x11   : > { %157 = sbr.rel (!%p690_p4) target bundleno = 24 (0x18), region = 28  ;;  %s159_s25 = sand.u32 (%p690_p4), 1, %s628_s16  }
  0x12   : > { %s574_s26 = sshll.u32 (%p690_p4), %s632_s17, 4  ;;  %s552_s27 = sshll.u32 (%p690_p4), %s159_s25, 5 }
  0x13   : > { %s164_s30 = scalar_lea.vmem (%p690_p4), %s747_s1, %s574_s26  ;;  %s161_s5 = scalar_lea.vmem (%p690_p4), [#allocation2], %s552_s27 }
  0x14   : > { %v177_v0 = vld [vmem:[%s164_s30] sm:$0xff] (%p690_p4)  ;;  %v179_v1 = vld [vmem:[%s164_s30 + $0x8] sm:$0xff] (%p690_p4) }
  0x15   : > { %v181_v2 = vld [vmem:[%s164_s30 + $0x20] sm:$0xff] (%p690_p4)  ;;  %178 = vst [vmem:[%s161_s5] sm:$0xff] (%p690_p4), %v177_v0  ;;  %180 = vst [vmem:[%s161_s5 + $0x8] sm:$0xff] (%p690_p4), %v179_v1  ;;  %v183_v3 = vld [vmem:[%s164_s30 + $0x28] sm:$0xff] (%p690_p4) }
  0x16   : > { %182 = vst [vmem:[%s161_s5 + $0x10] sm:$0xff] (%p690_p4), %v181_v2  ;;  %184 = vst [vmem:[%s161_s5 + $0x18] sm:$0xff] (%p690_p4), %v183_v3 }
  0x18 PF: > { %190 = sbr.rel (!%p690_p4) target bundleno = 32 (0x20), region = 51  ;;  %s192_s6 = sand.u32 (%p690_p4), 1, %s628_s16  }
  0x19   : > { %s575_s7 = sshll.u32 (%p690_p4), %s632_s17, 5  ;;  %s555_s8 = sshll.u32 (%p690_p4), %s192_s6, 6 }
  0x1a   : > { %s197_s11 = scalar_lea.vmem (%p690_p4), %s749_s3, %s575_s7  ;;  %s194_s12 = scalar_lea.vmem (%p690_p4), [#allocation3], %s555_s8 }
  0x1b   : > { %v210_v4 = vld [vmem:[%s197_s11] sm:$0xff] (%p690_p4)  ;;  %v212_v5 = vld [vmem:[%s197_s11 + $0x8] sm:$0xff] (%p690_p4)  ;;  %v214_v6 = vld [vmem:[%s197_s11 + $0x10] sm:$0xff] (%p690_p4) }
  0x1c   : > { %211 = vst [vmem:[%s194_s12] sm:$0xff] (%p690_p4), %v210_v4  ;;  %213 = vst [vmem:[%s194_s12 + $0x8] sm:$0xff] (%p690_p4), %v212_v5  ;;  %v216_v7 = vld [vmem:[%s197_s11 + $0x18] sm:$0xff] (%p690_p4)  ;;  %v218_v8 = vld [vmem:[%s197_s11 + $0x40] sm:$0xff] (%p690_p4) }
  0x1d   : > { %215 = vst [vmem:[%s194_s12 + $0x10] sm:$0xff] (%p690_p4), %v214_v6  ;;  %v220_v9 = vld [vmem:[%s197_s11 + $0x48] sm:$0xff] (%p690_p4)  ;;  %217 = vst [vmem:[%s194_s12 + $0x18] sm:$0xff] (%p690_p4), %v216_v7  ;;  %v222_v10 = vld [vmem:[%s197_s11 + $0x50] sm:$0xff] (%p690_p4) }
  0x1e   : > { %219 = vst [vmem:[%s194_s12 + $0x20] sm:$0xff] (%p690_p4), %v218_v8  ;;  %221 = vst [vmem:[%s194_s12 + $0x28] sm:$0xff] (%p690_p4), %v220_v9  ;;  %v224_v11 = vld [vmem:[%s197_s11 + $0x58] sm:$0xff] (%p690_p4) }
  0x1f   : > { %223 = vst [vmem:[%s194_s12 + $0x30] sm:$0xff] %v222_v10  ;;  %225 = vst [vmem:[%s194_s12 + $0x38] sm:$0xff] %v224_v11 }
  0x20 PF: > { %p558_p7 = scmp.ge.s32.totalorder %s632_s17, 1  ;;  %p230_p8 = scmp.lt.s32.totalorder %s632_s17, 3 }
  0x22   : > { %p231_p9 = pnand %p558_p7, %p230_p8 }
  0x23   : > { %s237_s13 = sand.u32 (!%p231_p9), 1, %s624_s15   ;;  %v634_v12 = vmov (!%p231_p9), 0   ;;  %v282_v13 = vld [vmem:[%s748_s2] sm:$0xff] (!%p231_p9)  ;;  %v283_v18 = vld [vmem:[%s748_s2 + $0x8] sm:$0xff] (!%p231_p9)  ;;  %vm319_vm0 = vcmask (!%p231_p9), 130048  }
  0x24   : > { %234 = sbr.rel (%p231_p9) target bundleno = 271 (0x10f), region = 74  ;;  %s559_s14 = sshll.u32 (!%p231_p9), %s237_s13, 5  ;;  %355 = vmatprep.mubr.bf16.mxu0 (!%p231_p9), %v634_v12  ;;  %398 = vmatprep.mubr.bf16.mxu1 (!%p231_p9), %v634_v12  ;;  %v609_v19 = vld [vmem:[%s746_s0] sm:$0xff] (!%p231_p9)  }
  0x25   : > { %602 = vset.pattern.permute.xlu0 (!%p231_p9), %v634_v12  ;;  %s239_s23 = scalar_lea.vmem (!%p231_p9), [#allocation2], %s559_s14  ;;  %s725_s28 = sshll.u32 (!%p231_p9), %s237_s13, 6 }
  0x26   : > { %v603_v14 = vld [vmem:[%s239_s23 + $0x4] ss:$16 sps:$4 sm:$0xff] (!%p231_p9)   ;;  %286 = vperm.xlu0 (!%p231_p9), %602, %v282_v13   ;;  %v605_v15 = vld [vmem:[%s239_s23 + $0xc] ss:$16 sps:$4 sm:$0xff] (!%p231_p9)   ;;  %v607_v16 = vld [vmem:[%s239_s23] ss:$16 sps:$4 sm:$0xff] (!%p231_p9)  }
  0x27   : > { %323 = vmatprep.subr.bf16.mxu0 (!%p231_p9), %v603_v14  ;;  %v608_v17 = vld [vmem:[%s239_s23 + $0x8] ss:$16 sps:$4 sm:$0xff] (!%p231_p9)   ;;  %366 = vmatprep.subr.bf16.mxu1 (!%p231_p9), %v605_v15  ;;  %s246_s29 = scalar_lea.vmem (!%p231_p9), [#allocation3], %s725_s28  ;;  %s271_s30 = scalar_lea.vmem (!%p231_p9), [#allocation4], %s725_s28 }
  0x28   : > { %324 = vmatpush1.bf16.msra.mxu0 (!%p231_p9), %v607_v16  ;;  %367 = vmatpush1.bf16.msra.mxu1 (!%p231_p9), %v608_v17  ;;  %v409_v23 = vld [vmem:[%s246_s29] sm:$0xff] (!%p231_p9)  ;;  %v411_v25 = vld [vmem:[%s246_s29 + $0x10] sm:$0xff] (!%p231_p9)  ;;  %v410_v29 = vld [vmem:[%s246_s29 + $0x8] sm:$0xff] (!%p231_p9) }
  0x29   : > { %v412_v31 = vld [vmem:[%s246_s29 + $0x18] sm:$0xff] (!%p231_p9)  ;;  %v413_v35 = vld [vmem:[%s246_s29 + $0x20] sm:$0xff] (!%p231_p9)  ;;  %v415_v37 = vld [vmem:[%s246_s29 + $0x30] sm:$0xff] (!%p231_p9) }
  0x2a   : > { %291 = vperm.xlu0 (!%p231_p9), %602, %v283_v18   ;;  %v414_v43 = vld [vmem:[%s246_s29 + $0x28] sm:$0xff] (!%p231_p9)  ;;  %v416_v45 = vld [vmem:[%s246_s29 + $0x38] sm:$0xff] (!%p231_p9) }
  0x2b   : > { %567 = vmatmul.mubr.msk.bf16.vlgmr.msra.gmra.mrb[0].mxu0 %vm319_vm0, %v609_v19  ;;  %568 = vmatmul.mubr.msk.bf16.vlgmr.msra.gmra.mrb[0].mxu1 %vm319_vm0, %v609_v19  ;;  %s576_s5 = sshll.u32 (%p694_p5), %s548_s18, 5 }
  0x2c   : > { %s442_s8 = scalar_lea.vmem (%p694_p5), %s750_s4, %s576_s5 }
  0xa5   : > { %v287_v20 = vpop.permute.xlu0 %286 }
  0xa9   : > { %v292_v21 = vpop.permute.xlu0 %291 }
  0xfe   : > { %v357_v22 = vpop.f32.mrb[0].mxu0  ;;  %v400_v24 = vpop.f32.mrb[0].mxu1 }
  0xff   : > { %v358_v26 = vadd.f32 %v357_v22, %v287_v20  ;;  %v401_v27 = vadd.f32 %v400_v24, %v287_v20  ;;  %v359_v28 = vpop.f32.mrb[1].mxu0  ;;  %v402_v30 = vpop.f32.mrb[1].mxu1 }
 0x100   : > { %v360_v32 = vadd.f32 %v359_v28, %v287_v20  ;;  %v403_v33 = vadd.f32 %v402_v30, %v287_v20  ;;  %v361_v34 = vpop.f32.mrb[2].mxu0  ;;  %v404_v36 = vpop.f32.mrb[2].mxu1  ;;  %439 = sbr.rel (!%p694_p5) target bundleno = 271 (0x10f), region = 86 }
 0x101   : > { %v417_v38 = vadd.f32 %v409_v23, %v358_v26  ;;  %v419_v39 = vadd.f32 %v411_v25, %v401_v27  ;;  %v362_v40 = vadd.f32 %v361_v34, %v292_v21  ;;  %v405_v41 = vadd.f32 %v404_v36, %v292_v21  ;;  %v363_v42 = vpop.f32.mrb[3].mxu0  ;;  %v406_v44 = vpop.f32.mrb[3].mxu1 }
 0x102   : > { %v418_v46 = vadd.f32 %v410_v29, %v360_v32  ;;  %v420_v47 = vadd.f32 %v412_v31, %v403_v33  ;;  %v364_v48 = vadd.f32 %v363_v42, %v292_v21  ;;  %v407_v49 = vadd.f32 %v406_v44, %v292_v21 }
 0x103   : > { %425 = vst [vmem:[%s271_s30] sm:$0xff] %v417_v38  ;;  %427 = vst [vmem:[%s271_s30 + $0x10] sm:$0xff] %v419_v39  ;;  %v421_v50 = vadd.f32 %v413_v35, %v362_v40  ;;  %v423_v51 = vadd.f32 %v415_v37, %v405_v41 }
 0x104   : > { %426 = vst [vmem:[%s271_s30 + $0x8] sm:$0xff] %v418_v46  ;;  %428 = vst [vmem:[%s271_s30 + $0x18] sm:$0xff] %v420_v47  ;;  %v422_v52 = vadd.f32 %v414_v43, %v364_v48  ;;  %v424_v53 = vadd.f32 %v416_v45, %v407_v49 }
 0x105   : > { %429 = vst [vmem:[%s271_s30 + $0x20] sm:$0xff] %v421_v50  ;;  %431 = vst [vmem:[%s271_s30 + $0x30] sm:$0xff] %v423_v51 }
 0x106   : > { %430 = vst [vmem:[%s271_s30 + $0x28] sm:$0xff] %v422_v52  ;;  %432 = vst [vmem:[%s271_s30 + $0x38] sm:$0xff] %v424_v53 }
 0x10a   : > { %v455_v54 = vld [vmem:[%s271_s30] sm:$0xff]  ;;  %v459_v56 = vld [vmem:[%s271_s30 + $0x10] sm:$0xff] }
 0x10b   : > { %v457_v55 = vld [vmem:[%s271_s30 + $0x8] sm:$0xff]  ;;  %v461_v57 = vld [vmem:[%s271_s30 + $0x18] sm:$0xff]  ;;  %456 = vst [vmem:[%s442_s8] sm:$0xff] %v455_v54  ;;  %460 = vst [vmem:[%s442_s8 + $0x10] sm:$0xff] %v459_v56 }
 0x10c   : > { %v463_v58 = vld [vmem:[%s271_s30 + $0x20] sm:$0xff]  ;;  %458 = vst [vmem:[%s442_s8 + $0x8] sm:$0xff] %v457_v55  ;;  %462 = vst [vmem:[%s442_s8 + $0x18] sm:$0xff] %v461_v57  ;;  %v467_v60 = vld [vmem:[%s271_s30 + $0x30] sm:$0xff] }
 0x10d   : > { %v465_v59 = vld [vmem:[%s271_s30 + $0x28] sm:$0xff]  ;;  %464 = vst [vmem:[%s442_s8 + $0x40] sm:$0xff] %v463_v58  ;;  %v469_v61 = vld [vmem:[%s271_s30 + $0x38] sm:$0xff]  ;;  %468 = vst [vmem:[%s442_s8 + $0x50] sm:$0xff] %v467_v60 }
 0x10e   : > { %466 = vst [vmem:[%s442_s8 + $0x48] sm:$0xff] %v465_v59  ;;  %470 = vst [vmem:[%s442_s8 + $0x58] sm:$0xff] %v469_v61 }
 0x10f PF: > { %p11_p10 = scmp.ge.s32.totalorder %s677_s19, 4   ;;  %s753_s15 = smov %s628_s16 }
 0x110   : > { %s754_s16 = smov %s688_s22  ;;  %s755_s17 = smov %s677_s19 }
 0x111   :  { %13 = sbr.rel (!%p11_p10) target bundleno = 2 (0x2), region = 148 }

// kernel: network_forward.180
= control target key start
LH: loop header
LB: loop body
LE: loop exit
PB: predicated region body
PF: predicated region fallthrough
CT: control target
= control target key end

     0   :  { %s479_s12 = smov 0   ;;  %s481_s13 = smov 0   ;;  %s551_s0 = inlined_call_operand.vmem [shape: f32[16,1024], index: 0, kind: input, shape index: {}]   ;;  %s552_s1 = inlined_call_operand.vmem [shape: f32[16,1], index: 1, kind: input, shape index: {}]   ;;  %s553_s2 = inlined_call_operand.vmem [shape: f32[16,1], index: 2, kind: input, shape index: {}]   ;;  %s554_s3 = inlined_call_operand.vmem [shape: bf16[16,1024], index: 3, kind: output, shape index: {}]  }
   0x1   :  { %s483_s14 = smov 0  }
   0x2 LB: > { %s382_s15 = sadd.s32 4294967295, %s456_s14   ;;  %s496_s16 = sadd.s32 1, %s456_s14   ;;  %s456_s14 = sphi %s483_s14, %s558_s14   ;;  %s452_s13 = sphi %s481_s13, %s557_s13   ;;  %s448_s12 = sphi %s479_s12, %s556_s12  }
   0x3   : > { %s17_s17 = ssub.s32 %s456_s14, %s496_s16  ;;  %s20_s18 = sadd.s32 1, %s452_s13 }
   0x4   : > { %p18_p0 = scmp.eq.s32.totalorder %s17_s17, 0  ;;  %p27_p1 = scmp.ne.s32.totalorder %s452_s13, %s448_s12 }
   0x5   : > { %p28_p2 = scmp.eq.s32.totalorder %s456_s14, 0  ;;  %p99_p3 = scmp.eq.s32.totalorder %s382_s15, 1 }
   0x6   : > { %s507_s19 = scalar_select %p18_p0, %s452_s13, %s20_s18  }
   0x7   : > { %p29_p4 = por %p28_p2, %p27_p1  ;;  %p509_p5 = por %p99_p3, %p27_p1 }
   0x8   : > { %p385_p6 = scmp.ge.s32.totalorder %s456_s14, 2 }
   0xa   : > { %127 = sbr.rel (%p385_p6) target bundleno = 25 (0x19), region = 24 }
  0x11   : > { %130 = sbr.rel (!%p29_p4) target bundleno = 25 (0x19), region = 28  ;;  %s132_s21 = sand.u32 (%p29_p4), 1, %s452_s13  }
  0x12   : > { %s401_s22 = sshll.u32 (%p29_p4), %s456_s14, 5  ;;  %s386_s23 = sshll.u32 (%p29_p4), %s132_s21, 6 }
  0x13   : > { %s137_s26 = scalar_lea.vmem (%p29_p4), %s551_s0, %s401_s22  ;;  %s134_s27 = scalar_lea.vmem (%p29_p4), [#allocation2], %s386_s23 }
  0x14   : > { %v150_v0 = vld [vmem:[%s137_s26] sm:$0xff] (%p29_p4)  ;;  %v152_v1 = vld [vmem:[%s137_s26 + $0x8] sm:$0xff] (%p29_p4)  ;;  %v154_v2 = vld [vmem:[%s137_s26 + $0x10] sm:$0xff] (%p29_p4) }
  0x15   : > { %151 = vst [vmem:[%s134_s27] sm:$0xff] (%p29_p4), %v150_v0  ;;  %153 = vst [vmem:[%s134_s27 + $0x8] sm:$0xff] (%p29_p4), %v152_v1  ;;  %v156_v3 = vld [vmem:[%s137_s26 + $0x18] sm:$0xff] (%p29_p4)  ;;  %v158_v4 = vld [vmem:[%s137_s26 + $0x40] sm:$0xff] (%p29_p4) }
  0x16   : > { %155 = vst [vmem:[%s134_s27 + $0x10] sm:$0xff] (%p29_p4), %v154_v2  ;;  %v160_v5 = vld [vmem:[%s137_s26 + $0x48] sm:$0xff] (%p29_p4)  ;;  %157 = vst [vmem:[%s134_s27 + $0x18] sm:$0xff] (%p29_p4), %v156_v3  ;;  %v162_v6 = vld [vmem:[%s137_s26 + $0x50] sm:$0xff] (%p29_p4) }
  0x17   : > { %159 = vst [vmem:[%s134_s27 + $0x20] sm:$0xff] (%p29_p4), %v158_v4  ;;  %161 = vst [vmem:[%s134_s27 + $0x28] sm:$0xff] (%p29_p4), %v160_v5  ;;  %v164_v7 = vld [vmem:[%s137_s26 + $0x58] sm:$0xff] (%p29_p4) }
  0x18   : > { %163 = vst [vmem:[%s134_s27 + $0x30] sm:$0xff] %v162_v6  ;;  %165 = vst [vmem:[%s134_s27 + $0x38] sm:$0xff] %v164_v7 }
  0x19 PF: > { %p389_p7 = scmp.ge.s32.totalorder %s456_s14, 1  ;;  %p170_p8 = scmp.lt.s32.totalorder %s456_s14, 3 }
  0x1b   : > { %p171_p9 = pnand %p389_p7, %p170_p8 }
  0x1c   : > { %v229_v8 = vld [vmem:[%s553_s2] sm:$0xff] (!%p171_p9)  ;;  %v458_v10 = vmov (!%p171_p9), 0   ;;  %v230_v11 = vld [vmem:[%s553_s2 + $0x8] sm:$0xff] (!%p171_p9)  ;;  %s177_s9 = sand.u32 (!%p171_p9), 1, %s448_s12  }
  0x1d   : > { %174 = sbr.rel (%p171_p9) target bundleno = 182 (0xb6), region = 51  ;;  %v209_v9 = vld [vmem:[%s552_s1] sm:$0xff] (!%p171_p9)  ;;  %433 = vset.pattern.permute.xlu1 (!%p171_p9), %v458_v10  ;;  %432 = vset.pattern.permute.xlu0 (!%p171_p9), %v458_v10  ;;  %v210_v12 = vld [vmem:[%s552_s1 + $0x8] sm:$0xff] (!%p171_p9)  ;;  %s390_s10 = sshll.u32 (!%p171_p9), %s177_s9, 6 }
  0x1e   : > { %233 = vperm.xlu1 (!%p171_p9), %433, %v229_v8   ;;  %213 = vperm.xlu0 (!%p171_p9), %432, %v209_v9   ;;  %s179_s11 = scalar_lea.vmem (!%p171_p9), [#allocation2], %s390_s10  ;;  %s391_s12 = sshll.u32 (!%p171_p9), %s177_s9, 5 }
  0x1f   : > { %v201_v13 = vld [vmem:[%s179_s11] sm:$0xff] (!%p171_p9)  ;;  %v202_v14 = vld [vmem:[%s179_s11 + $0x8] sm:$0xff] (!%p171_p9)  ;;  %v203_v15 = vld [vmem:[%s179_s11 + $0x10] sm:$0xff] (!%p171_p9)  ;;  %s198_s17 = scalar_lea.vmem (!%p171_p9), [#allocation3], %s391_s12 }
  0x20   : > { %v204_v16 = vld [vmem:[%s179_s11 + $0x18] sm:$0xff] (!%p171_p9)  ;;  %v205_v23 = vld [vmem:[%s179_s11 + $0x20] sm:$0xff] (!%p171_p9)  ;;  %v206_v28 = vld [vmem:[%s179_s11 + $0x28] sm:$0xff] (!%p171_p9) }
  0x21   : > { %v207_v29 = vld [vmem:[%s179_s11 + $0x30] sm:$0xff] (!%p171_p9)  ;;  %v208_v30 = vld [vmem:[%s179_s11 + $0x38] sm:$0xff] (!%p171_p9) }
  0x22   : > { %238 = vperm.xlu1 (!%p171_p9), %433, %v230_v11   ;;  %218 = vperm.xlu0 (!%p171_p9), %432, %v210_v12  }
  0x24   : > { %s406_s18 = sshll.u32 (%p509_p5), %s382_s15, 4 }
  0x25   : > { %s302_s23 = scalar_lea.vmem (%p509_p5), %s554_s3, %s406_s18 }
  0x9d   : > { %v214_v17 = vpop.permute.xlu0 %213  ;;  %v234_v18 = vpop.permute.xlu1 %233 }
  0x9e   : > { %v221_v19 = vmul.f32 %v214_v17, %v201_v13  ;;  %v222_v20 = vmul.f32 %v214_v17, %v202_v14  ;;  %v223_v21 = vmul.f32 %v214_v17, %v203_v15  ;;  %v224_v22 = vmul.f32 %v214_v17, %v204_v16 }
  0xa0   : > { %v241_v24 = vadd.f32 %v234_v18, %v221_v19  ;;  %v242_v25 = vadd.f32 %v234_v18, %v222_v20  ;;  %v243_v26 = vadd.f32 %v234_v18, %v223_v21  ;;  %v244_v27 = vadd.f32 %v234_v18, %v224_v22 }
  0xa1   : > { %v219_v31 = vpop.permute.xlu0 %218  ;;  %v239_v44 = vpop.permute.xlu1 %238 }
  0xa2   : > { %v249_v32 = vmax.f32 %v241_v24, 0.0  ;;  %v250_v33 = vmax.f32 %v242_v25, 0.0  ;;  %v251_v34 = vmax.f32 %v243_v26, 0.0  ;;  %v252_v35 = vmax.f32 %v244_v27, 0.0 }
  0xa3   : > { %v225_v36 = vmul.f32 %v219_v31, %v205_v23  ;;  %v226_v37 = vmul.f32 %v219_v31, %v206_v28  ;;  %v227_v38 = vmul.f32 %v219_v31, %v207_v29  ;;  %v228_v39 = vmul.f32 %v219_v31, %v208_v30 }
  0xa4   : > { %v257_v40 = vmin.f32 %v249_v32, 6.0  ;;  %v258_v41 = vmin.f32 %v250_v33, 6.0  ;;  %v259_v42 = vmin.f32 %v251_v34, 6.0  ;;  %v260_v43 = vmin.f32 %v252_v35, 6.0 }
  0xa5   : > { %v245_v45 = vadd.f32 %v239_v44, %v225_v36  ;;  %v246_v46 = vadd.f32 %v239_v44, %v226_v37  ;;  %v247_v47 = vadd.f32 %v239_v44, %v227_v38  ;;  %v248_v48 = vadd.f32 %v239_v44, %v228_v39 }
  0xa6   : > { %v402_v49 = vpack.c.bf16 %v258_v41, %v257_v40  ;;  %v403_v50 = vpack.c.bf16 %v260_v43, %v259_v42 }
  0xa7   : > { %v253_v51 = vmax.f32 %v245_v45, 0.0  ;;  %v254_v52 = vmax.f32 %v246_v46, 0.0  ;;  %v255_v53 = vmax.f32 %v247_v47, 0.0  ;;  %v256_v54 = vmax.f32 %v248_v48, 0.0  ;;  %299 = sbr.rel (!%p509_p5) target bundleno = 182 (0xb6), region = 59 }
  0xa8   : > { %289 = vst [vmem:[%s198_s17] sm:$0xff] %v402_v49  ;;  %290 = vst [vmem:[%s198_s17 + $0x8] sm:$0xff] %v403_v50 }
  0xa9   : > { %v261_v55 = vmin.f32 %v253_v51, 6.0  ;;  %v262_v56 = vmin.f32 %v254_v52, 6.0  ;;  %v263_v57 = vmin.f32 %v255_v53, 6.0  ;;  %v264_v58 = vmin.f32 %v256_v54, 6.0 }
  0xab   : > { %v404_v59 = vpack.c.bf16 %v262_v56, %v261_v55  ;;  %v405_v60 = vpack.c.bf16 %v264_v58, %v263_v57 }
  0xad   : > { %291 = vst [vmem:[%s198_s17 + $0x10] sm:$0xff] %v404_v59  ;;  %292 = vst [vmem:[%s198_s17 + $0x18] sm:$0xff] %v405_v60 }
  0xaf   : > { %v315_v61 = vld [vmem:[%s198_s17] sm:$0xff]  ;;  %v317_v62 = vld [vmem:[%s198_s17 + $0x8] sm:$0xff] }
  0xb0   : > { %316 = vst [vmem:[%s302_s23] sm:$0xff] %v315_v61  ;;  %318 = vst [vmem:[%s302_s23 + $0x8] sm:$0xff] %v317_v62 }
  0xb4   : > { %v319_v63 = vld [vmem:[%s198_s17 + $0x10] sm:$0xff]  ;;  %v321_v0 = vld [vmem:[%s198_s17 + $0x18] sm:$0xff] }
  0xb5   : > { %320 = vst [vmem:[%s302_s23 + $0x20] sm:$0xff] %v319_v63  ;;  %322 = vst [vmem:[%s302_s23 + $0x28] sm:$0xff] %v321_v0 }
  0xb6 PF: > { %p10_p10 = scmp.ge.s32.totalorder %s496_s16, 4   ;;  %s556_s12 = smov %s452_s13 }
  0xb7   : > { %s557_s13 = smov %s507_s19  ;;  %s558_s14 = smov %s496_s16 }
  0xb8   :  { %12 = sbr.rel (!%p10_p10) target bundleno = 2 (0x2), region = 113 }

// kernel: network_forward.183
= control target key start
LH: loop header
LB: loop body
LE: loop exit
PB: predicated region body
PF: predicated region fallthrough
CT: control target
= control target key end

     0   :  { %s1878_s15 = smov 0   ;;  %s1880_s16 = smov 0   ;;  %s2307_s0 = inlined_call_operand.vmem [shape: bf16[16,432], index: 0, kind: input, shape index: {}]   ;;  %s2308_s1 = inlined_call_operand.vmem [shape: bf16[432,1024], index: 1, kind: input, shape index: {}]   ;;  %s2309_s2 = inlined_call_operand.vmem [shape: f32[16,1], index: 2, kind: input, shape index: {}]   ;;  %s2310_s3 = inlined_call_operand.vmem [shape: f32[16,1024], index: 3, kind: input, shape index: {}]   ;;  %s2311_s4 = inlined_call_operand.vmem [shape: f32[16,1024], index: 4, kind: output, shape index: {}]  }
   0x1   :  { %s1882_s17 = smov 0  }
   0x2 LB: > { %s1482_s18 = sadd.s32 4294967295, %s1850_s17   ;;  %s1895_s19 = sadd.s32 1, %s1850_s17   ;;  %s1850_s17 = sphi %s1882_s17, %s2316_s17   ;;  %s1846_s16 = sphi %s1880_s16, %s2315_s16   ;;  %s1842_s15 = sphi %s1878_s15, %s2314_s15  }
   0x3   : > { %s39_s20 = ssub.s32 %s1850_s17, %s1895_s19  ;;  %s42_s21 = sadd.s32 1, %s1846_s16 }
   0x4   : > { %p40_p0 = scmp.eq.s32.totalorder %s39_s20, 0  ;;  %p49_p1 = scmp.ne.s32.totalorder %s1846_s16, %s1842_s15 }
   0x5   : > { %p50_p2 = scmp.eq.s32.totalorder %s1850_s17, 0  ;;  %p126_p3 = scmp.eq.s32.totalorder %s1482_s18, 1 }
   0x6   : > { %s1906_s22 = scalar_select %p40_p0, %s1846_s16, %s42_s21  }
   0x7   : > { %p1908_p4 = por %p50_p2, %p49_p1  ;;  %p1912_p5 = por %p126_p3, %p49_p1 }
   0x8   : > { %p1485_p6 = scmp.ge.s32.totalorder %s1850_s17, 2 }
   0xa   : > { %154 = sbr.rel (%p1485_p6) target bundleno = 83 (0x53), region = 24 }
  0x11   : > { %157 = sbr.rel (!%p1908_p4) target bundleno = 75 (0x4b), region = 28  ;;  %s159_s25 = sand.u32 (%p1908_p4), 1, %s1846_s16  }
  0x12   : > { %s1613_s26 = sshll.u32 (%p1908_p4), %s1850_s17, 4  ;;  %s1632_s27 = smul.u32 (%p1908_p4), 864, %s159_s25 }
  0x13   : > { %s1924_s30 = scalar_lea.vmem (%p1908_p4), %s2308_s1, %s1613_s26 }
  0x14   : > { %v177_v0 = vld [vmem:[%s1924_s30] sm:$0xff] (%p1908_p4)  ;;  %v179_v1 = vld [vmem:[%s1924_s30 + $0x8] sm:$0xff] (%p1908_p4)  ;;  %s1932_s5 = scalar_lea.vmem (%p1908_p4), [#allocation2], %s1632_s27 }
  0x15   : > { %v181_v2 = vld [vmem:[%s1924_s30 + $0x20] sm:$0xff] (%p1908_p4)  ;;  %v183_v3 = vld [vmem:[%s1924_s30 + $0x28] sm:$0xff] (%p1908_p4)  ;;  %178 = vst [vmem:[%s1932_s5] sm:$0xff] (%p1908_p4), %v177_v0  ;;  %180 = vst [vmem:[%s1932_s5 + $0x8] sm:$0xff] (%p1908_p4), %v179_v1 }
  0x16   : > { %v185_v4 = vld [vmem:[%s1924_s30 + $0x40] sm:$0xff] (%p1908_p4)  ;;  %v187_v5 = vld [vmem:[%s1924_s30 + $0x48] sm:$0xff] (%p1908_p4)  ;;  %182 = vst [vmem:[%s1932_s5 + $0x10] sm:$0xff] (%p1908_p4), %v181_v2  ;;  %184 = vst [vmem:[%s1932_s5 + $0x18] sm:$0xff] (%p1908_p4), %v183_v3 }
  0x17   : > { %186 = vst [vmem:[%s1932_s5 + $0x20] sm:$0xff] (%p1908_p4), %v185_v4  ;;  %188 = vst [vmem:[%s1932_s5 + $0x28] sm:$0xff] (%p1908_p4), %v187_v5  ;;  %v189_v6 = vld [vmem:[%s1924_s30 + $0x60] sm:$0xff] (%p1908_p4)  ;;  %v191_v7 = vld [vmem:[%s1924_s30 + $0x68] sm:$0xff] (%p1908_p4) }
  0x18   : > { %v193_v8 = vld [vmem:[%s1924_s30 + $0x80] sm:$0xff]  ;;  %190 = vst [vmem:[%s1932_s5 + $0x30] sm:$0xff] %v189_v6  ;;  %192 = vst [vmem:[%s1932_s5 + $0x38] sm:$0xff] %v191_v7  ;;  %v195_v9 = vld [vmem:[%s1924_s30 + $0x88] sm:$0xff] }
  0x19   : > { %194 = vst [vmem:[%s1932_s5 + $0x40] sm:$0xff] %v193_v8  ;;  %v197_v10 = vld [vmem:[%s1924_s30 + $0xa0] sm:$0xff]  ;;  %v199_v11 = vld [vmem:[%s1924_s30 + $0xa8] sm:$0xff]  ;;  %196 = vst [vmem:[%s1932_s5 + $0x48] sm:$0xff] %v195_v9 }
  0x1a   : > { %198 = vst [vmem:[%s1932_s5 + $0x50] sm:$0xff] %v197_v10  ;;  %200 = vst [vmem:[%s1932_s5 + $0x58] sm:$0xff] %v199_v11  ;;  %v201_v12 = vld [vmem:[%s1924_s30 + $0xc0] sm:$0xff]  ;;  %v203_v13 = vld [vmem:[%s1924_s30 + $0xc8] sm:$0xff] }
  0x1b   : > { %v205_v14 = vld [vmem:[%s1924_s30 + $0xe0] sm:$0xff]  ;;  %202 = vst [vmem:[%s1932_s5 + $0x60] sm:$0xff] %v201_v12  ;;  %204 = vst [vmem:[%s1932_s5 + $0x68] sm:$0xff] %v203_v13  ;;  %v207_v15 = vld [vmem:[%s1924_s30 + $0xe8] sm:$0xff] }
  0x1c   : > { %206 = vst [vmem:[%s1932_s5 + $0x70] sm:$0xff] %v205_v14  ;;  %v209_v16 = vld [vmem:[%s1924_s30 + $0x100] sm:$0xff]  ;;  %v211_v17 = vld [vmem:[%s1924_s30 + $0x108] sm:$0xff]  ;;  %208 = vst [vmem:[%s1932_s5 + $0x78] sm:$0xff] %v207_v15 }
  0x1d   : > { %210 = vst [vmem:[%s1932_s5 + $0x80] sm:$0xff] %v209_v16  ;;  %212 = vst [vmem:[%s1932_s5 + $0x88] sm:$0xff] %v211_v17  ;;  %v213_v18 = vld [vmem:[%s1924_s30 + $0x120] sm:$0xff]  ;;  %v215_v19 = vld [vmem:[%s1924_s30 + $0x128] sm:$0xff] }
  0x1e   : > { %v217_v20 = vld [vmem:[%s1924_s30 + $0x140] sm:$0xff]  ;;  %214 = vst [vmem:[%s1932_s5 + $0x90] sm:$0xff] %v213_v18  ;;  %216 = vst [vmem:[%s1932_s5 + $0x98] sm:$0xff] %v215_v19  ;;  %v219_v21 = vld [vmem:[%s1924_s30 + $0x148] sm:$0xff] }
  0x1f   : > { %218 = vst [vmem:[%s1932_s5 + $0xa0] sm:$0xff] %v217_v20  ;;  %v221_v22 = vld [vmem:[%s1924_s30 + $0x160] sm:$0xff]  ;;  %v223_v23 = vld [vmem:[%s1924_s30 + $0x168] sm:$0xff]  ;;  %220 = vst [vmem:[%s1932_s5 + $0xa8] sm:$0xff] %v219_v21 }
  0x20   : > { %222 = vst [vmem:[%s1932_s5 + $0xb0] sm:$0xff] %v221_v22  ;;  %224 = vst [vmem:[%s1932_s5 + $0xb8] sm:$0xff] %v223_v23  ;;  %v225_v24 = vld [vmem:[%s1924_s30 + $0x180] sm:$0xff]  ;;  %v227_v25 = vld [vmem:[%s1924_s30 + $0x188] sm:$0xff] }
  0x21   : > { %v229_v26 = vld [vmem:[%s1924_s30 + $0x1a0] sm:$0xff]  ;;  %226 = vst [vmem:[%s1932_s5 + $0xc0] sm:$0xff] %v225_v24  ;;  %228 = vst [vmem:[%s1932_s5 + $0xc8] sm:$0xff] %v227_v25  ;;  %v231_v27 = vld [vmem:[%s1924_s30 + $0x1a8] sm:$0xff] }
  0x22   : > { %230 = vst [vmem:[%s1932_s5 + $0xd0] sm:$0xff] %v229_v26  ;;  %v233_v28 = vld [vmem:[%s1924_s30 + $0x1c0] sm:$0xff]  ;;  %v235_v29 = vld [vmem:[%s1924_s30 + $0x1c8] sm:$0xff]  ;;  %232 = vst [vmem:[%s1932_s5 + $0xd8] sm:$0xff] %v231_v27 }
  0x23   : > { %234 = vst [vmem:[%s1932_s5 + $0xe0] sm:$0xff] %v233_v28  ;;  %236 = vst [vmem:[%s1932_s5 + $0xe8] sm:$0xff] %v235_v29  ;;  %v237_v30 = vld [vmem:[%s1924_s30 + $0x1e0] sm:$0xff]  ;;  %v239_v31 = vld [vmem:[%s1924_s30 + $0x1e8] sm:$0xff] }
  0x24   : > { %v241_v32 = vld [vmem:[%s1924_s30 + $0x200] sm:$0xff]  ;;  %238 = vst [vmem:[%s1932_s5 + $0xf0] sm:$0xff] %v237_v30  ;;  %240 = vst [vmem:[%s1932_s5 + $0xf8] sm:$0xff] %v239_v31  ;;  %v243_v33 = vld [vmem:[%s1924_s30 + $0x208] sm:$0xff] }
  0x25   : > { %242 = vst [vmem:[%s1932_s5 + $0x100] sm:$0xff] %v241_v32  ;;  %v245_v34 = vld [vmem:[%s1924_s30 + $0x220] sm:$0xff]  ;;  %v247_v35 = vld [vmem:[%s1924_s30 + $0x228] sm:$0xff]  ;;  %244 = vst [vmem:[%s1932_s5 + $0x108] sm:$0xff] %v243_v33 }
  0x26   : > { %246 = vst [vmem:[%s1932_s5 + $0x110] sm:$0xff] %v245_v34  ;;  %248 = vst [vmem:[%s1932_s5 + $0x118] sm:$0xff] %v247_v35  ;;  %v249_v36 = vld [vmem:[%s1924_s30 + $0x240] sm:$0xff]  ;;  %v251_v37 = vld [vmem:[%s1924_s30 + $0x248] sm:$0xff] }
  0x27   : > { %v253_v38 = vld [vmem:[%s1924_s30 + $0x260] sm:$0xff]  ;;  %250 = vst [vmem:[%s1932_s5 + $0x120] sm:$0xff] %v249_v36  ;;  %252 = vst [vmem:[%s1932_s5 + $0x128] sm:$0xff] %v251_v37  ;;  %v255_v39 = vld [vmem:[%s1924_s30 + $0x268] sm:$0xff] }
  0x28   : > { %254 = vst [vmem:[%s1932_s5 + $0x130] sm:$0xff] %v253_v38  ;;  %v257_v40 = vld [vmem:[%s1924_s30 + $0x280] sm:$0xff]  ;;  %v259_v41 = vld [vmem:[%s1924_s30 + $0x288] sm:$0xff]  ;;  %256 = vst [vmem:[%s1932_s5 + $0x138] sm:$0xff] %v255_v39 }
  0x29   : > { %258 = vst [vmem:[%s1932_s5 + $0x140] sm:$0xff] %v257_v40  ;;  %260 = vst [vmem:[%s1932_s5 + $0x148] sm:$0xff] %v259_v41  ;;  %v261_v42 = vld [vmem:[%s1924_s30 + $0x2a0] sm:$0xff]  ;;  %v263_v43 = vld [vmem:[%s1924_s30 + $0x2a8] sm:$0xff] }
  0x2a   : > { %v265_v44 = vld [vmem:[%s1924_s30 + $0x2c0] sm:$0xff]  ;;  %262 = vst [vmem:[%s1932_s5 + $0x150] sm:$0xff] %v261_v42  ;;  %264 = vst [vmem:[%s1932_s5 + $0x158] sm:$0xff] %v263_v43  ;;  %v267_v45 = vld [vmem:[%s1924_s30 + $0x2c8] sm:$0xff] }
  0x2b   : > { %266 = vst [vmem:[%s1932_s5 + $0x160] sm:$0xff] %v265_v44  ;;  %v269_v46 = vld [vmem:[%s1924_s30 + $0x2e0] sm:$0xff]  ;;  %v271_v47 = vld [vmem:[%s1924_s30 + $0x2e8] sm:$0xff]  ;;  %268 = vst [vmem:[%s1932_s5 + $0x168] sm:$0xff] %v267_v45 }
  0x2c   : > { %270 = vst [vmem:[%s1932_s5 + $0x170] sm:$0xff] %v269_v46  ;;  %272 = vst [vmem:[%s1932_s5 + $0x178] sm:$0xff] %v271_v47  ;;  %v273_v48 = vld [vmem:[%s1924_s30 + $0x300] sm:$0xff]  ;;  %v275_v49 = vld [vmem:[%s1924_s30 + $0x308] sm:$0xff] }
  0x2d   : > { %v277_v50 = vld [vmem:[%s1924_s30 + $0x320] sm:$0xff]  ;;  %274 = vst [vmem:[%s1932_s5 + $0x180] sm:$0xff] %v273_v48  ;;  %276 = vst [vmem:[%s1932_s5 + $0x188] sm:$0xff] %v275_v49  ;;  %v279_v51 = vld [vmem:[%s1924_s30 + $0x328] sm:$0xff] }
  0x2e   : > { %278 = vst [vmem:[%s1932_s5 + $0x190] sm:$0xff] %v277_v50  ;;  %v281_v52 = vld [vmem:[%s1924_s30 + $0x340] sm:$0xff]  ;;  %v283_v53 = vld [vmem:[%s1924_s30 + $0x348] sm:$0xff]  ;;  %280 = vst [vmem:[%s1932_s5 + $0x198] sm:$0xff] %v279_v51 }
  0x2f   : > { %282 = vst [vmem:[%s1932_s5 + $0x1a0] sm:$0xff] %v281_v52  ;;  %284 = vst [vmem:[%s1932_s5 + $0x1a8] sm:$0xff] %v283_v53  ;;  %v285_v54 = vld [vmem:[%s1924_s30 + $0x360] sm:$0xff]  ;;  %v287_v55 = vld [vmem:[%s1924_s30 + $0x368] sm:$0xff] }
  0x30   : > { %v289_v56 = vld [vmem:[%s1924_s30 + $0x380] sm:$0xff]  ;;  %286 = vst [vmem:[%s1932_s5 + $0x1b0] sm:$0xff] %v285_v54  ;;  %288 = vst [vmem:[%s1932_s5 + $0x1b8] sm:$0xff] %v287_v55  ;;  %v291_v57 = vld [vmem:[%s1924_s30 + $0x388] sm:$0xff] }
  0x31   : > { %290 = vst [vmem:[%s1932_s5 + $0x1c0] sm:$0xff] %v289_v56  ;;  %v293_v58 = vld [vmem:[%s1924_s30 + $0x3a0] sm:$0xff]  ;;  %v295_v59 = vld [vmem:[%s1924_s30 + $0x3a8] sm:$0xff]  ;;  %292 = vst [vmem:[%s1932_s5 + $0x1c8] sm:$0xff] %v291_v57 }
  0x32   : > { %294 = vst [vmem:[%s1932_s5 + $0x1d0] sm:$0xff] %v293_v58  ;;  %296 = vst [vmem:[%s1932_s5 + $0x1d8] sm:$0xff] %v295_v59  ;;  %v297_v60 = vld [vmem:[%s1924_s30 + $0x3c0] sm:$0xff]  ;;  %v299_v61 = vld [vmem:[%s1924_s30 + $0x3c8] sm:$0xff] }
  0x33   : > { %v301_v62 = vld [vmem:[%s1924_s30 + $0x3e0] sm:$0xff]  ;;  %298 = vst [vmem:[%s1932_s5 + $0x1e0] sm:$0xff] %v297_v60  ;;  %300 = vst [vmem:[%s1932_s5 + $0x1e8] sm:$0xff] %v299_v61  ;;  %v303_v63 = vld [vmem:[%s1924_s30 + $0x3e8] sm:$0xff] }
  0x34   : > { %302 = vst [vmem:[%s1932_s5 + $0x1f0] sm:$0xff] %v301_v62  ;;  %v305_v0 = vld [vmem:[%s1924_s30 + $0x400] sm:$0xff]  ;;  %v307_v1 = vld [vmem:[%s1924_s30 + $0x408] sm:$0xff]  ;;  %304 = vst [vmem:[%s1932_s5 + $0x1f8] sm:$0xff] %v303_v63 }
  0x35   : > { %306 = vst [vmem:[%s1932_s5 + $0x200] sm:$0xff] %v305_v0  ;;  %308 = vst [vmem:[%s1932_s5 + $0x208] sm:$0xff] %v307_v1  ;;  %v309_v2 = vld [vmem:[%s1924_s30 + $0x420] sm:$0xff]  ;;  %v311_v3 = vld [vmem:[%s1924_s30 + $0x428] sm:$0xff] }
  0x36   : > { %v313_v4 = vld [vmem:[%s1924_s30 + $0x440] sm:$0xff]  ;;  %310 = vst [vmem:[%s1932_s5 + $0x210] sm:$0xff] %v309_v2  ;;  %312 = vst [vmem:[%s1932_s5 + $0x218] sm:$0xff] %v311_v3  ;;  %v315_v5 = vld [vmem:[%s1924_s30 + $0x448] sm:$0xff] }
  0x37   : > { %314 = vst [vmem:[%s1932_s5 + $0x220] sm:$0xff] %v313_v4  ;;  %v317_v6 = vld [vmem:[%s1924_s30 + $0x460] sm:$0xff]  ;;  %v319_v7 = vld [vmem:[%s1924_s30 + $0x468] sm:$0xff]  ;;  %316 = vst [vmem:[%s1932_s5 + $0x228] sm:$0xff] %v315_v5 }
  0x38   : > { %318 = vst [vmem:[%s1932_s5 + $0x230] sm:$0xff] %v317_v6  ;;  %320 = vst [vmem:[%s1932_s5 + $0x238] sm:$0xff] %v319_v7  ;;  %v321_v8 = vld [vmem:[%s1924_s30 + $0x480] sm:$0xff]  ;;  %v323_v9 = vld [vmem:[%s1924_s30 + $0x488] sm:$0xff] }
  0x39   : > { %v325_v10 = vld [vmem:[%s1924_s30 + $0x4a0] sm:$0xff]  ;;  %322 = vst [vmem:[%s1932_s5 + $0x240] sm:$0xff] %v321_v8  ;;  %324 = vst [vmem:[%s1932_s5 + $0x248] sm:$0xff] %v323_v9  ;;  %v327_v11 = vld [vmem:[%s1924_s30 + $0x4a8] sm:$0xff] }
  0x3a   : > { %326 = vst [vmem:[%s1932_s5 + $0x250] sm:$0xff] %v325_v10  ;;  %v329_v12 = vld [vmem:[%s1924_s30 + $0x4c0] sm:$0xff]  ;;  %v331_v13 = vld [vmem:[%s1924_s30 + $0x4c8] sm:$0xff]  ;;  %328 = vst [vmem:[%s1932_s5 + $0x258] sm:$0xff] %v327_v11 }
  0x3b   : > { %330 = vst [vmem:[%s1932_s5 + $0x260] sm:$0xff] %v329_v12  ;;  %332 = vst [vmem:[%s1932_s5 + $0x268] sm:$0xff] %v331_v13  ;;  %v333_v14 = vld [vmem:[%s1924_s30 + $0x4e0] sm:$0xff]  ;;  %v335_v15 = vld [vmem:[%s1924_s30 + $0x4e8] sm:$0xff] }
  0x3c   : > { %v337_v16 = vld [vmem:[%s1924_s30 + $0x500] sm:$0xff]  ;;  %334 = vst [vmem:[%s1932_s5 + $0x270] sm:$0xff] %v333_v14  ;;  %336 = vst [vmem:[%s1932_s5 + $0x278] sm:$0xff] %v335_v15  ;;  %v339_v17 = vld [vmem:[%s1924_s30 + $0x508] sm:$0xff] }
  0x3d   : > { %338 = vst [vmem:[%s1932_s5 + $0x280] sm:$0xff] %v337_v16  ;;  %v341_v18 = vld [vmem:[%s1924_s30 + $0x520] sm:$0xff]  ;;  %v343_v19 = vld [vmem:[%s1924_s30 + $0x528] sm:$0xff]  ;;  %340 = vst [vmem:[%s1932_s5 + $0x288] sm:$0xff] %v339_v17 }
  0x3e   : > { %342 = vst [vmem:[%s1932_s5 + $0x290] sm:$0xff] %v341_v18  ;;  %344 = vst [vmem:[%s1932_s5 + $0x298] sm:$0xff] %v343_v19  ;;  %v345_v20 = vld [vmem:[%s1924_s30 + $0x540] sm:$0xff]  ;;  %v347_v21 = vld [vmem:[%s1924_s30 + $0x548] sm:$0xff] }
  0x3f   : > { %v349_v22 = vld [vmem:[%s1924_s30 + $0x560] sm:$0xff]  ;;  %346 = vst [vmem:[%s1932_s5 + $0x2a0] sm:$0xff] %v345_v20  ;;  %348 = vst [vmem:[%s1932_s5 + $0x2a8] sm:$0xff] %v347_v21  ;;  %v351_v23 = vld [vmem:[%s1924_s30 + $0x568] sm:$0xff] }
  0x40   : > { %350 = vst [vmem:[%s1932_s5 + $0x2b0] sm:$0xff] %v349_v22  ;;  %v353_v24 = vld [vmem:[%s1924_s30 + $0x580] sm:$0xff]  ;;  %v355_v25 = vld [vmem:[%s1924_s30 + $0x588] sm:$0xff]  ;;  %352 = vst [vmem:[%s1932_s5 + $0x2b8] sm:$0xff] %v351_v23 }
  0x41   : > { %354 = vst [vmem:[%s1932_s5 + $0x2c0] sm:$0xff] %v353_v24  ;;  %356 = vst [vmem:[%s1932_s5 + $0x2c8] sm:$0xff] %v355_v25  ;;  %v357_v26 = vld [vmem:[%s1924_s30 + $0x5a0] sm:$0xff]  ;;  %v359_v27 = vld [vmem:[%s1924_s30 + $0x5a8] sm:$0xff] }
  0x42   : > { %v361_v28 = vld [vmem:[%s1924_s30 + $0x5c0] sm:$0xff]  ;;  %358 = vst [vmem:[%s1932_s5 + $0x2d0] sm:$0xff] %v357_v26  ;;  %360 = vst [vmem:[%s1932_s5 + $0x2d8] sm:$0xff] %v359_v27  ;;  %v363_v29 = vld [vmem:[%s1924_s30 + $0x5c8] sm:$0xff] }
  0x43   : > { %362 = vst [vmem:[%s1932_s5 + $0x2e0] sm:$0xff] %v361_v28  ;;  %v365_v30 = vld [vmem:[%s1924_s30 + $0x5e0] sm:$0xff]  ;;  %v367_v31 = vld [vmem:[%s1924_s30 + $0x5e8] sm:$0xff]  ;;  %364 = vst [vmem:[%s1932_s5 + $0x2e8] sm:$0xff] %v363_v29 }
  0x44   : > { %366 = vst [vmem:[%s1932_s5 + $0x2f0] sm:$0xff] %v365_v30  ;;  %368 = vst [vmem:[%s1932_s5 + $0x2f8] sm:$0xff] %v367_v31  ;;  %v369_v32 = vld [vmem:[%s1924_s30 + $0x600] sm:$0xff]  ;;  %v371_v33 = vld [vmem:[%s1924_s30 + $0x608] sm:$0xff] }
  0x45   : > { %v373_v34 = vld [vmem:[%s1924_s30 + $0x620] sm:$0xff]  ;;  %370 = vst [vmem:[%s1932_s5 + $0x300] sm:$0xff] %v369_v32  ;;  %372 = vst [vmem:[%s1932_s5 + $0x308] sm:$0xff] %v371_v33  ;;  %v375_v35 = vld [vmem:[%s1924_s30 + $0x628] sm:$0xff] }
  0x46   : > { %374 = vst [vmem:[%s1932_s5 + $0x310] sm:$0xff] %v373_v34  ;;  %v377_v36 = vld [vmem:[%s1924_s30 + $0x640] sm:$0xff]  ;;  %v379_v37 = vld [vmem:[%s1924_s30 + $0x648] sm:$0xff]  ;;  %376 = vst [vmem:[%s1932_s5 + $0x318] sm:$0xff] %v375_v35 }
  0x47   : > { %378 = vst [vmem:[%s1932_s5 + $0x320] sm:$0xff] %v377_v36  ;;  %380 = vst [vmem:[%s1932_s5 + $0x328] sm:$0xff] %v379_v37  ;;  %v381_v38 = vld [vmem:[%s1924_s30 + $0x660] sm:$0xff]  ;;  %v383_v39 = vld [vmem:[%s1924_s30 + $0x668] sm:$0xff] }
  0x48   : > { %v385_v40 = vld [vmem:[%s1924_s30 + $0x680] sm:$0xff]  ;;  %382 = vst [vmem:[%s1932_s5 + $0x330] sm:$0xff] %v381_v38  ;;  %384 = vst [vmem:[%s1932_s5 + $0x338] sm:$0xff] %v383_v39  ;;  %v387_v41 = vld [vmem:[%s1924_s30 + $0x688] sm:$0xff] }
  0x49   : > { %386 = vst [vmem:[%s1932_s5 + $0x340] sm:$0xff] %v385_v40  ;;  %v389_v42 = vld [vmem:[%s1924_s30 + $0x6a0] sm:$0xff]  ;;  %v391_v43 = vld [vmem:[%s1924_s30 + $0x6a8] sm:$0xff]  ;;  %388 = vst [vmem:[%s1932_s5 + $0x348] sm:$0xff] %v387_v41 }
  0x4a   : > { %390 = vst [vmem:[%s1932_s5 + $0x350] sm:$0xff] %v389_v42  ;;  %392 = vst [vmem:[%s1932_s5 + $0x358] sm:$0xff] %v391_v43 }
  0x4b PF: > { %398 = sbr.rel (!%p1908_p4) target bundleno = 83 (0x53), region = 51  ;;  %s400_s6 = sand.u32 (%p1908_p4), 1, %s1846_s16  }
  0x4c   : > { %s1614_s7 = sshll.u32 (%p1908_p4), %s1850_s17, 5  ;;  %s1488_s8 = sshll.u32 (%p1908_p4), %s400_s6, 6 }
  0x4d   : > { %s405_s11 = scalar_lea.vmem (%p1908_p4), %s2310_s3, %s1614_s7  ;;  %s402_s12 = scalar_lea.vmem (%p1908_p4), [#allocation3], %s1488_s8 }
  0x4e   : > { %v418_v44 = vld [vmem:[%s405_s11] sm:$0xff] (%p1908_p4)  ;;  %v420_v45 = vld [vmem:[%s405_s11 + $0x8] sm:$0xff] (%p1908_p4)  ;;  %v422_v46 = vld [vmem:[%s405_s11 + $0x10] sm:$0xff] (%p1908_p4) }
  0x4f   : > { %419 = vst [vmem:[%s402_s12] sm:$0xff] (%p1908_p4), %v418_v44  ;;  %421 = vst [vmem:[%s402_s12 + $0x8] sm:$0xff] (%p1908_p4), %v420_v45  ;;  %v424_v47 = vld [vmem:[%s405_s11 + $0x18] sm:$0xff] (%p1908_p4)  ;;  %v426_v48 = vld [vmem:[%s405_s11 + $0x40] sm:$0xff] (%p1908_p4) }
  0x50   : > { %423 = vst [vmem:[%s402_s12 + $0x10] sm:$0xff] (%p1908_p4), %v422_v46  ;;  %v428_v49 = vld [vmem:[%s405_s11 + $0x48] sm:$0xff] (%p1908_p4)  ;;  %425 = vst [vmem:[%s402_s12 + $0x18] sm:$0xff] (%p1908_p4), %v424_v47  ;;  %v430_v50 = vld [vmem:[%s405_s11 + $0x50] sm:$0xff] (%p1908_p4) }
  0x51   : > { %427 = vst [vmem:[%s402_s12 + $0x20] sm:$0xff] (%p1908_p4), %v426_v48  ;;  %429 = vst [vmem:[%s402_s12 + $0x28] sm:$0xff] (%p1908_p4), %v428_v49  ;;  %v432_v51 = vld [vmem:[%s405_s11 + $0x58] sm:$0xff] (%p1908_p4) }
  0x52   : > { %431 = vst [vmem:[%s402_s12 + $0x30] sm:$0xff] %v430_v50  ;;  %433 = vst [vmem:[%s402_s12 + $0x38] sm:$0xff] %v432_v51 }
  0x53 PF: > { %p1491_p7 = scmp.ge.s32.totalorder %s1850_s17, 1  ;;  %p438_p8 = scmp.lt.s32.totalorder %s1850_s17, 3 }
  0x55   : > { %p439_p9 = pnand %p1491_p7, %p438_p8 }
  0x56   : > { %s445_s13 = sand.u32 (!%p439_p9), 1, %s1842_s15   ;;  %v1758_v52 = vld [vmem:[%s2307_s0 + $0x4] ss:$16 sps:$4 sm:$0xff] (!%p439_p9)   ;;  %v1852_v53 = vmov (!%p439_p9), 0   ;;  %v597_v56 = vld [vmem:[%s2309_s2 + $0x8] sm:$0xff] (!%p439_p9)  ;;  %vm1167_vm0 = vcmask (!%p439_p9), 392192  }
  0x57   : > { %442 = sbr.rel (%p439_p9) target bundleno = 428 (0x1ac), region = 74  ;;  %1659 = vset.pattern.permute.xlu0 (!%p439_p9), %v1852_v53  ;;  %v596_v54 = vld [vmem:[%s2309_s2] sm:$0xff] (!%p439_p9)  ;;  %1203 = vmatprep.mubr.bf16.mxu0 (!%p439_p9), %v1758_v52  ;;  %s2286_s9 = sshll.u32 (!%p439_p9), %s445_s13, 6 }
  0x58   : > { %s1633_s14 = smul.u32 (!%p439_p9), 864, %s445_s13  ;;  %1289 = vmatprep.mubr.bf16.mxu1 (!%p439_p9), %v1758_v52  ;;  %600 = vperm.xlu0 (!%p439_p9), %1659, %v596_v54   ;;  %s454_s10 = scalar_lea.vmem (!%p439_p9), [#allocation3], %s2286_s9 }
  0x59   : > { %s479_s15 = scalar_lea.vmem (!%p439_p9), [#allocation4], %s2286_s9 }
  0x5a   : > { %s2162_s26 = scalar_lea.vmem (!%p439_p9), [#allocation2], %s1633_s14 }
  0x5b   : > { %v1660_v55 = vld [vmem:[%s2162_s26 + $0x4] ss:$16 sps:$4 sm:$0xff] (!%p439_p9)   ;;  %v1662_v57 = vld [vmem:[%s2162_s26 + $0xc] ss:$16 sps:$4 sm:$0xff] (!%p439_p9)   ;;  %v1664_v58 = vld [vmem:[%s2162_s26] ss:$16 sps:$4 sm:$0xff] (!%p439_p9)  }
  0x5c   : > { %1171 = vmatprep.subr.bf16.mxu0 (!%p439_p9), %v1660_v55  ;;  %v1665_v59 = vld [vmem:[%s2162_s26 + $0x8] ss:$16 sps:$4 sm:$0xff] (!%p439_p9)   ;;  %1257 = vmatprep.subr.bf16.mxu1 (!%p439_p9), %v1662_v57  ;;  %v1666_v60 = vld [vmem:[%s2162_s26 + $0x24] ss:$16 sps:$4 sm:$0xff] (!%p439_p9)   ;;  %v1668_v61 = vld [vmem:[%s2162_s26 + $0x2c] ss:$16 sps:$4 sm:$0xff] (!%p439_p9)  }
  0x5d   : > { %1172 = vmatpush1.bf16.msra.mxu0 (!%p439_p9), %v1664_v58  ;;  %1258 = vmatpush1.bf16.msra.mxu1 (!%p439_p9), %v1665_v59  ;;  %v1670_v62 = vld [vmem:[%s2162_s26 + $0x20] ss:$16 sps:$4 sm:$0xff] (!%p439_p9)   ;;  %v1671_v63 = vld [vmem:[%s2162_s26 + $0x28] ss:$16 sps:$4 sm:$0xff] (!%p439_p9)   ;;  %v1672_v0 = vld [vmem:[%s2162_s26 + $0x44] ss:$16 sps:$4 sm:$0xff] (!%p439_p9)  }
  0x5e   : > { %1173 = vmatprep.subr.bf16.mxu0 %v1666_v60  ;;  %605 = vperm.xlu0 %1659, %v597_v56   ;;  %v1674_v1 = vld [vmem:[%s2162_s26 + $0x4c] ss:$16 sps:$4 sm:$0xff]   ;;  %v1676_v2 = vld [vmem:[%s2162_s26 + $0x40] ss:$16 sps:$4 sm:$0xff]   ;;  %v1677_v3 = vld [vmem:[%s2162_s26 + $0x48] ss:$16 sps:$4 sm:$0xff]  }
  0x5f   : > { %1259 = vmatprep.subr.bf16.mxu1 %v1668_v61  ;;  %v1678_v4 = vld [vmem:[%s2162_s26 + $0x64] ss:$16 sps:$4 sm:$0xff]   ;;  %v1680_v5 = vld [vmem:[%s2162_s26 + $0x6c] ss:$16 sps:$4 sm:$0xff]   ;;  %v1682_v6 = vld [vmem:[%s2162_s26 + $0x60] ss:$16 sps:$4 sm:$0xff]  }
  0x60   : > { %v1683_v7 = vld [vmem:[%s2162_s26 + $0x68] ss:$16 sps:$4 sm:$0xff]   ;;  %v1684_v8 = vld [vmem:[%s2162_s26 + $0x84] ss:$16 sps:$4 sm:$0xff]   ;;  %v1686_v9 = vld [vmem:[%s2162_s26 + $0x8c] ss:$16 sps:$4 sm:$0xff]  }
  0x61   : > { %1174 = vmatpush1.bf16.msra.mxu0 %v1670_v62  ;;  %1260 = vmatpush1.bf16.msra.mxu1 %v1671_v63  ;;  %v1688_v10 = vld [vmem:[%s2162_s26 + $0x80] ss:$16 sps:$4 sm:$0xff]   ;;  %v1689_v11 = vld [vmem:[%s2162_s26 + $0x88] ss:$16 sps:$4 sm:$0xff]   ;;  %v1690_v12 = vld [vmem:[%s2162_s26 + $0xa4] ss:$16 sps:$4 sm:$0xff]  }
  0x62   : > { %1175 = vmatprep.subr.bf16.mxu0 %v1672_v0  ;;  %1261 = vmatprep.subr.bf16.mxu1 %v1674_v1  ;;  %v1692_v13 = vld [vmem:[%s2162_s26 + $0xac] ss:$16 sps:$4 sm:$0xff]   ;;  %v1694_v14 = vld [vmem:[%s2162_s26 + $0xa0] ss:$16 sps:$4 sm:$0xff]   ;;  %v1695_v15 = vld [vmem:[%s2162_s26 + $0xa8] ss:$16 sps:$4 sm:$0xff]  }
  0x63   : > { %v1696_v16 = vld [vmem:[%s2162_s26 + $0xc4] ss:$16 sps:$4 sm:$0xff]   ;;  %v1698_v17 = vld [vmem:[%s2162_s26 + $0xcc] ss:$16 sps:$4 sm:$0xff]   ;;  %v1700_v18 = vld [vmem:[%s2162_s26 + $0xc0] ss:$16 sps:$4 sm:$0xff]  }
  0x64   : > { %v1701_v19 = vld [vmem:[%s2162_s26 + $0xc8] ss:$16 sps:$4 sm:$0xff]   ;;  %v1702_v20 = vld [vmem:[%s2162_s26 + $0xe4] ss:$16 sps:$4 sm:$0xff]   ;;  %v1704_v21 = vld [vmem:[%s2162_s26 + $0xec] ss:$16 sps:$4 sm:$0xff]  }
  0x65   : > { %1176 = vmatpush1.bf16.msra.mxu0 %v1676_v2  ;;  %1262 = vmatpush1.bf16.msra.mxu1 %v1677_v3  ;;  %v1706_v22 = vld [vmem:[%s2162_s26 + $0xe0] ss:$16 sps:$4 sm:$0xff]   ;;  %v1707_v23 = vld [vmem:[%s2162_s26 + $0xe8] ss:$16 sps:$4 sm:$0xff]   ;;  %v1708_v24 = vld [vmem:[%s2162_s26 + $0x104] ss:$16 sps:$4 sm:$0xff]  }
  0x66   : > { %1177 = vmatprep.subr.bf16.mxu0 %v1678_v4  ;;  %1263 = vmatprep.subr.bf16.mxu1 %v1680_v5  ;;  %v1710_v25 = vld [vmem:[%s2162_s26 + $0x10c] ss:$16 sps:$4 sm:$0xff]   ;;  %v1712_v26 = vld [vmem:[%s2162_s26 + $0x100] ss:$16 sps:$4 sm:$0xff]   ;;  %v1713_v27 = vld [vmem:[%s2162_s26 + $0x108] ss:$16 sps:$4 sm:$0xff]  }
  0x67   : > { %v1714_v28 = vld [vmem:[%s2162_s26 + $0x124] ss:$16 sps:$4 sm:$0xff]   ;;  %v1716_v29 = vld [vmem:[%s2162_s26 + $0x12c] ss:$16 sps:$4 sm:$0xff]   ;;  %v1718_v30 = vld [vmem:[%s2162_s26 + $0x120] ss:$16 sps:$4 sm:$0xff]  }
  0x68   : > { %v1719_v31 = vld [vmem:[%s2162_s26 + $0x128] ss:$16 sps:$4 sm:$0xff]   ;;  %v1720_v32 = vld [vmem:[%s2162_s26 + $0x144] ss:$16 sps:$4 sm:$0xff]   ;;  %v1722_v33 = vld [vmem:[%s2162_s26 + $0x14c] ss:$16 sps:$4 sm:$0xff]  }
  0x69   : > { %1178 = vmatpush1.bf16.msra.mxu0 %v1682_v6  ;;  %1264 = vmatpush1.bf16.msra.mxu1 %v1683_v7  ;;  %v1724_v34 = vld [vmem:[%s2162_s26 + $0x140] ss:$16 sps:$4 sm:$0xff]   ;;  %v1725_v35 = vld [vmem:[%s2162_s26 + $0x148] ss:$16 sps:$4 sm:$0xff]   ;;  %v1726_v36 = vld [vmem:[%s2162_s26 + $0x164] ss:$16 sps:$4 sm:$0xff]  }
  0x6a   : > { %1179 = vmatprep.subr.bf16.mxu0 %v1684_v8  ;;  %1265 = vmatprep.subr.bf16.mxu1 %v1686_v9  ;;  %v1728_v37 = vld [vmem:[%s2162_s26 + $0x16c] ss:$16 sps:$4 sm:$0xff]   ;;  %v1730_v38 = vld [vmem:[%s2162_s26 + $0x160] ss:$16 sps:$4 sm:$0xff]   ;;  %v1731_v39 = vld [vmem:[%s2162_s26 + $0x168] ss:$16 sps:$4 sm:$0xff]  }
  0x6b   : > { %v1732_v40 = vld [vmem:[%s2162_s26 + $0x184] ss:$16 sps:$4 sm:$0xff]   ;;  %v1734_v41 = vld [vmem:[%s2162_s26 + $0x18c] ss:$16 sps:$4 sm:$0xff]   ;;  %v1736_v42 = vld [vmem:[%s2162_s26 + $0x180] ss:$16 sps:$4 sm:$0xff]  }
  0x6c   : > { %v1737_v43 = vld [vmem:[%s2162_s26 + $0x188] ss:$16 sps:$4 sm:$0xff]   ;;  %v1738_v44 = vld [vmem:[%s2162_s26 + $0x1a4] ss:$16 sps:$4 sm:$0xff]   ;;  %v1740_v45 = vld [vmem:[%s2162_s26 + $0x1ac] ss:$16 sps:$4 sm:$0xff]  }
  0x6d   : > { %1180 = vmatpush1.bf16.msra.mxu0 %v1688_v10  ;;  %1266 = vmatpush1.bf16.msra.mxu1 %v1689_v11  ;;  %v1742_v46 = vld [vmem:[%s2162_s26 + $0x1a0] ss:$16 sps:$4 sm:$0xff]   ;;  %v1743_v47 = vld [vmem:[%s2162_s26 + $0x1a8] ss:$16 sps:$4 sm:$0xff]   ;;  %v1744_v48 = vld [vmem:[%s2162_s26 + $0x1c4] ss:$16 sps:$4 sm:$0xff]  }
  0x6e   : > { %1181 = vmatprep.subr.bf16.mxu0 %v1690_v12  ;;  %1267 = vmatprep.subr.bf16.mxu1 %v1692_v13  ;;  %v1746_v49 = vld [vmem:[%s2162_s26 + $0x1cc] ss:$16 sps:$4 sm:$0xff]   ;;  %v1748_v50 = vld [vmem:[%s2162_s26 + $0x1c0] ss:$16 sps:$4 sm:$0xff]   ;;  %v1749_v51 = vld [vmem:[%s2162_s26 + $0x1c8] ss:$16 sps:$4 sm:$0xff]  }
  0x6f   : > { %v1750_v52 = vld [vmem:[%s2162_s26 + $0x1e4] ss:$16 sps:$4 sm:$0xff]   ;;  %v1752_v53 = vld [vmem:[%s2162_s26 + $0x1ec] ss:$16 sps:$4 sm:$0xff]   ;;  %v1754_v54 = vld [vmem:[%s2162_s26 + $0x1e0] ss:$16 sps:$4 sm:$0xff]  }
  0x70   : > { %v1755_v55 = vld [vmem:[%s2162_s26 + $0x1e8] ss:$16 sps:$4 sm:$0xff]   ;;  %v1761_v56 = vld [vmem:[%s2162_s26 + $0x204] ss:$16 sps:$4 sm:$0xff]   ;;  %v1764_v57 = vld [vmem:[%s2162_s26 + $0x20c] ss:$16 sps:$4 sm:$0xff]  }
  0x71   : > { %1182 = vmatpush1.bf16.msra.mxu0 %v1694_v14  ;;  %1268 = vmatpush1.bf16.msra.mxu1 %v1695_v15  ;;  %v1756_v58 = vld [vmem:[%s2307_s0] ss:$16 sps:$4 sm:$0xff]   ;;  %v1762_v60 = vld [vmem:[%s2162_s26 + $0x208] ss:$16 sps:$4 sm:$0xff]   ;;  %v1767_v61 = vld [vmem:[%s2162_s26 + $0x224] ss:$16 sps:$4 sm:$0xff]  }
  0x72   : > { %1183 = vmatprep.subr.bf16.mxu0 %v1696_v16  ;;  %1269 = vmatprep.subr.bf16.mxu1 %v1698_v17  ;;  %v1759_v59 = vld [vmem:[%s2162_s26 + $0x200] ss:$16 sps:$4 sm:$0xff]   ;;  %v1770_v62 = vld [vmem:[%s2162_s26 + $0x22c] ss:$16 sps:$4 sm:$0xff]   ;;  %v1768_v1 = vld [vmem:[%s2162_s26 + $0x228] ss:$16 sps:$4 sm:$0xff]  }
  0x73   : > { %v1825_v63 = vld [vmem:[%s2307_s0 + $0xc] ss:$16 sps:$4 sm:$0xff]   ;;  %v1765_v0 = vld [vmem:[%s2162_s26 + $0x220] ss:$16 sps:$4 sm:$0xff]   ;;  %v1773_v2 = vld [vmem:[%s2162_s26 + $0x244] ss:$16 sps:$4 sm:$0xff]  }
  0x74   : > { %v1776_v3 = vld [vmem:[%s2162_s26 + $0x24c] ss:$16 sps:$4 sm:$0xff]   ;;  %v1771_v4 = vld [vmem:[%s2162_s26 + $0x240] ss:$16 sps:$4 sm:$0xff]   ;;  %v1774_v5 = vld [vmem:[%s2162_s26 + $0x248] ss:$16 sps:$4 sm:$0xff]  }
  0x75   : > { %1184 = vmatpush1.bf16.msra.mxu0 %v1700_v18  ;;  %1270 = vmatpush1.bf16.msra.mxu1 %v1701_v19  ;;  %v1779_v6 = vld [vmem:[%s2162_s26 + $0x264] ss:$16 sps:$4 sm:$0xff]   ;;  %v1782_v7 = vld [vmem:[%s2162_s26 + $0x26c] ss:$16 sps:$4 sm:$0xff]   ;;  %v1777_v8 = vld [vmem:[%s2162_s26 + $0x260] ss:$16 sps:$4 sm:$0xff]  }
  0x76   : > { %1185 = vmatprep.subr.bf16.mxu0 %v1702_v20  ;;  %1271 = vmatprep.subr.bf16.mxu1 %v1704_v21  ;;  %v1780_v9 = vld [vmem:[%s2162_s26 + $0x268] ss:$16 sps:$4 sm:$0xff]   ;;  %v1785_v10 = vld [vmem:[%s2162_s26 + $0x284] ss:$16 sps:$4 sm:$0xff]   ;;  %v1788_v11 = vld [vmem:[%s2162_s26 + $0x28c] ss:$16 sps:$4 sm:$0xff]  }
  0x77   : > { %v1783_v12 = vld [vmem:[%s2162_s26 + $0x280] ss:$16 sps:$4 sm:$0xff]   ;;  %v1786_v13 = vld [vmem:[%s2162_s26 + $0x288] ss:$16 sps:$4 sm:$0xff]   ;;  %v1791_v14 = vld [vmem:[%s2162_s26 + $0x2a4] ss:$16 sps:$4 sm:$0xff]  }
  0x78   : > { %v1794_v15 = vld [vmem:[%s2162_s26 + $0x2ac] ss:$16 sps:$4 sm:$0xff]   ;;  %v1789_v16 = vld [vmem:[%s2162_s26 + $0x2a0] ss:$16 sps:$4 sm:$0xff]   ;;  %v1792_v17 = vld [vmem:[%s2162_s26 + $0x2a8] ss:$16 sps:$4 sm:$0xff]  }
  0x79   : > { %1186 = vmatpush1.bf16.msra.mxu0 %v1706_v22  ;;  %1272 = vmatpush1.bf16.msra.mxu1 %v1707_v23  ;;  %v1797_v18 = vld [vmem:[%s2162_s26 + $0x2c4] ss:$16 sps:$4 sm:$0xff]   ;;  %v1800_v19 = vld [vmem:[%s2162_s26 + $0x2cc] ss:$16 sps:$4 sm:$0xff]   ;;  %v1795_v20 = vld [vmem:[%s2162_s26 + $0x2c0] ss:$16 sps:$4 sm:$0xff]  }
  0x7a   : > { %1187 = vmatprep.subr.bf16.mxu0 %v1708_v24  ;;  %1273 = vmatprep.subr.bf16.mxu1 %v1710_v25  ;;  %v1798_v21 = vld [vmem:[%s2162_s26 + $0x2c8] ss:$16 sps:$4 sm:$0xff]   ;;  %v1803_v22 = vld [vmem:[%s2162_s26 + $0x2e4] ss:$16 sps:$4 sm:$0xff]   ;;  %v1806_v23 = vld [vmem:[%s2162_s26 + $0x2ec] ss:$16 sps:$4 sm:$0xff]  }
  0x7b   : > { %v1801_v24 = vld [vmem:[%s2162_s26 + $0x2e0] ss:$16 sps:$4 sm:$0xff]   ;;  %v1804_v25 = vld [vmem:[%s2162_s26 + $0x2e8] ss:$16 sps:$4 sm:$0xff]   ;;  %s1615_s11 = sshll.u32 (%p1912_p5), %s1482_s18, 5 }
  0x7c   : > { %s1376_s14 = scalar_lea.vmem (%p1912_p5), %s2311_s4, %s1615_s11 }
  0x7d   : > { %1188 = vmatpush1.bf16.msra.mxu0 %v1712_v26  ;;  %1274 = vmatpush1.bf16.msra.mxu1 %v1713_v27  ;;  %v1809_v26 = vld [vmem:[%s2162_s26 + $0x304] ss:$16 sps:$4 sm:$0xff]   ;;  %v1812_v27 = vld [vmem:[%s2162_s26 + $0x30c] ss:$16 sps:$4 sm:$0xff]  }
  0x7e   : > { %1189 = vmatprep.subr.bf16.mxu0 %v1714_v28  ;;  %1275 = vmatprep.subr.bf16.mxu1 %v1716_v29  ;;  %v1807_v28 = vld [vmem:[%s2162_s26 + $0x300] ss:$16 sps:$4 sm:$0xff]   ;;  %v1810_v29 = vld [vmem:[%s2162_s26 + $0x308] ss:$16 sps:$4 sm:$0xff]  }
  0x81   : > { %1190 = vmatpush1.bf16.msra.mxu0 %v1718_v30  ;;  %1276 = vmatpush1.bf16.msra.mxu1 %v1719_v31  ;;  %v1815_v30 = vld [vmem:[%s2162_s26 + $0x324] ss:$16 sps:$4 sm:$0xff]   ;;  %v1818_v31 = vld [vmem:[%s2162_s26 + $0x32c] ss:$16 sps:$4 sm:$0xff]  }
  0x82   : > { %1191 = vmatprep.subr.bf16.mxu0 %v1720_v32  ;;  %1277 = vmatprep.subr.bf16.mxu1 %v1722_v33  ;;  %v1813_v32 = vld [vmem:[%s2162_s26 + $0x320] ss:$16 sps:$4 sm:$0xff]   ;;  %v1816_v33 = vld [vmem:[%s2162_s26 + $0x328] ss:$16 sps:$4 sm:$0xff]  }
  0x85   : > { %1192 = vmatpush1.bf16.msra.mxu0 %v1724_v34  ;;  %1278 = vmatpush1.bf16.msra.mxu1 %v1725_v35  ;;  %v1821_v34 = vld [vmem:[%s2162_s26 + $0x344] ss:$16 sps:$4 sm:$0xff]   ;;  %v1824_v35 = vld [vmem:[%s2162_s26 + $0x34c] ss:$16 sps:$4 sm:$0xff]  }
  0x86   : > { %1193 = vmatprep.subr.bf16.mxu0 %v1726_v36  ;;  %1279 = vmatprep.subr.bf16.mxu1 %v1728_v37  ;;  %v1819_v36 = vld [vmem:[%s2162_s26 + $0x340] ss:$16 sps:$4 sm:$0xff]   ;;  %v1822_v37 = vld [vmem:[%s2162_s26 + $0x348] ss:$16 sps:$4 sm:$0xff]  }
  0x89   : > { %1194 = vmatpush1.bf16.msra.mxu0 %v1730_v38  ;;  %1280 = vmatpush1.bf16.msra.mxu1 %v1731_v39  ;;  %v1827_v38 = vld [vmem:[%s2307_s0 + $0x8] ss:$16 sps:$4 sm:$0xff]  }
  0x8a   : > { %1195 = vmatprep.subr.bf16.mxu0 %v1732_v40  ;;  %1281 = vmatprep.subr.bf16.mxu1 %v1734_v41 }
  0x8d   : > { %1196 = vmatpush1.bf16.msra.mxu0 %v1736_v42  ;;  %1282 = vmatpush1.bf16.msra.mxu1 %v1737_v43  ;;  %v1343_v42 = vld [vmem:[%s454_s10] sm:$0xff] }
  0x8e   : > { %1197 = vmatprep.subr.bf16.mxu0 %v1738_v44  ;;  %1283 = vmatprep.subr.bf16.mxu1 %v1740_v45  ;;  %v1345_v44 = vld [vmem:[%s454_s10 + $0x10] sm:$0xff] }
  0x91   : > { %1198 = vmatpush1.bf16.msra.mxu0 %v1742_v46  ;;  %1284 = vmatpush1.bf16.msra.mxu1 %v1743_v47 }
  0x92   : > { %1199 = vmatprep.subr.bf16.mxu0 %v1744_v48  ;;  %1285 = vmatprep.subr.bf16.mxu1 %v1746_v49  ;;  %v1344_v48 = vld [vmem:[%s454_s10 + $0x8] sm:$0xff] }
  0x95   : > { %1200 = vmatpush1.bf16.msra.mxu0 %v1748_v50  ;;  %1286 = vmatpush1.bf16.msra.mxu1 %v1749_v51  ;;  %v1346_v50 = vld [vmem:[%s454_s10 + $0x18] sm:$0xff] }
  0x96   : > { %1201 = vmatprep.subr.bf16.mxu0 %v1750_v52  ;;  %1287 = vmatprep.subr.bf16.mxu1 %v1752_v53 }
  0x99   : > { %1202 = vmatpush1.bf16.msra.mxu0 %v1754_v54  ;;  %1288 = vmatpush1.bf16.msra.mxu1 %v1755_v55  ;;  %v1347_v54 = vld [vmem:[%s454_s10 + $0x20] sm:$0xff] }
  0x9a   : > { %1214 = vmatprep.subr.bf16.mxu0 %v1761_v56  ;;  %1300 = vmatprep.subr.bf16.mxu1 %v1764_v57  ;;  %v1349_v56 = vld [vmem:[%s454_s10 + $0x30] sm:$0xff] }
  0x9c   : > { %1204 = vmatmul.mubr.bf16.vlgmr.msra.gmra.mrb[0].mxu0 %v1756_v58  ;;  %1290 = vmatmul.mubr.bf16.vlgmr.msra.gmra.mrb[0].mxu1 %v1756_v58 }
  0x9d   : > { %1215 = vmatpush1.bf16.msra.mxu0 %v1759_v59  ;;  %1301 = vmatpush1.bf16.msra.mxu1 %v1762_v60 }
  0x9e   : > { %1216 = vmatprep.subr.bf16.mxu0 %v1767_v61  ;;  %1302 = vmatprep.subr.bf16.mxu1 %v1770_v62  ;;  %v1348_v62 = vld [vmem:[%s454_s10 + $0x28] sm:$0xff] }
  0x9f   : > { %1606 = vmatprep.mubr.msk.bf16.mxu0 %vm1167_vm0, %v1825_v63  ;;  %1607 = vmatprep.mubr.msk.bf16.mxu1 %vm1167_vm0, %v1825_v63 }
  0xa1   : > { %1217 = vmatpush1.bf16.msra.mxu0 %v1765_v0  ;;  %1303 = vmatpush1.bf16.msra.mxu1 %v1768_v1  ;;  %v1350_v0 = vld [vmem:[%s454_s10 + $0x38] sm:$0xff] }
  0xa2   : > { %1218 = vmatprep.subr.bf16.mxu0 %v1773_v2  ;;  %1304 = vmatprep.subr.bf16.mxu1 %v1776_v3 }
  0xa5   : > { %1219 = vmatpush1.bf16.msra.mxu0 %v1771_v4  ;;  %1305 = vmatpush1.bf16.msra.mxu1 %v1774_v5 }
  0xa6   : > { %1220 = vmatprep.subr.bf16.mxu0 %v1779_v6  ;;  %1306 = vmatprep.subr.bf16.mxu1 %v1782_v7 }
  0xa9   : > { %1221 = vmatpush1.bf16.msra.mxu0 %v1777_v8  ;;  %1307 = vmatpush1.bf16.msra.mxu1 %v1780_v9 }
  0xaa   : > { %1222 = vmatprep.subr.bf16.mxu0 %v1785_v10  ;;  %1308 = vmatprep.subr.bf16.mxu1 %v1788_v11 }
  0xad   : > { %1223 = vmatpush1.bf16.msra.mxu0 %v1783_v12  ;;  %1309 = vmatpush1.bf16.msra.mxu1 %v1786_v13 }
  0xae   : > { %1224 = vmatprep.subr.bf16.mxu0 %v1791_v14  ;;  %1310 = vmatprep.subr.bf16.mxu1 %v1794_v15 }
  0xb1   : > { %1225 = vmatpush1.bf16.msra.mxu0 %v1789_v16  ;;  %1311 = vmatpush1.bf16.msra.mxu1 %v1792_v17 }
  0xb2   : > { %1226 = vmatprep.subr.bf16.mxu0 %v1797_v18  ;;  %1312 = vmatprep.subr.bf16.mxu1 %v1800_v19 }
  0xb5   : > { %1227 = vmatpush1.bf16.msra.mxu0 %v1795_v20  ;;  %1313 = vmatpush1.bf16.msra.mxu1 %v1798_v21 }
  0xb6   : > { %1228 = vmatprep.subr.bf16.mxu0 %v1803_v22  ;;  %1314 = vmatprep.subr.bf16.mxu1 %v1806_v23 }
  0xb9   : > { %1229 = vmatpush1.bf16.msra.mxu0 %v1801_v24  ;;  %1315 = vmatpush1.bf16.msra.mxu1 %v1804_v25 }
  0xba   : > { %1230 = vmatprep.subr.bf16.mxu0 %v1809_v26  ;;  %1316 = vmatprep.subr.bf16.mxu1 %v1812_v27 }
  0xbd   : > { %1231 = vmatpush1.bf16.msra.mxu0 %v1807_v28  ;;  %1317 = vmatpush1.bf16.msra.mxu1 %v1810_v29 }
  0xbe   : > { %1232 = vmatprep.subr.bf16.mxu0 %v1815_v30  ;;  %1318 = vmatprep.subr.bf16.mxu1 %v1818_v31 }
  0xc1   : > { %1233 = vmatpush1.bf16.msra.mxu0 %v1813_v32  ;;  %1319 = vmatpush1.bf16.msra.mxu1 %v1816_v33 }
  0xc2   : > { %1234 = vmatprep.subr.bf16.mxu0 %v1821_v34  ;;  %1320 = vmatprep.subr.bf16.mxu1 %v1824_v35 }
  0xc5   : > { %1235 = vmatpush1.bf16.msra.mxu0 %v1819_v36  ;;  %1321 = vmatpush1.bf16.msra.mxu1 %v1822_v37 }
  0xc8   : > { %1247 = vmatmul.mubr.bf16.vlgmr.msra.gmra.mrb[0].mxu0 %v1827_v38  ;;  %1333 = vmatmul.mubr.bf16.vlgmr.msra.gmra.mrb[0].mxu1 %v1827_v38 }
  0xd7   : > { %v601_v39 = vpop.permute.xlu0 %600 }
  0xdd   : > { %v606_v40 = vpop.permute.xlu0 %605 }
 0x19b   : > { %v1248_v41 = vpop.f32.mrb[0].mxu0  ;;  %v1334_v43 = vpop.f32.mrb[0].mxu1 }
 0x19c   : > { %v1616_v45 = vadd.f32 %v1248_v41, %v601_v39  ;;  %v1620_v46 = vadd.f32 %v1334_v43, %v601_v39  ;;  %v1250_v47 = vpop.f32.mrb[1].mxu0  ;;  %v1336_v49 = vpop.f32.mrb[1].mxu1 }
 0x19d   : > { %v1617_v51 = vadd.f32 %v1250_v47, %v601_v39  ;;  %v1621_v52 = vadd.f32 %v1336_v49, %v601_v39  ;;  %v1252_v53 = vpop.f32.mrb[2].mxu0  ;;  %v1338_v55 = vpop.f32.mrb[2].mxu1  ;;  %1373 = sbr.rel (!%p1912_p5) target bundleno = 428 (0x1ac), region = 86 }
 0x19e   : > { %v1351_v57 = vadd.f32 %v1616_v45, %v1343_v42  ;;  %v1353_v58 = vadd.f32 %v1620_v46, %v1345_v44  ;;  %v1618_v59 = vadd.f32 %v1252_v53, %v606_v40  ;;  %v1622_v60 = vadd.f32 %v1338_v55, %v606_v40  ;;  %v1254_v61 = vpop.f32.mrb[3].mxu0  ;;  %v1340_v63 = vpop.f32.mrb[3].mxu1 }
 0x19f   : > { %v1352_v1 = vadd.f32 %v1617_v51, %v1344_v48  ;;  %v1354_v2 = vadd.f32 %v1621_v52, %v1346_v50  ;;  %v1619_v3 = vadd.f32 %v1254_v61, %v606_v40  ;;  %v1623_v4 = vadd.f32 %v1340_v63, %v606_v40 }
 0x1a0   : > { %1359 = vst [vmem:[%s479_s15] sm:$0xff] %v1351_v57  ;;  %1361 = vst [vmem:[%s479_s15 + $0x10] sm:$0xff] %v1353_v58  ;;  %v1355_v5 = vadd.f32 %v1618_v59, %v1347_v54  ;;  %v1357_v6 = vadd.f32 %v1622_v60, %v1349_v56 }
 0x1a1   : > { %1360 = vst [vmem:[%s479_s15 + $0x8] sm:$0xff] %v1352_v1  ;;  %1362 = vst [vmem:[%s479_s15 + $0x18] sm:$0xff] %v1354_v2  ;;  %v1356_v7 = vadd.f32 %v1619_v3, %v1348_v62  ;;  %v1358_v8 = vadd.f32 %v1623_v4, %v1350_v0 }
 0x1a2   : > { %1363 = vst [vmem:[%s479_s15 + $0x20] sm:$0xff] %v1355_v5  ;;  %1365 = vst [vmem:[%s479_s15 + $0x30] sm:$0xff] %v1357_v6 }
 0x1a3   : > { %1364 = vst [vmem:[%s479_s15 + $0x28] sm:$0xff] %v1356_v7  ;;  %1366 = vst [vmem:[%s479_s15 + $0x38] sm:$0xff] %v1358_v8 }
 0x1a7   : > { %v1389_v9 = vld [vmem:[%s479_s15] sm:$0xff]  ;;  %v1393_v11 = vld [vmem:[%s479_s15 + $0x10] sm:$0xff] }
 0x1a8   : > { %v1391_v10 = vld [vmem:[%s479_s15 + $0x8] sm:$0xff]  ;;  %v1395_v12 = vld [vmem:[%s479_s15 + $0x18] sm:$0xff]  ;;  %1390 = vst [vmem:[%s1376_s14] sm:$0xff] %v1389_v9  ;;  %1394 = vst [vmem:[%s1376_s14 + $0x10] sm:$0xff] %v1393_v11 }
 0x1a9   : > { %v1397_v13 = vld [vmem:[%s479_s15 + $0x20] sm:$0xff]  ;;  %1392 = vst [vmem:[%s1376_s14 + $0x8] sm:$0xff] %v1391_v10  ;;  %1396 = vst [vmem:[%s1376_s14 + $0x18] sm:$0xff] %v1395_v12  ;;  %v1401_v15 = vld [vmem:[%s479_s15 + $0x30] sm:$0xff] }
 0x1aa   : > { %v1399_v14 = vld [vmem:[%s479_s15 + $0x28] sm:$0xff]  ;;  %1398 = vst [vmem:[%s1376_s14 + $0x40] sm:$0xff] %v1397_v13  ;;  %v1403_v16 = vld [vmem:[%s479_s15 + $0x38] sm:$0xff]  ;;  %1402 = vst [vmem:[%s1376_s14 + $0x50] sm:$0xff] %v1401_v15 }
 0x1ab   : > { %1400 = vst [vmem:[%s1376_s14 + $0x48] sm:$0xff] %v1399_v14  ;;  %1404 = vst [vmem:[%s1376_s14 + $0x58] sm:$0xff] %v1403_v16 }
 0x1ac PF: > { %p11_p10 = scmp.ge.s32.totalorder %s1895_s19, 4   ;;  %s2314_s15 = smov %s1846_s16 }
 0x1ad   : > { %s2315_s16 = smov %s1906_s22  ;;  %s2316_s17 = smov %s1895_s19 }
 0x1ae   :  { %13 = sbr.rel (!%p11_p10) target bundleno = 2 (0x2), region = 148 }

// kernel: network_forward.181
= control target key start
LH: loop header
LB: loop body
LE: loop exit
PB: predicated region body
PF: predicated region fallthrough
CT: control target
= control target key end

     0   :  { %s1752_s12 = smov 0   ;;  %s1754_s13 = smov 0   ;;  %s2182_s0 = inlined_call_operand.vmem [shape: bf16[16,432], index: 0, kind: input, shape index: {}]   ;;  %s2183_s1 = inlined_call_operand.vmem [shape: bf16[432,1024], index: 1, kind: input, shape index: {}]   ;;  %s2184_s2 = inlined_call_operand.vmem [shape: f32[16,1], index: 2, kind: input, shape index: {}]   ;;  %s2185_s3 = inlined_call_operand.vmem [shape: f32[16,1024], index: 3, kind: output, shape index: {}]  }
   0x1   :  { %s1756_s14 = smov 0  }
   0x2 LB: > { %s1366_s15 = sadd.s32 4294967295, %s1729_s14   ;;  %s1769_s16 = sadd.s32 1, %s1729_s14   ;;  %s1729_s14 = sphi %s1756_s14, %s2189_s14   ;;  %s1725_s13 = sphi %s1754_s13, %s2188_s13   ;;  %s1721_s12 = sphi %s1752_s12, %s2187_s12  }
   0x3   : > { %s38_s17 = ssub.s32 %s1729_s14, %s1769_s16  ;;  %s41_s18 = sadd.s32 1, %s1725_s13 }
   0x4   : > { %p39_p0 = scmp.eq.s32.totalorder %s38_s17, 0  ;;  %p48_p1 = scmp.ne.s32.totalorder %s1725_s13, %s1721_s12 }
   0x5   : > { %p49_p2 = scmp.eq.s32.totalorder %s1729_s14, 0  ;;  %p99_p3 = scmp.eq.s32.totalorder %s1366_s15, 1 }
   0x6   : > { %s1780_s19 = scalar_select %p39_p0, %s1725_s13, %s41_s18  }
   0x7   : > { %p50_p4 = por %p49_p2, %p48_p1  ;;  %p1782_p5 = por %p99_p3, %p48_p1 }
   0x8   : > { %p1369_p6 = scmp.ge.s32.totalorder %s1729_s14, 2 }
   0xa   : > { %127 = sbr.rel (%p1369_p6) target bundleno = 75 (0x4b), region = 24 }
  0x11   : > { %130 = sbr.rel (!%p50_p4) target bundleno = 75 (0x4b), region = 28  ;;  %s132_s21 = sand.u32 (%p50_p4), 1, %s1725_s13  }
  0x12   : > { %s1493_s22 = sshll.u32 (%p50_p4), %s1729_s14, 4  ;;  %s1511_s23 = smul.u32 (%p50_p4), 864, %s132_s21 }
  0x13   : > { %s1792_s26 = scalar_lea.vmem (%p50_p4), %s2183_s1, %s1493_s22 }
  0x14   : > { %v150_v0 = vld [vmem:[%s1792_s26] sm:$0xff] (%p50_p4)  ;;  %v152_v1 = vld [vmem:[%s1792_s26 + $0x8] sm:$0xff] (%p50_p4)  ;;  %s1800_s27 = scalar_lea.vmem (%p50_p4), [#allocation2], %s1511_s23 }
  0x15   : > { %v154_v2 = vld [vmem:[%s1792_s26 + $0x20] sm:$0xff] (%p50_p4)  ;;  %v156_v3 = vld [vmem:[%s1792_s26 + $0x28] sm:$0xff] (%p50_p4)  ;;  %151 = vst [vmem:[%s1800_s27] sm:$0xff] (%p50_p4), %v150_v0  ;;  %153 = vst [vmem:[%s1800_s27 + $0x8] sm:$0xff] (%p50_p4), %v152_v1 }
  0x16   : > { %v158_v4 = vld [vmem:[%s1792_s26 + $0x40] sm:$0xff] (%p50_p4)  ;;  %v160_v5 = vld [vmem:[%s1792_s26 + $0x48] sm:$0xff] (%p50_p4)  ;;  %155 = vst [vmem:[%s1800_s27 + $0x10] sm:$0xff] (%p50_p4), %v154_v2  ;;  %157 = vst [vmem:[%s1800_s27 + $0x18] sm:$0xff] (%p50_p4), %v156_v3 }
  0x17   : > { %159 = vst [vmem:[%s1800_s27 + $0x20] sm:$0xff] (%p50_p4), %v158_v4  ;;  %161 = vst [vmem:[%s1800_s27 + $0x28] sm:$0xff] (%p50_p4), %v160_v5  ;;  %v162_v6 = vld [vmem:[%s1792_s26 + $0x60] sm:$0xff] (%p50_p4)  ;;  %v164_v7 = vld [vmem:[%s1792_s26 + $0x68] sm:$0xff] (%p50_p4) }
  0x18   : > { %v166_v8 = vld [vmem:[%s1792_s26 + $0x80] sm:$0xff]  ;;  %163 = vst [vmem:[%s1800_s27 + $0x30] sm:$0xff] %v162_v6  ;;  %165 = vst [vmem:[%s1800_s27 + $0x38] sm:$0xff] %v164_v7  ;;  %v168_v9 = vld [vmem:[%s1792_s26 + $0x88] sm:$0xff] }
  0x19   : > { %167 = vst [vmem:[%s1800_s27 + $0x40] sm:$0xff] %v166_v8  ;;  %v170_v10 = vld [vmem:[%s1792_s26 + $0xa0] sm:$0xff]  ;;  %v172_v11 = vld [vmem:[%s1792_s26 + $0xa8] sm:$0xff]  ;;  %169 = vst [vmem:[%s1800_s27 + $0x48] sm:$0xff] %v168_v9 }
  0x1a   : > { %171 = vst [vmem:[%s1800_s27 + $0x50] sm:$0xff] %v170_v10  ;;  %173 = vst [vmem:[%s1800_s27 + $0x58] sm:$0xff] %v172_v11  ;;  %v174_v12 = vld [vmem:[%s1792_s26 + $0xc0] sm:$0xff]  ;;  %v176_v13 = vld [vmem:[%s1792_s26 + $0xc8] sm:$0xff] }
  0x1b   : > { %v178_v14 = vld [vmem:[%s1792_s26 + $0xe0] sm:$0xff]  ;;  %175 = vst [vmem:[%s1800_s27 + $0x60] sm:$0xff] %v174_v12  ;;  %177 = vst [vmem:[%s1800_s27 + $0x68] sm:$0xff] %v176_v13  ;;  %v180_v15 = vld [vmem:[%s1792_s26 + $0xe8] sm:$0xff] }
  0x1c   : > { %179 = vst [vmem:[%s1800_s27 + $0x70] sm:$0xff] %v178_v14  ;;  %v182_v16 = vld [vmem:[%s1792_s26 + $0x100] sm:$0xff]  ;;  %v184_v17 = vld [vmem:[%s1792_s26 + $0x108] sm:$0xff]  ;;  %181 = vst [vmem:[%s1800_s27 + $0x78] sm:$0xff] %v180_v15 }
  0x1d   : > { %183 = vst [vmem:[%s1800_s27 + $0x80] sm:$0xff] %v182_v16  ;;  %185 = vst [vmem:[%s1800_s27 + $0x88] sm:$0xff] %v184_v17  ;;  %v186_v18 = vld [vmem:[%s1792_s26 + $0x120] sm:$0xff]  ;;  %v188_v19 = vld [vmem:[%s1792_s26 + $0x128] sm:$0xff] }
  0x1e   : > { %v190_v20 = vld [vmem:[%s1792_s26 + $0x140] sm:$0xff]  ;;  %187 = vst [vmem:[%s1800_s27 + $0x90] sm:$0xff] %v186_v18  ;;  %189 = vst [vmem:[%s1800_s27 + $0x98] sm:$0xff] %v188_v19  ;;  %v192_v21 = vld [vmem:[%s1792_s26 + $0x148] sm:$0xff] }
  0x1f   : > { %191 = vst [vmem:[%s1800_s27 + $0xa0] sm:$0xff] %v190_v20  ;;  %v194_v22 = vld [vmem:[%s1792_s26 + $0x160] sm:$0xff]  ;;  %v196_v23 = vld [vmem:[%s1792_s26 + $0x168] sm:$0xff]  ;;  %193 = vst [vmem:[%s1800_s27 + $0xa8] sm:$0xff] %v192_v21 }
  0x20   : > { %195 = vst [vmem:[%s1800_s27 + $0xb0] sm:$0xff] %v194_v22  ;;  %197 = vst [vmem:[%s1800_s27 + $0xb8] sm:$0xff] %v196_v23  ;;  %v198_v24 = vld [vmem:[%s1792_s26 + $0x180] sm:$0xff]  ;;  %v200_v25 = vld [vmem:[%s1792_s26 + $0x188] sm:$0xff] }
  0x21   : > { %v202_v26 = vld [vmem:[%s1792_s26 + $0x1a0] sm:$0xff]  ;;  %199 = vst [vmem:[%s1800_s27 + $0xc0] sm:$0xff] %v198_v24  ;;  %201 = vst [vmem:[%s1800_s27 + $0xc8] sm:$0xff] %v200_v25  ;;  %v204_v27 = vld [vmem:[%s1792_s26 + $0x1a8] sm:$0xff] }
  0x22   : > { %203 = vst [vmem:[%s1800_s27 + $0xd0] sm:$0xff] %v202_v26  ;;  %v206_v28 = vld [vmem:[%s1792_s26 + $0x1c0] sm:$0xff]  ;;  %v208_v29 = vld [vmem:[%s1792_s26 + $0x1c8] sm:$0xff]  ;;  %205 = vst [vmem:[%s1800_s27 + $0xd8] sm:$0xff] %v204_v27 }
  0x23   : > { %207 = vst [vmem:[%s1800_s27 + $0xe0] sm:$0xff] %v206_v28  ;;  %209 = vst [vmem:[%s1800_s27 + $0xe8] sm:$0xff] %v208_v29  ;;  %v210_v30 = vld [vmem:[%s1792_s26 + $0x1e0] sm:$0xff]  ;;  %v212_v31 = vld [vmem:[%s1792_s26 + $0x1e8] sm:$0xff] }
  0x24   : > { %v214_v32 = vld [vmem:[%s1792_s26 + $0x200] sm:$0xff]  ;;  %211 = vst [vmem:[%s1800_s27 + $0xf0] sm:$0xff] %v210_v30  ;;  %213 = vst [vmem:[%s1800_s27 + $0xf8] sm:$0xff] %v212_v31  ;;  %v216_v33 = vld [vmem:[%s1792_s26 + $0x208] sm:$0xff] }
  0x25   : > { %215 = vst [vmem:[%s1800_s27 + $0x100] sm:$0xff] %v214_v32  ;;  %v218_v34 = vld [vmem:[%s1792_s26 + $0x220] sm:$0xff]  ;;  %v220_v35 = vld [vmem:[%s1792_s26 + $0x228] sm:$0xff]  ;;  %217 = vst [vmem:[%s1800_s27 + $0x108] sm:$0xff] %v216_v33 }
  0x26   : > { %219 = vst [vmem:[%s1800_s27 + $0x110] sm:$0xff] %v218_v34  ;;  %221 = vst [vmem:[%s1800_s27 + $0x118] sm:$0xff] %v220_v35  ;;  %v222_v36 = vld [vmem:[%s1792_s26 + $0x240] sm:$0xff]  ;;  %v224_v37 = vld [vmem:[%s1792_s26 + $0x248] sm:$0xff] }
  0x27   : > { %v226_v38 = vld [vmem:[%s1792_s26 + $0x260] sm:$0xff]  ;;  %223 = vst [vmem:[%s1800_s27 + $0x120] sm:$0xff] %v222_v36  ;;  %225 = vst [vmem:[%s1800_s27 + $0x128] sm:$0xff] %v224_v37  ;;  %v228_v39 = vld [vmem:[%s1792_s26 + $0x268] sm:$0xff] }
  0x28   : > { %227 = vst [vmem:[%s1800_s27 + $0x130] sm:$0xff] %v226_v38  ;;  %v230_v40 = vld [vmem:[%s1792_s26 + $0x280] sm:$0xff]  ;;  %v232_v41 = vld [vmem:[%s1792_s26 + $0x288] sm:$0xff]  ;;  %229 = vst [vmem:[%s1800_s27 + $0x138] sm:$0xff] %v228_v39 }
  0x29   : > { %231 = vst [vmem:[%s1800_s27 + $0x140] sm:$0xff] %v230_v40  ;;  %233 = vst [vmem:[%s1800_s27 + $0x148] sm:$0xff] %v232_v41  ;;  %v234_v42 = vld [vmem:[%s1792_s26 + $0x2a0] sm:$0xff]  ;;  %v236_v43 = vld [vmem:[%s1792_s26 + $0x2a8] sm:$0xff] }
  0x2a   : > { %v238_v44 = vld [vmem:[%s1792_s26 + $0x2c0] sm:$0xff]  ;;  %235 = vst [vmem:[%s1800_s27 + $0x150] sm:$0xff] %v234_v42  ;;  %237 = vst [vmem:[%s1800_s27 + $0x158] sm:$0xff] %v236_v43  ;;  %v240_v45 = vld [vmem:[%s1792_s26 + $0x2c8] sm:$0xff] }
  0x2b   : > { %239 = vst [vmem:[%s1800_s27 + $0x160] sm:$0xff] %v238_v44  ;;  %v242_v46 = vld [vmem:[%s1792_s26 + $0x2e0] sm:$0xff]  ;;  %v244_v47 = vld [vmem:[%s1792_s26 + $0x2e8] sm:$0xff]  ;;  %241 = vst [vmem:[%s1800_s27 + $0x168] sm:$0xff] %v240_v45 }
  0x2c   : > { %243 = vst [vmem:[%s1800_s27 + $0x170] sm:$0xff] %v242_v46  ;;  %245 = vst [vmem:[%s1800_s27 + $0x178] sm:$0xff] %v244_v47  ;;  %v246_v48 = vld [vmem:[%s1792_s26 + $0x300] sm:$0xff]  ;;  %v248_v49 = vld [vmem:[%s1792_s26 + $0x308] sm:$0xff] }
  0x2d   : > { %v250_v50 = vld [vmem:[%s1792_s26 + $0x320] sm:$0xff]  ;;  %247 = vst [vmem:[%s1800_s27 + $0x180] sm:$0xff] %v246_v48  ;;  %249 = vst [vmem:[%s1800_s27 + $0x188] sm:$0xff] %v248_v49  ;;  %v252_v51 = vld [vmem:[%s1792_s26 + $0x328] sm:$0xff] }
  0x2e   : > { %251 = vst [vmem:[%s1800_s27 + $0x190] sm:$0xff] %v250_v50  ;;  %v254_v52 = vld [vmem:[%s1792_s26 + $0x340] sm:$0xff]  ;;  %v256_v53 = vld [vmem:[%s1792_s26 + $0x348] sm:$0xff]  ;;  %253 = vst [vmem:[%s1800_s27 + $0x198] sm:$0xff] %v252_v51 }
  0x2f   : > { %255 = vst [vmem:[%s1800_s27 + $0x1a0] sm:$0xff] %v254_v52  ;;  %257 = vst [vmem:[%s1800_s27 + $0x1a8] sm:$0xff] %v256_v53  ;;  %v258_v54 = vld [vmem:[%s1792_s26 + $0x360] sm:$0xff]  ;;  %v260_v55 = vld [vmem:[%s1792_s26 + $0x368] sm:$0xff] }
  0x30   : > { %v262_v56 = vld [vmem:[%s1792_s26 + $0x380] sm:$0xff]  ;;  %259 = vst [vmem:[%s1800_s27 + $0x1b0] sm:$0xff] %v258_v54  ;;  %261 = vst [vmem:[%s1800_s27 + $0x1b8] sm:$0xff] %v260_v55  ;;  %v264_v57 = vld [vmem:[%s1792_s26 + $0x388] sm:$0xff] }
  0x31   : > { %263 = vst [vmem:[%s1800_s27 + $0x1c0] sm:$0xff] %v262_v56  ;;  %v266_v58 = vld [vmem:[%s1792_s26 + $0x3a0] sm:$0xff]  ;;  %v268_v59 = vld [vmem:[%s1792_s26 + $0x3a8] sm:$0xff]  ;;  %265 = vst [vmem:[%s1800_s27 + $0x1c8] sm:$0xff] %v264_v57 }
  0x32   : > { %267 = vst [vmem:[%s1800_s27 + $0x1d0] sm:$0xff] %v266_v58  ;;  %269 = vst [vmem:[%s1800_s27 + $0x1d8] sm:$0xff] %v268_v59  ;;  %v270_v60 = vld [vmem:[%s1792_s26 + $0x3c0] sm:$0xff]  ;;  %v272_v61 = vld [vmem:[%s1792_s26 + $0x3c8] sm:$0xff] }
  0x33   : > { %v274_v62 = vld [vmem:[%s1792_s26 + $0x3e0] sm:$0xff]  ;;  %271 = vst [vmem:[%s1800_s27 + $0x1e0] sm:$0xff] %v270_v60  ;;  %273 = vst [vmem:[%s1800_s27 + $0x1e8] sm:$0xff] %v272_v61  ;;  %v276_v63 = vld [vmem:[%s1792_s26 + $0x3e8] sm:$0xff] }
  0x34   : > { %275 = vst [vmem:[%s1800_s27 + $0x1f0] sm:$0xff] %v274_v62  ;;  %v278_v0 = vld [vmem:[%s1792_s26 + $0x400] sm:$0xff]  ;;  %v280_v1 = vld [vmem:[%s1792_s26 + $0x408] sm:$0xff]  ;;  %277 = vst [vmem:[%s1800_s27 + $0x1f8] sm:$0xff] %v276_v63 }
  0x35   : > { %279 = vst [vmem:[%s1800_s27 + $0x200] sm:$0xff] %v278_v0  ;;  %281 = vst [vmem:[%s1800_s27 + $0x208] sm:$0xff] %v280_v1  ;;  %v282_v2 = vld [vmem:[%s1792_s26 + $0x420] sm:$0xff]  ;;  %v284_v3 = vld [vmem:[%s1792_s26 + $0x428] sm:$0xff] }
  0x36   : > { %v286_v4 = vld [vmem:[%s1792_s26 + $0x440] sm:$0xff]  ;;  %283 = vst [vmem:[%s1800_s27 + $0x210] sm:$0xff] %v282_v2  ;;  %285 = vst [vmem:[%s1800_s27 + $0x218] sm:$0xff] %v284_v3  ;;  %v288_v5 = vld [vmem:[%s1792_s26 + $0x448] sm:$0xff] }
  0x37   : > { %287 = vst [vmem:[%s1800_s27 + $0x220] sm:$0xff] %v286_v4  ;;  %v290_v6 = vld [vmem:[%s1792_s26 + $0x460] sm:$0xff]  ;;  %v292_v7 = vld [vmem:[%s1792_s26 + $0x468] sm:$0xff]  ;;  %289 = vst [vmem:[%s1800_s27 + $0x228] sm:$0xff] %v288_v5 }
  0x38   : > { %291 = vst [vmem:[%s1800_s27 + $0x230] sm:$0xff] %v290_v6  ;;  %293 = vst [vmem:[%s1800_s27 + $0x238] sm:$0xff] %v292_v7  ;;  %v294_v8 = vld [vmem:[%s1792_s26 + $0x480] sm:$0xff]  ;;  %v296_v9 = vld [vmem:[%s1792_s26 + $0x488] sm:$0xff] }
  0x39   : > { %v298_v10 = vld [vmem:[%s1792_s26 + $0x4a0] sm:$0xff]  ;;  %295 = vst [vmem:[%s1800_s27 + $0x240] sm:$0xff] %v294_v8  ;;  %297 = vst [vmem:[%s1800_s27 + $0x248] sm:$0xff] %v296_v9  ;;  %v300_v11 = vld [vmem:[%s1792_s26 + $0x4a8] sm:$0xff] }
  0x3a   : > { %299 = vst [vmem:[%s1800_s27 + $0x250] sm:$0xff] %v298_v10  ;;  %v302_v12 = vld [vmem:[%s1792_s26 + $0x4c0] sm:$0xff]  ;;  %v304_v13 = vld [vmem:[%s1792_s26 + $0x4c8] sm:$0xff]  ;;  %301 = vst [vmem:[%s1800_s27 + $0x258] sm:$0xff] %v300_v11 }
  0x3b   : > { %303 = vst [vmem:[%s1800_s27 + $0x260] sm:$0xff] %v302_v12  ;;  %305 = vst [vmem:[%s1800_s27 + $0x268] sm:$0xff] %v304_v13  ;;  %v306_v14 = vld [vmem:[%s1792_s26 + $0x4e0] sm:$0xff]  ;;  %v308_v15 = vld [vmem:[%s1792_s26 + $0x4e8] sm:$0xff] }
  0x3c   : > { %v310_v16 = vld [vmem:[%s1792_s26 + $0x500] sm:$0xff]  ;;  %307 = vst [vmem:[%s1800_s27 + $0x270] sm:$0xff] %v306_v14  ;;  %309 = vst [vmem:[%s1800_s27 + $0x278] sm:$0xff] %v308_v15  ;;  %v312_v17 = vld [vmem:[%s1792_s26 + $0x508] sm:$0xff] }
  0x3d   : > { %311 = vst [vmem:[%s1800_s27 + $0x280] sm:$0xff] %v310_v16  ;;  %v314_v18 = vld [vmem:[%s1792_s26 + $0x520] sm:$0xff]  ;;  %v316_v19 = vld [vmem:[%s1792_s26 + $0x528] sm:$0xff]  ;;  %313 = vst [vmem:[%s1800_s27 + $0x288] sm:$0xff] %v312_v17 }
  0x3e   : > { %315 = vst [vmem:[%s1800_s27 + $0x290] sm:$0xff] %v314_v18  ;;  %317 = vst [vmem:[%s1800_s27 + $0x298] sm:$0xff] %v316_v19  ;;  %v318_v20 = vld [vmem:[%s1792_s26 + $0x540] sm:$0xff]  ;;  %v320_v21 = vld [vmem:[%s1792_s26 + $0x548] sm:$0xff] }
  0x3f   : > { %v322_v22 = vld [vmem:[%s1792_s26 + $0x560] sm:$0xff]  ;;  %319 = vst [vmem:[%s1800_s27 + $0x2a0] sm:$0xff] %v318_v20  ;;  %321 = vst [vmem:[%s1800_s27 + $0x2a8] sm:$0xff] %v320_v21  ;;  %v324_v23 = vld [vmem:[%s1792_s26 + $0x568] sm:$0xff] }
  0x40   : > { %323 = vst [vmem:[%s1800_s27 + $0x2b0] sm:$0xff] %v322_v22  ;;  %v326_v24 = vld [vmem:[%s1792_s26 + $0x580] sm:$0xff]  ;;  %v328_v25 = vld [vmem:[%s1792_s26 + $0x588] sm:$0xff]  ;;  %325 = vst [vmem:[%s1800_s27 + $0x2b8] sm:$0xff] %v324_v23 }
  0x41   : > { %327 = vst [vmem:[%s1800_s27 + $0x2c0] sm:$0xff] %v326_v24  ;;  %329 = vst [vmem:[%s1800_s27 + $0x2c8] sm:$0xff] %v328_v25  ;;  %v330_v26 = vld [vmem:[%s1792_s26 + $0x5a0] sm:$0xff]  ;;  %v332_v27 = vld [vmem:[%s1792_s26 + $0x5a8] sm:$0xff] }
  0x42   : > { %v334_v28 = vld [vmem:[%s1792_s26 + $0x5c0] sm:$0xff]  ;;  %331 = vst [vmem:[%s1800_s27 + $0x2d0] sm:$0xff] %v330_v26  ;;  %333 = vst [vmem:[%s1800_s27 + $0x2d8] sm:$0xff] %v332_v27  ;;  %v336_v29 = vld [vmem:[%s1792_s26 + $0x5c8] sm:$0xff] }
  0x43   : > { %335 = vst [vmem:[%s1800_s27 + $0x2e0] sm:$0xff] %v334_v28  ;;  %v338_v30 = vld [vmem:[%s1792_s26 + $0x5e0] sm:$0xff]  ;;  %v340_v31 = vld [vmem:[%s1792_s26 + $0x5e8] sm:$0xff]  ;;  %337 = vst [vmem:[%s1800_s27 + $0x2e8] sm:$0xff] %v336_v29 }
  0x44   : > { %339 = vst [vmem:[%s1800_s27 + $0x2f0] sm:$0xff] %v338_v30  ;;  %341 = vst [vmem:[%s1800_s27 + $0x2f8] sm:$0xff] %v340_v31  ;;  %v342_v32 = vld [vmem:[%s1792_s26 + $0x600] sm:$0xff]  ;;  %v344_v33 = vld [vmem:[%s1792_s26 + $0x608] sm:$0xff] }
  0x45   : > { %v346_v34 = vld [vmem:[%s1792_s26 + $0x620] sm:$0xff]  ;;  %343 = vst [vmem:[%s1800_s27 + $0x300] sm:$0xff] %v342_v32  ;;  %345 = vst [vmem:[%s1800_s27 + $0x308] sm:$0xff] %v344_v33  ;;  %v348_v35 = vld [vmem:[%s1792_s26 + $0x628] sm:$0xff] }
  0x46   : > { %347 = vst [vmem:[%s1800_s27 + $0x310] sm:$0xff] %v346_v34  ;;  %v350_v36 = vld [vmem:[%s1792_s26 + $0x640] sm:$0xff]  ;;  %v352_v37 = vld [vmem:[%s1792_s26 + $0x648] sm:$0xff]  ;;  %349 = vst [vmem:[%s1800_s27 + $0x318] sm:$0xff] %v348_v35 }
  0x47   : > { %351 = vst [vmem:[%s1800_s27 + $0x320] sm:$0xff] %v350_v36  ;;  %353 = vst [vmem:[%s1800_s27 + $0x328] sm:$0xff] %v352_v37  ;;  %v354_v38 = vld [vmem:[%s1792_s26 + $0x660] sm:$0xff]  ;;  %v356_v39 = vld [vmem:[%s1792_s26 + $0x668] sm:$0xff] }
  0x48   : > { %v358_v40 = vld [vmem:[%s1792_s26 + $0x680] sm:$0xff]  ;;  %355 = vst [vmem:[%s1800_s27 + $0x330] sm:$0xff] %v354_v38  ;;  %357 = vst [vmem:[%s1800_s27 + $0x338] sm:$0xff] %v356_v39  ;;  %v360_v41 = vld [vmem:[%s1792_s26 + $0x688] sm:$0xff] }
  0x49   : > { %359 = vst [vmem:[%s1800_s27 + $0x340] sm:$0xff] %v358_v40  ;;  %v362_v42 = vld [vmem:[%s1792_s26 + $0x6a0] sm:$0xff]  ;;  %v364_v43 = vld [vmem:[%s1792_s26 + $0x6a8] sm:$0xff]  ;;  %361 = vst [vmem:[%s1800_s27 + $0x348] sm:$0xff] %v360_v41 }
  0x4a   : > { %363 = vst [vmem:[%s1800_s27 + $0x350] sm:$0xff] %v362_v42  ;;  %365 = vst [vmem:[%s1800_s27 + $0x358] sm:$0xff] %v364_v43 }
  0x4b PF: > { %p1372_p7 = scmp.ge.s32.totalorder %s1729_s14, 1  ;;  %p370_p8 = scmp.lt.s32.totalorder %s1729_s14, 3 }
  0x4d   : > { %p371_p9 = pnand %p1372_p7, %p370_p8 }
  0x4e   : > { %s377_s28 = sand.u32 (!%p371_p9), 1, %s1721_s12   ;;  %v1637_v44 = vld [vmem:[%s2182_s0 + $0x4] ss:$16 sps:$4 sm:$0xff] (!%p371_p9)   ;;  %v1731_v45 = vmov (!%p371_p9), 0   ;;  %v515_v48 = vld [vmem:[%s2184_s2 + $0x8] sm:$0xff] (!%p371_p9)  ;;  %vm1085_vm0 = vcmask (!%p371_p9), 392192  }
  0x4f   : > { %374 = sbr.rel (%p371_p9) target bundleno = 418 (0x1a2), region = 51  ;;  %1538 = vset.pattern.permute.xlu0 (!%p371_p9), %v1731_v45  ;;  %v514_v46 = vld [vmem:[%s2184_s2] sm:$0xff] (!%p371_p9)  ;;  %1121 = vmatprep.mubr.bf16.mxu0 (!%p371_p9), %v1637_v44  ;;  %s1373_s23 = sshll.u32 (!%p371_p9), %s377_s28, 6 }
  0x50   : > { %s1512_s29 = smul.u32 (!%p371_p9), 864, %s377_s28  ;;  %1207 = vmatprep.mubr.bf16.mxu1 (!%p371_p9), %v1637_v44  ;;  %518 = vperm.xlu0 (!%p371_p9), %1538, %v514_v46   ;;  %s2147_s24 = scalar_lea.vmem (!%p371_p9), [#allocation3], %s1373_s23 }
  0x52   : > { %s2023_s7 = scalar_lea.vmem (!%p371_p9), [#allocation2], %s1512_s29 }
  0x53   : > { %v1539_v47 = vld [vmem:[%s2023_s7 + $0x4] ss:$16 sps:$4 sm:$0xff] (!%p371_p9)   ;;  %v1541_v49 = vld [vmem:[%s2023_s7 + $0xc] ss:$16 sps:$4 sm:$0xff] (!%p371_p9)   ;;  %v1543_v50 = vld [vmem:[%s2023_s7] ss:$16 sps:$4 sm:$0xff] (!%p371_p9)  }
  0x54   : > { %1089 = vmatprep.subr.bf16.mxu0 (!%p371_p9), %v1539_v47  ;;  %v1544_v51 = vld [vmem:[%s2023_s7 + $0x8] ss:$16 sps:$4 sm:$0xff] (!%p371_p9)   ;;  %1175 = vmatprep.subr.bf16.mxu1 (!%p371_p9), %v1541_v49  ;;  %v1545_v52 = vld [vmem:[%s2023_s7 + $0x24] ss:$16 sps:$4 sm:$0xff] (!%p371_p9)   ;;  %v1547_v53 = vld [vmem:[%s2023_s7 + $0x2c] ss:$16 sps:$4 sm:$0xff] (!%p371_p9)  }
  0x55   : > { %1090 = vmatpush1.bf16.msra.mxu0 (!%p371_p9), %v1543_v50  ;;  %1176 = vmatpush1.bf16.msra.mxu1 (!%p371_p9), %v1544_v51  ;;  %v1549_v54 = vld [vmem:[%s2023_s7 + $0x20] ss:$16 sps:$4 sm:$0xff] (!%p371_p9)   ;;  %v1550_v55 = vld [vmem:[%s2023_s7 + $0x28] ss:$16 sps:$4 sm:$0xff] (!%p371_p9)   ;;  %v1551_v56 = vld [vmem:[%s2023_s7 + $0x44] ss:$16 sps:$4 sm:$0xff] (!%p371_p9)  }
  0x56   : > { %1091 = vmatprep.subr.bf16.mxu0 %v1545_v52  ;;  %523 = vperm.xlu0 %1538, %v515_v48   ;;  %v1553_v57 = vld [vmem:[%s2023_s7 + $0x4c] ss:$16 sps:$4 sm:$0xff]   ;;  %v1555_v58 = vld [vmem:[%s2023_s7 + $0x40] ss:$16 sps:$4 sm:$0xff]   ;;  %v1556_v59 = vld [vmem:[%s2023_s7 + $0x48] ss:$16 sps:$4 sm:$0xff]  }
  0x57   : > { %1177 = vmatprep.subr.bf16.mxu1 %v1547_v53  ;;  %v1557_v60 = vld [vmem:[%s2023_s7 + $0x64] ss:$16 sps:$4 sm:$0xff]   ;;  %v1559_v61 = vld [vmem:[%s2023_s7 + $0x6c] ss:$16 sps:$4 sm:$0xff]   ;;  %v1561_v62 = vld [vmem:[%s2023_s7 + $0x60] ss:$16 sps:$4 sm:$0xff]  }
  0x58   : > { %v1562_v63 = vld [vmem:[%s2023_s7 + $0x68] ss:$16 sps:$4 sm:$0xff]   ;;  %v1563_v0 = vld [vmem:[%s2023_s7 + $0x84] ss:$16 sps:$4 sm:$0xff]   ;;  %v1565_v1 = vld [vmem:[%s2023_s7 + $0x8c] ss:$16 sps:$4 sm:$0xff]  }
  0x59   : > { %1092 = vmatpush1.bf16.msra.mxu0 %v1549_v54  ;;  %1178 = vmatpush1.bf16.msra.mxu1 %v1550_v55  ;;  %v1567_v2 = vld [vmem:[%s2023_s7 + $0x80] ss:$16 sps:$4 sm:$0xff]   ;;  %v1568_v3 = vld [vmem:[%s2023_s7 + $0x88] ss:$16 sps:$4 sm:$0xff]   ;;  %v1569_v4 = vld [vmem:[%s2023_s7 + $0xa4] ss:$16 sps:$4 sm:$0xff]  }
  0x5a   : > { %1093 = vmatprep.subr.bf16.mxu0 %v1551_v56  ;;  %1179 = vmatprep.subr.bf16.mxu1 %v1553_v57  ;;  %v1571_v5 = vld [vmem:[%s2023_s7 + $0xac] ss:$16 sps:$4 sm:$0xff]   ;;  %v1573_v6 = vld [vmem:[%s2023_s7 + $0xa0] ss:$16 sps:$4 sm:$0xff]   ;;  %v1574_v7 = vld [vmem:[%s2023_s7 + $0xa8] ss:$16 sps:$4 sm:$0xff]  }
  0x5b   : > { %v1575_v8 = vld [vmem:[%s2023_s7 + $0xc4] ss:$16 sps:$4 sm:$0xff]   ;;  %v1577_v9 = vld [vmem:[%s2023_s7 + $0xcc] ss:$16 sps:$4 sm:$0xff]   ;;  %v1579_v10 = vld [vmem:[%s2023_s7 + $0xc0] ss:$16 sps:$4 sm:$0xff]  }
  0x5c   : > { %v1580_v11 = vld [vmem:[%s2023_s7 + $0xc8] ss:$16 sps:$4 sm:$0xff]   ;;  %v1581_v12 = vld [vmem:[%s2023_s7 + $0xe4] ss:$16 sps:$4 sm:$0xff]   ;;  %v1583_v13 = vld [vmem:[%s2023_s7 + $0xec] ss:$16 sps:$4 sm:$0xff]  }
  0x5d   : > { %1094 = vmatpush1.bf16.msra.mxu0 %v1555_v58  ;;  %1180 = vmatpush1.bf16.msra.mxu1 %v1556_v59  ;;  %v1585_v14 = vld [vmem:[%s2023_s7 + $0xe0] ss:$16 sps:$4 sm:$0xff]   ;;  %v1586_v15 = vld [vmem:[%s2023_s7 + $0xe8] ss:$16 sps:$4 sm:$0xff]   ;;  %v1587_v16 = vld [vmem:[%s2023_s7 + $0x104] ss:$16 sps:$4 sm:$0xff]  }
  0x5e   : > { %1095 = vmatprep.subr.bf16.mxu0 %v1557_v60  ;;  %1181 = vmatprep.subr.bf16.mxu1 %v1559_v61  ;;  %v1589_v17 = vld [vmem:[%s2023_s7 + $0x10c] ss:$16 sps:$4 sm:$0xff]   ;;  %v1591_v18 = vld [vmem:[%s2023_s7 + $0x100] ss:$16 sps:$4 sm:$0xff]   ;;  %v1592_v19 = vld [vmem:[%s2023_s7 + $0x108] ss:$16 sps:$4 sm:$0xff]  }
  0x5f   : > { %v1593_v20 = vld [vmem:[%s2023_s7 + $0x124] ss:$16 sps:$4 sm:$0xff]   ;;  %v1595_v21 = vld [vmem:[%s2023_s7 + $0x12c] ss:$16 sps:$4 sm:$0xff]   ;;  %v1597_v22 = vld [vmem:[%s2023_s7 + $0x120] ss:$16 sps:$4 sm:$0xff]  }
  0x60   : > { %v1598_v23 = vld [vmem:[%s2023_s7 + $0x128] ss:$16 sps:$4 sm:$0xff]   ;;  %v1599_v24 = vld [vmem:[%s2023_s7 + $0x144] ss:$16 sps:$4 sm:$0xff]   ;;  %v1601_v25 = vld [vmem:[%s2023_s7 + $0x14c] ss:$16 sps:$4 sm:$0xff]  }
  0x61   : > { %1096 = vmatpush1.bf16.msra.mxu0 %v1561_v62  ;;  %1182 = vmatpush1.bf16.msra.mxu1 %v1562_v63  ;;  %v1603_v26 = vld [vmem:[%s2023_s7 + $0x140] ss:$16 sps:$4 sm:$0xff]   ;;  %v1604_v27 = vld [vmem:[%s2023_s7 + $0x148] ss:$16 sps:$4 sm:$0xff]   ;;  %v1605_v28 = vld [vmem:[%s2023_s7 + $0x164] ss:$16 sps:$4 sm:$0xff]  }
  0x62   : > { %1097 = vmatprep.subr.bf16.mxu0 %v1563_v0  ;;  %1183 = vmatprep.subr.bf16.mxu1 %v1565_v1  ;;  %v1607_v29 = vld [vmem:[%s2023_s7 + $0x16c] ss:$16 sps:$4 sm:$0xff]   ;;  %v1609_v30 = vld [vmem:[%s2023_s7 + $0x160] ss:$16 sps:$4 sm:$0xff]   ;;  %v1610_v31 = vld [vmem:[%s2023_s7 + $0x168] ss:$16 sps:$4 sm:$0xff]  }
  0x63   : > { %v1611_v32 = vld [vmem:[%s2023_s7 + $0x184] ss:$16 sps:$4 sm:$0xff]   ;;  %v1613_v33 = vld [vmem:[%s2023_s7 + $0x18c] ss:$16 sps:$4 sm:$0xff]   ;;  %v1615_v34 = vld [vmem:[%s2023_s7 + $0x180] ss:$16 sps:$4 sm:$0xff]  }
  0x64   : > { %v1616_v35 = vld [vmem:[%s2023_s7 + $0x188] ss:$16 sps:$4 sm:$0xff]   ;;  %v1617_v36 = vld [vmem:[%s2023_s7 + $0x1a4] ss:$16 sps:$4 sm:$0xff]   ;;  %v1619_v37 = vld [vmem:[%s2023_s7 + $0x1ac] ss:$16 sps:$4 sm:$0xff]  }
  0x65   : > { %1098 = vmatpush1.bf16.msra.mxu0 %v1567_v2  ;;  %1184 = vmatpush1.bf16.msra.mxu1 %v1568_v3  ;;  %v1621_v38 = vld [vmem:[%s2023_s7 + $0x1a0] ss:$16 sps:$4 sm:$0xff]   ;;  %v1622_v39 = vld [vmem:[%s2023_s7 + $0x1a8] ss:$16 sps:$4 sm:$0xff]   ;;  %v1623_v40 = vld [vmem:[%s2023_s7 + $0x1c4] ss:$16 sps:$4 sm:$0xff]  }
  0x66   : > { %1099 = vmatprep.subr.bf16.mxu0 %v1569_v4  ;;  %1185 = vmatprep.subr.bf16.mxu1 %v1571_v5  ;;  %v1625_v41 = vld [vmem:[%s2023_s7 + $0x1cc] ss:$16 sps:$4 sm:$0xff]   ;;  %v1627_v42 = vld [vmem:[%s2023_s7 + $0x1c0] ss:$16 sps:$4 sm:$0xff]   ;;  %v1628_v43 = vld [vmem:[%s2023_s7 + $0x1c8] ss:$16 sps:$4 sm:$0xff]  }
  0x67   : > { %v1629_v44 = vld [vmem:[%s2023_s7 + $0x1e4] ss:$16 sps:$4 sm:$0xff]   ;;  %v1631_v45 = vld [vmem:[%s2023_s7 + $0x1ec] ss:$16 sps:$4 sm:$0xff]   ;;  %v1633_v46 = vld [vmem:[%s2023_s7 + $0x1e0] ss:$16 sps:$4 sm:$0xff]  }
  0x68   : > { %v1634_v47 = vld [vmem:[%s2023_s7 + $0x1e8] ss:$16 sps:$4 sm:$0xff]   ;;  %v1640_v48 = vld [vmem:[%s2023_s7 + $0x204] ss:$16 sps:$4 sm:$0xff]   ;;  %v1643_v49 = vld [vmem:[%s2023_s7 + $0x20c] ss:$16 sps:$4 sm:$0xff]  }
  0x69   : > { %1100 = vmatpush1.bf16.msra.mxu0 %v1573_v6  ;;  %1186 = vmatpush1.bf16.msra.mxu1 %v1574_v7  ;;  %v1635_v50 = vld [vmem:[%s2182_s0] ss:$16 sps:$4 sm:$0xff]   ;;  %v1641_v52 = vld [vmem:[%s2023_s7 + $0x208] ss:$16 sps:$4 sm:$0xff]   ;;  %v1646_v53 = vld [vmem:[%s2023_s7 + $0x224] ss:$16 sps:$4 sm:$0xff]  }
  0x6a   : > { %1101 = vmatprep.subr.bf16.mxu0 %v1575_v8  ;;  %1187 = vmatprep.subr.bf16.mxu1 %v1577_v9  ;;  %v1638_v51 = vld [vmem:[%s2023_s7 + $0x200] ss:$16 sps:$4 sm:$0xff]   ;;  %v1649_v54 = vld [vmem:[%s2023_s7 + $0x22c] ss:$16 sps:$4 sm:$0xff]   ;;  %v1647_v57 = vld [vmem:[%s2023_s7 + $0x228] ss:$16 sps:$4 sm:$0xff]  }
  0x6b   : > { %v1704_v55 = vld [vmem:[%s2182_s0 + $0xc] ss:$16 sps:$4 sm:$0xff]   ;;  %v1644_v56 = vld [vmem:[%s2023_s7 + $0x220] ss:$16 sps:$4 sm:$0xff]   ;;  %v1652_v58 = vld [vmem:[%s2023_s7 + $0x244] ss:$16 sps:$4 sm:$0xff]  }
  0x6c   : > { %v1655_v59 = vld [vmem:[%s2023_s7 + $0x24c] ss:$16 sps:$4 sm:$0xff]   ;;  %v1650_v60 = vld [vmem:[%s2023_s7 + $0x240] ss:$16 sps:$4 sm:$0xff]   ;;  %v1653_v61 = vld [vmem:[%s2023_s7 + $0x248] ss:$16 sps:$4 sm:$0xff]  }
  0x6d   : > { %1102 = vmatpush1.bf16.msra.mxu0 %v1579_v10  ;;  %1188 = vmatpush1.bf16.msra.mxu1 %v1580_v11  ;;  %v1658_v62 = vld [vmem:[%s2023_s7 + $0x264] ss:$16 sps:$4 sm:$0xff]   ;;  %v1661_v63 = vld [vmem:[%s2023_s7 + $0x26c] ss:$16 sps:$4 sm:$0xff]   ;;  %v1656_v0 = vld [vmem:[%s2023_s7 + $0x260] ss:$16 sps:$4 sm:$0xff]  }
  0x6e   : > { %1103 = vmatprep.subr.bf16.mxu0 %v1581_v12  ;;  %1189 = vmatprep.subr.bf16.mxu1 %v1583_v13  ;;  %v1659_v1 = vld [vmem:[%s2023_s7 + $0x268] ss:$16 sps:$4 sm:$0xff]   ;;  %v1664_v2 = vld [vmem:[%s2023_s7 + $0x284] ss:$16 sps:$4 sm:$0xff]   ;;  %v1667_v3 = vld [vmem:[%s2023_s7 + $0x28c] ss:$16 sps:$4 sm:$0xff]  }
  0x6f   : > { %v1662_v4 = vld [vmem:[%s2023_s7 + $0x280] ss:$16 sps:$4 sm:$0xff]   ;;  %v1665_v5 = vld [vmem:[%s2023_s7 + $0x288] ss:$16 sps:$4 sm:$0xff]   ;;  %v1670_v6 = vld [vmem:[%s2023_s7 + $0x2a4] ss:$16 sps:$4 sm:$0xff]  }
  0x70   : > { %v1673_v7 = vld [vmem:[%s2023_s7 + $0x2ac] ss:$16 sps:$4 sm:$0xff]   ;;  %v1668_v8 = vld [vmem:[%s2023_s7 + $0x2a0] ss:$16 sps:$4 sm:$0xff]   ;;  %v1671_v9 = vld [vmem:[%s2023_s7 + $0x2a8] ss:$16 sps:$4 sm:$0xff]  }
  0x71   : > { %1104 = vmatpush1.bf16.msra.mxu0 %v1585_v14  ;;  %1190 = vmatpush1.bf16.msra.mxu1 %v1586_v15  ;;  %v1676_v10 = vld [vmem:[%s2023_s7 + $0x2c4] ss:$16 sps:$4 sm:$0xff]   ;;  %v1679_v11 = vld [vmem:[%s2023_s7 + $0x2cc] ss:$16 sps:$4 sm:$0xff]   ;;  %v1674_v12 = vld [vmem:[%s2023_s7 + $0x2c0] ss:$16 sps:$4 sm:$0xff]  }
  0x72   : > { %1105 = vmatprep.subr.bf16.mxu0 %v1587_v16  ;;  %1191 = vmatprep.subr.bf16.mxu1 %v1589_v17  ;;  %v1677_v13 = vld [vmem:[%s2023_s7 + $0x2c8] ss:$16 sps:$4 sm:$0xff]   ;;  %v1682_v14 = vld [vmem:[%s2023_s7 + $0x2e4] ss:$16 sps:$4 sm:$0xff]   ;;  %v1685_v15 = vld [vmem:[%s2023_s7 + $0x2ec] ss:$16 sps:$4 sm:$0xff]  }
  0x73   : > { %v1680_v16 = vld [vmem:[%s2023_s7 + $0x2e0] ss:$16 sps:$4 sm:$0xff]   ;;  %v1683_v17 = vld [vmem:[%s2023_s7 + $0x2e8] ss:$16 sps:$4 sm:$0xff]   ;;  %s1494_s12 = sshll.u32 (%p1782_p5), %s1366_s15, 5 }
  0x74   : > { %s1278_s27 = scalar_lea.vmem (%p1782_p5), %s2185_s3, %s1494_s12 }
  0x75   : > { %1106 = vmatpush1.bf16.msra.mxu0 %v1591_v18  ;;  %1192 = vmatpush1.bf16.msra.mxu1 %v1592_v19  ;;  %v1688_v18 = vld [vmem:[%s2023_s7 + $0x304] ss:$16 sps:$4 sm:$0xff]   ;;  %v1691_v19 = vld [vmem:[%s2023_s7 + $0x30c] ss:$16 sps:$4 sm:$0xff]  }
  0x76   : > { %1107 = vmatprep.subr.bf16.mxu0 %v1593_v20  ;;  %1193 = vmatprep.subr.bf16.mxu1 %v1595_v21  ;;  %v1686_v20 = vld [vmem:[%s2023_s7 + $0x300] ss:$16 sps:$4 sm:$0xff]   ;;  %v1689_v21 = vld [vmem:[%s2023_s7 + $0x308] ss:$16 sps:$4 sm:$0xff]  }
  0x79   : > { %1108 = vmatpush1.bf16.msra.mxu0 %v1597_v22  ;;  %1194 = vmatpush1.bf16.msra.mxu1 %v1598_v23  ;;  %v1694_v22 = vld [vmem:[%s2023_s7 + $0x324] ss:$16 sps:$4 sm:$0xff]   ;;  %v1697_v23 = vld [vmem:[%s2023_s7 + $0x32c] ss:$16 sps:$4 sm:$0xff]  }
  0x7a   : > { %1109 = vmatprep.subr.bf16.mxu0 %v1599_v24  ;;  %1195 = vmatprep.subr.bf16.mxu1 %v1601_v25  ;;  %v1692_v24 = vld [vmem:[%s2023_s7 + $0x320] ss:$16 sps:$4 sm:$0xff]   ;;  %v1695_v25 = vld [vmem:[%s2023_s7 + $0x328] ss:$16 sps:$4 sm:$0xff]  }
  0x7d   : > { %1110 = vmatpush1.bf16.msra.mxu0 %v1603_v26  ;;  %1196 = vmatpush1.bf16.msra.mxu1 %v1604_v27  ;;  %v1700_v26 = vld [vmem:[%s2023_s7 + $0x344] ss:$16 sps:$4 sm:$0xff]   ;;  %v1703_v27 = vld [vmem:[%s2023_s7 + $0x34c] ss:$16 sps:$4 sm:$0xff]  }
  0x7e   : > { %1111 = vmatprep.subr.bf16.mxu0 %v1605_v28  ;;  %1197 = vmatprep.subr.bf16.mxu1 %v1607_v29  ;;  %v1698_v28 = vld [vmem:[%s2023_s7 + $0x340] ss:$16 sps:$4 sm:$0xff]   ;;  %v1701_v29 = vld [vmem:[%s2023_s7 + $0x348] ss:$16 sps:$4 sm:$0xff]  }
  0x81   : > { %1112 = vmatpush1.bf16.msra.mxu0 %v1609_v30  ;;  %1198 = vmatpush1.bf16.msra.mxu1 %v1610_v31  ;;  %v1706_v30 = vld [vmem:[%s2182_s0 + $0x8] ss:$16 sps:$4 sm:$0xff]  }
  0x82   : > { %1113 = vmatprep.subr.bf16.mxu0 %v1611_v32  ;;  %1199 = vmatprep.subr.bf16.mxu1 %v1613_v33 }
  0x85   : > { %1114 = vmatpush1.bf16.msra.mxu0 %v1615_v34  ;;  %1200 = vmatpush1.bf16.msra.mxu1 %v1616_v35 }
  0x86   : > { %1115 = vmatprep.subr.bf16.mxu0 %v1617_v36  ;;  %1201 = vmatprep.subr.bf16.mxu1 %v1619_v37 }
  0x89   : > { %1116 = vmatpush1.bf16.msra.mxu0 %v1621_v38  ;;  %1202 = vmatpush1.bf16.msra.mxu1 %v1622_v39 }
  0x8a   : > { %1117 = vmatprep.subr.bf16.mxu0 %v1623_v40  ;;  %1203 = vmatprep.subr.bf16.mxu1 %v1625_v41 }
  0x8d   : > { %1118 = vmatpush1.bf16.msra.mxu0 %v1627_v42  ;;  %1204 = vmatpush1.bf16.msra.mxu1 %v1628_v43 }
  0x8e   : > { %1119 = vmatprep.subr.bf16.mxu0 %v1629_v44  ;;  %1205 = vmatprep.subr.bf16.mxu1 %v1631_v45 }
  0x91   : > { %1120 = vmatpush1.bf16.msra.mxu0 %v1633_v46  ;;  %1206 = vmatpush1.bf16.msra.mxu1 %v1634_v47 }
  0x92   : > { %1132 = vmatprep.subr.bf16.mxu0 %v1640_v48  ;;  %1218 = vmatprep.subr.bf16.mxu1 %v1643_v49 }
  0x94   : > { %1122 = vmatmul.mubr.bf16.vlgmr.msra.gmra.mrb[0].mxu0 %v1635_v50  ;;  %1208 = vmatmul.mubr.bf16.vlgmr.msra.gmra.mrb[0].mxu1 %v1635_v50 }
  0x95   : > { %1133 = vmatpush1.bf16.msra.mxu0 %v1638_v51  ;;  %1219 = vmatpush1.bf16.msra.mxu1 %v1641_v52 }
  0x96   : > { %1134 = vmatprep.subr.bf16.mxu0 %v1646_v53  ;;  %1220 = vmatprep.subr.bf16.mxu1 %v1649_v54 }
  0x97   : > { %1486 = vmatprep.mubr.msk.bf16.mxu0 %vm1085_vm0, %v1704_v55  ;;  %1487 = vmatprep.mubr.msk.bf16.mxu1 %vm1085_vm0, %v1704_v55 }
  0x99   : > { %1135 = vmatpush1.bf16.msra.mxu0 %v1644_v56  ;;  %1221 = vmatpush1.bf16.msra.mxu1 %v1647_v57 }
  0x9a   : > { %1136 = vmatprep.subr.bf16.mxu0 %v1652_v58  ;;  %1222 = vmatprep.subr.bf16.mxu1 %v1655_v59 }
  0x9d   : > { %1137 = vmatpush1.bf16.msra.mxu0 %v1650_v60  ;;  %1223 = vmatpush1.bf16.msra.mxu1 %v1653_v61 }
  0x9e   : > { %1138 = vmatprep.subr.bf16.mxu0 %v1658_v62  ;;  %1224 = vmatprep.subr.bf16.mxu1 %v1661_v63 }
  0xa1   : > { %1139 = vmatpush1.bf16.msra.mxu0 %v1656_v0  ;;  %1225 = vmatpush1.bf16.msra.mxu1 %v1659_v1 }
  0xa2   : > { %1140 = vmatprep.subr.bf16.mxu0 %v1664_v2  ;;  %1226 = vmatprep.subr.bf16.mxu1 %v1667_v3 }
  0xa5   : > { %1141 = vmatpush1.bf16.msra.mxu0 %v1662_v4  ;;  %1227 = vmatpush1.bf16.msra.mxu1 %v1665_v5 }
  0xa6   : > { %1142 = vmatprep.subr.bf16.mxu0 %v1670_v6  ;;  %1228 = vmatprep.subr.bf16.mxu1 %v1673_v7 }
  0xa9   : > { %1143 = vmatpush1.bf16.msra.mxu0 %v1668_v8  ;;  %1229 = vmatpush1.bf16.msra.mxu1 %v1671_v9 }
  0xaa   : > { %1144 = vmatprep.subr.bf16.mxu0 %v1676_v10  ;;  %1230 = vmatprep.subr.bf16.mxu1 %v1679_v11 }
  0xad   : > { %1145 = vmatpush1.bf16.msra.mxu0 %v1674_v12  ;;  %1231 = vmatpush1.bf16.msra.mxu1 %v1677_v13 }
  0xae   : > { %1146 = vmatprep.subr.bf16.mxu0 %v1682_v14  ;;  %1232 = vmatprep.subr.bf16.mxu1 %v1685_v15 }
  0xb1   : > { %1147 = vmatpush1.bf16.msra.mxu0 %v1680_v16  ;;  %1233 = vmatpush1.bf16.msra.mxu1 %v1683_v17 }
  0xb2   : > { %1148 = vmatprep.subr.bf16.mxu0 %v1688_v18  ;;  %1234 = vmatprep.subr.bf16.mxu1 %v1691_v19 }
  0xb5   : > { %1149 = vmatpush1.bf16.msra.mxu0 %v1686_v20  ;;  %1235 = vmatpush1.bf16.msra.mxu1 %v1689_v21 }
  0xb6   : > { %1150 = vmatprep.subr.bf16.mxu0 %v1694_v22  ;;  %1236 = vmatprep.subr.bf16.mxu1 %v1697_v23 }
  0xb9   : > { %1151 = vmatpush1.bf16.msra.mxu0 %v1692_v24  ;;  %1237 = vmatpush1.bf16.msra.mxu1 %v1695_v25 }
  0xba   : > { %1152 = vmatprep.subr.bf16.mxu0 %v1700_v26  ;;  %1238 = vmatprep.subr.bf16.mxu1 %v1703_v27 }
  0xbd   : > { %1153 = vmatpush1.bf16.msra.mxu0 %v1698_v28  ;;  %1239 = vmatpush1.bf16.msra.mxu1 %v1701_v29 }
  0xc0   : > { %1165 = vmatmul.mubr.bf16.vlgmr.msra.gmra.mrb[0].mxu0 %v1706_v30  ;;  %1251 = vmatmul.mubr.bf16.vlgmr.msra.gmra.mrb[0].mxu1 %v1706_v30 }
  0xcf   : > { %v519_v31 = vpop.permute.xlu0 %518 }
  0xd5   : > { %v524_v32 = vpop.permute.xlu0 %523 }
 0x193   : > { %v1166_v33 = vpop.f32.mrb[0].mxu0  ;;  %v1252_v34 = vpop.f32.mrb[0].mxu1  ;;  %1275 = sbr.rel (!%p1782_p5) target bundleno = 418 (0x1a2), region = 59 }
 0x194   : > { %v1495_v35 = vadd.f32 %v1166_v33, %v519_v31  ;;  %v1499_v36 = vadd.f32 %v1252_v34, %v519_v31  ;;  %v1168_v37 = vpop.f32.mrb[1].mxu0  ;;  %v1254_v38 = vpop.f32.mrb[1].mxu1 }
 0x195   : > { %v1496_v39 = vadd.f32 %v1168_v37, %v519_v31  ;;  %v1500_v40 = vadd.f32 %v1254_v38, %v519_v31  ;;  %v1170_v41 = vpop.f32.mrb[2].mxu0  ;;  %v1256_v42 = vpop.f32.mrb[2].mxu1 }
 0x196   : > { %1261 = vst [vmem:[%s2147_s24] sm:$0xff] %v1495_v35  ;;  %1263 = vst [vmem:[%s2147_s24 + $0x10] sm:$0xff] %v1499_v36  ;;  %v1497_v43 = vadd.f32 %v1170_v41, %v524_v32  ;;  %v1501_v44 = vadd.f32 %v1256_v42, %v524_v32  ;;  %v1172_v45 = vpop.f32.mrb[3].mxu0  ;;  %v1258_v46 = vpop.f32.mrb[3].mxu1 }
 0x197   : > { %1262 = vst [vmem:[%s2147_s24 + $0x8] sm:$0xff] %v1496_v39  ;;  %1264 = vst [vmem:[%s2147_s24 + $0x18] sm:$0xff] %v1500_v40  ;;  %v1498_v47 = vadd.f32 %v1172_v45, %v524_v32  ;;  %v1502_v48 = vadd.f32 %v1258_v46, %v524_v32 }
 0x198   : > { %1265 = vst [vmem:[%s2147_s24 + $0x20] sm:$0xff] %v1497_v43  ;;  %1267 = vst [vmem:[%s2147_s24 + $0x30] sm:$0xff] %v1501_v44 }
 0x199   : > { %1266 = vst [vmem:[%s2147_s24 + $0x28] sm:$0xff] %v1498_v47  ;;  %1268 = vst [vmem:[%s2147_s24 + $0x38] sm:$0xff] %v1502_v48 }
 0x19d   : > { %v1291_v49 = vld [vmem:[%s2147_s24] sm:$0xff]  ;;  %v1295_v51 = vld [vmem:[%s2147_s24 + $0x10] sm:$0xff] }
 0x19e   : > { %v1293_v50 = vld [vmem:[%s2147_s24 + $0x8] sm:$0xff]  ;;  %v1297_v52 = vld [vmem:[%s2147_s24 + $0x18] sm:$0xff]  ;;  %1292 = vst [vmem:[%s1278_s27] sm:$0xff] %v1291_v49  ;;  %1296 = vst [vmem:[%s1278_s27 + $0x10] sm:$0xff] %v1295_v51 }
 0x19f   : > { %v1299_v53 = vld [vmem:[%s2147_s24 + $0x20] sm:$0xff]  ;;  %1294 = vst [vmem:[%s1278_s27 + $0x8] sm:$0xff] %v1293_v50  ;;  %1298 = vst [vmem:[%s1278_s27 + $0x18] sm:$0xff] %v1297_v52  ;;  %v1303_v55 = vld [vmem:[%s2147_s24 + $0x30] sm:$0xff] }
 0x1a0   : > { %v1301_v54 = vld [vmem:[%s2147_s24 + $0x28] sm:$0xff]  ;;  %1300 = vst [vmem:[%s1278_s27 + $0x40] sm:$0xff] %v1299_v53  ;;  %v1305_v56 = vld [vmem:[%s2147_s24 + $0x38] sm:$0xff]  ;;  %1304 = vst [vmem:[%s1278_s27 + $0x50] sm:$0xff] %v1303_v55 }
 0x1a1   : > { %1302 = vst [vmem:[%s1278_s27 + $0x48] sm:$0xff] %v1301_v54  ;;  %1306 = vst [vmem:[%s1278_s27 + $0x58] sm:$0xff] %v1305_v56 }
 0x1a2 PF: > { %p10_p10 = scmp.ge.s32.totalorder %s1769_s16, 4   ;;  %s2187_s12 = smov %s1725_s13 }
 0x1a3   : > { %s2188_s13 = smov %s1780_s19  ;;  %s2189_s14 = smov %s1769_s16 }
 0x1a4   :  { %12 = sbr.rel (!%p10_p10) target bundleno = 2 (0x2), region = 113 }

// kernel: network_forward.185
= control target key start
LH: loop header
LB: loop body
LE: loop exit
PB: predicated region body
PF: predicated region fallthrough
CT: control target
= control target key end

     0   :  { %s501_s12 = smov 0   ;;  %s503_s13 = smov 0   ;;  %s559_s0 = inlined_call_operand.vmem [shape: bf16[2,16], index: 0, kind: input, shape index: {}]   ;;  %s560_s1 = inlined_call_operand.vmem [shape: bf16[16,1024], index: 1, kind: input, shape index: {}]   ;;  %s561_s2 = inlined_call_operand.vmem [shape: f32[2,1], index: 2, kind: input, shape index: {}]   ;;  %s562_s3 = inlined_call_operand.vmem [shape: f32[2,1024], index: 3, kind: output, shape index: {}]  }
   0x1   :  { %s505_s14 = smov 0  }
   0x2 LB: > { %s402_s15 = sadd.s32 4294967295, %s477_s14   ;;  %s518_s16 = sadd.s32 1, %s477_s14   ;;  %s477_s14 = sphi %s505_s14, %s565_s14   ;;  %s473_s13 = sphi %s503_s13, %s564_s13   ;;  %s469_s12 = sphi %s501_s12, %s563_s12  }
   0x3   : > { %s38_s17 = ssub.s32 %s477_s14, %s518_s16  ;;  %s41_s18 = sadd.s32 1, %s473_s13 }
   0x4   : > { %p39_p0 = scmp.eq.s32.totalorder %s38_s17, 0  ;;  %p48_p1 = scmp.ne.s32.totalorder %s473_s13, %s469_s12 }
   0x5   : > { %p49_p2 = scmp.eq.s32.totalorder %s477_s14, 0  ;;  %p405_p4 = scmp.ge.s32.totalorder %s477_s14, 2 }
   0x6   : > { %s527_s19 = scalar_select %p39_p0, %s473_s13, %s41_s18  }
   0x7   : > { %p50_p3 = por %p49_p2, %p48_p1  ;;  %127 = sbr.rel (%p405_p4) target bundleno = 21 (0x15), region = 24 }
   0xe   : > { %130 = sbr.rel (!%p50_p3) target bundleno = 21 (0x15), region = 28  ;;  %s132_s20 = sand.u32 (%p50_p3), 1, %s473_s13  }
   0xf   : > { %s421_s21 = sshll.u32 (%p50_p3), %s477_s14, 4  ;;  %s406_s22 = sshll.u32 (%p50_p3), %s132_s20, 5 }
  0x10   : > { %s137_s25 = scalar_lea.vmem (%p50_p3), %s560_s1, %s421_s21  ;;  %s134_s26 = scalar_lea.vmem (%p50_p3), [#allocation2], %s406_s22 }
  0x11   : > { %v150_v0 = vld [vmem:[%s137_s25] sm:$0xff] (%p50_p3)  ;;  %v152_v1 = vld [vmem:[%s137_s25 + $0x8] sm:$0xff] (%p50_p3) }
  0x12   : > { %v154_v2 = vld [vmem:[%s137_s25 + $0x20] sm:$0xff] (%p50_p3)  ;;  %151 = vst [vmem:[%s134_s26] sm:$0xff] (%p50_p3), %v150_v0  ;;  %153 = vst [vmem:[%s134_s26 + $0x8] sm:$0xff] (%p50_p3), %v152_v1  ;;  %v156_v3 = vld [vmem:[%s137_s25 + $0x28] sm:$0xff] (%p50_p3) }
  0x13   : > { %155 = vst [vmem:[%s134_s26 + $0x10] sm:$0xff] (%p50_p3), %v154_v2  ;;  %157 = vst [vmem:[%s134_s26 + $0x18] sm:$0xff] (%p50_p3), %v156_v3 }
  0x15 PF: > { %p409_p5 = scmp.ge.s32.totalorder %s477_s14, 1  ;;  %p162_p6 = scmp.lt.s32.totalorder %s477_s14, 3 }
  0x17   : > { %p163_p7 = pnand %p409_p5, %p162_p6 }
  0x18   : > { %s169_s27 = sand.u32 (!%p163_p7), 1, %s469_s12   ;;  %v479_v4 = vmov (!%p163_p7), 0   ;;  %v205_v5 = vld [vmem:[%s561_s2] sm:$0x3] (!%p163_p7)  ;;  %vm231_vm0 = vcmask (!%p163_p7), 130048   ;;  %s411_s7 = sshll.u32 (!%p163_p7), %s402_s15, 2  ;;  %v326_v13 = vlaneseq (!%p163_p7) }
  0x19   : > { %166 = sbr.rel (%p163_p7) target bundleno = 254 (0xfe), region = 51  ;;  %s410_s28 = sshll.u32 (!%p163_p7), %s169_s27, 5  ;;  %267 = vmatprep.mubr.bf16.mxu0 (!%p163_p7), %v479_v4  ;;  %308 = vmatprep.mubr.bf16.mxu1 (!%p163_p7), %v479_v4  ;;  %v200_v10 = vld [vmem:[%s559_s0] sm:$0x1] (!%p163_p7)  ;;  %v480_v11 = vmov (!%p163_p7), 1983009808  }
  0x1a   : > { %448 = vset.pattern.permute.xlu0 (!%p163_p7), %v479_v4  ;;  %s171_s4 = scalar_lea.vmem (!%p163_p7), [#allocation2], %s410_s28  ;;  %v324_v12 = vunpack.c.l.s4 (!%p163_p7), %v480_v11  ;;  %p194_p8 = scmp.lt.s32.totalorder (!%p163_p7), %s411_s7, 7  ;;  %v327_v16 = vshrl.u32 (!%p163_p7), %v326_v13, 7 }
  0x1b   : > { %v449_v6 = vld [vmem:[%s171_s4 + $0x4] ss:$16 sps:$4 sm:$0xff] (!%p163_p7)   ;;  %208 = vperm.xlu0 (!%p163_p7), %448, %v205_v5   ;;  %v451_v7 = vld [vmem:[%s171_s4 + $0xc] ss:$16 sps:$4 sm:$0xff] (!%p163_p7)   ;;  %v453_v8 = vld [vmem:[%s171_s4] ss:$16 sps:$4 sm:$0xff] (!%p163_p7)  }
  0x1c   : > { %235 = vmatprep.subr.bf16.mxu0 (!%p163_p7), %v449_v6  ;;  %v454_v9 = vld [vmem:[%s171_s4 + $0x8] ss:$16 sps:$4 sm:$0xff] (!%p163_p7)   ;;  %276 = vmatprep.subr.bf16.mxu1 (!%p163_p7), %v451_v7  ;;  %v325_v15 = vunpack.c.0.s8 (!%p163_p7), %v324_v12 }
  0x1d   : > { %236 = vmatpush1.bf16.msra.mxu0 (!%p163_p7), %v453_v8  ;;  %277 = vmatpush1.bf16.msra.mxu1 (!%p163_p7), %v454_v9 }
  0x1e   : > { %v328_v24 = vsub.s32 (!%p163_p7), %v325_v15, %v327_v16 }
  0x20   : > { %417 = vmatmul.mubr.msk.bf16.vlgmr.msra.gmra.mrb[0].mxu0 %vm231_vm0, %v200_v10  ;;  %418 = vmatmul.mubr.msk.bf16.vlgmr.msra.gmra.mrb[0].mxu1 %vm231_vm0, %v200_v10  ;;  %s567_s7 = smov (!%p194_p8, %s411_s7), 7 }
  0x21   : > { %s412_s8 = sshll.u32 %s567_s7, 1 }
  0x22   : > { %s197_s11 = scalar_lea.vmem %s562_s3, %s412_s8 }
  0x9a   : > { %v209_v14 = vpop.permute.xlu0 %208 }
  0xf3   : > { %v269_v17 = vpop.f32.mrb[0].mxu0  ;;  %v310_v18 = vpop.f32.mrb[0].mxu1 }
  0xf4   : > { %v270_v19 = vadd.f32 %v269_v17, %v209_v14  ;;  %v311_v20 = vadd.f32 %v310_v18, %v209_v14  ;;  %v271_v21 = vpop.f32.mrb[1].mxu0  ;;  %v312_v22 = vpop.f32.mrb[1].mxu1 }
  0xf5   : > { %v272_v23 = vadd.f32 %v271_v21, %v209_v14  ;;  %v313_v25 = vadd.f32 %v312_v22, %v209_v14  ;;  %v273_v26 = vpop.f32.mrb[2].mxu0  ;;  %v314_v27 = vpop.f32.mrb[2].mxu1 }
  0xf6   : > { %v274_v28 = vpop.f32.mrb[3].mxu0  ;;  %v315_v29 = vpop.f32.mrb[3].mxu1 }
  0xf7   : > { %v321_v30 = vcombine.low %v270_v19, %v272_v23  ;;  %v322_v31 = vcombine.low %v311_v20, %v313_v25 }
  0xf9   : > { %v329_v32 = vrot.slane %v321_v30, %v328_v24  ;;  %v336_v33 = vrot.slane %v322_v31, %v328_v24 }
  0xfb   : > { %v337_v34 = vcombine.low %v329_v32, %v336_v33 }
  0xfd   : > { %339 = vst [vmem:[%s197_s11] sm:$0xff] %v337_v34 }
  0xfe PF: > { %p10_p9 = scmp.ge.s32.totalorder %s518_s16, 4   ;;  %s563_s12 = smov %s473_s13 }
  0xff   : > { %s564_s13 = smov %s527_s19  ;;  %s565_s14 = smov %s518_s16 }
 0x100   :  { %12 = sbr.rel (!%p10_p9) target bundleno = 2 (0x2), region = 90 }

</bundles_post_ra>
